<compile_context>
chip_gen: v6e
topology: v6e:2x2x1
jax: 0.10.0
libtpu: 0.0.40
codegen_flags: <defaults>
</compile_context>

<pallas_src>
import jax
import jax.numpy as jnp
from jax import lax
from jax.experimental import pallas as pl
from jax.experimental.pallas import tpu as pltpu


OC3 = 336        # stage3 output channels (== MLPHead in_features)
OC3_PAD = 384    # padded to 3 * 128 for lane-dense conv output / head input
HIDDEN = 32
OUT_DIM = 2


# ----------------------------------------------------------------------------
# VMEM sizing helpers
# ----------------------------------------------------------------------------
def _vmem_capacity_bytes():
    try:
        return int(pltpu.get_tpu_info().vmem_capacity_bytes)
    except Exception:
        return 64 * 1024 * 1024          # conservative fallback (v7x physical)


def _choose_rows_per_chunk(H, W, C, budget_bytes):
    """Rows of conv output processed per in-kernel chunk.

    Footprint that scales with the chunk: the f32 (rows*W, OC3_PAD) conv
    activation plus a couple of live bf16 (rows*W, C) tap relayout copies.
    Picks the largest divisor of H that fits the budget (rows=1 always
    exists), so there is never an over-budget fallback tile."""
    def footprint(rows):
        pix = rows * W
        return pix * OC3_PAD * 4 + 4 * pix * C * 2
    for rows in sorted((d for d in range(1, H + 1) if H % d == 0), reverse=True):
        if footprint(rows) <= budget_bytes:
            return rows
    return 1


# ----------------------------------------------------------------------------
# Fused Pallas kernel:
#   in-kernel im2col (9 shifted taps) + 9 accumulating matmuls + bias + ReLU
#   + global-avg-pool + Linear + ReLU + Linear        -> one (1, 2) row per b
# ----------------------------------------------------------------------------
def _make_kernel(W, C, rows_per_chunk, num_chunks, inv_hw):
    rc = rows_per_chunk

    def conv_chunk_sum(x_ref, w3_ref, b3_ref, row0):
        """ReLU(conv3x3)+spatial-sum for output rows [row0, row0+rc)."""
        acc = None
        for t in range(9):                                   # static 3x3 taps
            di, dj = divmod(t, 3)
            # shifted window of the spatially padded image: (rc, W, C) bf16
            tap = x_ref[pl.ds(row0 + di, rc), pl.ds(dj, W), :]
            part = jnp.dot(tap.reshape(rc * W, C), w3_ref[t],
                           preferred_element_type=jnp.float32)
            acc = part if acc is None else acc + part        # (rc*W, OC3_PAD) f32
        y = jnp.maximum(acc + b3_ref[...], 0.0)              # bias + ReLU (f32, v5e-safe)
        return jnp.sum(y, axis=0, keepdims=True)             # (1, OC3_PAD) partial pool

    def kernel(x_ref, w3_ref, b3_ref, w1_ref, b1_ref, w2_ref, b2_ref, out_ref):
        if num_chunks == 1:                                   # demo path: fully static
            total = conv_chunk_sum(x_ref, w3_ref, b3_ref, 0)
        else:                                                 # large images: bounded VMEM
            total = lax.fori_loop(
                0, num_chunks,
                lambda i, s: s + conv_chunk_sum(x_ref, w3_ref, b3_ref, i * rc),
                jnp.zeros((1, OC3_PAD), jnp.float32))

        pooled = total * inv_hw                               # global average pool
        # MLP head (tiny, f32), fused into the same grid step.
        h = jnp.dot(pooled, w1_ref[...], preferred_element_type=jnp.float32)
        h = jnp.maximum(h + b1_ref[...], 0.0)                 # dropout: eval identity
        o = jnp.dot(h, w2_ref[...], preferred_element_type=jnp.float32)
        out_ref[...] = o + b2_ref[...]                        # (1, OUT_DIM)

    return kernel


def fginet_stage3_head(x_padded, w3, b3, w1, b1, w2, b2, H, W):
    """x_padded: (B, H+2, W+2, C) bf16 (one halo frame per batch element).
       w3: (9, C, OC3_PAD) bf16; biases / head weights f32."""
    B, Hp, Wp, C = x_padded.shape

    # --- VMEM budgeting (generation-aware) ----------------------------------
    capacity = _vmem_capacity_bytes()
    vmem_limit = min(int(capacity * 0.75), 100 * 1024 * 1024)   # ~96 MiB v5e/v6e, ~48 MiB v7x
    img_block_bytes = Hp * Wp * C * 2                           # bf16 frame per grid step
    weight_bytes = (w3.size * 2 +
                    (b3.size + w1.size + b1.size + w2.size + b2.size) * 4)
    # budget for chunk-scaled intermediates: half of what is left after the
    # double-buffered input frame and the resident weights (headroom for
    # Mosaic temporaries / relayout copies).
    chunk_budget = max((vmem_limit - 2 * img_block_bytes - weight_bytes) // 2,
                       256 * 1024)
    rows = _choose_rows_per_chunk(H, W, C, chunk_budget)
    num_chunks = H // rows

    flops = (2 * B * H * W * 9 * C * OC3_PAD
             + 2 * B * (OC3_PAD * HIDDEN + HIDDEN * OUT_DIM))
    bytes_accessed = (x_padded.size * 2 + weight_bytes + B * OUT_DIM * 4)

    def full_spec(a):                 # whole array, constant index map -> DMA'd once
        n = a.ndim
        return pl.BlockSpec(a.shape, lambda b, _n=n: (0,) * _n)

    out = pl.pallas_call(
        _make_kernel(W, C, rows, num_chunks, 1.0 / float(H * W)),
        # (B, 1, OUT_DIM) so the block's trailing dims equal the full array
        # dims (satisfies the (8,128) block constraint for a tiny output).
        out_shape=jax.ShapeDtypeStruct((B, 1, OUT_DIM), jnp.float32),
        grid_spec=pltpu.PrefetchScalarGridSpec(
            num_scalar_prefetch=0,
            grid=(B,),
            in_specs=[
                pl.BlockSpec((None, Hp, Wp, C), lambda b: (b, 0, 0, 0)),
                full_spec(w3), full_spec(b3), full_spec(w1),
                full_spec(b1), full_spec(w2), full_spec(b2),
            ],
            out_specs=pl.BlockSpec((None, 1, OUT_DIM), lambda b: (b, 0, 0)),
        ),
        compiler_params=pltpu.CompilerParams(
            dimension_semantics=("parallel",),       # batch shards across v7x's 2 TCs
            vmem_limit_bytes=vmem_limit,
        ),
        cost_estimate=pl.CostEstimate(flops=flops, transcendentals=0,
                                      bytes_accessed=bytes_accessed),
    )(x_padded, w3, b3, w1, b1, w2, b2)
    return out.reshape(B, OUT_DIM)


# ----------------------------------------------------------------------------
# Parameter init (deterministic, synthetic) — only params the output depends on
# ----------------------------------------------------------------------------
def init_params(key, in_ch):
    ks = jax.random.split(key, 6)
    return {
        "s3_w": 0.05 * jax.random.normal(ks[0], (3, 3, in_ch, OC3), jnp.float32),
        "s3_b": 0.05 * jax.random.normal(ks[1], (1, OC3), jnp.float32),
        "h_w1": 0.05 * jax.random.normal(ks[2], (OC3, HIDDEN), jnp.float32),
        "h_b1": 0.05 * jax.random.normal(ks[3], (1, HIDDEN), jnp.float32),
        "h_w2": 0.05 * jax.random.normal(ks[4], (HIDDEN, OUT_DIM), jnp.float32),
        "h_b2": 0.05 * jax.random.normal(ks[5], (1, OUT_DIM), jnp.float32),
    }


# ----------------------------------------------------------------------------
# Full FGINet forward
# ----------------------------------------------------------------------------
def fginet_forward(params, x_nchw):
    # NOTE: x1 = stage1(x), x2 = stage2(x) are dead in the PyTorch forward;
    # they are intentionally not computed (output is identical).
    x = jnp.transpose(x_nchw, (0, 2, 3, 1)).astype(jnp.bfloat16)      # NCHW -> NHWC
    B, H, W, C = x.shape
    x_padded = jnp.pad(x, ((0, 0), (1, 1), (1, 1), (0, 0)))           # 3x3 'same' halo

    # Conv weight: (3,3,C,OC3) -> per-tap (9, C, OC3_PAD). Padded columns /
    # lanes / rows below are exact zeros, so the padded channels never feed
    # the head (ReLU(0 + 0) = 0, w1 pad rows = 0).
    w3 = jnp.pad(params["s3_w"], ((0, 0), (0, 0), (0, 0), (0, OC3_PAD - OC3)))
    w3 = w3.reshape(9, C, OC3_PAD).astype(jnp.bfloat16)
    b3 = jnp.pad(params["s3_b"], ((0, 0), (0, OC3_PAD - OC3)))
    w1 = jnp.pad(params["h_w1"], ((0, OC3_PAD - OC3), (0, 0)))

    return fginet_stage3_head(x_padded, w3, b3, w1,
                              params["h_b1"], params["h_w2"], params["h_b2"],
                              H, W)


def fginet_reference(params, x_nchw):
    """Pure-JAX f32 reference for correctness checking."""
    x = jnp.transpose(x_nchw, (0, 2, 3, 1)).astype(jnp.float32)
    B, H, W, C = x.shape
    xp = jnp.pad(x, ((0, 0), (1, 1), (1, 1), (0, 0)))
    taps = [xp[:, di:di + H, dj:dj + W, :] for di in range(3) for dj in range(3)]
    patches = jnp.stack(taps, axis=3).reshape(B, H * W, 9 * C)
    w3 = params["s3_w"].reshape(9 * C, OC3)
    y = jnp.einsum("bpk,ko->bpo", patches, w3) + params["s3_b"][None]
    x3 = jnp.mean(jnp.maximum(y, 0.0), axis=1)
    h = jnp.maximum(x3 @ params["h_w1"] + params["h_b1"], 0.0)
    return h @ params["h_w2"] + params["h_b2"]


if __name__ == "__main__":
    key = jax.random.PRNGKey(0)
    k_x, k_p = jax.random.split(key)

    B, C, H, W = 2, 4, 16, 16
    x = jax.random.normal(k_x, (B, C, H, W), jnp.float32)
    params = init_params(k_p, C)

    fwd = jax.jit(fginet_forward)
    out = jax.block_until_ready(fwd(params, x))
    ref = jax.block_until_ready(fginet_reference(params, x))

    assert out.shape == (B, OUT_DIM), out.shape
    # bf16 conv operands vs f32 reference -> ~1e-2 relative precision contract.
    assert jnp.allclose(out, ref, atol=1e-2, rtol=1e-2), (out, ref)
    print("KERNEL_OK")
</pallas_src>

<mosaic_0001>
module attributes {stable_mosaic.version = 11 : i64} {
  func.func @kernel(%arg0: i32, %arg1: memref<1x18x18x4xbf16, #tpu.memory_space<vmem>>, %arg2: memref<9x4x384xbf16, #tpu.memory_space<vmem>>, %arg3: memref<1x384xf32, #tpu.memory_space<vmem>>, %arg4: memref<384x32xf32, #tpu.memory_space<vmem>>, %arg5: memref<1x32xf32, #tpu.memory_space<vmem>>, %arg6: memref<32x2xf32, #tpu.memory_space<vmem>>, %arg7: memref<1x2xf32, #tpu.memory_space<vmem>>, %arg8: memref<1x1x2xf32, #tpu.memory_space<vmem>>) attributes {dimension_semantics = [#tpu.dimension_semantics<parallel>], iteration_bounds = array<i64: 2>, scalar_prefetch = 0 : i64, scratch_operands = 0 : i64, tpu.core_type = #tpu.core_type<tc>, window_params = [{transform_indices = @transform_0, window_bounds = array<i64: 1, 18, 18, 4>}, {pipeline_mode = #tpu.pipeline_mode<synchronous>, transform_indices = @transform_1, window_bounds = array<i64: 9, 4, 384>}, {pipeline_mode = #tpu.pipeline_mode<synchronous>, transform_indices = @transform_2, window_bounds = array<i64: 1, 384>}, {pipeline_mode = #tpu.pipeline_mode<synchronous>, transform_indices = @transform_3, window_bounds = array<i64: 384, 32>}, {pipeline_mode = #tpu.pipeline_mode<synchronous>, transform_indices = @transform_4, window_bounds = array<i64: 1, 32>}, {pipeline_mode = #tpu.pipeline_mode<synchronous>, transform_indices = @transform_5, window_bounds = array<i64: 32, 2>}, {pipeline_mode = #tpu.pipeline_mode<synchronous>, transform_indices = @transform_6, window_bounds = array<i64: 1, 2>}, {transform_indices = @transform_7, window_bounds = array<i64: 1, 1, 2>}]} {
    %c0 = arith.constant 0 : index
    %c0_0 = arith.constant 0 : index
    %c0_1 = arith.constant 0 : index
    %c0_2 = arith.constant 0 : index
    %0 = vector.load %arg1[%c0, %c0_0, %c0_1, %c0_2] : memref<1x18x18x4xbf16, #tpu.memory_space<vmem>>, vector<1x16x16x4xbf16>
    %1 = vector.shape_cast %0 : vector<1x16x16x4xbf16> to vector<16x16x4xbf16>
    %2 = vector.shape_cast %1 : vector<16x16x4xbf16> to vector<256x4xbf16>
    %c0_3 = arith.constant 0 : index
    %c0_4 = arith.constant 0 : index
    %c0_5 = arith.constant 0 : index
    %3 = vector.load %arg2[%c0_3, %c0_4, %c0_5] : memref<9x4x384xbf16, #tpu.memory_space<vmem>>, vector<1x4x384xbf16>
    %4 = vector.shape_cast %3 : vector<1x4x384xbf16> to vector<4x384xbf16>
    %cst = arith.constant dense<0.000000e+00> : vector<256x384xf32>
    %5 = tpu.matmul %2, %4, %cst {dimension_numbers = #tpu.dot_dimension_numbers<[1], [0], [0], [1], [0, 0, 1, 1], [], []>} : vector<256x4xbf16>, vector<4x384xbf16>, vector<256x384xf32> -> vector<256x384xf32>
    %c0_6 = arith.constant 0 : index
    %c0_7 = arith.constant 0 : index
    %c1 = arith.constant 1 : index
    %c0_8 = arith.constant 0 : index
    %6 = vector.load %arg1[%c0_6, %c0_7, %c1, %c0_8] : memref<1x18x18x4xbf16, #tpu.memory_space<vmem>>, vector<1x16x16x4xbf16>
    %7 = vector.shape_cast %6 : vector<1x16x16x4xbf16> to vector<16x16x4xbf16>
    %8 = vector.shape_cast %7 : vector<16x16x4xbf16> to vector<256x4xbf16>
    %c1_9 = arith.constant 1 : index
    %c0_10 = arith.constant 0 : index
    %c0_11 = arith.constant 0 : index
    %9 = vector.load %arg2[%c1_9, %c0_10, %c0_11] : memref<9x4x384xbf16, #tpu.memory_space<vmem>>, vector<1x4x384xbf16>
    %10 = vector.shape_cast %9 : vector<1x4x384xbf16> to vector<4x384xbf16>
    %cst_12 = arith.constant dense<0.000000e+00> : vector<256x384xf32>
    %11 = tpu.matmul %8, %10, %cst_12 {dimension_numbers = #tpu.dot_dimension_numbers<[1], [0], [0], [1], [0, 0, 1, 1], [], []>} : vector<256x4xbf16>, vector<4x384xbf16>, vector<256x384xf32> -> vector<256x384xf32>
    %12 = arith.addf %5, %11 : vector<256x384xf32>
    %c0_13 = arith.constant 0 : index
    %c0_14 = arith.constant 0 : index
    %c2 = arith.constant 2 : index
    %c0_15 = arith.constant 0 : index
    %13 = vector.load %arg1[%c0_13, %c0_14, %c2, %c0_15] : memref<1x18x18x4xbf16, #tpu.memory_space<vmem>>, vector<1x16x16x4xbf16>
    %14 = vector.shape_cast %13 : vector<1x16x16x4xbf16> to vector<16x16x4xbf16>
    %15 = vector.shape_cast %14 : vector<16x16x4xbf16> to vector<256x4xbf16>
    %c2_16 = arith.constant 2 : index
    %c0_17 = arith.constant 0 : index
    %c0_18 = arith.constant 0 : index
    %16 = vector.load %arg2[%c2_16, %c0_17, %c0_18] : memref<9x4x384xbf16, #tpu.memory_space<vmem>>, vector<1x4x384xbf16>
    %17 = vector.shape_cast %16 : vector<1x4x384xbf16> to vector<4x384xbf16>
    %cst_19 = arith.constant dense<0.000000e+00> : vector<256x384xf32>
    %18 = tpu.matmul %15, %17, %cst_19 {dimension_numbers = #tpu.dot_dimension_numbers<[1], [0], [0], [1], [0, 0, 1, 1], [], []>} : vector<256x4xbf16>, vector<4x384xbf16>, vector<256x384xf32> -> vector<256x384xf32>
    %19 = arith.addf %12, %18 : vector<256x384xf32>
    %c0_20 = arith.constant 0 : index
    %c1_21 = arith.constant 1 : index
    %c0_22 = arith.constant 0 : index
    %c0_23 = arith.constant 0 : index
    %20 = vector.load %arg1[%c0_20, %c1_21, %c0_22, %c0_23] : memref<1x18x18x4xbf16, #tpu.memory_space<vmem>>, vector<1x16x16x4xbf16>
    %21 = vector.shape_cast %20 : vector<1x16x16x4xbf16> to vector<16x16x4xbf16>
    %22 = vector.shape_cast %21 : vector<16x16x4xbf16> to vector<256x4xbf16>
    %c3 = arith.constant 3 : index
    %c0_24 = arith.constant 0 : index
    %c0_25 = arith.constant 0 : index
    %23 = vector.load %arg2[%c3, %c0_24, %c0_25] : memref<9x4x384xbf16, #tpu.memory_space<vmem>>, vector<1x4x384xbf16>
    %24 = vector.shape_cast %23 : vector<1x4x384xbf16> to vector<4x384xbf16>
    %cst_26 = arith.constant dense<0.000000e+00> : vector<256x384xf32>
    %25 = tpu.matmul %22, %24, %cst_26 {dimension_numbers = #tpu.dot_dimension_numbers<[1], [0], [0], [1], [0, 0, 1, 1], [], []>} : vector<256x4xbf16>, vector<4x384xbf16>, vector<256x384xf32> -> vector<256x384xf32>
    %26 = arith.addf %19, %25 : vector<256x384xf32>
    %c0_27 = arith.constant 0 : index
    %c1_28 = arith.constant 1 : index
    %c1_29 = arith.constant 1 : index
    %c0_30 = arith.constant 0 : index
    %27 = vector.load %arg1[%c0_27, %c1_28, %c1_29, %c0_30] : memref<1x18x18x4xbf16, #tpu.memory_space<vmem>>, vector<1x16x16x4xbf16>
    %28 = vector.shape_cast %27 : vector<1x16x16x4xbf16> to vector<16x16x4xbf16>
    %29 = vector.shape_cast %28 : vector<16x16x4xbf16> to vector<256x4xbf16>
    %c4 = arith.constant 4 : index
    %c0_31 = arith.constant 0 : index
    %c0_32 = arith.constant 0 : index
    %30 = vector.load %arg2[%c4, %c0_31, %c0_32] : memref<9x4x384xbf16, #tpu.memory_space<vmem>>, vector<1x4x384xbf16>
    %31 = vector.shape_cast %30 : vector<1x4x384xbf16> to vector<4x384xbf16>
    %cst_33 = arith.constant dense<0.000000e+00> : vector<256x384xf32>
    %32 = tpu.matmul %29, %31, %cst_33 {dimension_numbers = #tpu.dot_dimension_numbers<[1], [0], [0], [1], [0, 0, 1, 1], [], []>} : vector<256x4xbf16>, vector<4x384xbf16>, vector<256x384xf32> -> vector<256x384xf32>
    %33 = arith.addf %26, %32 : vector<256x384xf32>
    %c0_34 = arith.constant 0 : index
    %c1_35 = arith.constant 1 : index
    %c2_36 = arith.constant 2 : index
    %c0_37 = arith.constant 0 : index
    %34 = vector.load %arg1[%c0_34, %c1_35, %c2_36, %c0_37] : memref<1x18x18x4xbf16, #tpu.memory_space<vmem>>, vector<1x16x16x4xbf16>
    %35 = vector.shape_cast %34 : vector<1x16x16x4xbf16> to vector<16x16x4xbf16>
    %36 = vector.shape_cast %35 : vector<16x16x4xbf16> to vector<256x4xbf16>
    %c5 = arith.constant 5 : index
    %c0_38 = arith.constant 0 : index
    %c0_39 = arith.constant 0 : index
    %37 = vector.load %arg2[%c5, %c0_38, %c0_39] : memref<9x4x384xbf16, #tpu.memory_space<vmem>>, vector<1x4x384xbf16>
    %38 = vector.shape_cast %37 : vector<1x4x384xbf16> to vector<4x384xbf16>
    %cst_40 = arith.constant dense<0.000000e+00> : vector<256x384xf32>
    %39 = tpu.matmul %36, %38, %cst_40 {dimension_numbers = #tpu.dot_dimension_numbers<[1], [0], [0], [1], [0, 0, 1, 1], [], []>} : vector<256x4xbf16>, vector<4x384xbf16>, vector<256x384xf32> -> vector<256x384xf32>
    %40 = arith.addf %33, %39 : vector<256x384xf32>
    %c0_41 = arith.constant 0 : index
    %c2_42 = arith.constant 2 : index
    %c0_43 = arith.constant 0 : index
    %c0_44 = arith.constant 0 : index
    %41 = vector.load %arg1[%c0_41, %c2_42, %c0_43, %c0_44] : memref<1x18x18x4xbf16, #tpu.memory_space<vmem>>, vector<1x16x16x4xbf16>
    %42 = vector.shape_cast %41 : vector<1x16x16x4xbf16> to vector<16x16x4xbf16>
    %43 = vector.shape_cast %42 : vector<16x16x4xbf16> to vector<256x4xbf16>
    %c6 = arith.constant 6 : index
    %c0_45 = arith.constant 0 : index
    %c0_46 = arith.constant 0 : index
    %44 = vector.load %arg2[%c6, %c0_45, %c0_46] : memref<9x4x384xbf16, #tpu.memory_space<vmem>>, vector<1x4x384xbf16>
    %45 = vector.shape_cast %44 : vector<1x4x384xbf16> to vector<4x384xbf16>
    %cst_47 = arith.constant dense<0.000000e+00> : vector<256x384xf32>
    %46 = tpu.matmul %43, %45, %cst_47 {dimension_numbers = #tpu.dot_dimension_numbers<[1], [0], [0], [1], [0, 0, 1, 1], [], []>} : vector<256x4xbf16>, vector<4x384xbf16>, vector<256x384xf32> -> vector<256x384xf32>
    %47 = arith.addf %40, %46 : vector<256x384xf32>
    %c0_48 = arith.constant 0 : index
    %c2_49 = arith.constant 2 : index
    %c1_50 = arith.constant 1 : index
    %c0_51 = arith.constant 0 : index
    %48 = vector.load %arg1[%c0_48, %c2_49, %c1_50, %c0_51] : memref<1x18x18x4xbf16, #tpu.memory_space<vmem>>, vector<1x16x16x4xbf16>
    %49 = vector.shape_cast %48 : vector<1x16x16x4xbf16> to vector<16x16x4xbf16>
    %50 = vector.shape_cast %49 : vector<16x16x4xbf16> to vector<256x4xbf16>
    %c7 = arith.constant 7 : index
    %c0_52 = arith.constant 0 : index
    %c0_53 = arith.constant 0 : index
    %51 = vector.load %arg2[%c7, %c0_52, %c0_53] : memref<9x4x384xbf16, #tpu.memory_space<vmem>>, vector<1x4x384xbf16>
    %52 = vector.shape_cast %51 : vector<1x4x384xbf16> to vector<4x384xbf16>
    %cst_54 = arith.constant dense<0.000000e+00> : vector<256x384xf32>
    %53 = tpu.matmul %50, %52, %cst_54 {dimension_numbers = #tpu.dot_dimension_numbers<[1], [0], [0], [1], [0, 0, 1, 1], [], []>} : vector<256x4xbf16>, vector<4x384xbf16>, vector<256x384xf32> -> vector<256x384xf32>
    %54 = arith.addf %47, %53 : vector<256x384xf32>
    %c0_55 = arith.constant 0 : index
    %c2_56 = arith.constant 2 : index
    %c2_57 = arith.constant 2 : index
    %c0_58 = arith.constant 0 : index
    %55 = vector.load %arg1[%c0_55, %c2_56, %c2_57, %c0_58] : memref<1x18x18x4xbf16, #tpu.memory_space<vmem>>, vector<1x16x16x4xbf16>
    %56 = vector.shape_cast %55 : vector<1x16x16x4xbf16> to vector<16x16x4xbf16>
    %57 = vector.shape_cast %56 : vector<16x16x4xbf16> to vector<256x4xbf16>
    %c8 = arith.constant 8 : index
    %c0_59 = arith.constant 0 : index
    %c0_60 = arith.constant 0 : index
    %58 = vector.load %arg2[%c8, %c0_59, %c0_60] : memref<9x4x384xbf16, #tpu.memory_space<vmem>>, vector<1x4x384xbf16>
    %59 = vector.shape_cast %58 : vector<1x4x384xbf16> to vector<4x384xbf16>
    %cst_61 = arith.constant dense<0.000000e+00> : vector<256x384xf32>
    %60 = tpu.matmul %57, %59, %cst_61 {dimension_numbers = #tpu.dot_dimension_numbers<[1], [0], [0], [1], [0, 0, 1, 1], [], []>} : vector<256x4xbf16>, vector<4x384xbf16>, vector<256x384xf32> -> vector<256x384xf32>
    %61 = arith.addf %54, %60 : vector<256x384xf32>
    %c0_62 = arith.constant 0 : index
    %c0_63 = arith.constant 0 : index
    %62 = vector.load %arg3[%c0_62, %c0_63] : memref<1x384xf32, #tpu.memory_space<vmem>>, vector<1x384xf32>
    %63 = vector.broadcast %62 : vector<1x384xf32> to vector<256x384xf32>
    %64 = arith.addf %61, %63 : vector<256x384xf32>
    %cst_64 = arith.constant 0.000000e+00 : f32
    %65 = vector.broadcast %cst_64 : f32 to vector<256x384xf32>
    %66 = arith.maximumf %64, %65 : vector<256x384xf32>
    %cst_65 = arith.constant dense<0.000000e+00> : vector<384xf32>
    %67 = vector.multi_reduction <add>, %66, %cst_65 [0] : vector<256x384xf32> to vector<384xf32>
    %68 = vector.shape_cast %67 : vector<384xf32> to vector<1x384xf32>
    %cst_66 = arith.constant 3.906250e-03 : f32
    %69 = vector.broadcast %cst_66 : f32 to vector<1x384xf32>
    %70 = arith.mulf %68, %69 : vector<1x384xf32>
    %c0_67 = arith.constant 0 : index
    %c0_68 = arith.constant 0 : index
    %71 = vector.load %arg4[%c0_67, %c0_68] : memref<384x32xf32, #tpu.memory_space<vmem>>, vector<384x32xf32>
    %cst_69 = arith.constant dense<0.000000e+00> : vector<1x32xf32>
    %72 = tpu.matmul %70, %71, %cst_69 {dimension_numbers = #tpu.dot_dimension_numbers<[1], [0], [0], [1], [0, 0, 1, 1], [], []>} : vector<1x384xf32>, vector<384x32xf32>, vector<1x32xf32> -> vector<1x32xf32>
    %c0_70 = arith.constant 0 : index
    %c0_71 = arith.constant 0 : index
    %73 = vector.load %arg5[%c0_70, %c0_71] : memref<1x32xf32, #tpu.memory_space<vmem>>, vector<1x32xf32>
    %74 = arith.addf %72, %73 : vector<1x32xf32>
    %cst_72 = arith.constant 0.000000e+00 : f32
    %75 = vector.broadcast %cst_72 : f32 to vector<1x32xf32>
    %76 = arith.maximumf %74, %75 : vector<1x32xf32>
    %c0_73 = arith.constant 0 : index
    %c0_74 = arith.constant 0 : index
    %77 = vector.load %arg6[%c0_73, %c0_74] : memref<32x2xf32, #tpu.memory_space<vmem>>, vector<32x2xf32>
    %cst_75 = arith.constant dense<0.000000e+00> : vector<1x2xf32>
    %78 = tpu.matmul %76, %77, %cst_75 {dimension_numbers = #tpu.dot_dimension_numbers<[1], [0], [0], [1], [0, 0, 1, 1], [], []>} : vector<1x32xf32>, vector<32x2xf32>, vector<1x2xf32> -> vector<1x2xf32>
    %c0_76 = arith.constant 0 : index
    %c0_77 = arith.constant 0 : index
    %79 = vector.load %arg7[%c0_76, %c0_77] : memref<1x2xf32, #tpu.memory_space<vmem>>, vector<1x2xf32>
    %80 = arith.addf %78, %79 : vector<1x2xf32>
    %c0_78 = arith.constant 0 : index
    %c0_79 = arith.constant 0 : index
    %c0_80 = arith.constant 0 : index
    %81 = vector.load %arg8[%c0_78, %c0_79, %c0_80] : memref<1x1x2xf32, #tpu.memory_space<vmem>>, vector<1x1x2xf32>
    %82 = vector.shape_cast %81 : vector<1x1x2xf32> to vector<1x2xf32>
    %83 = vector.shape_cast %80 : vector<1x2xf32> to vector<1x1x2xf32>
    tpu.vector_store %arg8[%c0_78, %c0_79, %c0_80], %83 {strides = array<i32>} : memref<1x1x2xf32, #tpu.memory_space<vmem>>, vector<1x1x2xf32>,
    return
  }
  func.func @transform_0(%arg0: i32) -> (i32, i32, i32, i32) {
    %c0_i32 = arith.constant 0 : i32
    %c0_i32_0 = arith.constant 0 : i32
    %c0_i32_1 = arith.constant 0 : i32
    %c0_i32_2 = arith.constant 0 : i32
    return %arg0, %c0_i32, %c0_i32_0, %c0_i32_1 : i32, i32, i32, i32
  }
  func.func @transform_1(%arg0: i32) -> (i32, i32, i32) {
    %c0_i32 = arith.constant 0 : i32
    %c0_i32_0 = arith.constant 0 : i32
    %c0_i32_1 = arith.constant 0 : i32
    %c0_i32_2 = arith.constant 0 : i32
    return %c0_i32, %c0_i32_0, %c0_i32_1 : i32, i32, i32
  }
  func.func @transform_2(%arg0: i32) -> (i32, i32) {
    %c0_i32 = arith.constant 0 : i32
    %c0_i32_0 = arith.constant 0 : i32
    %c0_i32_1 = arith.constant 0 : i32
    return %c0_i32, %c0_i32_0 : i32, i32
  }
  func.func @transform_3(%arg0: i32) -> (i32, i32) {
    %c0_i32 = arith.constant 0 : i32
    %c0_i32_0 = arith.constant 0 : i32
    %c0_i32_1 = arith.constant 0 : i32
    return %c0_i32, %c0_i32_0 : i32, i32
  }
  func.func @transform_4(%arg0: i32) -> (i32, i32) {
    %c0_i32 = arith.constant 0 : i32
    %c0_i32_0 = arith.constant 0 : i32
    %c0_i32_1 = arith.constant 0 : i32
    return %c0_i32, %c0_i32_0 : i32, i32
  }
  func.func @transform_5(%arg0: i32) -> (i32, i32) {
    %c0_i32 = arith.constant 0 : i32
    %c0_i32_0 = arith.constant 0 : i32
    %c0_i32_1 = arith.constant 0 : i32
    return %c0_i32, %c0_i32_0 : i32, i32
  }
  func.func @transform_6(%arg0: i32) -> (i32, i32) {
    %c0_i32 = arith.constant 0 : i32
    %c0_i32_0 = arith.constant 0 : i32
    %c0_i32_1 = arith.constant 0 : i32
    return %c0_i32, %c0_i32_0 : i32, i32
  }
  func.func @transform_7(%arg0: i32) -> (i32, i32, i32) {
    %c0_i32 = arith.constant 0 : i32
    %c0_i32_0 = arith.constant 0 : i32
    %c0_i32_1 = arith.constant 0 : i32
    return %arg0, %c0_i32, %c0_i32_0 : i32, i32, i32
  }
}

</mosaic_0001>

<bundles_post_ra>
// kernel: fginet_forward.1
= control target key start
LH: loop header
LB: loop body
LE: loop exit
PB: predicated region body
PF: predicated region fallthrough
CT: control target
= control target key end

     0   :  { %12 = vsyncpa [#allocation3], 0  ;;  %s14360_s0 = inlined_call_operand.vmem [shape: bf16[2,18,18,4], index: 0, kind: input, shape index: {}]   ;;  %s14361_s1 = inlined_call_operand.vmem [shape: bf16[9,4,384], index: 1, kind: input, shape index: {}]   ;;  %s14362_s2 = inlined_call_operand.vmem [shape: f32[1,384], index: 2, kind: input, shape index: {}]   ;;  %s14363_s3 = inlined_call_operand.vmem [shape: f32[384,32], index: 3, kind: input, shape index: {}]   ;;  %s14364_s4 = inlined_call_operand.vmem [shape: f32[1,32], index: 4, kind: input, shape index: {}]   ;;  %s14365_s5 = inlined_call_operand.vmem [shape: f32[32,2], index: 5, kind: input, shape index: {}]   ;;  %s14366_s6 = inlined_call_operand.vmem [shape: f32[1,2], index: 6, kind: input, shape index: {}]   ;;  %s14367_s7 = inlined_call_operand.hbm [shape: f32[2,1,2], index: 7, kind: output, shape index: {}]  }
   0x1   :  { %14 = vsyncpa [#allocation3 + $0x1], 0  ;;  %s9547_s24 = smov 0   ;;  %s9549_s25 = smov 0  }
   0x2   :  { %s9551_s26 = smov 0   ;;  %s9553_s27 = smov 0  }
   0x3 LB: > { %s9568_s28 = sadd.s32 4294967295, %s9500_s27   ;;  %s8002_s29 = sadd.s32 4294967294, %s9500_s27   ;;  %s9500_s27 = sphi %s9553_s27, %s15415_s27   ;;  %s9496_s26 = sphi %s9551_s26, %s15414_s26   ;;  %s9492_s25 = sphi %s9549_s25, %s15413_s25   ;;  %s9488_s24 = sphi %s9547_s24, %s15412_s24  }
   0x4   : > { %s9572_s30 = sadd.s32 1, %s9500_s27   ;;  %s179_s8 = sadd.s32 1, %s9496_s26 }
   0x5   : > { %s176_s9 = ssub.s32 %s9500_s27, %s9572_s30  ;;  %p189_p0 = scmp.ne.s32.totalorder %s9496_s26, %s9492_s25 }
   0x6   : > { %p177_p1 = scmp.eq.s32.totalorder %s176_s9, 0  ;;  %p190_p2 = scmp.eq.s32.totalorder %s9568_s28, 1 }
   0x7   : > { %p195_p3 = scmp.ne.s32.totalorder %s9492_s25, %s9488_s24  ;;  %p196_p4 = scmp.eq.s32.totalorder %s8002_s29, 1 }
   0x8   : > { %s9583_s10 = scalar_select %p177_p1, %s9496_s26, %s179_s8  }
   0x9   : > { %p9585_p5 = por %p190_p2, %p189_p0  ;;  %p9589_p6 = por %p196_p4, %p195_p3 }
   0xa   : > { %p8005_p7 = scmp.ge.s32.totalorder %s9500_s27, 1  ;;  %p240_p8 = scmp.lt.s32.totalorder %s9500_s27, 3 }
   0xc   : > { %p241_p9 = pnand %p8005_p7, %p240_p8 }
   0xe   : > { %244 = sbr.rel (%p241_p9) target bundleno = 1578 (0x62a), region = 48 }
  0x13   : > { %v768_v0 = vlaneseq  ;;  %v9502_v1 = vmov 1983009808   ;;  %v14368_v3 = vmov 0   ;;  %p271_p10 = scmp.lt.s32.totalorder %s9568_s28, 1  ;;  %v8007_v5 = vld [vmem:[%s14361_s1 + $0x6] sm:$0x3f] }
  0x14   : > { %v766_v2 = vunpack.c.l.s4 %v9502_v1  ;;  %871 = vmatprep.mubr.bf16.mxu0 %v14368_v3  ;;  %1021 = vmatprep.mubr.bf16.mxu1 %v14368_v3  ;;  %v309_v7 = vld [vmem:[%s14361_s1] sm:$0x3f]  ;;  %v764_v8 = vcombine.high %v8007_v5, %v8007_v5  ;;  %vm829_vm0 = vcmask 1041408   ;;  %vm326_vm1 = vsmask.f32 3328  ;;  %s8761_s22 = sshll.u32 %s9568_s28, 4 }
  0x15   : > { %v9598_v4 = vshrl.u32 %v768_v0, 7  ;;  %s272_s17 = scalar_select %p271_p10, %s9568_s28, 1  ;;  %v1274_v9 = vcombine.high %v309_v7, %v309_v7  ;;  %vm327_vm2 = vsmask.f32 7440  ;;  %vm780_vm3 = vcmask 31744  }
  0x16   : > { %v767_v6 = vunpack.c.0.s8 %v766_v2  ;;  %vm9648_vm4 = vmor %vm326_vm1, %vm327_vm2  ;;  %v14386_v43 = vmov 0  ;;  %vm1797_vm5 = vcmask 1042432   ;;  %vm1798_vm6 = vcmask 1046532   ;;  %s14325_s9 = scalar_lea.hbm %s14367_s7, %s8761_s22  ;;  %s9506_s28 = smov [#allocation2]  }
  0x17   : > { %14384 = vst [vmem:[#allocation5_spill] sm:$0xff] %v9598_v4  ;;  %s9337_s18 = smul.u32 216, %s272_s17  ;;  %v14387_v43 = vsel %vm9648_vm4, 4294967295, %v14386_v43  ;;  %vm10104_vm7 = vmor %vm1797_vm5, %vm1798_vm6  ;;  %vm9505_vm8 = vmmov 0   ;;  %vm7858_vm9 = vcmask 261120   ;;  %vm7932_vm10 = vcmask 8192  }
  0x18   : > { %v9608_v10 = vsub.s32 %v767_v6, %v9598_v4  ;;  %14388 = vst [vmem:[#allocation7_spill] sm:$0xff] %v14387_v43  ;;  %s9444_s15 = sshll.u32 %s9506_s28, 4  ;;  %s9445_s15 = int_to_ptr.vmem [resolvable:$false] %s9444_s15 }
  0x19   : > { %s9614_s21 = scalar_lea.vmem %s14360_s0, %s9337_s18  ;;  %s269_s18 = sand.u32 1, %s9492_s25  }
  0x1a   : > { %14385 = vst [vmem:[#allocation6_spill] sm:$0xff] %v9608_v10  ;;  %v771_v11 = vrot.slane %v8007_v5, %v9608_v10  ;;  %v1288_v12 = vrot.slane %v1274_v9, %v9608_v10  ;;  %v9618_v13 = vld [vmem:[%s9614_s21] sm:$0xf]  ;;  %v9621_v14 = vld [vmem:[%s9614_s21 + $0x4] sm:$0xf]  ;;  %v778_v16 = vrot.slane %v764_v8, %v9608_v10  ;;  %v9626_v17 = vrot.slane %v309_v7, %v9608_v10  ;;  %s7935_s13 = scalar_lea.sflag [#allocation3], %s269_s18 }
  0x1b   : > { %v310_v15 = vld [vmem:[%s9614_s21 + $0x8] sm:$0x1]  ;;  %v330_v20 = vshrl.u32 %v9618_v13, 16  ;;  %v333_v21 = vshll.u32 %v9618_v13, 16  ;;  %v307_v22 = vld [vmem:[%s9614_s21 + $0xb4] sm:$0xf] }
  0x1c   : > { %v779_v18 = vcombine.high %v771_v11, %v771_v11  ;;  %v831_v19 = vsel %vm829_vm0, %v771_v11, 0  ;;  %v339_v23 = vshll.u32 %v9621_v14, 16  ;;  %v343_v24 = vshrl.u32 %v9621_v14, 16  ;;  %v308_v26 = vld [vmem:[%s9614_s21 + $0xb8] sm:$0xf]  ;;  %s9446_s16 = scalar_lea.vmem %s9445_s15, 32 }
  0x1d   : > { %v349_v25 = vshll.u32 %v310_v15, 16  ;;  %v690_v27 = vshrl.u32 %v307_v22, 16  ;;  %v332_v28 = vrot.slane %v330_v20, 4  ;;  %v335_v29 = vrot.slane %v333_v21, 5  ;;  %v325_v30 = vld [vmem:[%s9614_s21 + $0xbc] sm:$0x1] }
  0x1e   : > { %8024 = vmatprep.subr.msk.bf16.mxu0 %vm829_vm0, %v779_v18  ;;  %9326 = vmatprep.subr.msk.bf16.mxu1 %vm829_vm0, %v779_v18  ;;  %v693_v31 = vshll.u32 %v307_v22, 16  ;;  %v699_v32 = vshll.u32 %v308_v26, 16  ;;  %v341_v33 = vrot.slane %v339_v23, 5  ;;  %v345_v34 = vrot.slane %v343_v24, 4  ;;  %v9639_v37 = vld [vmem:[%s9614_s21 + $0xc] sm:$0xf] }
  0x1f   : > { %854 = vmatpush1.bf16.msra.mxu0 %v831_v19  ;;  %9327 = vmatpush1.bf16.msra.mxu1 %v831_v19  ;;  %v351_v35 = vrot.slane %v349_v25, 5  ;;  %v692_v36 = vrot.slane %v690_v27, 4  ;;  %v336_v38 = vor.u32 %v335_v29, %v332_v28  ;;  %v703_v41 = vshrl.u32 %v308_v26, 16  ;;  %v9644_v42 = vld [vmem:[%s9614_s21 + $0x10] sm:$0xf] }
  0x20   : > { %9329 = vmatprep.subr.msk.bf16.mxu0 %vm829_vm0, %v1288_v12  ;;  %v695_v39 = vrot.slane %v693_v31, 5  ;;  %v701_v40 = vrot.slane %v699_v32, 5  ;;  %9328 = vmatprep.subr.msk.bf16.mxu1 %vm829_vm0, %v778_v16  ;;  %v346_v44 = vor.u32 %v345_v34, %v341_v33  ;;  %v709_v45 = vshll.u32 %v325_v30, 16  ;;  %v311_v54 = vld [vmem:[%s9614_s21 + $0x14] sm:$0x1] }
  0x21   : > { %v1345_v46 = vsel %vm829_vm0, %v1288_v12, 0  ;;  %v837_v47 = vsel %vm829_vm0, %v778_v16, 0  ;;  %v337_v48 = vrot.slane %v336_v38, 4  ;;  %v705_v50 = vrot.slane %v703_v41, 4  ;;  %v9661_v61 = vld [vmem:[%s9614_s21 + $0x18] sm:$0xf] }
  0x22   : > { %v696_v49 = vor.u32 %v695_v39, %v692_v36  ;;  %v354_v51 = vshrl.u32 %v9639_v37, 16  ;;  %v347_v52 = vrot.slane %v346_v44, 4  ;;  %v711_v53 = vrot.slane %v709_v45, 5  ;;  %v9667_v2 = vld [vmem:[%s9614_s21 + $0x1c] sm:$0xf] }
  0x23   : > { %v357_v55 = vshll.u32 %v9639_v37, 16  ;;  %v363_v56 = vshll.u32 %v9644_v42, 16  ;;  %v342_v57 = vsel %vm9648_vm4, %v337_v48, %v341_v33  ;;  %v706_v59 = vor.u32 %v705_v50, %v701_v40  ;;  %v312_v12 = vld [vmem:[%s9614_s21 + $0x20] sm:$0x1]  ;;  %v9680_v22 = vld [vmem:[%s9614_s21 + $0x24] sm:$0xf] }
  0x24   : > { %v697_v58 = vrot.slane %v696_v49, 4  ;;  %v356_v60 = vrot.slane %v354_v51, 4  ;;  %v352_v62 = vsel %vm9648_vm4, %v347_v52, %v351_v35  ;;  %v367_v1 = vshrl.u32 %v9644_v42, 16  ;;  %v9686_v27 = vld [vmem:[%s9614_s21 + $0x28] sm:$0xf] }
  0x25   : > { %v359_v63 = vrot.slane %v357_v55, 5  ;;  %v365_v0 = vrot.slane %v363_v56, 5  ;;  %v8008_v5 = vcombine.low %v342_v57, %v352_v62  ;;  %v707_v7 = vrot.slane %v706_v59, 4  ;;  %v9698_v44 = vld [vmem:[%s9614_s21 + $0x30] sm:$0xf] }
  0x26   : > { %v702_v6 = vsel %vm9648_vm4, %v697_v58, %v701_v40  ;;  %v373_v8 = vshll.u32 %v311_v54, 16  ;;  %v369_v11 = vrot.slane %v367_v1, 4  ;;  %v378_v15 = vshrl.u32 %v9661_v61, 16  ;;  %v313_v40 = vld [vmem:[%s9614_s21 + $0x2c] sm:$0x1] }
  0x27   : > { %v360_v9 = vor.u32 %v359_v63, %v356_v60  ;;  %v381_v16 = vshll.u32 %v9661_v61, 16  ;;  %8025 = vmatmul.mubr.msk.bf16.vlgmr.msra.gmra.mxu0 %vm780_vm3, %v8008_v5  ;;  %v712_v18 = vsel %vm9648_vm4, %v707_v7, %v711_v53  ;;  %v387_v20 = vshll.u32 %v9667_v2, 16  ;;  %v314_v60 = vld [vmem:[%s9614_s21 + $0x38] sm:$0x1] }
  0x28   : > { %v375_v19 = vrot.slane %v373_v8, 5  ;;  %v391_v21 = vshrl.u32 %v9667_v2, 16  ;;  %v9682_v23 = vcombine.low %v702_v6, %v712_v18  ;;  %9009 = vmatpush3.bf16.msra.mxu0 %v1345_v46  ;;  %881 = vmatprep.mubr.bf16.mxu0 %v14368_v3  ;;  %v370_v25 = vor.u32 %v369_v11, %v365_v0  ;;  %v9720_v8 = vld [vmem:[%s9614_s21 + $0x40] sm:$0xf] }
  0x29   : > { %v361_v24 = vrot.slane %v360_v9, 4  ;;  %v380_v26 = vrot.slane %v378_v15, 4  ;;  %v383_v28 = vrot.slane %v381_v16, 5  ;;  %v389_v29 = vrot.slane %v387_v20, 5  ;;  %v315_v20 = vld [vmem:[%s9614_s21 + $0x44] sm:$0x1] }
  0x2a   : > { %v393_v30 = vrot.slane %v391_v21, 4  ;;  %v397_v31 = vshll.u32 %v312_v12, 16  ;;  %8040 = vmatmul.mubr.msk.bf16.vlgmr.msra.gmra.mxu1 %vm780_vm3, %v9682_v23  ;;  %v371_v33 = vrot.slane %v370_v25, 4  ;;  %v402_v34 = vshrl.u32 %v9680_v22, 16 }
  0x2b   : > { %v366_v32 = vsel %vm9648_vm4, %v361_v24, %v365_v0  ;;  %v405_v35 = vshll.u32 %v9680_v22, 16  ;;  %8975 = vmatpush3.bf16.msra.mxu1 %v837_v47  ;;  %8976 = vmatprep.mubr.msk.bf16.mxu1 %vm780_vm3, %v8008_v5  ;;  %v384_v36 = vor.u32 %v383_v28, %v380_v26  ;;  %v411_v41 = vshll.u32 %v9686_v27, 16  ;;  %v9704_v47 = vld [vmem:[%s9614_s21 + $0x34] sm:$0xf]  ;;  %v9716_v0 = vld [vmem:[%s9614_s21 + $0x3c] sm:$0xf] }
  0x2c   : > { %v394_v38 = vor.u32 %v393_v30, %v389_v29  ;;  %v399_v39 = vrot.slane %v397_v31, 5  ;;  %v376_v45 = vsel %vm9648_vm4, %v371_v33, %v375_v19  ;;  %v404_v46 = vrot.slane %v402_v34, 4 }
  0x2d   : > { %v407_v48 = vrot.slane %v405_v35, 5  ;;  %v415_v49 = vshrl.u32 %v9686_v27, 16  ;;  %v8009_v50 = vcombine.low %v366_v32, %v376_v45  ;;  %v385_v51 = vrot.slane %v384_v36, 4 }
  0x2e   : > { %v395_v52 = vrot.slane %v394_v38, 4  ;;  %v413_v53 = vrot.slane %v411_v41, 5  ;;  %v421_v56 = vshll.u32 %v313_v40, 16  ;;  %v426_v57 = vshrl.u32 %v9698_v44, 16 }
  0x2f   : > { %v408_v54 = vor.u32 %v407_v48, %v404_v46  ;;  %v417_v55 = vrot.slane %v415_v49, 4  ;;  %8026 = vmatmul.mubr.msk.bf16.gmra.mxu0 %vm780_vm3, %v8009_v50  ;;  %v390_v58 = vsel %vm9648_vm4, %v385_v51, %v389_v29  ;;  %v429_v62 = vshll.u32 %v9698_v44, 16  ;;  %v9732_v29 = vld [vmem:[%s9614_s21 + $0x48] sm:$0xf]  ;;  %v316_v51 = vld [vmem:[%s9614_s21 + $0x50] sm:$0x1] }
  0x30   : > { %v400_v59 = vsel %vm9648_vm4, %v395_v52, %v399_v39  ;;  %v435_v63 = vshll.u32 %v9704_v47, 16  ;;  %891 = vmatprep.mubr.bf16.mxu0 %v14368_v3  ;;  %v423_v7 = vrot.slane %v421_v56, 5  ;;  %v428_v9 = vrot.slane %v426_v57, 4  ;;  %v9738_v39 = vld [vmem:[%s9614_s21 + $0x4c] sm:$0xf] }
  0x31   : > { %v8010_v1 = vcombine.low %v390_v58, %v400_v59  ;;  %v409_v5 = vrot.slane %v408_v54, 4  ;;  %v418_v6 = vor.u32 %v417_v55, %v413_v53  ;;  %v431_v11 = vrot.slane %v429_v62, 5  ;;  %v9749_v57 = vld [vmem:[%s9614_s21 + $0x54] sm:$0xf] }
  0x32   : > { %v437_v12 = vrot.slane %v435_v63, 5  ;;  %v439_v15 = vshrl.u32 %v9704_v47, 16  ;;  %8977 = vmatmul.mubr.msk.bf16.vlgmr.msra.gmra.mxu1 %vm780_vm3, %v8009_v50  ;;  %v445_v19 = vshll.u32 %v314_v60, 16  ;;  %v450_v21 = vshrl.u32 %v9716_v0, 16  ;;  %v9755_v63 = vld [vmem:[%s9614_s21 + $0x58] sm:$0xf] }
  0x33   : > { %v414_v16 = vsel %vm9648_vm4, %v409_v5, %v413_v53  ;;  %v419_v18 = vrot.slane %v418_v6, 4  ;;  %8980 = vmatprep.mubr.msk.bf16.mxu1 %vm780_vm3, %v8010_v1  ;;  %v432_v24 = vor.u32 %v431_v11, %v428_v9  ;;  %v453_v26 = vshll.u32 %v9716_v0, 16 }
  0x34   : > { %v441_v25 = vrot.slane %v439_v15, 4  ;;  %v459_v28 = vshll.u32 %v9720_v8, 16  ;;  %v447_v31 = vrot.slane %v445_v19, 5  ;;  %v452_v32 = vrot.slane %v450_v21, 4  ;;  %v317_v15 = vld [vmem:[%s9614_s21 + $0x5c] sm:$0x1] }
  0x35   : > { %v424_v30 = vsel %vm9648_vm4, %v419_v18, %v423_v7  ;;  %v463_v33 = vshrl.u32 %v9720_v8, 16  ;;  %v433_v35 = vrot.slane %v432_v24, 4  ;;  %v455_v38 = vrot.slane %v453_v26, 5  ;;  %v9771_v24 = vld [vmem:[%s9614_s21 + $0x60] sm:$0xf] }
  0x36   : > { %v8011_v34 = vcombine.low %v414_v16, %v424_v30  ;;  %v442_v36 = vor.u32 %v441_v25, %v437_v12  ;;  %v461_v40 = vrot.slane %v459_v28, 5  ;;  %v469_v45 = vshll.u32 %v315_v20, 16 }
  0x37   : > { %v465_v41 = vrot.slane %v463_v33, 4  ;;  %v474_v46 = vshrl.u32 %v9732_v29, 16  ;;  %8027 = vmatmul.mubr.msk.bf16.gmra.mxu0 %vm780_vm3, %v8010_v1  ;;  %v438_v48 = vsel %vm9648_vm4, %v433_v35, %v437_v12  ;;  %v456_v50 = vor.u32 %v455_v38, %v452_v32  ;;  %v318_v38 = vld [vmem:[%s9614_s21 + $0x68] sm:$0x1] }
  0x38   : > { %v443_v49 = vrot.slane %v442_v36, 4  ;;  %v477_v52 = vshll.u32 %v9732_v29, 16  ;;  %901 = vmatprep.mubr.bf16.mxu0 %v14368_v3  ;;  %v471_v54 = vrot.slane %v469_v45, 5  ;;  %v483_v56 = vshll.u32 %v9738_v39, 16 }
  0x39   : > { %v466_v53 = vor.u32 %v465_v41, %v461_v40  ;;  %v476_v55 = vrot.slane %v474_v46, 4  ;;  %v457_v59 = vrot.slane %v456_v50, 4  ;;  %v487_v62 = vshrl.u32 %v9738_v39, 16 }
  0x3a   : > { %v448_v58 = vsel %vm9648_vm4, %v443_v49, %v447_v31  ;;  %v479_v60 = vrot.slane %v477_v52, 5  ;;  %8981 = vmatmul.mubr.msk.bf16.gmra.mxu1 %vm780_vm3, %v8011_v34  ;;  %v485_v6 = vrot.slane %v483_v56, 5  ;;  %v493_v7 = vshll.u32 %v316_v51, 16  ;;  %v9776_v31 = vld [vmem:[%s9614_s21 + $0x64] sm:$0xf] }
  0x3b   : > { %v9758_v1 = vcombine.low %v438_v48, %v448_v58  ;;  %v467_v5 = vrot.slane %v466_v53, 4  ;;  %v462_v9 = vsel %vm9648_vm4, %v457_v59, %v461_v40  ;;  %v489_v12 = vrot.slane %v487_v62, 4  ;;  %v9781_v40 = vld [vmem:[%s9614_s21 + $0x6c] sm:$0xf]  ;;  %v9789_v49 = vld [vmem:[%s9614_s21 + $0x70] sm:$0xf] }
  0x3c   : > { %v480_v11 = vor.u32 %v479_v60, %v476_v55  ;;  %v498_v16 = vshrl.u32 %v9749_v57, 16  ;;  %v495_v19 = vrot.slane %v493_v7, 5  ;;  %v501_v20 = vshll.u32 %v9749_v57, 16 }
  0x3d   : > { %8984 = vmatprep.mubr.msk.bf16.mxu1 %vm780_vm3, %v9758_v1  ;;  %v472_v18 = vsel %vm9648_vm4, %v467_v5, %v471_v54  ;;  %v507_v21 = vshll.u32 %v9755_v63, 16  ;;  %v490_v28 = vor.u32 %v489_v12, %v485_v6  ;;  %v511_v35 = vshrl.u32 %v9755_v63, 16  ;;  %v319_v5 = vld [vmem:[%s9614_s21 + $0x74] sm:$0x1]  ;;  %v9803_v12 = vld [vmem:[%s9614_s21 + $0x78] sm:$0xf] }
  0x3e   : > { %v9773_v25 = vcombine.low %v462_v9, %v472_v18  ;;  %v481_v26 = vrot.slane %v480_v11, 4  ;;  %v500_v30 = vrot.slane %v498_v16, 4  ;;  %v503_v32 = vrot.slane %v501_v20, 5  ;;  %v9812_v20 = vld [vmem:[%s9614_s21 + $0x7c] sm:$0xf] }
  0x3f   : > { %v509_v33 = vrot.slane %v507_v21, 5  ;;  %v517_v36 = vshll.u32 %v317_v15, 16  ;;  %8028 = vmatmul.mubr.msk.bf16.gmra.mxu0 %vm780_vm3, %v8011_v34  ;;  %v491_v45 = vrot.slane %v490_v28, 4  ;;  %v522_v46 = vshrl.u32 %v9771_v24, 16 }
  0x40   : > { %v486_v41 = vsel %vm9648_vm4, %v481_v26, %v485_v6  ;;  %v525_v48 = vshll.u32 %v9771_v24, 16  ;;  %911 = vmatprep.mubr.bf16.mxu0 %v14368_v3  ;;  %v504_v50 = vor.u32 %v503_v32, %v500_v30  ;;  %v513_v51 = vrot.slane %v511_v35, 4 }
  0x41   : > { %v519_v52 = vrot.slane %v517_v36, 5  ;;  %v531_v53 = vshll.u32 %v9776_v31, 16  ;;  %v496_v34 = vsel %vm9648_vm4, %v491_v45, %v495_v19  ;;  %v524_v54 = vrot.slane %v522_v46, 4 }
  0x42   : > { %v527_v55 = vrot.slane %v525_v48, 5  ;;  %v535_v56 = vshrl.u32 %v9776_v31, 16  ;;  %8985 = vmatmul.mubr.msk.bf16.gmra.mxu1 %vm780_vm3, %v9773_v25  ;;  %v9798_v58 = vcombine.low %v486_v41, %v496_v34  ;;  %v505_v59 = vrot.slane %v504_v50, 4  ;;  %v9825_v50 = vld [vmem:[%s9614_s21 + $0x84] sm:$0xf] }
  0x43   : > { %v514_v60 = vor.u32 %v513_v51, %v509_v33  ;;  %v533_v62 = vrot.slane %v531_v53, 5  ;;  %v541_v9 = vshll.u32 %v318_v38, 16  ;;  %v546_v11 = vshrl.u32 %v9781_v40, 16  ;;  %v320_v38 = vld [vmem:[%s9614_s21 + $0x80] sm:$0x1] }
  0x44   : > { %v528_v6 = vor.u32 %v527_v55, %v524_v54  ;;  %v537_v7 = vrot.slane %v535_v56, 4  ;;  %8988 = vmatprep.mubr.msk.bf16.mxu1 %vm780_vm3, %v9798_v58  ;;  %v510_v15 = vsel %vm9648_vm4, %v505_v59, %v509_v33  ;;  %v549_v18 = vshll.u32 %v9781_v40, 16 }
  0x45   : > { %v515_v16 = vrot.slane %v514_v60, 4  ;;  %v555_v19 = vshll.u32 %v9789_v49, 16  ;;  %v543_v28 = vrot.slane %v541_v9, 5  ;;  %v548_v30 = vrot.slane %v546_v11, 4 }
  0x46   : > { %v529_v21 = vrot.slane %v528_v6, 4  ;;  %v538_v26 = vor.u32 %v537_v7, %v533_v62  ;;  %v551_v35 = vrot.slane %v549_v18, 5  ;;  %v559_v33 = vshrl.u32 %v9789_v49, 16  ;;  %v9843_v18 = vld [vmem:[%s9614_s21 + $0x90] sm:$0xf] }
  0x47   : > { %v520_v32 = vsel %vm9648_vm4, %v515_v16, %v519_v52  ;;  %v557_v36 = vrot.slane %v555_v19, 5  ;;  %8029 = vmatmul.mubr.msk.bf16.gmra.mxu0 %vm780_vm3, %v9758_v1  ;;  %v565_v48 = vshll.u32 %v319_v5, 16  ;;  %v570_v53 = vshrl.u32 %v9803_v12, 16  ;;  %v9831_v1 = vld [vmem:[%s9614_s21 + $0x88] sm:$0xf] }
  0x48   : > { %v9820_v41 = vcombine.low %v510_v15, %v520_v32  ;;  %v534_v45 = vsel %vm9648_vm4, %v529_v21, %v533_v62  ;;  %v539_v46 = vrot.slane %v538_v26, 4  ;;  %921 = vmatprep.mubr.bf16.mxu0 %v14368_v3  ;;  %v552_v51 = vor.u32 %v551_v35, %v548_v30  ;;  %v321_v16 = vld [vmem:[%s9614_s21 + $0x8c] sm:$0x1]  ;;  %v9852_v30 = vld [vmem:[%s9614_s21 + $0x94] sm:$0xf] }
  0x49   : > { %v561_v52 = vrot.slane %v559_v33, 4  ;;  %v573_v34 = vshll.u32 %v9803_v12, 16  ;;  %v567_v55 = vrot.slane %v565_v48, 5  ;;  %v579_v56 = vshll.u32 %v9812_v20, 16 }
  0x4a   : > { %v544_v54 = vsel %vm9648_vm4, %v539_v46, %v543_v28  ;;  %v583_v59 = vshrl.u32 %v9812_v20, 16  ;;  %8989 = vmatmul.mubr.msk.bf16.gmra.mxu1 %vm780_vm3, %v9820_v41  ;;  %v553_v62 = vrot.slane %v552_v51, 4  ;;  %v572_v6 = vrot.slane %v570_v53, 4 }
  0x4b   : > { %v9839_v60 = vcombine.low %v534_v45, %v544_v54  ;;  %v562_v5 = vor.u32 %v561_v52, %v557_v36  ;;  %v575_v7 = vrot.slane %v573_v34, 5  ;;  %v581_v9 = vrot.slane %v579_v56, 5  ;;  %v322_v54 = vld [vmem:[%s9614_s21 + $0x98] sm:$0x1]  ;;  %v9864_v56 = vld [vmem:[%s9614_s21 + $0x9c] sm:$0xf] }
  0x4c   : > { %v585_v11 = vrot.slane %v583_v59, 4  ;;  %v589_v15 = vshll.u32 %v320_v38, 16  ;;  %v558_v19 = vsel %vm9648_vm4, %v553_v62, %v557_v36  ;;  %v594_v26 = vshrl.u32 %v9825_v50, 16 }
  0x4d   : > { %8992 = vmatprep.mubr.msk.bf16.mxu1 %vm780_vm3, %v9839_v60  ;;  %v563_v21 = vrot.slane %v562_v5, 4  ;;  %v597_v28 = vshll.u32 %v9825_v50, 16  ;;  %v576_v32 = vor.u32 %v575_v7, %v572_v6  ;;  %v603_v38 = vshll.u32 %v9831_v1, 16  ;;  %v9869_v6 = vld [vmem:[%s9614_s21 + $0xa0] sm:$0xf] }
  0x4e   : > { %v586_v35 = vor.u32 %v585_v11, %v581_v9  ;;  %v591_v33 = vrot.slane %v589_v15, 5  ;;  %v596_v46 = vrot.slane %v594_v26, 4  ;;  %v607_v48 = vshrl.u32 %v9831_v1, 16 }
  0x4f   : > { %v568_v45 = vsel %vm9648_vm4, %v563_v21, %v567_v55  ;;  %v599_v36 = vrot.slane %v597_v28, 5  ;;  %8030 = vmatmul.mubr.msk.bf16.gmra.mxu0 %vm780_vm3, %v9773_v25  ;;  %v577_v52 = vrot.slane %v576_v32, 4  ;;  %v605_v34 = vrot.slane %v603_v38, 5  ;;  %v323_v38 = vld [vmem:[%s9614_s21 + $0xa4] sm:$0x1] }
  0x50   : > { %v9860_v51 = vcombine.low %v558_v19, %v568_v45  ;;  %v587_v53 = vrot.slane %v586_v35, 4  ;;  %931 = vmatprep.mubr.bf16.mxu0 %v14368_v3  ;;  %v609_v55 = vrot.slane %v607_v48, 4  ;;  %v613_v62 = vshll.u32 %v321_v16, 16 }
  0x51   : > { %v600_v59 = vor.u32 %v599_v36, %v596_v46  ;;  %v618_v5 = vshrl.u32 %v9843_v18, 16  ;;  %v582_v25 = vsel %vm9648_vm4, %v577_v52, %v581_v9  ;;  %v621_v11 = vshll.u32 %v9843_v18, 16 }
  0x52   : > { %v592_v7 = vsel %vm9648_vm4, %v587_v53, %v591_v33  ;;  %v627_v15 = vshll.u32 %v9852_v30, 16  ;;  %8993 = vmatmul.mubr.msk.bf16.gmra.mxu1 %vm780_vm3, %v9860_v51  ;;  %v610_v21 = vor.u32 %v609_v55, %v605_v34  ;;  %v615_v26 = vrot.slane %v613_v62, 5  ;;  %v9884_v33 = vld [vmem:[%s9614_s21 + $0xa8] sm:$0xf]  ;;  %v9894_v62 = vld [vmem:[%s9614_s21 + $0xac] sm:$0xf] }
  0x53   : > { %v9879_v16 = vcombine.low %v582_v25, %v592_v7  ;;  %v601_v19 = vrot.slane %v600_v59, 4  ;;  %v620_v28 = vrot.slane %v618_v5, 4  ;;  %v623_v32 = vrot.slane %v621_v11, 5 }
  0x54   : > { %v629_v35 = vrot.slane %v627_v15, 5  ;;  %v631_v9 = vshrl.u32 %v9852_v30, 16  ;;  %v611_v46 = vrot.slane %v610_v21, 4  ;;  %v637_v36 = vshll.u32 %v322_v54, 16  ;;  %v324_v21 = vld [vmem:[%s9614_s21 + $0xb0] sm:$0x1] }
  0x55   : > { %8996 = vmatprep.mubr.msk.bf16.mxu1 %vm780_vm3, %v9879_v16  ;;  %v606_v45 = vsel %vm9648_vm4, %v601_v19, %v605_v34  ;;  %v642_v48 = vshrl.u32 %v9864_v56, 16  ;;  %v624_v52 = vor.u32 %v623_v32, %v620_v28  ;;  %v645_v59 = vshll.u32 %v9864_v56, 16 }
  0x56   : > { %v633_v53 = vrot.slane %v631_v9, 4  ;;  %v651_v55 = vshll.u32 %v9869_v6, 16  ;;  %v616_v5 = vsel %vm9648_vm4, %v611_v46, %v615_v26  ;;  %v639_v25 = vrot.slane %v637_v36, 5 }
  0x57   : > { %v644_v7 = vrot.slane %v642_v48, 4  ;;  %v655_v34 = vshrl.u32 %v9869_v6, 16  ;;  %8031 = vmatmul.mubr.msk.bf16.gmra.mxu0 %vm780_vm3, %v9798_v58  ;;  %v9901_v54 = vcombine.low %v606_v45, %v616_v5  ;;  %v625_v11 = vrot.slane %v624_v52, 4 }
  0x58   : > { %v634_v15 = vor.u32 %v633_v53, %v629_v35  ;;  %v647_v19 = vrot.slane %v645_v59, 5  ;;  %941 = vmatprep.mubr.bf16.mxu0 %v14368_v3  ;;  %v653_v28 = vrot.slane %v651_v55, 5  ;;  %v661_v9 = vshll.u32 %v323_v38, 16 }
  0x59   : > { %v657_v32 = vrot.slane %v655_v34, 4  ;;  %v666_v26 = vshrl.u32 %v9884_v33, 16  ;;  %v630_v46 = vsel %vm9648_vm4, %v625_v11, %v629_v35  ;;  %v669_v58 = vshll.u32 %v9884_v33, 16 }
  0x5a   : > { %v635_v36 = vrot.slane %v634_v15, 4  ;;  %v648_v48 = vor.u32 %v647_v19, %v644_v7  ;;  %8997 = vmatmul.mubr.msk.bf16.gmra.mxu1 %vm780_vm3, %v9901_v54  ;;  %v663_v52 = vrot.slane %v661_v9, 5  ;;  %v675_v59 = vshll.u32 %v9894_v62, 16 }
  0x5b   : > { %v658_v45 = vor.u32 %v657_v32, %v653_v28  ;;  %v668_v53 = vrot.slane %v666_v26, 4  ;;  %v671_v5 = vrot.slane %v669_v58, 5  ;;  %v679_v34 = vshrl.u32 %v9894_v62, 16 }
  0x5c   : > { %v640_v38 = vsel %vm9648_vm4, %v635_v36, %v639_v25  ;;  %v649_v55 = vrot.slane %v648_v48, 4  ;;  %v677_v11 = vrot.slane %v675_v59, 5  ;;  %v685_v15 = vshll.u32 %v324_v21, 16  ;;  %v8122_v25 = vld [vmem:[%s14361_s1 + $0xc] sm:$0x3f] }
  0x5d   : > { %v9915_v35 = vcombine.low %v630_v46, %v640_v38  ;;  %v659_v7 = vrot.slane %v658_v45, 4  ;;  %v672_v32 = vor.u32 %v671_v5, %v668_v53  ;;  %v681_v9 = vrot.slane %v679_v34, 4  ;;  %v1705_v38 = vld [vmem:[%s9614_s21 + $0x10] sm:$0xf] }
  0x5e   : > { %v654_v19 = vsel %vm9648_vm4, %v649_v55, %v653_v28  ;;  %v1289_v26 = vcombine.high %v9626_v17, %v9626_v17  ;;  %v687_v36 = vrot.slane %v685_v15, 5  ;;  %v1339_v21 = vsel %vm829_vm0, %v9626_v17, 0 }
  0x5f   : > { %9000 = vmatprep.mubr.msk.bf16.mxu1 %vm780_vm3, %v9915_v35  ;;  %v664_v46 = vsel %vm9648_vm4, %v659_v7, %v663_v52  ;;  %8032 = vmatmul.mubr.msk.bf16.gmra.mxu0 %vm780_vm3, %v9820_v41  ;;  %v673_v48 = vrot.slane %v672_v32, 4  ;;  %v682_v58 = vor.u32 %v681_v9, %v677_v11  ;;  %v9935_v45 = vcombine.low %v9639_v37, %v9644_v42  ;;  %v1706_v7 = vld [vmem:[%s9614_s21 + $0x14] sm:$0x1] }
  0x60   : > { %v8021_v28 = vcombine.low %v654_v19, %v664_v46  ;;  %8073 = vmatprep.subr.msk.bf16.mxu1 %vm829_vm0, %v1289_v26  ;;  %951 = vmatprep.mubr.bf16.mxu0 %v14368_v3  ;;  %v8059_v52 = vcombine.low %v9661_v61, %v9667_v2  ;;  %v9942_v17 = vcombine.low %v9680_v22, %v9686_v27  ;;  %v1809_v34 = vrot.slane %v1705_v38, 5  ;;  %v1708_v26 = vld [vmem:[%s9614_s21 + $0x1c] sm:$0xf] }
  0x61   : > { %1362 = vmatpush1.bf16.msra.mxu1 %v1339_v21  ;;  %v9946_v41 = vcombine.low %v9698_v44, %v9704_v47  ;;  %v678_v53 = vsel %vm9648_vm4, %v673_v48, %v677_v11  ;;  %v683_v59 = vrot.slane %v682_v58, 4  ;;  %v9952_v37 = vcombine.low %v9716_v0, %v9720_v8  ;;  %v1707_v21 = vld [vmem:[%s9614_s21 + $0x18] sm:$0xe] }
  0x62   : > { %v1970_v42 = vrot.slane %v8122_v25, %v9608_v10  ;;  %9001 = vmatmul.mubr.msk.bf16.gmra.mxu1 %vm780_vm3, %v8021_v28  ;;  %v9958_v61 = vcombine.low %v9732_v29, %v9738_v39  ;;  %v9962_v2 = vcombine.low %v9749_v57, %v9755_v63  ;;  %v9966_v22 = vcombine.low %v9771_v24, %v9776_v31  ;;  %v10133_v48 = vld [vmem:[%s14361_s1 + $0x18] sm:$0x3f] }
  0x63   : > { %v9970_v27 = vcombine.low %v9781_v40, %v9789_v49  ;;  %v688_v44 = vsel %vm9648_vm4, %v683_v59, %v687_v36  ;;  %v1963_v0 = vcombine.high %v8122_v25, %v8122_v25  ;;  %v9976_v29 = vcombine.low %v9803_v12, %v9812_v20 }
  0x64   : > { %v1978_v47 = vcombine.high %v1970_v42, %v1970_v42  ;;  %v8022_v8 = vcombine.low %v678_v53, %v688_v44  ;;  %v9980_v39 = vcombine.low %v9825_v50, %v9831_v1  ;;  %v9984_v57 = vcombine.low %v9843_v18, %v9852_v30  ;;  %v1702_v1 = vld [vmem:[%s9614_s21 + $0x4] sm:$0xf]  ;;  %v1701_v18 = vld [vmem:[%s9614_s21] sm:$0xe]  ;;  %v1703_v30 = vld [vmem:[%s9614_s21 + $0x8] sm:$0x1] }
  0x65   : > { %v1977_v63 = vrot.slane %v1963_v0, %v9608_v10  ;;  %v9990_v24 = vcombine.low %v9864_v56, %v9869_v6  ;;  %v9994_v31 = vcombine.low %v9884_v33, %v9894_v62  ;;  %v8057_v40 = vcombine.low %v9618_v13, %v9621_v14  ;;  %v8204_v13 = vld [vmem:[%s14361_s1 + $0x12] sm:$0x3f]  ;;  %v9439_v56 = vld [vmem:[%s9614_s21 + $0xb8] sm:$0xf]  ;;  %v1711_v53 = vld [vmem:[%s9614_s21 + $0x28] sm:$0xf] }
  0x66   : > { %8139 = vmatprep.subr.msk.bf16.mxu0 %vm829_vm0, %v1978_v47  ;;  %9004 = vmatprep.mubr.msk.bf16.mxu1 %vm780_vm3, %v8022_v8  ;;  %v2602_v14 = vcombine.high %v8204_v13, %v8204_v13  ;;  %v10058_v20 = vrot.slane %v8204_v13, %v9608_v10  ;;  %v1805_v62 = vrot.slane %v1703_v30, 5  ;;  %v1811_v19 = vrot.slane %v1809_v34, 4  ;;  %v1714_v47 = vld [vmem:[%s9614_s21 + $0x34] sm:$0xf]  ;;  %v1715_v13 = vld [vmem:[%s9614_s21 + $0x38] sm:$0x1] }
  0x67   : > { %8033 = vmatmul.mubr.msk.bf16.gmra.mxu0 %vm780_vm3, %v9839_v60  ;;  %9330 = vmatprep.subr.msk.bf16.mxu1 %vm829_vm0, %v1977_v63  ;;  %v2034_v49 = vsel %vm829_vm0, %v1977_v63, 0  ;;  %v1802_v60 = vrot.slane %v1702_v1, 5  ;;  %v1812_v32 = vrot.slane %v1706_v7, 5  ;;  %v1816_v36 = vrot.slane %v1708_v26, 5  ;;  %v1718_v7 = vld [vmem:[%s9614_s21 + $0x44] sm:$0x1] }
  0x68   : > { %961 = vmatprep.mubr.bf16.mxu0 %v14368_v3  ;;  %v2616_v12 = vrot.slane %v2602_v14, %v9608_v10  ;;  %v2617_v50 = vcombine.high %v10058_v20, %v10058_v20  ;;  %v10139_v58 = vrot.slane %v10133_v48, %v9608_v10  ;;  %v1833_v30 = vrot.slane %v1715_v13, 5  ;;  %v1725_v13 = vld [vmem:[%s9614_s21 + $0x60] sm:$0xe] }
  0x69   : > { %v1804_v33 = vrot.slane %v1802_v60, 4  ;;  %v1813_v46 = vsel %vm10104_vm7, %v1811_v19, %v1812_v32  ;;  %v1719_v19 = vld [vmem:[%s9614_s21 + $0x48] sm:$0xe]  ;;  %v1721_v32 = vld [vmem:[%s9614_s21 + $0x50] sm:$0x1] }
  0x6a   : > { %9005 = vmatmul.mubr.msk.bf16.gmra.mxu1 %vm780_vm3, %v9682_v23  ;;  %v2028_v23 = vsel %vm829_vm0, %v1970_v42, 0  ;;  %v2673_v9 = vsel %vm829_vm0, %v2616_v12, 0  ;;  %v3623_v59 = vcombine.high %v10139_v58, %v10139_v58  ;;  %v1823_v42 = vrot.slane %v1711_v53, 5 }
  0x6b   : > { %1379 = vmatprep.mubr.bf16.mxu1 %v14368_v3  ;;  %v1806_v5 = vsel %vm10104_vm7, %v1804_v33, %v1805_v62 }
  0x6f   : > { %8034 = vmatmul.mubr.msk.bf16.gmra.mxu0 %vm780_vm3, %v9860_v51  ;;  %v9438_v51 = vld [vmem:[%s9614_s21 + $0xb4] sm:$0xf] }
  0x70   : > { %971 = vmatprep.mubr.bf16.mxu0 %v14368_v3  ;;  %v8072_v6 = vcombine.low %v9438_v51, %v9439_v56  ;;  %v1717_v51 = vld [vmem:[%s9614_s21 + $0x40] sm:$0xf]  ;;  %v2667_v56 = vsel %vm829_vm0, %v10058_v20, 0 }
  0x72   : > { %8074 = vmatmul.mubr.msk.bf16.vlgmr.msra.gmra.mxu1 %vm780_vm3, %v8057_v40 }
  0x73   : > { %1389 = vmatprep.mubr.bf16.mxu1 %v14368_v3  ;;  %9043 = vmatpush3.bf16.msra.mxu1 %v2034_v49  ;;  %v1713_v49 = vld [vmem:[%s9614_s21 + $0x30] sm:$0xe] }
  0x74   : > { %8221 = vmatprep.subr.msk.bf16.mxu1 %vm829_vm0, %v2617_v50 }
  0x77   : > { %8035 = vmatmul.mubr.msk.bf16.gmra.mxu0 %vm780_vm3, %v9879_v16  ;;  %v8106_v16 = vrot.slane %v1701_v18, 9 }
  0x78   : > { %981 = vmatprep.mubr.bf16.mxu0 %v14368_v3 }
  0x79   : > { %v1803_v55 = vsel %vm10104_vm7, %v8106_v16, %v1802_v60  ;;  %v8110_v60 = vrot.slane %v1713_v49, 9  ;;  %v1720_v16 = vld [vmem:[%s9614_s21 + $0x4c] sm:$0xf] }
  0x7a   : > { %8075 = vmatmul.mubr.msk.bf16.gmra.mxu1 %vm780_vm3, %v9935_v45  ;;  %v8123_v11 = vcombine.low %v1803_v55, %v1806_v5  ;;  %v1837_v55 = vrot.slane %v1717_v51, 5 }
  0x7b   : > { %1399 = vmatprep.mubr.bf16.mxu1 %v14368_v3 }
  0x7f   : > { %8036 = vmatmul.mubr.msk.bf16.gmra.mxu0 %vm780_vm3, %v9901_v54  ;;  %v14389_v54 = vmov 0 }
  0x80   : > { %991 = vmatprep.mubr.bf16.mxu0 %v14368_v3  ;;  %v14390_v54 = vsel %vm10104_vm7, 4294967295, %v14389_v54 }
  0x81   : > { %14391 = vst [vmem:[#allocation8_spill] sm:$0xff] %v14390_v54 }
  0x82   : > { %8076 = vmatmul.mubr.msk.bf16.gmra.mxu1 %vm780_vm3, %v8059_v52 }
  0x83   : > { %1409 = vmatprep.mubr.bf16.mxu1 %v14368_v3 }
  0x87   : > { %8037 = vmatmul.mubr.msk.bf16.gmra.mxu0 %vm780_vm3, %v9915_v35  ;;  %v1704_v35 = vld [vmem:[%s9614_s21 + $0xc] sm:$0xe] }
  0x88   : > { %1001 = vmatprep.mubr.bf16.mxu0 %v14368_v3  ;;  %v8107_v15 = vrot.slane %v1704_v35, 9  ;;  %v1716_v35 = vld [vmem:[%s9614_s21 + $0x3c] sm:$0xe] }
  0x8a   : > { %8077 = vmatmul.mubr.msk.bf16.gmra.mxu1 %vm780_vm3, %v9942_v17  ;;  %v1810_v25 = vsel %vm10104_vm7, %v8107_v15, %v1809_v34 }
  0x8b   : > { %1419 = vmatprep.mubr.bf16.mxu1 %v14368_v3 }
  0x8f   : > { %8038 = vmatmul.mubr.msk.bf16.gmra.mxu0 %vm780_vm3, %v8021_v28  ;;  %v1709_v28 = vld [vmem:[%s9614_s21 + $0x20] sm:$0x1] }
  0x90   : > { %1011 = vmatprep.mubr.bf16.mxu0 %v14368_v3 }
  0x92   : > { %8078 = vmatmul.mubr.msk.bf16.gmra.mxu1 %vm780_vm3, %v9946_v41 }
  0x93   : > { %1429 = vmatprep.mubr.bf16.mxu1 %v14368_v3 }
  0x97   : > { %8039 = vmatmul.mubr.msk.bf16.gmra.mxu0 %vm780_vm3, %v8022_v8 }
  0x98   : > { %9010 = vmatprep.mubr.msk.bf16.mxu0 %vm780_vm3, %v8057_v40 }
  0x9a   : > { %8079 = vmatmul.mubr.msk.bf16.gmra.mxu1 %vm780_vm3, %v9952_v37 }
  0x9b   : > { %1439 = vmatprep.mubr.bf16.mxu1 %v14368_v3 }
  0x9f   : > { %9011 = vmatmul.mubr.msk.bf16.vlgmr.msra.gmra.mxu0 %vm780_vm3, %v9935_v45  ;;  %v8124_v45 = vcombine.low %v1810_v25, %v1813_v46  ;;  %v8111_v46 = vrot.slane %v1716_v35, 9 }
  0xa0   : > { %2051 = vmatpush1.bf16.msra.mxu0 %v2028_v23  ;;  %9014 = vmatprep.mubr.msk.bf16.mxu0 %vm780_vm3, %v8059_v52  ;;  %v8108_v52 = vrot.slane %v1707_v21, 9  ;;  %v1840_v21 = vrot.slane %v1718_v7, 5  ;;  %v1729_v7 = vld [vmem:[%s9614_s21 + $0x70] sm:$0xf] }
  0xa1   : > { %9331 = vmatprep.subr.msk.bf16.mxu0 %vm829_vm0, %v2616_v12 }
  0xa2   : > { %8080 = vmatmul.mubr.msk.bf16.gmra.mxu1 %vm780_vm3, %v9958_v61 }
  0xa3   : > { %1449 = vmatprep.mubr.bf16.mxu1 %v14368_v3 }
  0xa7   : > { %9015 = vmatmul.mubr.msk.bf16.gmra.mxu0 %vm780_vm3, %v9942_v17  ;;  %v1818_v17 = vrot.slane %v1816_v36, 4 }
  0xa8   : > { %9018 = vmatprep.mubr.msk.bf16.mxu0 %vm780_vm3, %v9946_v41  ;;  %v1819_v41 = vrot.slane %v1709_v28, 5 }
  0xaa   : > { %8081 = vmatmul.mubr.msk.bf16.gmra.mxu1 %vm780_vm3, %v9962_v2 }
  0xab   : > { %1459 = vmatprep.mubr.bf16.mxu1 %v14368_v3 }
  0xaf   : > { %9019 = vmatmul.mubr.msk.bf16.gmra.mxu0 %vm780_vm3, %v9952_v37 }
  0xb0   : > { %9022 = vmatprep.mubr.msk.bf16.mxu0 %vm780_vm3, %v9958_v61  ;;  %v1817_v61 = vsel %vm10104_vm7, %v8108_v52, %v1816_v36  ;;  %v1839_v36 = vrot.slane %v1837_v55, 4 }
  0xb2   : > { %8082 = vmatmul.mubr.msk.bf16.gmra.mxu1 %vm780_vm3, %v9966_v22 }
  0xb3   : > { %1469 = vmatprep.mubr.bf16.mxu1 %v14368_v3 }
  0xb7   : > { %9023 = vmatmul.mubr.msk.bf16.gmra.mxu0 %vm780_vm3, %v9962_v2  ;;  %v1820_v2 = vsel %vm10104_vm7, %v1818_v17, %v1819_v41  ;;  %v1847_v17 = vrot.slane %v1721_v32, 5  ;;  %v1723_v41 = vld [vmem:[%s9614_s21 + $0x58] sm:$0xf] }
  0xb8   : > { %9026 = vmatprep.mubr.msk.bf16.mxu0 %vm780_vm3, %v9966_v22  ;;  %v1710_v22 = vld [vmem:[%s9614_s21 + $0x24] sm:$0xe] }
  0xba   : > { %8083 = vmatmul.mubr.msk.bf16.gmra.mxu1 %vm780_vm3, %v9970_v27 }
  0xbb   : > { %1479 = vmatprep.mubr.bf16.mxu1 %v14368_v3 }
  0xbf   : > { %9027 = vmatmul.mubr.msk.bf16.gmra.mxu0 %vm780_vm3, %v9970_v27  ;;  %v1712_v27 = vld [vmem:[%s9614_s21 + $0x2c] sm:$0x1] }
  0xc0   : > { %9030 = vmatprep.mubr.msk.bf16.mxu0 %vm780_vm3, %v9976_v29  ;;  %v1826_v63 = vrot.slane %v1712_v27, 5  ;;  %v1722_v27 = vld [vmem:[%s9614_s21 + $0x54] sm:$0xe] }
  0xc2   : > { %8084 = vmatmul.mubr.msk.bf16.gmra.mxu1 %vm780_vm3, %v9976_v29  ;;  %v8125_v29 = vcombine.low %v1817_v61, %v1820_v2  ;;  %v1838_v2 = vsel %vm10104_vm7, %v8111_v46, %v1837_v55 }
  0xc3   : > { %1489 = vmatprep.mubr.bf16.mxu1 %v14368_v3 }
  0xc7   : > { %9031 = vmatmul.mubr.msk.bf16.gmra.mxu0 %vm780_vm3, %v9980_v39 }
  0xc8   : > { %9034 = vmatprep.mubr.msk.bf16.mxu0 %vm780_vm3, %v9984_v57 }
  0xca   : > { %8085 = vmatmul.mubr.msk.bf16.gmra.mxu1 %vm780_vm3, %v9980_v39  ;;  %v8109_v39 = vrot.slane %v1710_v22, 9  ;;  %v1841_v22 = vsel %vm10104_vm7, %v1839_v36, %v1840_v21  ;;  %v1865_v21 = vrot.slane %v1729_v7, 5  ;;  %v1738_v7 = vld [vmem:[%s9614_s21 + $0x94] sm:$0xf] }
  0xcb   : > { %1499 = vmatprep.mubr.bf16.mxu1 %v14368_v3 }
  0xcc   : > { %v1824_v12 = vsel %vm10104_vm7, %v8109_v39, %v1823_v42 }
  0xcf   : > { %9035 = vmatmul.mubr.msk.bf16.gmra.mxu0 %vm780_vm3, %v9990_v24 }
  0xd0   : > { %9038 = vmatprep.mubr.msk.bf16.mxu0 %vm780_vm3, %v9994_v31 }
  0xd2   : > { %8086 = vmatmul.mubr.msk.bf16.gmra.mxu1 %vm780_vm3, %v9984_v57  ;;  %v1825_v57 = vrot.slane %v1823_v42, 4 }
  0xd3   : > { %1509 = vmatprep.mubr.bf16.mxu1 %v14368_v3 }
  0xd4   : > { %v1827_v50 = vsel %vm10104_vm7, %v1825_v57, %v1826_v63  ;;  %v1724_v63 = vld [vmem:[%s9614_s21 + $0x5c] sm:$0x1] }
  0xd5   : > { %v8126_v38 = vcombine.low %v1824_v12, %v1827_v50  ;;  %v1727_v12 = vld [vmem:[%s9614_s21 + $0x68] sm:$0x1]  ;;  %v3608_v50 = vcombine.high %v10133_v48, %v10133_v48  ;;  %v8114_v48 = vrot.slane %v1725_v13, 9 }
  0xd6   : > { %v1861_v35 = vrot.slane %v1727_v12, 5  ;;  %v1867_v12 = vrot.slane %v1865_v21, 4 }
  0xd7   : > { %9039 = vmatmul.mubr.msk.bf16.gmra.mxu0 %vm780_vm3, %v8072_v6  ;;  %v10251_v55 = vrot.slane %v3608_v50, %v9608_v10 }
  0xd8   : > { %2068 = vmatprep.mubr.bf16.mxu0 %v14368_v3 }
  0xda   : > { %8087 = vmatmul.mubr.msk.bf16.gmra.mxu1 %vm780_vm3, %v9990_v24 }
  0xdb   : > { %1519 = vmatprep.mubr.bf16.mxu1 %v14368_v3 }
  0xdf   : > { %8140 = vmatmul.mubr.msk.bf16.vlgmr.msra.gmra.mxu0 %vm780_vm3, %v8123_v11 }
  0xe0   : > { %9077 = vmatpush3.bf16.msra.mxu0 %v2673_v9  ;;  %2078 = vmatprep.mubr.bf16.mxu0 %v14368_v3 }
  0xe1   : > { %8319 = vmatprep.subr.msk.bf16.mxu0 %vm829_vm0, %v3623_v59  ;;  %v1726_v59 = vld [vmem:[%s9614_s21 + $0x64] sm:$0xf] }
  0xe2   : > { %8088 = vmatmul.mubr.msk.bf16.gmra.mxu1 %vm780_vm3, %v9994_v31  ;;  %v1830_v31 = vrot.slane %v1714_v47, 5  ;;  %v1851_v47 = vrot.slane %v1723_v41, 5  ;;  %v1728_v41 = vld [vmem:[%s9614_s21 + $0x6c] sm:$0xe] }
  0xe3   : > { %1529 = vmatprep.mubr.bf16.mxu1 %v14368_v3  ;;  %v8115_v13 = vrot.slane %v1728_v41, 9 }
  0xe4   : > { %v1832_v18 = vrot.slane %v1830_v31, 4  ;;  %v1831_v20 = vsel %vm10104_vm7, %v8110_v60, %v1830_v31  ;;  %v1858_v31 = vrot.slane %v1726_v59, 5  ;;  %v1730_v59 = vld [vmem:[%s9614_s21 + $0x74] sm:$0x1] }
  0xe5   : > { %v1868_v50 = vrot.slane %v1730_v59, 5 }
  0xe6   : > { %v1834_v34 = vsel %vm10104_vm7, %v1832_v18, %v1833_v30  ;;  %v8128_v18 = vcombine.low %v1838_v2, %v1841_v22  ;;  %v8113_v30 = vrot.slane %v1722_v27, 9  ;;  %v1731_v27 = vld [vmem:[%s9614_s21 + $0x78] sm:$0xe] }
  0xe7   : > { %v10146_v37 = vpop.f32.mrf.mxu0  ;;  %8141 = vmatmul.mubr.msk.bf16.gmra.mxu0 %vm780_vm3, %v8124_v45  ;;  %v8127_v25 = vcombine.low %v1831_v20, %v1834_v34  ;;  %v1860_v34 = vrot.slane %v1858_v31, 4 }
  0xe8   : > { %2088 = vmatprep.mubr.bf16.mxu0 %v14368_v3  ;;  %v1852_v46 = vsel %vm10104_vm7, %v8113_v30, %v1851_v47 }
  0xe9   : > { %v10156_v44 = vpop.f32.mrf.mxu0 }
  0xea   : > { %v10159_v0 = vpop.f32.mrf.mxu1  ;;  %8089 = vmatmul.mubr.msk.bf16.gmra.mxu1 %vm780_vm3, %v8072_v6 }
  0xeb   : > { %14392 = vst [vmem:[#allocation9_spill] sm:$0xff] %v10159_v0  ;;  %v10162_v8 = vpop.f32.mrf.mxu0  ;;  %9044 = vmatprep.mubr.msk.bf16.mxu1 %vm780_vm3, %v8123_v11  ;;  %v1844_v11 = vrot.slane %v1720_v16, 5  ;;  %v1853_v16 = vrot.slane %v1851_v47, 4  ;;  %v1733_v47 = vld [vmem:[%s9614_s21 + $0x80] sm:$0x1] }
  0xec   : > { %v10165_v24 = vpop.f32.mrf.mxu1 }
  0xed   : > { %14393 = vst [vmem:[#allocation10_spill] sm:$0xff] %v10165_v24  ;;  %v10167_v40 = vpop.f32.mrf.mxu0  ;;  %v1846_v52 = vrot.slane %v1844_v11, 4 }
  0xee   : > { %v10171_v14 = vpop.f32.mrf.mxu1 }
  0xef   : > { %14394 = vst [vmem:[#allocation11_spill] sm:$0xff] %v10171_v14  ;;  %v10173_v23 = vpop.f32.mrf.mxu0  ;;  %8142 = vmatmul.mubr.msk.bf16.gmra.mxu0 %vm780_vm3, %v8125_v29  ;;  %v1848_v57 = vsel %vm10104_vm7, %v1846_v52, %v1847_v17  ;;  %v1859_v52 = vsel %vm10104_vm7, %v8114_v48, %v1858_v31  ;;  %v1862_v17 = vsel %vm10104_vm7, %v1860_v34, %v1861_v35  ;;  %v1875_v48 = vrot.slane %v1733_v47, 5  ;;  %v1735_v34 = vld [vmem:[%s9614_s21 + $0x88] sm:$0xf]  ;;  %v1736_v47 = vld [vmem:[%s9614_s21 + $0x8c] sm:$0x1] }
  0xf0   : > { %v10180_v1 = vpop.f32.mrf.mxu1  ;;  %2098 = vmatprep.mubr.bf16.mxu0 %v14368_v3  ;;  %v10292_v31 = vcombine.low %v1859_v52, %v1862_v17  ;;  %v1879_v52 = vrot.slane %v1735_v34, 5 }
  0xf1   : > { %14395 = vst [vmem:[#allocation12_spill] sm:$0xff] %v10180_v1  ;;  %v10186_v6 = vpop.f32.mrf.mxu0  ;;  %v1737_v1 = vld [vmem:[%s9614_s21 + $0x90] sm:$0xe] }
  0xf2   : > { %v10189_v33 = vpop.f32.mrf.mxu1  ;;  %9045 = vmatmul.mubr.msk.bf16.vlgmr.msra.gmra.mxu1 %vm780_vm3, %v8124_v45  ;;  %v8112_v45 = vrot.slane %v1719_v19, 9  ;;  %v1732_v19 = vld [vmem:[%s9614_s21 + $0x7c] sm:$0xf]  ;;  %v8118_v14 = vrot.slane %v1737_v1, 9 }
  0xf3   : > { %14396 = vst [vmem:[#allocation13_spill] sm:$0xff] %v10189_v33  ;;  %v10192_v62 = vpop.f32.mrf.mxu0  ;;  %9048 = vmatprep.mubr.msk.bf16.mxu1 %vm780_vm3, %v8125_v29  ;;  %2690 = vmatpush1.bf16.msra.mxu1 %v2667_v56  ;;  %v1872_v2 = vrot.slane %v1732_v19, 5 }
  0xf4   : > { %v10195_v5 = vpop.f32.mrf.mxu1  ;;  %v1845_v39 = vsel %vm10104_vm7, %v8112_v45, %v1844_v11  ;;  %9332 = vmatprep.subr.msk.bf16.mxu1 %vm829_vm0, %v10251_v55 }
  0xf5   : > { %14397 = vst [vmem:[#allocation14_spill] sm:$0xff] %v10195_v5  ;;  %v10203_v15 = vpop.f32.mrf.mxu0  ;;  %v10248_v56 = vcombine.low %v1845_v39, %v1848_v57  ;;  %v9412_v5 = vld [vmem:[%s9614_s21 + $0x84] sm:$0xff]  }
  0xf6   : > { %v10207_v9 = vpop.f32.mrf.mxu1 }
  0xf7   : > { %14398 = vst [vmem:[#allocation15_spill] sm:$0xff] %v10207_v9  ;;  %v10209_v26 = vpop.f32.mrf.mxu0  ;;  %8143 = vmatmul.mubr.msk.bf16.gmra.mxu0 %vm780_vm3, %v8126_v38 }
  0xf8   : > { %v10212_v28 = vpop.f32.mrf.mxu1  ;;  %2108 = vmatprep.mubr.bf16.mxu0 %v14368_v3 }
  0xf9   : > { %14399 = vst [vmem:[#allocation16_spill] sm:$0xff] %v10212_v28  ;;  %v10216_v53 = vpop.f32.mrf.mxu0  ;;  %v8258_v28 = vld [vmem:[%s9614_s21 + $0x1c] sm:$0xf] }
  0xfa   : > { %v10219_v42 = vpop.f32.mrf.mxu1  ;;  %9049 = vmatmul.mubr.msk.bf16.gmra.mxu1 %vm780_vm3, %v8126_v38  ;;  %v1854_v38 = vrot.slane %v1724_v63, 5 }
  0xfb   : > { %14400 = vst [vmem:[#allocation17_spill] sm:$0xff] %v10219_v42  ;;  %v10222_v61 = vpop.f32.mrf.mxu0  ;;  %9052 = vmatprep.mubr.msk.bf16.mxu1 %vm780_vm3, %v8127_v25 }
  0xfc   : > { %v10230_v29 = vpop.f32.mrf.mxu1  ;;  %v1855_v36 = vsel %vm10104_vm7, %v1853_v16, %v1854_v38  ;;  %v8116_v16 = vrot.slane %v1731_v27, 9  ;;  %v1874_v38 = vrot.slane %v1872_v2, 4  ;;  %v1734_v27 = vld [vmem:[%s9614_s21 + $0x84] sm:$0xe] }
  0xfd   : > { %14401 = vst [vmem:[#allocation18_spill] sm:$0xff] %v10230_v29  ;;  %v10237_v49 = vpop.f32.mrf.mxu0  ;;  %v10287_v57 = vcombine.low %v1852_v46, %v1855_v36  ;;  %v1866_v46 = vsel %vm10104_vm7, %v8115_v13, %v1865_v21  ;;  %v1869_v36 = vsel %vm10104_vm7, %v1867_v12, %v1868_v50  ;;  %v1739_v21 = vld [vmem:[%s9614_s21 + $0x98] sm:$0x1] }
  0xfe   : > { %v10243_v60 = vpop.f32.mrf.mxu1  ;;  %v1873_v41 = vsel %vm10104_vm7, %v8116_v16, %v1872_v2  ;;  %v1876_v59 = vsel %vm10104_vm7, %v1874_v38, %v1875_v48  ;;  %v10327_v12 = vcombine.low %v1866_v46, %v1869_v36  ;;  %v8117_v16 = vrot.slane %v1734_v27, 9  ;;  %v1741_v36 = vld [vmem:[%s9614_s21 + $0xa0] sm:$0xf] }
  0xff   : > { %14402 = vst [vmem:[#allocation19_spill] sm:$0xff] %v10243_v60  ;;  %v10245_v51 = vpop.f32.mrf.mxu0  ;;  %8144 = vmatmul.mubr.msk.bf16.gmra.mxu0 %vm780_vm3, %v8127_v25  ;;  %v10333_v2 = vcombine.low %v1873_v41, %v1876_v59  ;;  %v1881_v38 = vrot.slane %v1879_v52, 4  ;;  %v1882_v48 = vrot.slane %v1736_v47, 5  ;;  %v1889_v46 = vrot.slane %v1739_v21, 5 }
 0x100   : > { %14403 = vst [vmem:[#allocation20_spill] sm:$0xff] %v10245_v51  ;;  %v10253_v20 = vpop.f32.mrf.mxu1  ;;  %2118 = vmatprep.mubr.bf16.mxu0 %v14368_v3  ;;  %v1880_v1 = vsel %vm10104_vm7, %v8117_v16, %v1879_v52  ;;  %v1893_v27 = vrot.slane %v1741_v36, 5  ;;  %v1745_v52 = vld [vmem:[%s9614_s21 + $0xb0] sm:$0x1] }
 0x101   : > { %14404 = vst [vmem:[#allocation21_spill] sm:$0xff] %v10253_v20  ;;  %v10257_v11 = vpop.f32.mrf.mxu0  ;;  %v1883_v59 = vsel %vm10104_vm7, %v1881_v38, %v1882_v48 }
 0x102   : > { %14405 = vst [vmem:[#allocation22_spill] sm:$0xff] %v10257_v11  ;;  %v10262_v32 = vpop.f32.mrf.mxu1  ;;  %9053 = vmatmul.mubr.msk.bf16.gmra.mxu1 %vm780_vm3, %v8128_v18  ;;  %v10368_v38 = vcombine.low %v1880_v1, %v1883_v59  ;;  %v1903_v1 = vrot.slane %v1745_v52, 5  ;;  %v1747_v59 = vld [vmem:[%s9614_s21 + $0xb8] sm:$0xf] }
 0x103   : > { %14406 = vst [vmem:[#allocation23_spill] sm:$0xff] %v10262_v32  ;;  %v10265_v25 = vpop.f32.mrf.mxu0  ;;  %9056 = vmatprep.mubr.msk.bf16.mxu1 %vm780_vm3, %v10248_v56 }
 0x104   : > { %14407 = vst [vmem:[#allocation24_spill] sm:$0xff] %v10265_v25  ;;  %v10273_v45 = vpop.f32.mrf.mxu1 }
 0x105   : > { %14408 = vst [vmem:[#allocation25_spill] sm:$0xff] %v10273_v45  ;;  %v10281_v22 = vpop.f32.mrf.mxu0 }
 0x106   : > { %14409 = vst [vmem:[#allocation26_spill] sm:$0xff] %v10281_v22  ;;  %v10285_v39 = vpop.f32.mrf.mxu1  ;;  %v8266_v22 = vld [vmem:[%s9614_s21 + $0x3c] sm:$0xf] }
 0x107   : > { %14410 = vst [vmem:[#allocation27_spill] sm:$0xff] %v10285_v39  ;;  %v10289_v63 = vpop.f32.mrf.mxu0  ;;  %8145 = vmatmul.mubr.msk.bf16.gmra.mxu0 %vm780_vm3, %v8128_v18  ;;  %v1743_v39 = vld [vmem:[%s9614_s21 + $0xa8] sm:$0xe] }
 0x108   : > { %14411 = vst [vmem:[#allocation28_spill] sm:$0xff] %v10289_v63  ;;  %v10294_v30 = vpop.f32.mrf.mxu1  ;;  %2128 = vmatprep.mubr.bf16.mxu0 %v14368_v3  ;;  %v1886_v3 = vrot.slane %v1738_v7, 5  ;;  %v14421_v7 = vmov 0   ;;  %v8120_v36 = vrot.slane %v1743_v39, 9 }
 0x109   : > { %14412 = vst [vmem:[#allocation29_spill] sm:$0xff] %v10294_v30  ;;  %v10298_v35 = vpop.f32.mrf.mxu0 }
 0x10a   : > { %14413 = vst [vmem:[#allocation30_spill] sm:$0xff] %v10298_v35  ;;  %v10301_v18 = vpop.f32.mrf.mxu1  ;;  %9057 = vmatmul.mubr.msk.bf16.gmra.mxu1 %vm780_vm3, %v10287_v57  ;;  %v1888_v24 = vrot.slane %v1886_v3, 4  ;;  %v1887_v21 = vsel %vm10104_vm7, %v8118_v14, %v1886_v3  ;;  %v1895_v14 = vrot.slane %v1893_v27, 4 }
 0x10b   : > { %14414 = vst [vmem:[#allocation31_spill] sm:$0xff] %v10301_v18  ;;  %v10305_v19 = vpop.f32.mrf.mxu0  ;;  %9060 = vmatprep.mubr.msk.bf16.mxu1 %vm780_vm3, %v10292_v31 }
 0x10c   : > { %14415 = vst [vmem:[#allocation32_spill] sm:$0xff] %v10305_v19  ;;  %v10313_v17 = vpop.f32.mrf.mxu1  ;;  %v3207_v19 = vshll.u32 %v8258_v28, 16 }
 0x10d   : > { %14416 = vst [vmem:[#allocation33_spill] sm:$0xff] %v10313_v17  ;;  %v10321_v4 = vpop.f32.mrf.mxu0  ;;  %v1742_v17 = vld [vmem:[%s9614_s21 + $0xa4] sm:$0x1] }
 0x10e   : > { %14417 = vst [vmem:[#allocation34_spill] sm:$0xff] %v10321_v4  ;;  %v10325_v13 = vpop.f32.mrf.mxu1 }
 0x10f   : > { %14418 = vst [vmem:[#allocation35_spill] sm:$0xff] %v10325_v13  ;;  %v10329_v50 = vpop.f32.mrf.mxu0  ;;  %8146 = vmatmul.mubr.msk.bf16.gmra.mxu0 %vm780_vm3, %v10248_v56  ;;  %v1744_v13 = vld [vmem:[%s9614_s21 + $0xac] sm:$0xf] }
 0x110   : > { %14419 = vst [vmem:[#allocation36_spill] sm:$0xff] %v10329_v50  ;;  %v10335_v34 = vpop.f32.mrf.mxu1  ;;  %2138 = vmatprep.mubr.bf16.mxu0 %v14421_v7  ;;  %v1900_v18 = vrot.slane %v1744_v13, 5 }
 0x111   : > { %14420 = vst [vmem:[#allocation37_spill] sm:$0xff] %v10335_v34  ;;  %v10339_v0 = vpop.f32.mrf.mxu0  ;;  %v1740_v34 = vld [vmem:[%s9614_s21 + $0x9c] sm:$0xe] }
 0x112   : > { %14422 = vst [vmem:[#allocation38_spill] sm:$0xff] %v10339_v0  ;;  %v10342_v56 = vpop.f32.mrf.mxu1  ;;  %9061 = vmatmul.mubr.msk.bf16.gmra.mxu1 %vm780_vm3, %v10327_v12 }
 0x113   : > { %14423 = vst [vmem:[#allocation39_spill] sm:$0xff] %v10342_v56  ;;  %v10346_v41 = vpop.f32.mrf.mxu0  ;;  %9064 = vmatprep.mubr.msk.bf16.mxu1 %vm780_vm3, %v10333_v2  ;;  %v1890_v56 = vsel %vm10104_vm7, %v1888_v24, %v1889_v46  ;;  %v8119_v24 = vrot.slane %v1740_v34, 9  ;;  %v1896_v46 = vrot.slane %v1742_v17, 5  ;;  %v1907_v34 = vrot.slane %v1747_v59, 5 }
 0x114   : > { %14424 = vst [vmem:[#allocation40_spill] sm:$0xff] %v10346_v41  ;;  %v10354_v47 = vpop.f32.mrf.mxu1  ;;  %v10374_v3 = vcombine.low %v1887_v21, %v1890_v56  ;;  %v1901_v21 = vsel %vm10104_vm7, %v8120_v36, %v1900_v18 }
 0x115   : > { %14425 = vst [vmem:[#allocation41_spill] sm:$0xff] %v10354_v47  ;;  %v10362_v30 = vpop.f32.mrf.mxu0  ;;  %v1894_v17 = vsel %vm10104_vm7, %v8119_v24, %v1893_v27  ;;  %v1897_v39 = vsel %vm10104_vm7, %v1895_v14, %v1896_v46 }
 0x116   : > { %14426 = vst [vmem:[#allocation42_spill] sm:$0xff] %v10362_v30  ;;  %v10366_v16 = vpop.f32.mrf.mxu1  ;;  %v10406_v30 = vcombine.low %v1894_v17, %v1897_v39 }
 0x117   : > { %14427 = vst [vmem:[#allocation43_spill] sm:$0xff] %v10366_v16  ;;  %v10370_v48 = vpop.f32.mrf.mxu0  ;;  %8147 = vmatmul.mubr.msk.bf16.gmra.mxu0 %vm780_vm3, %v10287_v57  ;;  %v1902_v16 = vrot.slane %v1900_v18, 4  ;;  %v1909_v18 = vrot.slane %v1907_v34, 4 }
 0x118   : > { %14428 = vst [vmem:[#allocation44_spill] sm:$0xff] %v10370_v48  ;;  %v10376_v13 = vpop.f32.mrf.mxu1  ;;  %2148 = vmatprep.mubr.bf16.mxu0 %v14421_v7 }
 0x119   : > { %14429 = vst [vmem:[#allocation45_spill] sm:$0xff] %v10376_v13  ;;  %v10380_v47 = vpop.f32.mrf.mxu0  ;;  %v1904_v52 = vsel %vm10104_vm7, %v1902_v16, %v1903_v1  ;;  %v1748_v13 = vld [vmem:[%s9614_s21 + $0xbc] sm:$0x1] }
 0x11a   : > { %14430 = vst [vmem:[#allocation46_spill] sm:$0xff] %v10380_v47  ;;  %v10382_v48 = vpop.f32.mrf.mxu1  ;;  %9065 = vmatmul.mubr.msk.bf16.gmra.mxu1 %vm780_vm3, %v10368_v38  ;;  %v10412_v24 = vcombine.low %v1901_v21, %v1904_v52  ;;  %v1910_v46 = vrot.slane %v1748_v13, 5 }
 0x11b   : > { %14431 = vst [vmem:[#allocation47_spill] sm:$0xff] %v10382_v48  ;;  %v10386_v57 = vpop.f32.mrf.mxu0  ;;  %9068 = vmatprep.mubr.msk.bf16.mxu1 %vm780_vm3, %v10374_v3  ;;  %v1746_v48 = vld [vmem:[%s9614_s21 + $0xb4] sm:$0xe] }
 0x11c   : > { %14432 = vst [vmem:[#allocation48_spill] sm:$0xff] %v10386_v57  ;;  %v10394_v56 = vpop.f32.mrf.mxu1  ;;  %v8121_v14 = vrot.slane %v1746_v48, 9  ;;  %v1911_v48 = vsel %vm10104_vm7, %v1909_v18, %v1910_v46 }
 0x11d   : > { %14433 = vst [vmem:[#allocation49_spill] sm:$0xff] %v10394_v56  ;;  %v10402_v57 = vpop.f32.mrf.mxu0 }
 0x11e   : > { %14434 = vst [vmem:[#allocation50_spill] sm:$0xff] %v10402_v57  ;;  %v10404_v47 = vpop.f32.mrf.mxu1 }
 0x11f   : > { %14435 = vst [vmem:[#allocation51_spill] sm:$0xff] %v10404_v47  ;;  %v10408_v27 = vpop.f32.mrf.mxu0  ;;  %8148 = vmatmul.mubr.msk.bf16.gmra.mxu0 %vm780_vm3, %v10292_v31  ;;  %v1908_v31 = vsel %vm10104_vm7, %v8121_v14, %v1907_v34  ;;  %v9404_v47 = vld [vmem:[%s9614_s21 + $0x30] sm:$0xff]  }
 0x120   : > { %14436 = vst [vmem:[#allocation52_spill] sm:$0xff] %v10408_v27  ;;  %v10414_v36 = vpop.f32.mrf.mxu1  ;;  %2158 = vmatprep.mubr.bf16.mxu0 %v14421_v7  ;;  %v10437_v21 = vcombine.low %v1908_v31, %v1911_v48  ;;  %v10462_v48 = vld [vmem:[%s9614_s21 + $0xc] sm:$0xff]  }
 0x121   : > { %14437 = vst [vmem:[#allocation53_spill] sm:$0xff] %v10414_v36  ;;  %v10417_v16 = vpop.f32.mrf.mxu0 }
 0x122   : > { %14438 = vst [vmem:[#allocation54_spill] sm:$0xff] %v10417_v16  ;;  %v10419_v1 = vpop.f32.mrf.mxu1  ;;  %9069 = vmatmul.mubr.msk.bf16.gmra.mxu1 %vm780_vm3, %v10406_v30  ;;  %v9405_v16 = vld [vmem:[%s9614_s21 + $0x3c] sm:$0xff]  }
 0x123   : > { %14439 = vst [vmem:[#allocation55_spill] sm:$0xff] %v10419_v1  ;;  %v10423_v59 = vpop.f32.mrf.mxu0  ;;  %9072 = vmatprep.mubr.msk.bf16.mxu1 %vm780_vm3, %v10412_v24 }
 0x124   : > { %14440 = vst [vmem:[#allocation56_spill] sm:$0xff] %v10423_v59  ;;  %v10431_v13 = vpop.f32.mrf.mxu1 }
 0x125   : > { %14441 = vst [vmem:[#allocation57_spill] sm:$0xff] %v10431_v13  ;;  %v10433_v17 = vpop.f32.mrf.mxu0 }
 0x126   : > { %14442 = vst [vmem:[#allocation58_spill] sm:$0xff] %v10433_v17  ;;  %v10435_v39 = vpop.f32.mrf.mxu1 }
 0x127   : > { %14443 = vst [vmem:[#allocation59_spill] sm:$0xff] %v10435_v39  ;;  %v10439_v52 = vpop.f32.mrf.mxu0  ;;  %8149 = vmatmul.mubr.msk.bf16.gmra.mxu0 %vm780_vm3, %v10327_v12 }
 0x128   : > { %14444 = vst [vmem:[#allocation60_spill] sm:$0xff] %v10439_v52  ;;  %v10443_v1 = vpop.f32.mrf.mxu1  ;;  %2168 = vmatprep.mubr.bf16.mxu0 %v14421_v7 }
 0x129   : > { %14445 = vst [vmem:[#allocation61_spill] sm:$0xff] %v10443_v1  ;;  %v10446_v34 = vpop.f32.mrf.mxu0  ;;  %v3679_v1 = vsel %vm829_vm0, %v10251_v55, 0  ;;  %v10489_v55 = vld [vmem:[%s9614_s21 + $0x18] sm:$0xff]  }
 0x12a   : > { %14446 = vst [vmem:[#allocation62_spill] sm:$0xff] %v10446_v34  ;;  %v10448_v14 = vpop.f32.mrf.mxu1  ;;  %9073 = vmatmul.mubr.msk.bf16.gmra.mxu1 %vm780_vm3, %v10437_v21 }
 0x12b   : > { %14447 = vst [vmem:[#allocation63_spill] sm:$0xff] %v10448_v14  ;;  %v10452_v18 = vpop.f32.mrf.mxu0  ;;  %2707 = vmatprep.mubr.bf16.mxu1 %v14421_v7 }
 0x12c   : > { %14448 = vst [vmem:[#allocation64_spill] sm:$0xff] %v10452_v18  ;;  %v10455_v46 = vpop.f32.mrf.mxu1  ;;  %v9403_v18 = vld [vmem:[%s9614_s21 + $0x24] sm:$0xff]  }
 0x12d   : > { %14449 = vst [vmem:[#allocation65_spill] sm:$0xff] %v10455_v46  ;;  %v10457_v31 = vpop.f32.mrf.mxu0 }
 0x12e   : > { %14450 = vst [vmem:[#allocation66_spill] sm:$0xff] %v10457_v31  ;;  %v10459_v12 = vpop.f32.mrf.mxu1 }
 0x12f   : > { %14451 = vst [vmem:[#allocation67_spill] sm:$0xff] %v10459_v12  ;;  %v10464_v54 = vpop.f32.mrf.mxu0  ;;  %8150 = vmatmul.mubr.msk.bf16.gmra.mxu0 %vm780_vm3, %v10333_v2 }
 0x130   : > { %14452 = vst [vmem:[#allocation68_spill] sm:$0xff] %v10464_v54  ;;  %v10468_v14 = vpop.f32.mrf.mxu1  ;;  %2178 = vmatprep.mubr.bf16.mxu0 %v14421_v7 }
 0x131   : > { %14453 = vst [vmem:[#allocation69_spill] sm:$0xff] %v10468_v14  ;;  %v10473_v46 = vpop.f32.mrf.mxu0 }
 0x132   : > { %14454 = vst [vmem:[#allocation70_spill] sm:$0xff] %v10473_v46  ;;  %v10475_v39 = vpop.f32.mrf.mxu1  ;;  %8222 = vmatmul.mubr.msk.bf16.vlgmr.msra.gmra.mxu1 %vm780_vm3, %v10462_v48 }
 0x133   : > { %v10479_v12 = vpop.f32.mrf.mxu0  ;;  %2717 = vmatprep.mubr.bf16.mxu1 %v14421_v7  ;;  %9111 = vmatpush3.bf16.msra.mxu1 %v3679_v1 }
 0x134   : > { %14455 = vst [vmem:[#allocation71_spill] sm:$0xff] %v10479_v12  ;;  %v10482_v2 = vpop.f32.mrf.mxu1 }
 0x135   : > { %v10484_v14 = vpop.f32.mrf.mxu0 }
 0x136   : > { %14456 = vst [vmem:[#allocation72_spill] sm:$0xff] %v10484_v14  ;;  %v10486_v54 = vpop.f32.mrf.mxu1 }
 0x137   : > { %v10491_v46 = vpop.f32.mrf.mxu0  ;;  %8151 = vmatmul.mubr.msk.bf16.gmra.mxu0 %vm780_vm3, %v10368_v38 }
 0x138   : > { %14457 = vst [vmem:[#allocation73_spill] sm:$0xff] %v10491_v46  ;;  %v10495_v31 = vpop.f32.mrf.mxu1  ;;  %2188 = vmatprep.mubr.bf16.mxu0 %v14421_v7 }
 0x139   : > { %v10498_v12 = vpop.f32.mrf.mxu0 }
 0x13a   : > { %14458 = vst [vmem:[#allocation74_spill] sm:$0xff] %v10498_v12  ;;  %v10500_v1 = vpop.f32.mrf.mxu1  ;;  %8223 = vmatmul.mubr.msk.bf16.gmra.mxu1 %vm780_vm3, %v10489_v55 }
 0x13b   : > { %v10504_v14 = vpop.f32.mrf.mxu0  ;;  %2727 = vmatprep.mubr.bf16.mxu1 %v14421_v7 }
 0x13c   : > { %14459 = vst [vmem:[#allocation75_spill] sm:$0xff] %v10504_v14  ;;  %v10507_v13 = vpop.f32.mrf.mxu1 }
 0x13d   : > { %v10509_v46 = vpop.f32.mrf.mxu0 }
 0x13e   : > { %14460 = vst [vmem:[#allocation76_spill] sm:$0xff] %v10509_v46  ;;  %v10511_v38 = vpop.f32.mrf.mxu1 }
 0x13f   : > { %v10514_v34 = vpop.f32.mrf.mxu0  ;;  %8152 = vmatmul.mubr.msk.bf16.gmra.mxu0 %vm780_vm3, %v10374_v3 }
 0x140   : > { %14461 = vst [vmem:[#allocation77_spill] sm:$0xff] %v10514_v34  ;;  %v10518_v12 = vpop.f32.mrf.mxu1  ;;  %2198 = vmatprep.mubr.bf16.mxu0 %v14421_v7 }
 0x141   : > { %v10521_v14 = vpop.f32.mrf.mxu0 }
 0x142   : > { %14462 = vst [vmem:[#allocation78_spill] sm:$0xff] %v10521_v14  ;;  %v10523_v36 = vpop.f32.mrf.mxu1  ;;  %8224 = vmatmul.mubr.msk.bf16.gmra.mxu1 %vm780_vm3, %v9403_v18 }
 0x143   : > { %v10526_v52 = vpop.f32.mrf.mxu0  ;;  %2737 = vmatprep.mubr.bf16.mxu1 %v14421_v7 }
 0x144   : > { %14463 = vst [vmem:[#allocation79_spill] sm:$0xff] %v10526_v52  ;;  %v10529_v46 = vpop.f32.mrf.mxu1 }
 0x145   : > { %v10531_v34 = vpop.f32.mrf.mxu0 }
 0x146   : > { %14464 = vst [vmem:[#allocation80_spill] sm:$0xff] %v10531_v34  ;;  %v10533_v3 = vpop.f32.mrf.mxu1 }
 0x147   : > { %v10536_v17 = vpop.f32.mrf.mxu0  ;;  %8153 = vmatmul.mubr.msk.bf16.gmra.mxu0 %vm780_vm3, %v10406_v30 }
 0x148   : > { %14465 = vst [vmem:[#allocation81_spill] sm:$0xff] %v10536_v17  ;;  %v10540_v14 = vpop.f32.mrf.mxu1  ;;  %2208 = vmatprep.mubr.bf16.mxu0 %v14421_v7 }
 0x149   : > { %v10543_v52 = vpop.f32.mrf.mxu0 }
 0x14a   : > { %14466 = vst [vmem:[#allocation82_spill] sm:$0xff] %v10543_v52  ;;  %v10545_v56 = vpop.f32.mrf.mxu1  ;;  %8225 = vmatmul.mubr.msk.bf16.gmra.mxu1 %vm780_vm3, %v9404_v47 }
 0x14b   : > { %14467 = vst [vmem:[#allocation83_spill] sm:$0xff] %v10545_v56  ;;  %v10548_v59 = vpop.f32.mrf.mxu0  ;;  %2747 = vmatprep.mubr.bf16.mxu1 %v14421_v7 }
 0x14c   : > { %14468 = vst [vmem:[#allocation84_spill] sm:$0xff] %v10548_v59  ;;  %v10551_v34 = vpop.f32.mrf.mxu1 }
 0x14d   : > { %14469 = vst [vmem:[#allocation85_spill] sm:$0xff] %v10551_v34  ;;  %v10553_v17 = vpop.f32.mrf.mxu0 }
 0x14e   : > { %14470 = vst [vmem:[#allocation86_spill] sm:$0xff] %v10553_v17  ;;  %v10555_v30 = vpop.f32.mrf.mxu1 }
 0x14f   : > { %14471 = vst [vmem:[#allocation87_spill] sm:$0xff] %v10555_v30  ;;  %v10558_v27 = vpop.f32.mrf.mxu0  ;;  %8154 = vmatmul.mubr.msk.bf16.gmra.mxu0 %vm780_vm3, %v10412_v24  ;;  %v9406_v24 = vld [vmem:[%s9614_s21 + $0x48] sm:$0xff]   ;;  %v8267_v30 = vld [vmem:[%s9614_s21 + $0x40] sm:$0xf] }
 0x150   : > { %14472 = vst [vmem:[#allocation88_spill] sm:$0xff] %v10558_v27  ;;  %v10562_v52 = vpop.f32.mrf.mxu1  ;;  %2218 = vmatprep.mubr.bf16.mxu0 %v14421_v7 }
 0x151   : > { %14473 = vst [vmem:[#allocation89_spill] sm:$0xff] %v10562_v52  ;;  %v10565_v59 = vpop.f32.mrf.mxu0 }
 0x152   : > { %14474 = vst [vmem:[#allocation90_spill] sm:$0xff] %v10565_v59  ;;  %v10567_v57 = vpop.f32.mrf.mxu1  ;;  %8226 = vmatmul.mubr.msk.bf16.gmra.mxu1 %vm780_vm3, %v9405_v16 }
 0x153   : > { %14475 = vst [vmem:[#allocation91_spill] sm:$0xff] %v10567_v57  ;;  %v10570_v41 = vpop.f32.mrf.mxu0  ;;  %2757 = vmatprep.mubr.bf16.mxu1 %v14421_v7 }
 0x154   : > { %14476 = vst [vmem:[#allocation92_spill] sm:$0xff] %v10570_v41  ;;  %v10573_v17 = vpop.f32.mrf.mxu1  ;;  %v8416_v41 = vld [vmem:[%s14361_s1 + $0x1e] sm:$0x3f] }
 0x155   : > { %14477 = vst [vmem:[#allocation93_spill] sm:$0xff] %v10573_v17  ;;  %v10575_v27 = vpop.f32.mrf.mxu0  ;;  %v8256_v17 = vld [vmem:[%s9614_s21 + $0x14] sm:$0x1] }
 0x156   : > { %14478 = vst [vmem:[#allocation94_spill] sm:$0xff] %v10575_v27  ;;  %v10577_v45 = vpop.f32.mrf.mxu1  ;;  %v4390_v27 = vcombine.high %v8416_v41, %v8416_v41 }
 0x157   : > { %14479 = vst [vmem:[#allocation95_spill] sm:$0xff] %v10577_v45  ;;  %v10580_v32 = vpop.f32.mrf.mxu0  ;;  %8155 = vmatmul.mubr.msk.bf16.gmra.mxu0 %vm780_vm3, %v10437_v21 }
 0x158   : > { %14480 = vst [vmem:[#allocation96_spill] sm:$0xff] %v10580_v32  ;;  %v10584_v59 = vpop.f32.mrf.mxu1  ;;  %9078 = vmatprep.mubr.msk.bf16.mxu0 %vm780_vm3, %v10462_v48  ;;  %v3673_v48 = vsel %vm829_vm0, %v10139_v58, 0  ;;  %v10606_v60 = vrot.slane %v4390_v27, %v9608_v10 }
 0x159   : > { %14481 = vst [vmem:[#allocation97_spill] sm:$0xff] %v10584_v59  ;;  %v10591_v0 = vpop.f32.mrf.mxu0 }
 0x15a   : > { %14482 = vst [vmem:[#allocation98_spill] sm:$0xff] %v10591_v0  ;;  %v10593_v20 = vpop.f32.mrf.mxu1  ;;  %8227 = vmatmul.mubr.msk.bf16.gmra.mxu1 %vm780_vm3, %v9406_v24 }
 0x15b   : > { %14483 = vst [vmem:[#allocation99_spill] sm:$0xff] %v10593_v20  ;;  %v10596_v32 = vpop.f32.mrf.mxu0  ;;  %2767 = vmatprep.mubr.bf16.mxu1 %v14421_v7  ;;  %v9407_v20 = vld [vmem:[%s9614_s21 + $0x54] sm:$0xff]  }
 0x15c   : > { %14484 = vst [vmem:[#allocation100_spill] sm:$0xff] %v10596_v32  ;;  %v10599_v21 = vpop.f32.mrf.mxu1 }
 0x15d   : > { %14485 = vst [vmem:[#allocation101_spill] sm:$0xff] %v10599_v21  ;;  %v10601_v50 = vpop.f32.mrf.mxu0 }
 0x15e   : > { %14486 = vst [vmem:[#allocation102_spill] sm:$0xff] %v10601_v50  ;;  %v10608_v0 = vpop.f32.mrf.mxu1 }
 0x15f   : > { %14487 = vst [vmem:[#allocation103_spill] sm:$0xff] %v10608_v0  ;;  %v10611_v29 = vpop.f32.mrf.mxu0  ;;  %9079 = vmatmul.mubr.msk.bf16.vlgmr.msra.gmra.mxu0 %vm780_vm3, %v10489_v55 }
 0x160   : > { %14488 = vst [vmem:[#allocation104_spill] sm:$0xff] %v10611_v29  ;;  %v10615_v32 = vpop.f32.mrf.mxu1  ;;  %3696 = vmatpush1.bf16.msra.mxu0 %v3673_v48  ;;  %9082 = vmatprep.mubr.msk.bf16.mxu0 %vm780_vm3, %v9403_v18  ;;  %v9408_v18 = vld [vmem:[%s9614_s21 + $0x60] sm:$0xff]  }
 0x161   : > { %14489 = vst [vmem:[#allocation105_spill] sm:$0xff] %v10615_v32  ;;  %v10618_v50 = vpop.f32.mrf.mxu0  ;;  %9333 = vmatprep.subr.msk.bf16.mxu0 %vm829_vm0, %v10606_v60 }
 0x162   : > { %14490 = vst [vmem:[#allocation106_spill] sm:$0xff] %v10618_v50  ;;  %v10622_v58 = vpop.f32.mrf.mxu1  ;;  %8228 = vmatmul.mubr.msk.bf16.gmra.mxu1 %vm780_vm3, %v9407_v20  ;;  %v3211_v50 = vshrl.u32 %v8258_v28, 16 }
 0x163   : > { %14491 = vst [vmem:[#allocation107_spill] sm:$0xff] %v10622_v58  ;;  %v10625_v27 = vpop.f32.mrf.mxu0  ;;  %2777 = vmatprep.mubr.bf16.mxu1 %v14421_v7 }
 0x164   : > { %14492 = vst [vmem:[#allocation108_spill] sm:$0xff] %v10625_v27  ;;  %v10628_v0 = vpop.f32.mrf.mxu1 }
 0x165   : > { %14493 = vst [vmem:[#allocation109_spill] sm:$0xff] %v10628_v0  ;;  %v10630_v55 = vpop.f32.mrf.mxu0 }
 0x166   : > { %14494 = vst [vmem:[#allocation110_spill] sm:$0xff] %v10630_v55  ;;  %v10632_v48 = vpop.f32.mrf.mxu1 }
 0x167   : > { %14495 = vst [vmem:[#allocation111_spill] sm:$0xff] %v10632_v48  ;;  %v10635_v32 = vpop.f32.mrf.mxu0  ;;  %9083 = vmatmul.mubr.msk.bf16.gmra.mxu0 %vm780_vm3, %v9404_v47 }
 0x168   : > { %14496 = vst [vmem:[#allocation112_spill] sm:$0xff] %v10635_v32  ;;  %v10638_v21 = vpop.f32.mrf.mxu1  ;;  %9086 = vmatprep.mubr.msk.bf16.mxu0 %vm780_vm3, %v9405_v16 }
 0x169   : > { %14497 = vst [vmem:[#allocation113_spill] sm:$0xff] %v10638_v21  ;;  %v10641_v58 = vpop.f32.mrf.mxu0  ;;  %v9409_v21 = vld [vmem:[%s9614_s21 + $0x6c] sm:$0xff]  }
 0x16a   : > { %14498 = vst [vmem:[#allocation114_spill] sm:$0xff] %v10641_v58  ;;  %v10643_v42 = vpop.f32.mrf.mxu1  ;;  %8229 = vmatmul.mubr.msk.bf16.gmra.mxu1 %vm780_vm3, %v9408_v18 }
 0x16b   : > { %14499 = vst [vmem:[#allocation115_spill] sm:$0xff] %v10643_v42  ;;  %v10646_v0 = vpop.f32.mrf.mxu0  ;;  %2787 = vmatprep.mubr.bf16.mxu1 %v14421_v7 }
 0x16c   : > { %14500 = vst [vmem:[#allocation116_spill] sm:$0xff] %v10646_v0  ;;  %v10649_v48 = vpop.f32.mrf.mxu1 }
 0x16d   : > { %14501 = vst [vmem:[#allocation117_spill] sm:$0xff] %v10649_v48  ;;  %v10651_v59 = vpop.f32.mrf.mxu0  ;;  %v10668_v48 = vrot.slane %v8416_v41, %v9608_v10 }
 0x16e   : > { %14502 = vst [vmem:[#allocation118_spill] sm:$0xff] %v10651_v59  ;;  %v10653_v47 = vpop.f32.mrf.mxu1  ;;  %v9410_v59 = vld [vmem:[%s9614_s21 + $0x78] sm:$0xff]  }
 0x16f   : > { %14503 = vst [vmem:[#allocation119_spill] sm:$0xff] %v10653_v47  ;;  %v10656_v16 = vpop.f32.mrf.mxu0  ;;  %9087 = vmatmul.mubr.msk.bf16.gmra.mxu0 %vm780_vm3, %v9406_v24  ;;  %14508 = vst [vmem:[#allocation124_spill] sm:$0xff] %v10668_v48  ;;  %v4405_v24 = vcombine.high %v10668_v48, %v10668_v48 }
 0x170   : > { %14504 = vst [vmem:[#allocation120_spill] sm:$0xff] %v10656_v16  ;;  %v10659_v42 = vpop.f32.mrf.mxu1  ;;  %9090 = vmatprep.mubr.msk.bf16.mxu0 %vm780_vm3, %v9407_v20  ;;  %v8254_v20 = vld [vmem:[%s9614_s21 + $0xc] sm:$0xf] }
 0x171   : > { %14505 = vst [vmem:[#allocation121_spill] sm:$0xff] %v10659_v42  ;;  %v10662_v0 = vpop.f32.mrf.mxu0  ;;  %8433 = vmatprep.subr.msk.bf16.mxu1 %vm829_vm0, %v4405_v24  ;;  %v8257_v24 = vld [vmem:[%s9614_s21 + $0x18] sm:$0xf] }
 0x172   : > { %14506 = vst [vmem:[#allocation122_spill] sm:$0xff] %v10662_v0  ;;  %v10664_v58 = vpop.f32.mrf.mxu1  ;;  %8230 = vmatmul.mubr.msk.bf16.gmra.mxu1 %vm780_vm3, %v9409_v21  ;;  %v8255_v0 = vld [vmem:[%s9614_s21 + $0x10] sm:$0xf]  ;;  %v3201_v45 = vshll.u32 %v8257_v24, 16 }
 0x173   : > { %14507 = vst [vmem:[#allocation123_spill] sm:$0xff] %v10664_v58  ;;  %v10670_v47 = vpop.f32.mrf.mxu0  ;;  %2797 = vmatprep.mubr.bf16.mxu1 %v14421_v7  ;;  %v3183_v32 = vshll.u32 %v8255_v0, 16  ;;  %v3187_v4 = vshrl.u32 %v8255_v0, 16 }
 0x174   : > { %14509 = vst [vmem:[#allocation125_spill] sm:$0xff] %v10670_v47  ;;  %v10673_v16 = vpop.f32.mrf.mxu1  ;;  %v3177_v47 = vshll.u32 %v8254_v20, 16  ;;  %v3203_v35 = vrot.slane %v3201_v45, 5  ;;  %v8262_v45 = vld [vmem:[%s9614_s21 + $0x2c] sm:$0x1] }
 0x175   : > { %14510 = vst [vmem:[#allocation126_spill] sm:$0xff] %v10673_v16  ;;  %v10677_v42 = vpop.f32.mrf.mxu0  ;;  %v10705_v0 = vrot.slane %v3183_v32, 5  ;;  %v3241_v34 = vshll.u32 %v8262_v45, 16  ;;  %v3283_v45 = vshrl.u32 %v8267_v30, 16 }
 0x176   : > { %14511 = vst [vmem:[#allocation127_spill] sm:$0xff] %v10677_v42  ;;  %v10681_v58 = vpop.f32.mrf.mxu1  ;;  %v3174_v42 = vshrl.u32 %v8254_v20, 16  ;;  %v3179_v27 = vrot.slane %v3177_v47, 5 }
 0x177   : > { %14512 = vst [vmem:[#allocation128_spill] sm:$0xff] %v10681_v58  ;;  %v10685_v41 = vpop.f32.mrf.mxu0  ;;  %9091 = vmatmul.mubr.msk.bf16.gmra.mxu0 %vm780_vm3, %v9408_v18  ;;  %v8260_v18 = vld [vmem:[%s9614_s21 + $0x24] sm:$0xf]  ;;  %v3243_v11 = vrot.slane %v3241_v34, 5  ;;  %v3285_v34 = vrot.slane %v3283_v45, 4 }
 0x178   : > { %14513 = vst [vmem:[#allocation129_spill] sm:$0xff] %v10685_v41  ;;  %v10688_v16 = vpop.f32.mrf.mxu1  ;;  %9094 = vmatprep.mubr.msk.bf16.mxu0 %vm780_vm3, %v9409_v21  ;;  %v3176_v20 = vrot.slane %v3174_v42, 4  ;;  %v3222_v29 = vshrl.u32 %v8260_v18, 16 }
 0x179   : > { %14514 = vst [vmem:[#allocation130_spill] sm:$0xff] %v10688_v16  ;;  %v10691_v55 = vpop.f32.mrf.mxu0  ;;  %v8261_v16 = vld [vmem:[%s9614_s21 + $0x28] sm:$0xf] }
 0x17a   : > { %14515 = vst [vmem:[#allocation131_spill] sm:$0xff] %v10691_v55  ;;  %v10693_v58 = vpop.f32.mrf.mxu1  ;;  %8231 = vmatmul.mubr.msk.bf16.gmra.mxu1 %vm780_vm3, %v9410_v59  ;;  %v3189_v55 = vrot.slane %v3187_v4, 4  ;;  %v3231_v42 = vshll.u32 %v8261_v16, 16  ;;  %v3235_v47 = vshrl.u32 %v8261_v16, 16 }
 0x17b   : > { %14516 = vst [vmem:[#allocation132_spill] sm:$0xff] %v10693_v58  ;;  %v10698_v41 = vpop.f32.mrf.mxu0  ;;  %2807 = vmatprep.mubr.bf16.mxu1 %v14421_v7  ;;  %v3198_v58 = vshrl.u32 %v8257_v24, 16  ;;  %v3180_v24 = vor.u32 %v3179_v27, %v3176_v20  ;;  %v8259_v27 = vld [vmem:[%s9614_s21 + $0x20] sm:$0x1]  ;;  %v3224_v20 = vrot.slane %v3222_v29, 4  ;;  %v3193_v29 = vshll.u32 %v8256_v17, 16 }
 0x17c   : > { %14517 = vst [vmem:[#allocation133_spill] sm:$0xff] %v10698_v41  ;;  %v10703_v21 = vpop.f32.mrf.mxu1  ;;  %v3190_v28 = vor.u32 %v3189_v55, %v10705_v0  ;;  %v3237_v57 = vrot.slane %v3235_v47, 4  ;;  %v3217_v52 = vshll.u32 %v8259_v27, 16 }
 0x17d   : > { %14518 = vst [vmem:[#allocation134_spill] sm:$0xff] %v10703_v21  ;;  %v10707_v9 = vpop.f32.mrf.mxu0  ;;  %v3225_v21 = vshll.u32 %v8260_v18, 16  ;;  %v9413_v18 = vld [vmem:[%s9614_s21 + $0x90] sm:$0xff]   ;;  %v3200_v16 = vrot.slane %v3198_v58, 4 }
 0x17e   : > { %14519 = vst [vmem:[#allocation135_spill] sm:$0xff] %v10707_v9  ;;  %v10709_v41 = vpop.f32.mrf.mxu1  ;;  %v8263_v9 = vld [vmem:[%s9614_s21 + $0x30] sm:$0xf] }
 0x17f   : > { %14520 = vst [vmem:[#allocation136_spill] sm:$0xff] %v10709_v41  ;;  %v10712_v32 = vpop.f32.mrf.mxu0  ;;  %9095 = vmatmul.mubr.msk.bf16.gmra.mxu0 %vm780_vm3, %v9410_v59  ;;  %v8264_v41 = vld [vmem:[%s9614_s21 + $0x34] sm:$0xf]  ;;  %v3213_v59 = vrot.slane %v3211_v50, 4  ;;  %v3227_v55 = vrot.slane %v3225_v21, 5  ;;  %v3249_v50 = vshll.u32 %v8263_v9, 16  ;;  %v3204_v47 = vor.u32 %v3203_v35, %v3200_v16 }
 0x180   : > { %14521 = vst [vmem:[#allocation137_spill] sm:$0xff] %v10712_v32  ;;  %v10715_v4 = vpop.f32.mrf.mxu1  ;;  %9098 = vmatprep.mubr.msk.bf16.mxu0 %vm780_vm3, %v9412_v5  ;;  %v10725_v32 = vrot.slane %v3207_v19, 5  ;;  %v3246_v19 = vshrl.u32 %v8263_v9, 16  ;;  %v3255_v58 = vshll.u32 %v8264_v41, 16  ;;  %v3259_v63 = vshrl.u32 %v8264_v41, 16 }
 0x181   : > { %14522 = vst [vmem:[#allocation138_spill] sm:$0xff] %v10715_v4  ;;  %v10721_v33 = vpop.f32.mrf.mxu0  ;;  %v10731_v4 = vrot.slane %v3231_v42, 5  ;;  %v10744_v42 = vrot.slane %v3180_v24, 4  ;;  %v10751_v9 = vrot.slane %v3190_v28, 4  ;;  %v3228_v41 = vor.u32 %v3227_v55, %v3224_v20  ;;  %v8265_v28 = vld [vmem:[%s9614_s21 + $0x38] sm:$0x1] }
 0x182   : > { %14523 = vst [vmem:[#allocation139_spill] sm:$0xff] %v10721_v33  ;;  %v10727_v48 = vpop.f32.mrf.mxu1  ;;  %8232 = vmatmul.mubr.msk.bf16.gmra.mxu1 %vm780_vm3, %v9412_v5  ;;  %v10740_v5 = vld [vmem:[%s9614_s21 + $0x9c] sm:$0xff]   ;;  %v3248_v24 = vrot.slane %v3246_v19, 4  ;;  %v3251_v35 = vrot.slane %v3249_v50, 5  ;;  %v10757_v16 = vrot.slane %v3255_v58, 5  ;;  %v3270_v20 = vshrl.u32 %v8266_v22, 16 }
 0x183   : > { %14524 = vst [vmem:[#allocation140_spill] sm:$0xff] %v10727_v48  ;;  %v10733_v33 = vpop.f32.mrf.mxu0  ;;  %2817 = vmatprep.mubr.bf16.mxu1 %v14421_v7  ;;  %v3273_v55 = vshll.u32 %v8266_v22, 16  ;;  %v3205_v19 = vrot.slane %v3204_v47, 4  ;;  %v3219_v58 = vrot.slane %v3217_v52, 5  ;;  %v8269_v47 = vld [vmem:[%s9614_s21 + $0x48] sm:$0xf] }
 0x184   : > { %14525 = vst [vmem:[#allocation141_spill] sm:$0xff] %v10733_v33  ;;  %v10737_v48 = vpop.f32.mrf.mxu1  ;;  %v3214_v33 = vor.u32 %v3213_v59, %v10725_v32  ;;  %v3261_v59 = vrot.slane %v3259_v63, 4  ;;  %v8270_v52 = vld [vmem:[%s9614_s21 + $0x4c] sm:$0xf] }
 0x185   : > { %14526 = vst [vmem:[#allocation142_spill] sm:$0xff] %v10737_v48  ;;  %v10742_v21 = vpop.f32.mrf.mxu0  ;;  %v3238_v48 = vor.u32 %v3237_v57, %v10731_v4  ;;  %v3279_v57 = vshll.u32 %v8267_v30, 16  ;;  %v3275_v51 = vrot.slane %v3273_v55, 5  ;;  %v3294_v55 = vshrl.u32 %v8269_v47, 16 }
 0x186   : > { %14527 = vst [vmem:[#allocation143_spill] sm:$0xff] %v10742_v21  ;;  %v10749_v25 = vpop.f32.mrf.mxu1  ;;  %v3215_v50 = vrot.slane %v3214_v33, 4  ;;  %v3229_v21 = vrot.slane %v3228_v41, 4  ;;  %v3265_v33 = vshll.u32 %v8265_v28, 16  ;;  %v8268_v28 = vld [vmem:[%s9614_s21 + $0x44] sm:$0x1] }
 0x187   : > { %14528 = vst [vmem:[#allocation144_spill] sm:$0xff] %v10749_v25  ;;  %v10754_v17 = vpop.f32.mrf.mxu0  ;;  %9099 = vmatmul.mubr.msk.bf16.gmra.mxu0 %vm780_vm3, %v9413_v18  ;;  %v3239_v30 = vrot.slane %v3238_v48, 4  ;;  %v10783_v41 = vrot.slane %v3279_v57, 5  ;;  %v3186_v48 = vsel %vm9648_vm4, %v10744_v42, %v10705_v0  ;;  %v3297_v57 = vshll.u32 %v8269_v47, 16 }
 0x188   : > { %14529 = vst [vmem:[#allocation145_spill] sm:$0xff] %v10754_v17  ;;  %v10759_v27 = vpop.f32.mrf.mxu1  ;;  %9102 = vmatprep.mubr.msk.bf16.mxu0 %vm780_vm3, %v10740_v5  ;;  %v3195_v17 = vrot.slane %v3193_v29, 5  ;;  %v3262_v29 = vor.u32 %v3261_v59, %v10757_v16  ;;  %v3220_v59 = vsel %vm9648_vm4, %v3215_v50, %v3219_v58  ;;  %v3303_v45 = vshll.u32 %v8270_v52, 16 }
 0x189   : > { %14530 = vst [vmem:[#allocation146_spill] sm:$0xff] %v10759_v27  ;;  %v10764_v25 = vpop.f32.mrf.mxu0  ;;  %v10770_v27 = vld [vmem:[%s9614_s21 + $0xa8] sm:$0xff]   ;;  %v3244_v50 = vsel %vm9648_vm4, %v3239_v30, %v3243_v11  ;;  %v3286_v47 = vor.u32 %v3285_v34, %v10783_v41  ;;  %v3296_v11 = vrot.slane %v3294_v55, 4 }
 0x18a   : > { %14531 = vst [vmem:[#allocation147_spill] sm:$0xff] %v10764_v25  ;;  %v10766_v63 = vpop.f32.mrf.mxu1  ;;  %8233 = vmatmul.mubr.msk.bf16.gmra.mxu1 %vm780_vm3, %v9413_v18  ;;  %v3252_v25 = vor.u32 %v3251_v35, %v3248_v24  ;;  %v3272_v18 = vrot.slane %v3270_v20, 4  ;;  %v3196_v24 = vsel %vm9648_vm4, %v10751_v9, %v3195_v17  ;;  %v3210_v35 = vsel %vm9648_vm4, %v3205_v19, %v10725_v32 }
 0x18b   : > { %14532 = vst [vmem:[#allocation148_spill] sm:$0xff] %v10766_v63  ;;  %v10772_v22 = vpop.f32.mrf.mxu0  ;;  %2827 = vmatprep.mubr.bf16.mxu1 %v14421_v7  ;;  %v10781_v63 = vld [vmem:[%s9614_s21 + $0xb4] sm:$0xff]   ;;  %v3234_v32 = vsel %vm9648_vm4, %v3229_v21, %v10731_v4  ;;  %v3263_v9 = vrot.slane %v3262_v29, 4  ;;  %v3267_v17 = vrot.slane %v3265_v33, 5  ;;  %v10818_v4 = vcombine.low %v3186_v48, %v3196_v24  ;;  %v8271_v21 = vld [vmem:[%s9614_s21 + $0x50] sm:$0x1] }
 0x18c   : > { %14533 = vst [vmem:[#allocation149_spill] sm:$0xff] %v10772_v22  ;;  %v10778_v56 = vpop.f32.mrf.mxu1  ;;  %v3253_v42 = vrot.slane %v3252_v25, 4  ;;  %v3276_v58 = vor.u32 %v3275_v51, %v3272_v18  ;;  %v10822_v25 = vsel %vm829_vm0, %v10606_v60, 0  ;;  %v3299_v51 = vrot.slane %v3297_v57, 5  ;;  %v8272_v18 = vld [vmem:[%s9614_s21 + $0x54] sm:$0xf] }
 0x18d   : > { %14534 = vst [vmem:[#allocation150_spill] sm:$0xff] %v10778_v56  ;;  %v10785_v22 = vpop.f32.mrf.mxu0  ;;  %v3307_v56 = vshrl.u32 %v8270_v52, 16  ;;  %v3289_v52 = vshll.u32 %v8268_v28, 16  ;;  %v10829_v30 = vrot.slane %v3303_v45, 5  ;;  %v10836_v48 = vld [vmem:[%s9614_s21 + $0xc0] sm:$0xff]   ;;  %v10838_v60 = vcombine.low %v3210_v35, %v3220_v59 }
 0x18e   : > { %v10800_v20 = vpop.f32.mrf.mxu1  ;;  %v10840_v24 = vcombine.low %v3234_v32, %v3244_v50  ;;  %v3268_v28 = vsel %vm9648_vm4, %v3263_v9, %v3267_v17  ;;  %v3287_v57 = vrot.slane %v3286_v47, 4  ;;  %v10852_v35 = vadd.f32 %v10475_v39, %v10146_v37  ;;  %v8275_v39 = vld [vmem:[%s9614_s21 + $0x60] sm:$0xf] }
 0x18f   : > { %14535 = vst [vmem:[#allocation151_spill] sm:$0xff] %v10800_v20  ;;  %v10802_v0 = vpop.f32.mrf.mxu0  ;;  %9103 = vmatmul.mubr.msk.bf16.gmra.mxu0 %vm780_vm3, %v10770_v27  ;;  %v3309_v33 = vrot.slane %v3307_v56, 4  ;;  %v3277_v56 = vrot.slane %v3276_v58, 4  ;;  %v3291_v45 = vrot.slane %v3289_v52, 5  ;;  %v10856_v59 = vadd.f32 %v10482_v2, %v10156_v44 }
 0x190   : > { %v10809_v19 = vpop.f32.mrf.mxu1  ;;  %9106 = vmatprep.mubr.msk.bf16.mxu0 %vm780_vm3, %v10781_v63  ;;  %v3318_v32 = vshrl.u32 %v8272_v18, 16  ;;  %v10862_v9 = vadd.f32 %v10486_v54, %v10162_v8  ;;  %v10866_v17 = vadd.f32 %v10495_v31, %v10167_v40  ;;  %v3300_v37 = vor.u32 %v3299_v51, %v3296_v11  ;;  %v8276_v31 = vld [vmem:[%s9614_s21 + $0x64] sm:$0xf]  ;;  %v8278_v11 = vld [vmem:[%s9614_s21 + $0x6c] sm:$0xf] }
 0x191   : > { %14536 = vst [vmem:[#allocation152_spill] sm:$0xff] %v10809_v19  ;;  %v10816_v20 = vpop.f32.mrf.mxu0  ;;  %v8273_v19 = vld [vmem:[%s9614_s21 + $0x58] sm:$0xf]  ;;  %v3310_v44 = vor.u32 %v3309_v33, %v10829_v30  ;;  %v10874_v2 = vadd.f32 %v10500_v1, %v10173_v23  ;;  %v10885_v47 = vadd.f32 %v10507_v13, %v10186_v6  ;;  %v3282_v23 = vsel %vm9648_vm4, %v3277_v56, %v10783_v41  ;;  %v8274_v41 = vld [vmem:[%s9614_s21 + $0x5c] sm:$0x1] }
 0x192   : > { %v10825_v29 = vpop.f32.mrf.mxu1  ;;  %8234 = vmatmul.mubr.msk.bf16.gmra.mxu1 %vm780_vm3, %v10740_v5  ;;  %v3258_v5 = vsel %vm9648_vm4, %v3253_v42, %v10757_v16  ;;  %v3321_v42 = vshll.u32 %v8272_v18, 16  ;;  %v3327_v8 = vshll.u32 %v8273_v19, 16  ;;  %v3331_v40 = vshrl.u32 %v8273_v19, 16  ;;  %v8279_v18 = vld [vmem:[%s9614_s21 + $0x70] sm:$0xf] }
 0x193   : > { %14537 = vst [vmem:[#allocation153_spill] sm:$0xff] %v10825_v29  ;;  %v10832_v34 = vpop.f32.mrf.mxu0  ;;  %2837 = vmatprep.mubr.bf16.mxu1 %v14421_v7  ;;  %v3313_v29 = vshll.u32 %v8271_v21, 16  ;;  %v10880_v54 = vcombine.low %v3258_v5, %v3268_v28  ;;  %v3292_v1 = vsel %vm9648_vm4, %v3287_v57, %v3291_v45  ;;  %v3320_v51 = vrot.slane %v3318_v32, 4 }
 0x194   : > { %v10847_v55 = vpop.f32.mrf.mxu1  ;;  %v3323_v33 = vrot.slane %v3321_v42, 5  ;;  %v3342_v6 = vshrl.u32 %v8275_v39, 16  ;;  %v3345_v13 = vshll.u32 %v8275_v39, 16  ;;  %v3301_v28 = vrot.slane %v3300_v37, 4 }
 0x195   : > { %14538 = vst [vmem:[#allocation154_spill] sm:$0xff] %v10847_v55  ;;  %v10858_v16 = vpop.f32.mrf.mxu0  ;;  %v3315_v21 = vrot.slane %v3313_v29, 5  ;;  %v3351_v56 = vshll.u32 %v8276_v31, 16  ;;  %v10907_v29 = vrot.slane %v3327_v8, 5  ;;  %v3333_v45 = vrot.slane %v3331_v40, 4 }
 0x196   : > { %v10868_v50 = vpop.f32.mrf.mxu1  ;;  %v3366_v32 = vshrl.u32 %v8278_v11, 16  ;;  %v3369_v42 = vshll.u32 %v8278_v11, 16  ;;  %v10911_v39 = vadd.f32 %v10511_v38, %v10192_v62  ;;  %v3375_v37 = vshll.u32 %v8279_v18, 16 }
 0x197   : > { %14539 = vst [vmem:[#allocation155_spill] sm:$0xff] %v10868_v50  ;;  %v10876_v58 = vpop.f32.mrf.mxu0  ;;  %9107 = vmatmul.mubr.msk.bf16.gmra.mxu0 %vm780_vm3, %v10836_v48  ;;  %v3355_v50 = vshrl.u32 %v8276_v31, 16  ;;  %v3324_v55 = vor.u32 %v3323_v33, %v3320_v51  ;;  %v3344_v8 = vrot.slane %v3342_v6, 4  ;;  %v3306_v62 = vsel %vm9648_vm4, %v3301_v28, %v10829_v30  ;;  %v8277_v6 = vld [vmem:[%s9614_s21 + $0x68] sm:$0x1] }
 0x198   : > { %v10887_v52 = vpop.f32.mrf.mxu1  ;;  %3713 = vmatprep.mubr.bf16.mxu0 %v14421_v7  ;;  %v10930_v11 = vadd.f32 %v10518_v12, %v10203_v15  ;;  %v3334_v33 = vor.u32 %v3333_v45, %v10907_v29  ;;  %v3368_v30 = vrot.slane %v3366_v32, 4  ;;  %v8280_v15 = vld [vmem:[%s9614_s21 + $0x74] sm:$0x1]  ;;  %v10948_v12 = vrot.slane %v3375_v37, 5  ;;  %v8281_v28 = vld [vmem:[%s9614_s21 + $0x78] sm:$0xf] }
 0x199   : > { %14540 = vst [vmem:[#allocation156_spill] sm:$0xff] %v10887_v52  ;;  %v10896_v19 = vpop.f32.mrf.mxu0  ;;  %v3311_v52 = vrot.slane %v3310_v44, 4  ;;  %v3379_v44 = vshrl.u32 %v8279_v18, 16  ;;  %v3361_v37 = vshll.u32 %v8277_v6, 16 }
 0x19a   : > { %14541 = vst [vmem:[#allocation157_spill] sm:$0xff] %v10896_v19  ;;  %v10899_v5 = vpop.f32.mrf.mxu1  ;;  %8235 = vmatmul.mubr.msk.bf16.gmra.mxu1 %vm780_vm3, %v10770_v27  ;;  %v10915_v27 = vcombine.low %v3282_v23, %v3292_v1  ;;  %v3347_v19 = vrot.slane %v3345_v13, 5  ;;  %v10926_v23 = vrot.slane %v3351_v56, 5  ;;  %v3357_v1 = vrot.slane %v3355_v50, 4 }
 0x19b   : > { %14542 = vst [vmem:[#allocation158_spill] sm:$0xff] %v10899_v5  ;;  %v10904_v57 = vpop.f32.mrf.mxu0  ;;  %2847 = vmatprep.mubr.bf16.mxu1 %v14421_v7  ;;  %v3316_v38 = vsel %vm9648_vm4, %v3311_v52, %v3315_v21  ;;  %v3371_v13 = vrot.slane %v3369_v42, 5  ;;  %v10938_v52 = vadd.f32 %v10523_v36, %v10209_v26  ;;  %v3381_v18 = vrot.slane %v3379_v44, 4 }
 0x19c   : > { %14543 = vst [vmem:[#allocation159_spill] sm:$0xff] %v10904_v57  ;;  %v10913_v5 = vpop.f32.mrf.mxu1  ;;  %v3337_v57 = vshll.u32 %v8274_v41, 16  ;;  %v10951_v56 = vcombine.low %v3306_v62, %v3316_v38  ;;  %v10953_v26 = vrot.slane %v3324_v55, 4  ;;  %v3348_v45 = vor.u32 %v3347_v19, %v3344_v8  ;;  %v8282_v55 = vld [vmem:[%s9614_s21 + $0x7c] sm:$0xf] }
 0x19d   : > { %14544 = vst [vmem:[#allocation160_spill] sm:$0xff] %v10913_v5  ;;  %v10917_v31 = vpop.f32.mrf.mxu0  ;;  %v3358_v42 = vor.u32 %v3357_v1, %v10926_v23  ;;  %v3335_v44 = vrot.slane %v3334_v33, 4  ;;  %v3372_v8 = vor.u32 %v3371_v13, %v3368_v30  ;;  %v3385_v62 = vshll.u32 %v8280_v15, 16 }
 0x19e   : > { %v10919_v40 = vpop.f32.mrf.mxu1  ;;  %v3339_v36 = vrot.slane %v3337_v57, 5  ;;  %v3390_v38 = vshrl.u32 %v8281_v28, 16  ;;  %v3393_v1 = vshll.u32 %v8281_v28, 16  ;;  %v3349_v33 = vrot.slane %v3348_v45, 4 }
 0x19f   : > { %14545 = vst [vmem:[#allocation161_spill] sm:$0xff] %v10919_v40  ;;  %v2070_v51 = vpop.f32.mrf.mxu0  ;;  %8320 = vmatmul.mubr.msk.bf16.vlgmr.msra.gmra.mxu0 %vm780_vm3, %v10818_v4  ;;  %v3399_v30 = vshll.u32 %v8282_v55, 16  ;;  %v3403_v13 = vshrl.u32 %v8282_v55, 16  ;;  %v3359_v28 = vrot.slane %v3358_v42, 4  ;;  %v3373_v45 = vrot.slane %v3372_v8, 4  ;;  %v14572_v40 = vld [vmem:[#allocation14_spill] sm:$0xff] }
 0x1a0   : > { %v10940_v21 = vpop.f32.mrf.mxu1  ;;  %v10943_v50 = vadd.f32 %v2070_v51, %v10852_v35  ;;  %9145 = vmatpush3.bf16.msra.mxu0 %v10822_v25  ;;  %3723 = vmatprep.mubr.bf16.mxu0 %v14421_v7  ;;  %v10958_v35 = vld [vmem:[%s14361_s1 + $0x24] sm:$0x3f]  ;;  %v3392_v42 = vrot.slane %v3390_v38, 4 }
 0x1a1   : > { %14546 = vst [vmem:[#allocation162_spill] sm:$0xff] %v10940_v21  ;;  %v2072_v41 = vpop.f32.mrf.mxu0  ;;  %v10971_v19 = vrot.slane %v10958_v35, %v9608_v10  ;;  %v8284_v55 = vld [vmem:[%s9614_s21 + $0x84] sm:$0xf]  ;;  %v11019_v8 = vrot.slane %v3399_v30, 5 }
 0x1a2   : > { %v10960_v25 = vpop.f32.mrf.mxu1  ;;  %8236 = vmatmul.mubr.msk.bf16.gmra.mxu1 %vm780_vm3, %v10781_v63  ;;  %v10965_v32 = vadd.f32 %v2072_v41, %v10856_v59  ;;  %v3382_v59 = vor.u32 %v3381_v18, %v10948_v12  ;;  %v10984_v41 = vadd.f32 %v10529_v46, %v10216_v53  ;;  %v3330_v18 = vsel %vm9648_vm4, %v10953_v26, %v10907_v29 }
 0x1a3   : > { %14547 = vst [vmem:[#allocation163_spill] sm:$0xff] %v10960_v25  ;;  %14548 = vst [vmem:[#allocation164_spill] sm:$0xff] %v10971_v19  ;;  %v2074_v57 = vpop.f32.mrf.mxu0  ;;  %2857 = vmatprep.mubr.bf16.mxu1 %v14421_v7  ;;  %v5044_v6 = vcombine.high %v10971_v19, %v10971_v19  ;;  %v10998_v53 = vadd.f32 %v10533_v3, %v10222_v61  ;;  %v8283_v3 = vld [vmem:[%s9614_s21 + $0x80] sm:$0x1]  ;;  %v14554_v19 = vld [vmem:[#allocation83_spill] sm:$0xff] }
 0x1a4   : > { %v10974_v51 = vpop.f32.mrf.mxu1  ;;  %v10977_v63 = vadd.f32 %v2074_v57, %v10862_v9  ;;  %v3363_v57 = vrot.slane %v3361_v37, 5  ;;  %v3383_v61 = vrot.slane %v3382_v59, 4  ;;  %v3395_v37 = vrot.slane %v3393_v1, 5  ;;  %v14553_v1 = vld [vmem:[#allocation20_spill] sm:$0xff] }
 0x1a5   : > { %14549 = vst [vmem:[#allocation165_spill] sm:$0xff] %v10974_v51  ;;  %v2076_v25 = vpop.f32.mrf.mxu0  ;;  %8515 = vmatprep.subr.msk.bf16.mxu0 %vm829_vm0, %v5044_v6  ;;  %v11014_v6 = vadd.f32 %v10540_v14, %v10237_v49  ;;  %v3414_v14 = vshrl.u32 %v8284_v55, 16  ;;  %v3417_v59 = vshll.u32 %v8284_v55, 16 }
 0x1a6   : > { %v10986_v15 = vpop.f32.mrf.mxu1  ;;  %v10989_v9 = vadd.f32 %v2076_v25, %v10866_v17  ;;  %v3340_v17 = vsel %vm9648_vm4, %v3335_v44, %v3339_v36  ;;  %v3387_v25 = vrot.slane %v3385_v62, 5  ;;  %v3354_v44 = vsel %vm9648_vm4, %v3349_v33, %v10926_v23 }
 0x1a7   : > { %14550 = vst [vmem:[#allocation166_spill] sm:$0xff] %v10986_v15  ;;  %v2080_v46 = vpop.f32.mrf.mxu0  ;;  %8321 = vmatmul.mubr.msk.bf16.gmra.mxu0 %vm780_vm3, %v10838_v60  ;;  %v3405_v62 = vrot.slane %v3403_v13, 4  ;;  %v3364_v49 = vsel %vm9648_vm4, %v3359_v28, %v3363_v57  ;;  %v11033_v23 = vadd.f32 %v14554_v19, %v14553_v1  ;;  %v11037_v30 = vcombine.low %v3330_v18, %v3340_v17  ;;  %v14558_v17 = vld [vmem:[#allocation24_spill] sm:$0xff]  ;;  %v14559_v1 = vld [vmem:[#allocation87_spill] sm:$0xff] }
 0x1a8   : > { %v11005_v29 = vpop.f32.mrf.mxu1  ;;  %v11008_v26 = vadd.f32 %v2080_v46, %v10874_v2  ;;  %3733 = vmatprep.mubr.bf16.mxu0 %v14421_v7  ;;  %v8285_v2 = vld [vmem:[%s9614_s21 + $0x88] sm:$0xf]  ;;  %v3388_v19 = vsel %vm9648_vm4, %v3383_v61, %v3387_v25  ;;  %v3396_v57 = vor.u32 %v3395_v37, %v3392_v42  ;;  %v3416_v25 = vrot.slane %v3414_v14, 4  ;;  %v8287_v37 = vld [vmem:[%s9614_s21 + $0x90] sm:$0xf] }
 0x1a9   : > { %14551 = vst [vmem:[#allocation167_spill] sm:$0xff] %v11005_v29  ;;  %v2082_v36 = vpop.f32.mrf.mxu0  ;;  %v3423_v55 = vshll.u32 %v8285_v2, 16  ;;  %v3419_v61 = vrot.slane %v3417_v59, 5  ;;  %v3427_v42 = vshrl.u32 %v8285_v2, 16  ;;  %v3441_v21 = vshll.u32 %v8287_v37, 16 }
 0x1aa   : > { %v11022_v46 = vpop.f32.mrf.mxu1  ;;  %8237 = vmatmul.mubr.msk.bf16.gmra.mxu1 %vm780_vm3, %v10836_v48  ;;  %v11027_v38 = vadd.f32 %v2082_v36, %v10885_v47  ;;  %v3378_v48 = vsel %vm9648_vm4, %v3373_v45, %v10948_v12  ;;  %v3409_v47 = vshll.u32 %v8283_v3, 16  ;;  %v14556_v36 = vld [vmem:[#allocation22_spill] sm:$0xff]  ;;  %v11057_v45 = vcombine.low %v3354_v44, %v3364_v49 }
 0x1ab   : > { %14552 = vst [vmem:[#allocation168_spill] sm:$0xff] %v11022_v46  ;;  %v2084_v33 = vpop.f32.mrf.mxu0  ;;  %9112 = vmatprep.mubr.msk.bf16.mxu1 %vm780_vm3, %v10818_v4  ;;  %v14557_v4 = vld [vmem:[#allocation85_spill] sm:$0xff]  ;;  %v11055_v46 = vadd.f32 %v14559_v1, %v14558_v17  ;;  %v3406_v3 = vor.u32 %v3405_v62, %v11019_v8  ;;  %v14563_v17 = vld [vmem:[#allocation28_spill] sm:$0xff]  ;;  %v14564_v1 = vld [vmem:[#allocation91_spill] sm:$0xff]  ;;  %v3397_v59 = vrot.slane %v3396_v57, 4 }
 0x1ac   : > { %v11042_v13 = vpop.f32.mrf.mxu1  ;;  %v11045_v28 = vadd.f32 %v2084_v33, %v10911_v39  ;;  %v11051_v18 = vadd.f32 %v14557_v4, %v14556_v36  ;;  %v14561_v36 = vld [vmem:[#allocation26_spill] sm:$0xff]  ;;  %v14562_v4 = vld [vmem:[#allocation89_spill] sm:$0xff]  ;;  %v11072_v44 = vadd.f32 %v14564_v1, %v14563_v17  ;;  %v3411_v49 = vrot.slane %v3409_v47, 5  ;;  %v14571_v47 = vld [vmem:[#allocation104_spill] sm:$0xff] }
 0x1ad   : > { %14555 = vst [vmem:[#allocation20_spill] sm:$0xff] %v11042_v13  ;;  %v2086_v12 = vpop.f32.mrf.mxu0  ;;  %v11068_v13 = vadd.f32 %v14562_v4, %v14561_v36  ;;  %v8288_v36 = vld [vmem:[%s9614_s21 + $0x94] sm:$0xf]  ;;  %v14567_v4 = vld [vmem:[#allocation124_spill] sm:$0xff]  ;;  %v14568_v1 = vld [vmem:[#allocation30_spill] sm:$0xff]  ;;  %v3407_v15 = vrot.slane %v3406_v3, 4 }
 0x1ae   : > { %v11060_v39 = vpop.f32.mrf.mxu1  ;;  %v11063_v33 = vadd.f32 %v2086_v12, %v10930_v11  ;;  %v11076_v11 = vcombine.low %v3378_v48, %v3388_v19  ;;  %v11084_v12 = vrot.slane %v3423_v55, 5  ;;  %v4455_v17 = vsel %vm829_vm0, %v14567_v4, 0  ;;  %v14570_v48 = vld [vmem:[#allocation13_spill] sm:$0xff] }
 0x1af   : > { %14560 = vst [vmem:[#allocation83_spill] sm:$0xff] %v11060_v39  ;;  %v2090_v62 = vpop.f32.mrf.mxu0  ;;  %8322 = vmatmul.mubr.msk.bf16.gmra.mxu0 %vm780_vm3, %v10840_v24  ;;  %v14569_v39 = vld [vmem:[#allocation93_spill] sm:$0xff]  ;;  %v1583_v19 = vadd.f32 %v14571_v47, %v14570_v48  ;;  %v3420_v55 = vor.u32 %v3419_v61, %v3416_v25  ;;  %v3429_v4 = vrot.slane %v3427_v42, 4  ;;  %v3447_v3 = vshll.u32 %v8288_v36, 16  ;;  %v14577_v42 = vld [vmem:[#allocation15_spill] sm:$0xff] }
 0x1b0   : > { %v11078_v14 = vpop.f32.mrf.mxu1  ;;  %v11081_v2 = vadd.f32 %v2090_v62, %v10938_v52  ;;  %3743 = vmatprep.mubr.bf16.mxu0 %v14421_v7  ;;  %v11091_v29 = vadd.f32 %v14569_v39, %v14568_v1  ;;  %v8286_v52 = vld [vmem:[%s9614_s21 + $0x8c] sm:$0x1]  ;;  %v3438_v62 = vshrl.u32 %v8287_v37, 16  ;;  %v3451_v47 = vshrl.u32 %v8288_v36, 16  ;;  %v14578_v37 = vld [vmem:[#allocation108_spill] sm:$0xff] }
 0x1b1   : > { %14565 = vst [vmem:[#allocation22_spill] sm:$0xff] %v11078_v14  ;;  %v2092_v14 = vpop.f32.mrf.mxu0  ;;  %v14573_v39 = vld [vmem:[#allocation106_spill] sm:$0xff] }
 0x1b2   : > { %14566 = vst [vmem:[#allocation85_spill] sm:$0xff] %v11081_v2  ;;  %v9046_v51 = vpop.f32.mrf.mxu1  ;;  %9113 = vmatmul.mubr.msk.bf16.vlgmr.msra.gmra.mxu1 %vm780_vm3, %v10838_v60  ;;  %v11099_v57 = vadd.f32 %v2092_v14, %v10984_v41  ;;  %v1575_v1 = vadd.f32 %v14573_v39, %v14572_v40  ;;  %v14575_v60 = vld [vmem:[#allocation32_spill] sm:$0xff]  ;;  %v14576_v2 = vld [vmem:[#allocation95_spill] sm:$0xff]  ;;  %v3402_v40 = vsel %vm9648_vm4, %v3397_v59, %v11019_v8  ;;  %v3443_v59 = vrot.slane %v3441_v21, 5 }
 0x1b3   : > { %v11103_v5 = vadd.f32 %v9046_v51, %v1583_v19  ;;  %v2094_v48 = vpop.f32.mrf.mxu0  ;;  %9116 = vmatprep.mubr.msk.bf16.mxu1 %vm780_vm3, %v10840_v24  ;;  %4478 = vmatpush1.bf16.msra.mxu1 %v4455_v17  ;;  %v11109_v41 = vadd.f32 %v14576_v2, %v14575_v60  ;;  %v3433_v51 = vshll.u32 %v8286_v52, 16  ;;  %v1586_v24 = vadd.f32 %v14578_v37, %v14577_v42  ;;  %v8290_v19 = vld [vmem:[%s9614_s21 + $0x9c] sm:$0xf]  ;;  %v14581_v60 = vld [vmem:[#allocation110_spill] sm:$0xff] }
 0x1b4   : > { %v2263_v25 = vpop.f32.mrf.mxu1  ;;  %v11112_v61 = vadd.f32 %v2094_v48, %v10998_v53  ;;  %v3412_v2 = vsel %vm9648_vm4, %v3407_v15, %v3411_v49  ;;  %v3440_v17 = vrot.slane %v3438_v62, 4  ;;  %v11127_v48 = vrot.slane %v3420_v55, 4  ;;  %v14580_v52 = vld [vmem:[#allocation16_spill] sm:$0xff]  ;;  %v8289_v15 = vld [vmem:[%s9614_s21 + $0x98] sm:$0x1] }
 0x1b5   : > { %14574 = vst [vmem:[#allocation24_spill] sm:$0xff] %v11103_v5  ;;  %v11119_v14 = vadd.f32 %v2263_v25, %v1575_v1  ;;  %v2096_v36 = vpop.f32.mrf.mxu0  ;;  %v3430_v8 = vor.u32 %v3429_v4, %v11084_v12  ;;  %v1578_v42 = vadd.f32 %v14581_v60, %v14580_v52  ;;  %v11137_v49 = vrot.slane %v3447_v3, 5  ;;  %v14585_v52 = vld [vmem:[#allocation17_spill] sm:$0xff]  ;;  %v14586_v60 = vld [vmem:[#allocation112_spill] sm:$0xff] }
 0x1b6   : > { %v9047_v39 = vpop.f32.mrf.mxu1  ;;  %v11125_v53 = vadd.f32 %v2096_v36, %v11014_v6  ;;  %v3453_v6 = vrot.slane %v3451_v47, 4  ;;  %v11143_v21 = vrot.slane %v3433_v51, 5  ;;  %v3462_v4 = vshrl.u32 %v8290_v19, 16  ;;  %v14584_v36 = vld [vmem:[#allocation97_spill] sm:$0xff] }
 0x1b7   : > { %14579 = vst [vmem:[#allocation87_spill] sm:$0xff] %v11119_v14  ;;  %v11132_v1 = vadd.f32 %v9047_v39, %v1586_v24  ;;  %v2100_v25 = vpop.f32.mrf.mxu0  ;;  %8323 = vmatmul.mubr.msk.bf16.gmra.mxu0 %vm780_vm3, %v10880_v54  ;;  %v3465_v37 = vshll.u32 %v8290_v19, 16  ;;  %v14583_v24 = vld [vmem:[#allocation34_spill] sm:$0xff]  ;;  %v11153_v14 = vcombine.low %v3402_v40, %v3412_v2  ;;  %v3426_v19 = vsel %vm9648_vm4, %v11127_v48, %v11084_v12  ;;  %v14592_v48 = vld [vmem:[#allocation19_spill] sm:$0xff]  ;;  %v14597_v5 = vld [vmem:[#allocation21_spill] sm:$0xff] }
 0x1b8   : > { %v2266_v62 = vpop.f32.mrf.mxu1  ;;  %v11140_v55 = vadd.f32 %v2100_v25, %v11033_v23  ;;  %3753 = vmatprep.mubr.bf16.mxu0 %v14421_v7  ;;  %v11147_v39 = vadd.f32 %v14584_v36, %v14583_v24  ;;  %v8291_v23 = vld [vmem:[%s9614_s21 + $0xa0] sm:$0xf]  ;;  %v3444_v24 = vor.u32 %v3443_v59, %v3440_v17  ;;  %v3457_v36 = vshll.u32 %v8289_v15, 16 }
 0x1b9   : > { %14582 = vst [vmem:[#allocation26_spill] sm:$0xff] %v11132_v1  ;;  %v1599_v1 = vadd.f32 %v14586_v60, %v14585_v52  ;;  %v11151_v3 = vadd.f32 %v2266_v62, %v1578_v42  ;;  %v2102_v47 = vpop.f32.mrf.mxu0  ;;  %v14588_v42 = vld [vmem:[#allocation18_spill] sm:$0xff]  ;;  %v3467_v12 = vrot.slane %v3465_v37, 5  ;;  %v3471_v17 = vshll.u32 %v8291_v23, 16  ;;  %v14593_v59 = vld [vmem:[#allocation116_spill] sm:$0xff] }
 0x1ba   : > { %v9050_v25 = vpop.f32.mrf.mxu1  ;;  %9117 = vmatmul.mubr.msk.bf16.gmra.mxu1 %vm780_vm3, %v10880_v54  ;;  %v11159_v51 = vadd.f32 %v2102_v47, %v11051_v18  ;;  %v14589_v62 = vld [vmem:[#allocation114_spill] sm:$0xff]  ;;  %v3431_v54 = vrot.slane %v3430_v8, 4  ;;  %v3454_v18 = vor.u32 %v3453_v6, %v11137_v49  ;;  %v1602_v15 = vadd.f32 %v14593_v59, %v14592_v48  ;;  %v14595_v6 = vld [vmem:[#allocation36_spill] sm:$0xff] }
 0x1bb   : > { %14587 = vst [vmem:[#allocation89_spill] sm:$0xff] %v11151_v3  ;;  %v1591_v52 = vadd.f32 %v14589_v62, %v14588_v42  ;;  %v11167_v40 = vadd.f32 %v9050_v25, %v1599_v1  ;;  %v2104_v2 = vpop.f32.mrf.mxu0  ;;  %9120 = vmatprep.mubr.msk.bf16.mxu1 %vm780_vm3, %v10915_v27  ;;  %v3464_v3 = vrot.slane %v3462_v4, 4  ;;  %v3475_v42 = vshrl.u32 %v8291_v23, 16  ;;  %v14596_v62 = vld [vmem:[#allocation99_spill] sm:$0xff] }
 0x1bc   : > { %v2279_v60 = vpop.f32.mrf.mxu1  ;;  %v11173_v47 = vadd.f32 %v2104_v2, %v11055_v46  ;;  %v5029_v8 = vcombine.high %v10958_v35, %v10958_v35  ;;  %v3445_v37 = vrot.slane %v3444_v24, 4  ;;  %v3459_v2 = vrot.slane %v3457_v36, 5  ;;  %v8292_v35 = vld [vmem:[%s9614_s21 + $0xa4] sm:$0x1] }
 0x1bd   : > { %14590 = vst [vmem:[#allocation28_spill] sm:$0xff] %v11167_v40  ;;  %v11177_v1 = vadd.f32 %v2279_v60, %v1591_v52  ;;  %v2106_v25 = vpop.f32.mrf.mxu0  ;;  %v1432_v40 = vadd.f32 %v14596_v62, %v14595_v6  ;;  %v3455_v23 = vrot.slane %v3454_v18, 4  ;;  %v8293_v60 = vld [vmem:[%s9614_s21 + $0xa8] sm:$0xf]  ;;  %v14603_v18 = vld [vmem:[#allocation23_spill] sm:$0xff] }
 0x1be   : > { %14591 = vst [vmem:[#allocation91_spill] sm:$0xff] %v11173_v47  ;;  %v9051_v46 = vpop.f32.mrf.mxu1  ;;  %v11184_v4 = vadd.f32 %v2106_v25, %v11068_v13  ;;  %v14598_v47 = vld [vmem:[#allocation118_spill] sm:$0xff]  ;;  %v11195_v6 = vrot.slane %v5029_v8, %v9608_v10  ;;  %v14601_v13 = vld [vmem:[#allocation101_spill] sm:$0xff] }
 0x1bf   : > { %14594 = vst [vmem:[#allocation124_spill] sm:$0xff] %v11177_v1  ;;  %v1594_v48 = vadd.f32 %v14598_v47, %v14597_v5  ;;  %v11188_v59 = vadd.f32 %v9051_v46, %v1602_v15  ;;  %v2110_v52 = vpop.f32.mrf.mxu0  ;;  %8324 = vmatmul.mubr.msk.bf16.gmra.mxu0 %vm780_vm3, %v10915_v27  ;;  %v14600_v62 = vld [vmem:[#allocation38_spill] sm:$0xff]  ;;  %v3436_v5 = vsel %vm9648_vm4, %v3431_v54, %v11143_v21  ;;  %v14604_v47 = vld [vmem:[#allocation120_spill] sm:$0xff]  ;;  %v3486_v54 = vshrl.u32 %v8293_v60, 16 }
 0x1c0   : > { %v1434_v25 = vadd.f32 %v14601_v13, %v14600_v62  ;;  %v2282_v24 = vpop.f32.mrf.mxu1  ;;  %v11200_v36 = vadd.f32 %v2110_v52, %v11072_v44  ;;  %3763 = vmatprep.mubr.bf16.mxu0 %v14421_v7  ;;  %v3468_v27 = vor.u32 %v3467_v12, %v3464_v3  ;;  %v1615_v15 = vadd.f32 %v14604_v47, %v14603_v18  ;;  %v14607_v12 = vld [vmem:[#allocation25_spill] sm:$0xff]  ;;  %v14610_v18 = vld [vmem:[#allocation40_spill] sm:$0xff]  ;;  %v14611_v47 = vld [vmem:[#allocation103_spill] sm:$0xff] }
 0x1c1   : > { %14599 = vst [vmem:[#allocation30_spill] sm:$0xff] %v11188_v59  ;;  %v11208_v46 = vadd.f32 %v2282_v24, %v1594_v48  ;;  %v2112_v8 = vpop.f32.mrf.mxu0  ;;  %v11210_v59 = vrot.slane %v3471_v17, 5  ;;  %v3477_v62 = vrot.slane %v3475_v42, 4  ;;  %9334 = vmatprep.subr.msk.bf16.mxu1 %vm829_vm0, %v11195_v6  ;;  %v3450_v21 = vsel %vm9648_vm4, %v3445_v37, %v11137_v49  ;;  %v14608_v17 = vld [vmem:[#allocation122_spill] sm:$0xff] }
 0x1c2   : > { %14602 = vst [vmem:[#allocation93_spill] sm:$0xff] %v11200_v36  ;;  %v9054_v44 = vpop.f32.mrf.mxu1  ;;  %9121 = vmatmul.mubr.msk.bf16.gmra.mxu1 %vm780_vm3, %v10951_v56  ;;  %v11217_v52 = vadd.f32 %v2112_v8, %v11091_v29  ;;  %v3481_v3 = vshll.u32 %v8292_v35, 16  ;;  %v1607_v48 = vadd.f32 %v14608_v17, %v14607_v12  ;;  %v3460_v29 = vsel %vm9648_vm4, %v3455_v23, %v3459_v2  ;;  %v14614_v12 = vld [vmem:[#allocation105_spill] sm:$0xff] }
 0x1c3   : > { %14605 = vst [vmem:[#allocation13_spill] sm:$0xff] %v11208_v46  ;;  %v11224_v42 = vadd.f32 %v9054_v44, %v1615_v15  ;;  %v2114_v13 = vpop.f32.mrf.mxu0  ;;  %9124 = vmatprep.mubr.msk.bf16.mxu1 %vm780_vm3, %v11037_v30  ;;  %v3489_v24 = vshll.u32 %v8293_v60, 16  ;;  %v1436_v8 = vadd.f32 %v14611_v47, %v14610_v18  ;;  %v11235_v35 = vcombine.low %v3426_v19, %v3436_v5  ;;  %v14613_v44 = vld [vmem:[#allocation42_spill] sm:$0xff]  ;;  %v14616_v46 = vld [vmem:[#allocation125_spill] sm:$0xff] }
 0x1c4   : > { %14606 = vst [vmem:[#allocation104_spill] sm:$0xff] %v11217_v52  ;;  %v2295_v49 = vpop.f32.mrf.mxu1  ;;  %v11233_v37 = vadd.f32 %v2114_v13, %v11109_v41  ;;  %v11237_v15 = vrot.slane %v3468_v27, 4  ;;  %v1438_v17 = vadd.f32 %v14614_v12, %v14613_v44  ;;  %v3478_v60 = vor.u32 %v3477_v62, %v11210_v59  ;;  %v8294_v18 = vld [vmem:[%s9614_s21 + $0xac] sm:$0xf]  ;;  %v8296_v13 = vld [vmem:[%s9614_s21 + $0xb4] sm:$0xf] }
 0x1c5   : > { %14609 = vst [vmem:[#allocation14_spill] sm:$0xff] %v11224_v42  ;;  %v14615_v42 = vld [vmem:[#allocation27_spill] sm:$0xff]  ;;  %v11243_v2 = vadd.f32 %v2295_v49, %v1607_v48  ;;  %v2116_v23 = vpop.f32.mrf.mxu0  ;;  %v11250_v19 = vcombine.low %v3450_v21, %v3460_v29  ;;  %v3483_v5 = vrot.slane %v3481_v3, 5  ;;  %v3488_v27 = vrot.slane %v3486_v54, 4  ;;  %v14619_v44 = vld [vmem:[#allocation44_spill] sm:$0xff]  ;;  %v14621_v48 = vld [vmem:[#allocation29_spill] sm:$0xff] }
 0x1c6   : > { %14612 = vst [vmem:[#allocation106_spill] sm:$0xff] %v11233_v37  ;;  %v1618_v1 = vadd.f32 %v14616_v46, %v14615_v42  ;;  %v9055_v47 = vpop.f32.mrf.mxu1  ;;  %v11248_v41 = vadd.f32 %v2116_v23, %v11147_v39  ;;  %v14620_v12 = vld [vmem:[#allocation107_spill] sm:$0xff]  ;;  %v3491_v39 = vrot.slane %v3489_v24, 5  ;;  %v3474_v3 = vsel %vm9648_vm4, %v11237_v15, %v11210_v59  ;;  %v8295_v54 = vld [vmem:[%s9614_s21 + $0xb0] sm:$0x1]  ;;  %v14631_v37 = vld [vmem:[#allocation33_spill] sm:$0xff] }
 0x1c7   : > { %14617 = vst [vmem:[#allocation32_spill] sm:$0xff] %v11243_v2  ;;  %v1442_v46 = vadd.f32 %v14620_v12, %v14619_v44  ;;  %v14622_v42 = vld [vmem:[#allocation127_spill] sm:$0xff]  ;;  %v2120_v62 = vpop.f32.mrf.mxu0  ;;  %8325 = vmatmul.mubr.msk.bf16.gmra.mxu0 %vm780_vm3, %v10951_v56  ;;  %v3495_v29 = vshll.u32 %v8294_v18, 16  ;;  %v14626_v44 = vld [vmem:[#allocation129_spill] sm:$0xff]  ;;  %v3479_v24 = vrot.slane %v3478_v60, 4  ;;  %v14629_v15 = vld [vmem:[#allocation46_spill] sm:$0xff] }
 0x1c8   : > { %14618 = vst [vmem:[#allocation95_spill] sm:$0xff] %v11248_v41  ;;  %v1610_v49 = vadd.f32 %v14622_v42, %v14621_v48  ;;  %v11257_v2 = vadd.f32 %v9055_v47, %v1618_v1  ;;  %v8297_v23 = vld [vmem:[%s9614_s21 + $0xb8] sm:$0xf]  ;;  %v2298_v10 = vpop.f32.mrf.mxu1  ;;  %v11262_v21 = vadd.f32 %v2120_v62, %v1432_v40  ;;  %3773 = vmatprep.mubr.bf16.mxu0 %v14421_v7  ;;  %v3499_v1 = vshrl.u32 %v8294_v18, 16  ;;  %v14630_v41 = vld [vmem:[#allocation109_spill] sm:$0xff] }
 0x1c9   : > { %v14625_v47 = vld [vmem:[#allocation31_spill] sm:$0xff]  ;;  %v2122_v56 = vpop.f32.mrf.mxu0  ;;  %v3510_v42 = vshrl.u32 %v8296_v13, 16  ;;  %v3523_v59 = vshrl.u32 %v8297_v23, 16  ;;  %v1444_v18 = vadd.f32 %v14630_v41, %v14629_v15  ;;  %v14636_v15 = vld [vmem:[#allocation133_spill] sm:$0xff] }
 0x1ca   : > { %14623 = vst [vmem:[#allocation15_spill] sm:$0xff] %v11257_v2  ;;  %14624 = vst [vmem:[#allocation108_spill] sm:$0xff] %v11262_v21  ;;  %v1631_v12 = vadd.f32 %v14626_v44, %v14625_v47  ;;  %v11272_v48 = vadd.f32 %v2298_v10, %v1610_v49  ;;  %v9058_v40 = vpop.f32.mrf.mxu1  ;;  %9125 = vmatmul.mubr.msk.bf16.gmra.mxu1 %vm780_vm3, %v11057_v45  ;;  %v11276_v62 = vadd.f32 %v2122_v56, %v1434_v25  ;;  %v14632_v52 = vld [vmem:[#allocation131_spill] sm:$0xff] }
 0x1cb   : > { %v3513_v2 = vshll.u32 %v8296_v13, 16  ;;  %v3519_v21 = vshll.u32 %v8297_v23, 16  ;;  %v1623_v10 = vadd.f32 %v14632_v52, %v14631_v37  ;;  %v2124_v60 = vpop.f32.mrf.mxu0  ;;  %9128 = vmatprep.mubr.msk.bf16.mxu1 %vm780_vm3, %v11076_v11  ;;  %v3505_v47 = vshll.u32 %v8295_v54, 16  ;;  %v14635_v41 = vld [vmem:[#allocation35_spill] sm:$0xff] }
 0x1cc   : > { %14627 = vst [vmem:[#allocation16_spill] sm:$0xff] %v11272_v48  ;;  %14628 = vst [vmem:[#allocation110_spill] sm:$0xff] %v11276_v62  ;;  %v11282_v49 = vadd.f32 %v9058_v40, %v1631_v12  ;;  %v2311_v25 = vpop.f32.mrf.mxu1  ;;  %v11286_v44 = vadd.f32 %v2124_v60, %v1436_v8  ;;  %v3492_v13 = vor.u32 %v3491_v39, %v3488_v27  ;;  %v11288_v23 = vrot.slane %v3495_v29, 5  ;;  %v8299_v40 = vld [vmem:[%s9614_s21 + $0xc0] sm:$0xf]  ;;  %v14640_v60 = vld [vmem:[#allocation111_spill] sm:$0xff] }
 0x1cd   : > { %v3501_v56 = vrot.slane %v3499_v1, 4  ;;  %v1634_v48 = vadd.f32 %v14636_v15, %v14635_v41  ;;  %v11292_v62 = vadd.f32 %v2311_v25, %v1623_v10  ;;  %v2126_v52 = vpop.f32.mrf.mxu0  ;;  %v3484_v37 = vsel %vm9648_vm4, %v3479_v24, %v3483_v5  ;;  %v8298_v8 = vld [vmem:[%s9614_s21 + $0xbc] sm:$0x1]  ;;  %v14641_v10 = vld [vmem:[#allocation37_spill] sm:$0xff]  ;;  %v14642_v25 = vld [vmem:[#allocation135_spill] sm:$0xff] }
 0x1ce   : > { %14633 = vst [vmem:[#allocation34_spill] sm:$0xff] %v11282_v49  ;;  %14634 = vst [vmem:[#allocation97_spill] sm:$0xff] %v11286_v44  ;;  %v3512_v12 = vrot.slane %v3510_v42, 4  ;;  %v9059_v49 = vpop.f32.mrf.mxu1  ;;  %v11297_v54 = vadd.f32 %v2126_v52, %v1438_v17  ;;  %v3515_v27 = vrot.slane %v3513_v2, 5  ;;  %v11300_v39 = vrot.slane %v3519_v21, 5  ;;  %v14639_v1 = vld [vmem:[#allocation48_spill] sm:$0xff] }
 0x1cf   : > { %14637 = vst [vmem:[#allocation17_spill] sm:$0xff] %v11292_v62  ;;  %v3525_v29 = vrot.slane %v3523_v59, 4  ;;  %v1446_v41 = vadd.f32 %v14640_v60, %v14639_v1  ;;  %v1626_v15 = vadd.f32 %v14642_v25, %v14641_v10  ;;  %v11306_v62 = vadd.f32 %v9059_v49, %v1634_v48  ;;  %v2130_v5 = vpop.f32.mrf.mxu0  ;;  %8326 = vmatmul.mubr.msk.bf16.gmra.mxu0 %vm780_vm3, %v11037_v30  ;;  %v8300_v52 = vld [vmem:[%s9614_s21 + $0xc4] sm:$0xf]  ;;  %v14645_v48 = vld [vmem:[#allocation39_spill] sm:$0xff] }
 0x1d0   : > { %14638 = vst [vmem:[#allocation112_spill] sm:$0xff] %v11297_v54  ;;  %v11310_v17 = vrot.slane %v3505_v47, 5  ;;  %v2314_v24 = vpop.f32.mrf.mxu1  ;;  %v11312_v42 = vadd.f32 %v2130_v5, %v1442_v46  ;;  %3783 = vmatprep.mubr.bf16.mxu0 %v14421_v7  ;;  %v11315_v2 = vcombine.low %v3474_v3, %v3484_v37  ;;  %v11317_v21 = vrot.slane %v3492_v13, 4  ;;  %v14646_v49 = vld [vmem:[#allocation137_spill] sm:$0xff]  ;;  %v14650_v5 = vld [vmem:[#allocation139_spill] sm:$0xff] }
 0x1d1   : > { %14643 = vst [vmem:[#allocation18_spill] sm:$0xff] %v11306_v62  ;;  %v3502_v59 = vor.u32 %v3501_v56, %v11288_v23  ;;  %v1647_v1 = vadd.f32 %v14646_v49, %v14645_v48  ;;  %v11323_v60 = vadd.f32 %v2314_v24, %v1626_v15  ;;  %v2132_v30 = vpop.f32.mrf.mxu0  ;;  %v3529_v47 = vshll.u32 %v8298_v8, 16  ;;  %v14649_v56 = vld [vmem:[#allocation41_spill] sm:$0xff]  ;;  %v14652_v48 = vld [vmem:[#allocation50_spill] sm:$0xff] }
 0x1d2   : > { %14644 = vst [vmem:[#allocation114_spill] sm:$0xff] %v11312_v42  ;;  %v3534_v10 = vshrl.u32 %v8299_v40, 16  ;;  %v9062_v25 = vpop.f32.mrf.mxu1  ;;  %9129 = vmatmul.mubr.msk.bf16.gmra.mxu1 %vm780_vm3, %v11153_v14  ;;  %v11327_v46 = vadd.f32 %v2132_v30, %v1444_v18  ;;  %v3516_v3 = vor.u32 %v3515_v27, %v3512_v12  ;;  %v3526_v13 = vor.u32 %v3525_v29, %v11300_v39  ;;  %v14653_v49 = vld [vmem:[#allocation113_spill] sm:$0xff]  ;;  %v14654_v18 = vld [vmem:[#allocation52_spill] sm:$0xff]  ;;  %v14655_v30 = vld [vmem:[#allocation115_spill] sm:$0xff] }
 0x1d3   : > { %14647 = vst [vmem:[#allocation19_spill] sm:$0xff] %v11323_v60  ;;  %v3537_v37 = vshll.u32 %v8299_v40, 16  ;;  %v1639_v62 = vadd.f32 %v14650_v5, %v14649_v56  ;;  %v11332_v42 = vadd.f32 %v9062_v25, %v1647_v1  ;;  %v2134_v15 = vpop.f32.mrf.mxu0  ;;  %9132 = vmatprep.mubr.msk.bf16.mxu1 %vm780_vm3, %v11235_v35  ;;  %v3543_v8 = vshll.u32 %v8300_v52, 16  ;;  %v14656_v56 = vld [vmem:[#allocation43_spill] sm:$0xff]  ;;  %v14657_v1 = vld [vmem:[#allocation141_spill] sm:$0xff] }
 0x1d4   : > { %14648 = vst [vmem:[#allocation116_spill] sm:$0xff] %v11327_v46  ;;  %v3547_v24 = vshrl.u32 %v8300_v52, 16  ;;  %v1448_v60 = vadd.f32 %v14653_v49, %v14652_v48  ;;  %v1452_v12 = vadd.f32 %v14655_v30, %v14654_v18  ;;  %v2327_v27 = vpop.f32.mrf.mxu1  ;;  %v11340_v29 = vadd.f32 %v2134_v15, %v1446_v41  ;;  %v14658_v18 = vld [vmem:[#allocation45_spill] sm:$0xff]  ;;  %v14659_v30 = vld [vmem:[#allocation143_spill] sm:$0xff] }
 0x1d5   : > { %14651 = vst [vmem:[#allocation36_spill] sm:$0xff] %v11332_v42  ;;  %v3503_v40 = vrot.slane %v3502_v59, 4  ;;  %v1650_v25 = vadd.f32 %v14657_v1, %v14656_v56  ;;  %v11344_v5 = vadd.f32 %v2327_v27, %v1639_v62  ;;  %v2136_v42 = vpop.f32.mrf.mxu0  ;;  %v3531_v46 = vrot.slane %v3529_v47, 5  ;;  %v8301_v62 = vld [vmem:[%s9614_s21 + $0xc8] sm:$0x1]  ;;  %v14663_v1 = vld [vmem:[#allocation119_spill] sm:$0xff] }
 0x1d6   : > { %v3536_v54 = vrot.slane %v3534_v10, 4  ;;  %v9063_v52 = vpop.f32.mrf.mxu1  ;;  %v11346_v44 = vadd.f32 %v2136_v42, %v1448_v60  ;;  %v3517_v48 = vrot.slane %v3516_v3, 4  ;;  %v3527_v49 = vrot.slane %v3526_v13, 4  ;;  %v14660_v10 = vld [vmem:[#allocation54_spill] sm:$0xff]  ;;  %v14661_v56 = vld [vmem:[#allocation117_spill] sm:$0xff] }
 0x1d7   : > { %v3539_v36 = vrot.slane %v3537_v37, 5  ;;  %v1642_v41 = vadd.f32 %v14659_v30, %v14658_v18  ;;  %v11350_v15 = vadd.f32 %v9063_v52, %v1650_v25  ;;  %v2140_v59 = vpop.f32.mrf.mxu0  ;;  %8327 = vmatmul.mubr.msk.bf16.gmra.mxu0 %vm780_vm3, %v11057_v45  ;;  %v11355_v27 = vrot.slane %v3543_v8, 5  ;;  %v14662_v37 = vld [vmem:[#allocation56_spill] sm:$0xff]  ;;  %v14664_v25 = vld [vmem:[#allocation47_spill] sm:$0xff]  ;;  %v14665_v8 = vld [vmem:[#allocation145_spill] sm:$0xff] }
 0x1d8   : > { %v3549_v47 = vrot.slane %v3547_v24, 4  ;;  %v1454_v42 = vadd.f32 %v14661_v56, %v14660_v10  ;;  %v2330_v60 = vpop.f32.mrf.mxu1  ;;  %v11359_v3 = vadd.f32 %v2140_v59, %v1452_v12  ;;  %3793 = vmatprep.mubr.bf16.mxu0 %v14421_v7  ;;  %v3498_v13 = vsel %vm9648_vm4, %v11317_v21, %v11288_v23  ;;  %v14666_v10 = vld [vmem:[#allocation49_spill] sm:$0xff]  ;;  %v14667_v56 = vld [vmem:[#allocation147_spill] sm:$0xff] }
 0x1d9   : > { %v1456_v45 = vadd.f32 %v14663_v1, %v14662_v37  ;;  %v1663_v52 = vadd.f32 %v14665_v8, %v14664_v25  ;;  %v11370_v24 = vadd.f32 %v2330_v60, %v1642_v41  ;;  %v2142_v18 = vpop.f32.mrf.mxu0  ;;  %v3508_v12 = vsel %vm9648_vm4, %v3503_v40, %v11310_v17  ;;  %v14669_v1 = vld [vmem:[#allocation58_spill] sm:$0xff]  ;;  %v14670_v25 = vld [vmem:[#allocation121_spill] sm:$0xff] }
 0x1da   : > { %v9066_v30 = vpop.f32.mrf.mxu1  ;;  %9133 = vmatmul.mubr.msk.bf16.gmra.mxu1 %vm780_vm3, %v11250_v19  ;;  %v11377_v59 = vadd.f32 %v2142_v18, %v1454_v42  ;;  %v3522_v23 = vsel %vm9648_vm4, %v3517_v48, %v11300_v39  ;;  %v3532_v21 = vsel %vm9648_vm4, %v3527_v49, %v3531_v46  ;;  %v3553_v41 = vshll.u32 %v8301_v62, 16  ;;  %v14671_v46 = vld [vmem:[#allocation51_spill] sm:$0xff]  ;;  %v14672_v49 = vld [vmem:[#allocation149_spill] sm:$0xff] }
 0x1db   : > { %v1655_v60 = vadd.f32 %v14667_v56, %v14666_v10  ;;  %v11386_v37 = vadd.f32 %v9066_v30, %v1663_v52  ;;  %v2144_v17 = vpop.f32.mrf.mxu0  ;;  %9136 = vmatprep.mubr.msk.bf16.mxu1 %vm780_vm3, %v11315_v2  ;;  %v3540_v40 = vor.u32 %v3539_v36, %v3536_v54  ;;  %v3550_v42 = vor.u32 %v3549_v47, %v11355_v27  ;;  %v14674_v10 = vld [vmem:[#allocation60_spill] sm:$0xff]  ;;  %v14675_v56 = vld [vmem:[#allocation123_spill] sm:$0xff] }
 0x1dc   : > { %v1458_v8 = vadd.f32 %v14670_v25, %v14669_v1  ;;  %v2343_v39 = vpop.f32.mrf.mxu1  ;;  %v11393_v48 = vadd.f32 %v2144_v17, %v1456_v45  ;;  %v1666_v62 = vadd.f32 %v14672_v49, %v14671_v46  ;;  %v11399_v30 = vcombine.low %v3498_v13, %v3508_v12  ;;  %v14676_v45 = vld [vmem:[#allocation53_spill] sm:$0xff]  ;;  %v14679_v49 = vld [vmem:[#allocation126_spill] sm:$0xff] }
 0x1dd   : > { %14668 = vst [vmem:[#allocation99_spill] sm:$0xff] %v11386_v37  ;;  %v11397_v18 = vadd.f32 %v2343_v39, %v1655_v60  ;;  %v2146_v52 = vpop.f32.mrf.mxu0  ;;  %v1462_v36 = vadd.f32 %v14675_v56, %v14674_v10  ;;  %v11405_v37 = vcombine.low %v3522_v23, %v3532_v21  ;;  %v3555_v1 = vrot.slane %v3553_v41, 5  ;;  %v8353_v60 = vld [vmem:[%s9614_s21 + $0x10] sm:$0xf] }
 0x1de   : > { %v9067_v54 = vpop.f32.mrf.mxu1  ;;  %v11403_v47 = vadd.f32 %v2146_v52, %v1458_v8  ;;  %v1658_v17 = vadd.f32 %v10785_v22, %v14676_v45  ;;  %v3541_v13 = vrot.slane %v3540_v40, 4  ;;  %v3551_v12 = vrot.slane %v3550_v42, 4  ;;  %v14678_v39 = vld [vmem:[#allocation62_spill] sm:$0xff]  ;;  %v14680_v23 = vld [vmem:[#allocation55_spill] sm:$0xff] }
 0x1df   : > { %14673 = vst [vmem:[#allocation21_spill] sm:$0xff] %v11397_v18  ;;  %v11409_v25 = vadd.f32 %v9067_v54, %v1666_v62  ;;  %v2150_v46 = vpop.f32.mrf.mxu0  ;;  %8328 = vmatmul.mubr.msk.bf16.gmra.mxu0 %vm780_vm3, %v11076_v11  ;;  %v1464_v10 = vadd.f32 %v14679_v49, %v14678_v39  ;;  %v1679_v22 = vadd.f32 %v10802_v0, %v14680_v23  ;;  %v14682_v62 = vld [vmem:[#allocation64_spill] sm:$0xff]  ;;  %v14684_v54 = vld [vmem:[#allocation57_spill] sm:$0xff]  ;;  %v8352_v49 = vld [vmem:[%s9614_s21 + $0xc] sm:$0xe] }
 0x1e0   : > { %v2346_v8 = vpop.f32.mrf.mxu1  ;;  %v11416_v52 = vadd.f32 %v2150_v46, %v1462_v36  ;;  %3803 = vmatprep.mubr.bf16.mxu0 %v14421_v7  ;;  %v14683_v11 = vld [vmem:[#allocation128_spill] sm:$0xff]  ;;  %v4229_v36 = vrot.slane %v8353_v60, 5  ;;  %v1671_v45 = vadd.f32 %v10816_v20, %v14684_v54  ;;  %v3556_v39 = vsel %vm9648_vm4, %v3551_v12, %v3555_v1  ;;  %v8354_v20 = vld [vmem:[%s9614_s21 + $0x14] sm:$0x1] }
 0x1e1   : > { %14677 = vst [vmem:[#allocation118_spill] sm:$0xff] %v11409_v25  ;;  %v11421_v21 = vadd.f32 %v2346_v8, %v1658_v17  ;;  %v2152_v41 = vpop.f32.mrf.mxu0  ;;  %v1466_v40 = vadd.f32 %v14683_v11, %v14682_v62  ;;  %v3546_v17 = vsel %vm9648_vm4, %v3541_v13, %v11355_v27  ;;  %v14687_v8 = vld [vmem:[#allocation130_spill] sm:$0xff]  ;;  %v14690_v54 = vld [vmem:[#allocation68_spill] sm:$0xff] }
 0x1e2   : > { %v9070_v42 = vpop.f32.mrf.mxu1  ;;  %9137 = vmatmul.mubr.msk.bf16.gmra.mxu1 %vm780_vm3, %v11399_v30  ;;  %v11427_v56 = vadd.f32 %v2152_v41, %v1464_v10  ;;  %v14686_v10 = vld [vmem:[#allocation66_spill] sm:$0xff]  ;;  %v11454_v12 = vcombine.low %v3546_v17, %v3556_v39  ;;  %v8356_v17 = vld [vmem:[%s9614_s21 + $0x1c] sm:$0xf]  ;;  %v14696_v39 = vld [vmem:[#allocation63_spill] sm:$0xff] }
 0x1e3   : > { %14681 = vst [vmem:[#allocation38_spill] sm:$0xff] %v11421_v21  ;;  %v11431_v46 = vadd.f32 %v9070_v42, %v1679_v22  ;;  %v2154_v0 = vpop.f32.mrf.mxu0  ;;  %9140 = vmatprep.mubr.msk.bf16.mxu1 %vm780_vm3, %v11405_v37  ;;  %v1468_v60 = vadd.f32 %v14687_v8, %v14686_v10  ;;  %v14688_v22 = vld [vmem:[#allocation59_spill] sm:$0xff]  ;;  %v8400_v10 = vrot.slane %v8352_v49, 9  ;;  %v14692_v8 = vld [vmem:[#allocation61_spill] sm:$0xff] }
 0x1e4   : > { %v2359_v23 = vpop.f32.mrf.mxu1  ;;  %v11443_v41 = vadd.f32 %v2154_v0, %v1466_v40  ;;  %v1682_v62 = vadd.f32 %v10832_v34, %v14688_v22  ;;  %v1674_v40 = vadd.f32 %v10858_v16, %v14692_v8  ;;  %v4231_v34 = vrot.slane %v4229_v36, 4  ;;  %v14695_v22 = vld [vmem:[#allocation134_spill] sm:$0xff]  ;;  %v14707_v21 = vld [vmem:[#allocation159_spill] sm:$0xff] }
 0x1e5   : > { %14685 = vst [vmem:[#allocation101_spill] sm:$0xff] %v11431_v46  ;;  %v11448_v11 = vadd.f32 %v2359_v23, %v1671_v45  ;;  %v2156_v42 = vpop.f32.mrf.mxu0  ;;  %v14691_v46 = vld [vmem:[#allocation132_spill] sm:$0xff]  ;;  %v4232_v45 = vrot.slane %v8354_v20, 5  ;;  %v14694_v23 = vld [vmem:[#allocation70_spill] sm:$0xff]  ;;  %v1695_v16 = vadd.f32 %v10876_v58, %v14696_v39  ;;  %v4230_v8 = vsel %vm10104_vm7, %v8400_v10, %v4229_v36  ;;  %v14706_v10 = vld [vmem:[#allocation67_spill] sm:$0xff] }
 0x1e6   : > { %v1472_v27 = vadd.f32 %v14691_v46, %v14690_v54  ;;  %v9071_v13 = vpop.f32.mrf.mxu1  ;;  %v11452_v1 = vadd.f32 %v2156_v42, %v1468_v60  ;;  %v1474_v46 = vadd.f32 %v14695_v22, %v14694_v23  ;;  %v14698_v42 = vld [vmem:[#allocation71_spill] sm:$0xff]  ;;  %v14701_v23 = vld [vmem:[#allocation65_spill] sm:$0xff]  ;;  %v8357_v36 = vld [vmem:[%s9614_s21 + $0x20] sm:$0x1] }
 0x1e7   : > { %14689 = vst [vmem:[#allocation23_spill] sm:$0xff] %v11448_v11  ;;  %v11458_v0 = vadd.f32 %v9071_v13, %v1682_v62  ;;  %v2160_v43 = vpop.f32.mrf.mxu0  ;;  %8329 = vmatmul.mubr.msk.bf16.gmra.mxu0 %vm780_vm3, %v11153_v14  ;;  %v14699_v14 = vld [vmem:[#allocation136_spill] sm:$0xff]  ;;  %v14702_v22 = vld [vmem:[#allocation157_spill] sm:$0xff] }
 0x1e8   : > { %v2362_v54 = vpop.f32.mrf.mxu1  ;;  %v11464_v60 = vadd.f32 %v2160_v43, %v1472_v27  ;;  %3813 = vmatprep.mubr.bf16.mxu0 %v14421_v7  ;;  %v1476_v20 = vadd.f32 %v14699_v14, %v14698_v42  ;;  %v8355_v39 = vld [vmem:[%s9614_s21 + $0x18] sm:$0xe]  ;;  %v4236_v42 = vrot.slane %v8356_v17, 5 }
 0x1e9   : > { %14693 = vst [vmem:[#allocation120_spill] sm:$0xff] %v11458_v0  ;;  %v11470_v49 = vadd.f32 %v2362_v54, %v1674_v40  ;;  %v2162_v62 = vpop.f32.mrf.mxu0  ;;  %v1687_v0 = vadd.f32 %v14702_v22, %v14701_v23  ;;  %v4233_v54 = vsel %vm10104_vm7, %v4231_v34, %v4232_v45  ;;  %v14704_v14 = vld [vmem:[#allocation72_spill] sm:$0xff]  ;;  %v1698_v23 = vadd.f32 %v14707_v21, %v14706_v10  ;;  %v14708_v22 = vld [vmem:[#allocation73_spill] sm:$0xff]  ;;  %v14713_v10 = vld [vmem:[#allocation142_spill] sm:$0xff] }
 0x1ea   : > { %v9074_v13 = vpop.f32.mrf.mxu1  ;;  %9141 = vmatmul.mubr.msk.bf16.gmra.mxu1 %vm780_vm3, %v11454_v12  ;;  %v11476_v43 = vadd.f32 %v2162_v62, %v1474_v46  ;;  %v11501_v17 = vcombine.low %v4230_v8, %v4233_v54  ;;  %v4238_v21 = vrot.slane %v4236_v42, 4  ;;  %v8359_v8 = vld [vmem:[%s9614_s21 + $0x28] sm:$0xf] }
 0x1eb   : > { %14697 = vst [vmem:[#allocation25_spill] sm:$0xff] %v11470_v49  ;;  %v11482_v58 = vadd.f32 %v9074_v13, %v1695_v16  ;;  %v2164_v40 = vpop.f32.mrf.mxu0  ;;  %4495 = vmatprep.mubr.bf16.mxu1 %v14421_v7  ;;  %v14705_v49 = vld [vmem:[#allocation138_spill] sm:$0xff] }
 0x1ec   : > { %v1478_v46 = vadd.f32 %v14705_v49, %v14704_v14  ;;  %v2375_v62 = vpop.f32.mrf.mxu1  ;;  %v11490_v11 = vadd.f32 %v2164_v40, %v1476_v20  ;;  %v8401_v49 = vrot.slane %v8355_v39, 9  ;;  %v14710_v14 = vld [vmem:[#allocation69_spill] sm:$0xff] }
 0x1ed   : > { %14703 = vst [vmem:[#allocation122_spill] sm:$0xff] %v11482_v58  ;;  %v11495_v16 = vadd.f32 %v2375_v62, %v1687_v0  ;;  %v2166_v13 = vpop.f32.mrf.mxu0  ;;  %v14709_v58 = vld [vmem:[#allocation140_spill] sm:$0xff]  ;;  %v1690_v20 = vadd.f32 %v10917_v31, %v14710_v14  ;;  %v4239_v0 = vrot.slane %v8357_v36, 5  ;;  %v14712_v62 = vld [vmem:[#allocation74_spill] sm:$0xff]  ;;  %v5100_v31 = vsel %vm829_vm0, %v11195_v6, 0 }
 0x1ee   : > { %v1482_v25 = vadd.f32 %v14709_v58, %v14708_v22  ;;  %v9075_v34 = vpop.f32.mrf.mxu1  ;;  %v11499_v45 = vadd.f32 %v2166_v13, %v1478_v46  ;;  %v1484_v58 = vadd.f32 %v14713_v10, %v14712_v62  ;;  %v4237_v6 = vsel %vm10104_vm7, %v8401_v49, %v4236_v42  ;;  %v14718_v62 = vld [vmem:[#allocation76_spill] sm:$0xff]  ;;  %v14719_v10 = vld [vmem:[#allocation146_spill] sm:$0xff] }
 0x1ef   : > { %v11505_v40 = vadd.f32 %v9075_v34, %v1698_v23  ;;  %v2170_v18 = vpop.f32.mrf.mxu0  ;;  %8330 = vmatmul.mubr.msk.bf16.gmra.mxu0 %vm780_vm3, %v11235_v35  ;;  %v14715_v23 = vld [vmem:[#allocation75_spill] sm:$0xff]  ;;  %v14716_v35 = vld [vmem:[#allocation144_spill] sm:$0xff]  ;;  %v4240_v14 = vsel %vm10104_vm7, %v4238_v21, %v4239_v0 }
 0x1f0   : > { %v2378_v22 = vpop.f32.mrf.mxu1  ;;  %v11511_v46 = vadd.f32 %v2170_v18, %v1482_v25  ;;  %3823 = vmatprep.mubr.bf16.mxu0 %v14421_v7  ;;  %v1486_v36 = vadd.f32 %v14716_v35, %v14715_v23  ;;  %v14722_v42 = vld [vmem:[#allocation148_spill] sm:$0xff]  ;;  %v11546_v0 = vcombine.low %v4237_v6, %v4240_v14  ;;  %v8362_v6 = vld [vmem:[%s9614_s21 + $0x34] sm:$0xf] }
 0x1f1   : > { %14711 = vst [vmem:[#allocation40_spill] sm:$0xff] %v11505_v40  ;;  %v11517_v54 = vadd.f32 %v2378_v22, %v1690_v20  ;;  %v2172_v39 = vpop.f32.mrf.mxu0  ;;  %v4243_v20 = vrot.slane %v8359_v8, 5  ;;  %v1488_v22 = vadd.f32 %v14719_v10, %v14718_v62  ;;  %v14724_v62 = vld [vmem:[#allocation78_spill] sm:$0xff]  ;;  %v14727_v14 = vld [vmem:[#allocation79_spill] sm:$0xff] }
 0x1f2   : > { %v2709_v13 = vpop.f32.mrf.mxu1  ;;  %8434 = vmatmul.mubr.msk.bf16.vlgmr.msra.gmra.mxu1 %vm780_vm3, %v11501_v17  ;;  %v11523_v18 = vadd.f32 %v2172_v39, %v1484_v58  ;;  %v8358_v39 = vld [vmem:[%s9614_s21 + $0x24] sm:$0xe]  ;;  %v14725_v10 = vld [vmem:[#allocation150_spill] sm:$0xff] }
 0x1f3   : > { %14714 = vst [vmem:[#allocation103_spill] sm:$0xff] %v11517_v54  ;;  %v11526_v25 = vadd.f32 %v2709_v13, %v10943_v50  ;;  %v2174_v34 = vpop.f32.mrf.mxu0  ;;  %4505 = vmatprep.mubr.bf16.mxu1 %v14421_v7  ;;  %9179 = vmatpush3.bf16.msra.mxu1 %v5100_v31  ;;  %v8360_v50 = vld [vmem:[%s9614_s21 + $0x2c] sm:$0x1] }
 0x1f4   : > { %v2711_v23 = vpop.f32.mrf.mxu1  ;;  %v11535_v58 = vadd.f32 %v2174_v34, %v1486_v36  ;;  %v8402_v36 = vrot.slane %v8358_v39, 9  ;;  %v4246_v34 = vrot.slane %v8360_v50, 5 }
 0x1f5   : > { %14717 = vst [vmem:[#allocation42_spill] sm:$0xff] %v11526_v25  ;;  %v11540_v35 = vadd.f32 %v2711_v23, %v10965_v32  ;;  %v2176_v13 = vpop.f32.mrf.mxu0  ;;  %v14721_v25 = vld [vmem:[#allocation77_spill] sm:$0xff]  ;;  %v4245_v32 = vrot.slane %v4243_v20, 4  ;;  %v1494_v23 = vadd.f32 %v14725_v10, %v14724_v62  ;;  %v14731_v62 = vld [vmem:[#allocation152_spill] sm:$0xff] }
 0x1f6   : > { %v1492_v49 = vadd.f32 %v14722_v42, %v14721_v25  ;;  %v2713_v54 = vpop.f32.mrf.mxu1  ;;  %v11544_v21 = vadd.f32 %v2176_v13, %v1488_v22 }
 0x1f7   : > { %14720 = vst [vmem:[#allocation105_spill] sm:$0xff] %v11540_v35  ;;  %v11549_v8 = vadd.f32 %v2713_v54, %v10977_v63  ;;  %v2180_v31 = vpop.f32.mrf.mxu0  ;;  %8331 = vmatmul.mubr.msk.bf16.gmra.mxu0 %vm780_vm3, %v11250_v19  ;;  %v14728_v19 = vld [vmem:[#allocation151_spill] sm:$0xff] }
 0x1f8   : > { %v2715_v35 = vpop.f32.mrf.mxu1  ;;  %v11555_v25 = vadd.f32 %v2180_v31, %v1492_v49  ;;  %3833 = vmatprep.mubr.bf16.mxu0 %v14421_v7  ;;  %v1496_v22 = vadd.f32 %v14728_v19, %v14727_v14  ;;  %v4250_v49 = vrot.slane %v8362_v6, 5  ;;  %v14730_v31 = vld [vmem:[#allocation80_spill] sm:$0xff] }
 0x1f9   : > { %14723 = vst [vmem:[#allocation27_spill] sm:$0xff] %v11549_v8  ;;  %v11560_v63 = vadd.f32 %v2715_v35, %v10989_v9  ;;  %v2182_v54 = vpop.f32.mrf.mxu0  ;;  %v4244_v9 = vsel %vm10104_vm7, %v8402_v36, %v4243_v20  ;;  %v4247_v35 = vsel %vm10104_vm7, %v4245_v32, %v4246_v34  ;;  %v1498_v10 = vadd.f32 %v14731_v62, %v14730_v31  ;;  %v14736_v31 = vld [vmem:[#allocation82_spill] sm:$0xff] }
 0x1fa   : > { %v2719_v39 = vpop.f32.mrf.mxu1  ;;  %8435 = vmatmul.mubr.msk.bf16.gmra.mxu1 %vm780_vm3, %v11546_v0  ;;  %v11566_v50 = vadd.f32 %v2182_v54, %v1494_v23  ;;  %v8361_v23 = vld [vmem:[%s9614_s21 + $0x30] sm:$0xe]  ;;  %v8363_v54 = vld [vmem:[%s9614_s21 + $0x38] sm:$0x1]  ;;  %v11589_v32 = vcombine.low %v4244_v9, %v4247_v35  ;;  %v14739_v35 = vld [vmem:[#allocation84_spill] sm:$0xff] }
 0x1fb   : > { %14726 = vst [vmem:[#allocation125_spill] sm:$0xff] %v11560_v63  ;;  %v11569_v13 = vadd.f32 %v2719_v39, %v11008_v26  ;;  %v2184_v42 = vpop.f32.mrf.mxu0  ;;  %4515 = vmatprep.mubr.bf16.mxu1 %v14421_v7  ;;  %v14734_v63 = vld [vmem:[#allocation153_spill] sm:$0xff]  ;;  %v14737_v62 = vld [vmem:[#allocation154_spill] sm:$0xff] }
 0x1fc   : > { %v2721_v14 = vpop.f32.mrf.mxu1  ;;  %v11578_v19 = vadd.f32 %v2184_v42, %v1496_v22  ;;  %v8403_v22 = vrot.slane %v8361_v23, 9  ;;  %v4253_v42 = vrot.slane %v8363_v54, 5 }
 0x1fd   : > { %14729 = vst [vmem:[#allocation44_spill] sm:$0xff] %v11569_v13  ;;  %v11583_v26 = vadd.f32 %v2721_v14, %v11027_v38  ;;  %v2186_v39 = vpop.f32.mrf.mxu0  ;;  %v14733_v13 = vld [vmem:[#allocation81_spill] sm:$0xff]  ;;  %v4252_v38 = vrot.slane %v4250_v49, 4  ;;  %v1504_v14 = vadd.f32 %v14737_v62, %v14736_v31  ;;  %v14743_v31 = vld [vmem:[#allocation86_spill] sm:$0xff]  ;;  %v14744_v62 = vld [vmem:[#allocation156_spill] sm:$0xff] }
 0x1fe   : > { %v1502_v20 = vadd.f32 %v14734_v63, %v14733_v13  ;;  %v2723_v36 = vpop.f32.mrf.mxu1  ;;  %v11587_v8 = vadd.f32 %v2186_v39, %v1498_v10  ;;  %v8365_v13 = vld [vmem:[%s9614_s21 + $0x40] sm:$0xf] }
 0x1ff   : > { %14732 = vst [vmem:[#allocation107_spill] sm:$0xff] %v11583_v26  ;;  %v11592_v34 = vadd.f32 %v2723_v36, %v11045_v28  ;;  %v2190_v6 = vpop.f32.mrf.mxu0  ;;  %8332 = vmatmul.mubr.msk.bf16.gmra.mxu0 %vm780_vm3, %v11315_v2  ;;  %v14740_v2 = vld [vmem:[#allocation155_spill] sm:$0xff]  ;;  %v14741_v39 = vld [vmem:[#allocation85_spill] sm:$0xff] }
 0x200   : > { %v2725_v26 = vpop.f32.mrf.mxu1  ;;  %v11598_v63 = vadd.f32 %v2190_v6, %v1502_v20  ;;  %3843 = vmatprep.mubr.bf16.mxu0 %v14421_v7  ;;  %v1506_v10 = vadd.f32 %v14740_v2, %v14739_v35  ;;  %v4257_v6 = vrot.slane %v8365_v13, 5  ;;  %v1508_v35 = vadd.f32 %v14744_v62, %v14743_v31  ;;  %v14749_v31 = vld [vmem:[#allocation90_spill] sm:$0xff]  ;;  %v14750_v62 = vld [vmem:[#allocation160_spill] sm:$0xff] }
 0x201   : > { %14735 = vst [vmem:[#allocation29_spill] sm:$0xff] %v11592_v34  ;;  %v11603_v28 = vadd.f32 %v2725_v26, %v11063_v33  ;;  %v2192_v9 = vpop.f32.mrf.mxu0  ;;  %v4251_v33 = vsel %vm10104_vm7, %v8403_v22, %v4250_v49  ;;  %v4254_v26 = vsel %vm10104_vm7, %v4252_v38, %v4253_v42  ;;  %v14747_v34 = vld [vmem:[#allocation158_spill] sm:$0xff] }
 0x202   : > { %v2729_v23 = vpop.f32.mrf.mxu1  ;;  %8436 = vmatmul.mubr.msk.bf16.gmra.mxu1 %vm780_vm3, %v11589_v32  ;;  %v11609_v54 = vadd.f32 %v2192_v9, %v1504_v14  ;;  %v8364_v14 = vld [vmem:[%s9614_s21 + $0x3c] sm:$0xe]  ;;  %v8366_v9 = vld [vmem:[%s9614_s21 + $0x44] sm:$0x1]  ;;  %v11632_v38 = vcombine.low %v4251_v33, %v4254_v26 }
 0x203   : > { %14738 = vst [vmem:[#allocation127_spill] sm:$0xff] %v11603_v28  ;;  %v11612_v20 = vadd.f32 %v2729_v23, %v14741_v39  ;;  %v2194_v36 = vpop.f32.mrf.mxu0  ;;  %4525 = vmatprep.mubr.bf16.mxu1 %v14421_v7  ;;  %v14752_v26 = vld [vmem:[#allocation92_spill] sm:$0xff] }
 0x204   : > { %v2731_v2 = vpop.f32.mrf.mxu1  ;;  %v11621_v28 = vadd.f32 %v2194_v36, %v1506_v10  ;;  %v8404_v10 = vrot.slane %v8364_v14, 9  ;;  %v4260_v36 = vrot.slane %v8366_v9, 5 }
 0x205   : > { %14742 = vst [vmem:[#allocation31_spill] sm:$0xff] %v11612_v20  ;;  %v11626_v23 = vadd.f32 %v2731_v2, %v11099_v57  ;;  %v2196_v39 = vpop.f32.mrf.mxu0  ;;  %v14746_v20 = vld [vmem:[#allocation88_spill] sm:$0xff]  ;;  %v4259_v57 = vrot.slane %v4257_v6, 4  ;;  %v1514_v2 = vadd.f32 %v14750_v62, %v14749_v31  ;;  %v14756_v31 = vld [vmem:[#allocation162_spill] sm:$0xff] }
 0x206   : > { %v1512_v49 = vadd.f32 %v14747_v34, %v14746_v20  ;;  %v2733_v22 = vpop.f32.mrf.mxu1  ;;  %v11630_v40 = vadd.f32 %v2196_v39, %v1508_v35  ;;  %v8368_v20 = vld [vmem:[%s9614_s21 + $0x4c] sm:$0xf] }
 0x207   : > { %14745 = vst [vmem:[#allocation129_spill] sm:$0xff] %v11626_v23  ;;  %v11635_v42 = vadd.f32 %v2733_v22, %v11112_v61  ;;  %v2200_v13 = vpop.f32.mrf.mxu0  ;;  %8333 = vmatmul.mubr.msk.bf16.gmra.mxu0 %vm780_vm3, %v11399_v30  ;;  %v14753_v30 = vld [vmem:[#allocation161_spill] sm:$0xff]  ;;  %v4264_v22 = vrot.slane %v8368_v20, 5 }
 0x208   : > { %v2735_v23 = vpop.f32.mrf.mxu1  ;;  %v11641_v34 = vadd.f32 %v2200_v13, %v1512_v49  ;;  %3853 = vmatprep.mubr.bf16.mxu0 %v14421_v7  ;;  %v1516_v35 = vadd.f32 %v14753_v30, %v14752_v26  ;;  %v14755_v13 = vld [vmem:[#allocation94_spill] sm:$0xff] }
 0x209   : > { %14748 = vst [vmem:[#allocation46_spill] sm:$0xff] %v11635_v42  ;;  %v11646_v61 = vadd.f32 %v2735_v23, %v11125_v53  ;;  %v2202_v33 = vpop.f32.mrf.mxu0  ;;  %v4258_v53 = vsel %vm10104_vm7, %v8404_v10, %v4257_v6  ;;  %v4261_v23 = vsel %vm10104_vm7, %v4259_v57, %v4260_v36  ;;  %v1518_v62 = vadd.f32 %v14756_v31, %v14755_v13  ;;  %v14761_v36 = vld [vmem:[#allocation91_spill] sm:$0xff]  ;;  %v14763_v31 = vld [vmem:[#allocation98_spill] sm:$0xff] }
 0x20a   : > { %v2739_v14 = vpop.f32.mrf.mxu1  ;;  %8437 = vmatmul.mubr.msk.bf16.gmra.mxu1 %vm780_vm3, %v11632_v38  ;;  %v11652_v9 = vadd.f32 %v2202_v33, %v1514_v2  ;;  %v8367_v2 = vld [vmem:[%s9614_s21 + $0x48] sm:$0xe]  ;;  %v8369_v33 = vld [vmem:[%s9614_s21 + $0x50] sm:$0x1]  ;;  %v11675_v57 = vcombine.low %v4258_v53, %v4261_v23 }
 0x20b   : > { %14751 = vst [vmem:[#allocation109_spill] sm:$0xff] %v11646_v61  ;;  %v11655_v39 = vadd.f32 %v2739_v14, %v11140_v55  ;;  %v2204_v49 = vpop.f32.mrf.mxu0  ;;  %4535 = vmatprep.mubr.bf16.mxu1 %v14421_v7  ;;  %v14760_v61 = vld [vmem:[#allocation163_spill] sm:$0xff]  ;;  %v4267_v13 = vrot.slane %v8369_v33, 5 }
 0x20c   : > { %v2741_v26 = vpop.f32.mrf.mxu1  ;;  %v11664_v30 = vadd.f32 %v2204_v49, %v1516_v35  ;;  %v8405_v49 = vrot.slane %v8367_v2, 9 }
 0x20d   : > { %14754 = vst [vmem:[#allocation33_spill] sm:$0xff] %v11655_v39  ;;  %v11669_v55 = vadd.f32 %v2741_v26, %v11159_v51  ;;  %v2206_v14 = vpop.f32.mrf.mxu0  ;;  %v14759_v39 = vld [vmem:[#allocation96_spill] sm:$0xff]  ;;  %v4266_v51 = vrot.slane %v4264_v22, 4  ;;  %v14764_v26 = vld [vmem:[#allocation165_spill] sm:$0xff] }
 0x20e   : > { %14757 = vst [vmem:[#allocation131_spill] sm:$0xff] %v11664_v30  ;;  %v1522_v6 = vadd.f32 %v14760_v61, %v14759_v39  ;;  %v2743_v10 = vpop.f32.mrf.mxu1  ;;  %v11673_v42 = vadd.f32 %v2206_v14, %v1518_v62  ;;  %v8371_v39 = vld [vmem:[%s9614_s21 + $0x58] sm:$0xf] }
 0x20f   : > { %14758 = vst [vmem:[#allocation35_spill] sm:$0xff] %v11669_v55  ;;  %v11678_v20 = vadd.f32 %v2743_v10, %v14761_v36  ;;  %v2210_v35 = vpop.f32.mrf.mxu0  ;;  %8334 = vmatmul.mubr.msk.bf16.gmra.mxu0 %vm780_vm3, %v11405_v37  ;;  %v1524_v55 = vadd.f32 %v14764_v26, %v14763_v31  ;;  %v14767_v62 = vld [vmem:[#allocation100_spill] sm:$0xff]  ;;  %v14768_v37 = vld [vmem:[#allocation166_spill] sm:$0xff]  ;;  %v14773_v26 = vld [vmem:[#allocation167_spill] sm:$0xff] }
 0x210   : > { %v2745_v30 = vpop.f32.mrf.mxu1  ;;  %v11684_v61 = vadd.f32 %v2210_v35, %v1522_v6  ;;  %3863 = vmatprep.mubr.bf16.mxu0 %v14421_v7  ;;  %v1526_v2 = vadd.f32 %v14768_v37, %v14767_v62  ;;  %v14770_v6 = vld [vmem:[#allocation93_spill] sm:$0xff]  ;;  %v4271_v35 = vrot.slane %v8371_v39, 5  ;;  %v14772_v31 = vld [vmem:[#allocation102_spill] sm:$0xff] }
 0x211   : > { %14762 = vst [vmem:[#allocation133_spill] sm:$0xff] %v11678_v20  ;;  %v11689_v53 = vadd.f32 %v2745_v30, %v11184_v4  ;;  %v2212_v23 = vpop.f32.mrf.mxu0  ;;  %v4265_v4 = vsel %vm10104_vm7, %v8405_v49, %v4264_v22  ;;  %v4268_v30 = vsel %vm10104_vm7, %v4266_v51, %v4267_v13  ;;  %v1528_v62 = vadd.f32 %v14773_v26, %v14772_v31  ;;  %v14777_v20 = vld [vmem:[#allocation9_spill] sm:$0xff]  ;;  %v14780_v13 = vld [vmem:[#allocation106_spill] sm:$0xff] }
 0x212   : > { %14765 = vst [vmem:[#allocation48_spill] sm:$0xff] %v11684_v61  ;;  %v2749_v14 = vpop.f32.mrf.mxu1  ;;  %8438 = vmatmul.mubr.msk.bf16.gmra.mxu1 %vm780_vm3, %v11675_v57  ;;  %v11695_v33 = vadd.f32 %v2212_v23, %v1524_v55  ;;  %v8370_v55 = vld [vmem:[%s9614_s21 + $0x54] sm:$0xe]  ;;  %v8372_v23 = vld [vmem:[%s9614_s21 + $0x5c] sm:$0x1]  ;;  %v11718_v51 = vcombine.low %v4265_v4, %v4268_v30  ;;  %v4273_v31 = vrot.slane %v4271_v35, 4 }
 0x213   : > { %14766 = vst [vmem:[#allocation111_spill] sm:$0xff] %v11689_v53  ;;  %v11698_v10 = vadd.f32 %v2749_v14, %v14770_v6  ;;  %v2214_v36 = vpop.f32.mrf.mxu0  ;;  %4545 = vmatprep.mubr.bf16.mxu1 %v14421_v7  ;;  %v14775_v14 = vld [vmem:[#allocation104_spill] sm:$0xff]  ;;  %v4274_v26 = vrot.slane %v8372_v23, 5  ;;  %v14785_v4 = vld [vmem:[#allocation95_spill] sm:$0xff] }
 0x214   : > { %14769 = vst [vmem:[#allocation37_spill] sm:$0xff] %v11695_v33  ;;  %v2751_v37 = vpop.f32.mrf.mxu1  ;;  %v11707_v53 = vadd.f32 %v2214_v36, %v1526_v2  ;;  %v14778_v33 = vld [vmem:[#allocation168_spill] sm:$0xff]  ;;  %v8406_v36 = vrot.slane %v8370_v55, 9  ;;  %v14787_v55 = vld [vmem:[#allocation11_spill] sm:$0xff] }
 0x215   : > { %14771 = vst [vmem:[#allocation135_spill] sm:$0xff] %v11698_v10  ;;  %v11712_v6 = vadd.f32 %v2751_v37, %v14775_v14  ;;  %v2216_v10 = vpop.f32.mrf.mxu0  ;;  %v1532_v22 = vadd.f32 %v14778_v33, %v14777_v20  ;;  %v14782_v37 = vld [vmem:[#allocation10_spill] sm:$0xff]  ;;  %v14783_v14 = vld [vmem:[#allocation20_spill] sm:$0xff]  ;;  %v8374_v33 = vld [vmem:[%s9614_s21 + $0x64] sm:$0xf] }
 0x216   : > { %14774 = vst [vmem:[#allocation39_spill] sm:$0xff] %v11707_v53  ;;  %v2753_v49 = vpop.f32.mrf.mxu1  ;;  %v11716_v61 = vadd.f32 %v2216_v10, %v1528_v62  ;;  %v11735_v10 = vld [vmem:[%s14361_s1 + $0x2a] sm:$0x3f]  ;;  %v14788_v23 = vld [vmem:[#allocation83_spill] sm:$0xff] }
 0x217   : > { %14776 = vst [vmem:[#allocation137_spill] sm:$0xff] %v11712_v6  ;;  %v11721_v39 = vadd.f32 %v2753_v49, %v14780_v13  ;;  %v2220_v2 = vpop.f32.mrf.mxu0  ;;  %8335 = vmatmul.mubr.msk.bf16.gmra.mxu0 %vm780_vm3, %v11454_v12  ;;  %v1534_v6 = vadd.f32 %v14783_v14, %v14782_v37  ;;  %v6035_v62 = vcombine.high %v11735_v10, %v11735_v10  ;;  %v14790_v13 = vld [vmem:[#allocation108_spill] sm:$0xff] }
 0x218   : > { %14779 = vst [vmem:[#allocation41_spill] sm:$0xff] %v11716_v61  ;;  %v2755_v53 = vpop.f32.mrf.mxu1  ;;  %v11727_v20 = vadd.f32 %v2220_v2, %v1532_v22  ;;  %9146 = vmatprep.mubr.msk.bf16.mxu0 %vm780_vm3, %v11501_v17  ;;  %v1536_v22 = vadd.f32 %v14788_v23, %v14787_v55  ;;  %v4272_v37 = vsel %vm10104_vm7, %v8406_v36, %v4271_v35  ;;  %v14792_v55 = vld [vmem:[#allocation12_spill] sm:$0xff]  ;;  %v14793_v23 = vld [vmem:[#allocation22_spill] sm:$0xff] }
 0x219   : > { %14781 = vst [vmem:[#allocation139_spill] sm:$0xff] %v11721_v39  ;;  %v11738_v12 = vadd.f32 %v2755_v53, %v14785_v4  ;;  %v2222_v30 = vpop.f32.mrf.mxu0  ;;  %v4275_v14 = vsel %vm10104_vm7, %v4273_v31, %v4274_v26  ;;  %v4278_v4 = vrot.slane %v8374_v33, 5  ;;  %v14798_v36 = vld [vmem:[#allocation6_spill] sm:$0xff] }
 0x21a   : > { %14784 = vst [vmem:[#allocation50_spill] sm:$0xff] %v11727_v20  ;;  %v2759_v49 = vpop.f32.mrf.mxu1  ;;  %8439 = vmatmul.mubr.msk.bf16.gmra.mxu1 %vm780_vm3, %v11718_v51  ;;  %v11746_v17 = vadd.f32 %v2222_v30, %v1534_v6  ;;  %v8373_v6 = vld [vmem:[%s9614_s21 + $0x60] sm:$0xe]  ;;  %v8375_v30 = vld [vmem:[%s9614_s21 + $0x68] sm:$0x1]  ;;  %v11768_v61 = vrot.slane %v6035_v62, %v14798_v36  ;;  %v11772_v33 = vcombine.low %v4272_v37, %v4275_v14  ;;  %v14804_v14 = vld [vmem:[#allocation87_spill] sm:$0xff] }
 0x21b   : > { %14786 = vst [vmem:[#allocation113_spill] sm:$0xff] %v11738_v12  ;;  %v11749_v2 = vadd.f32 %v2759_v49, %v14790_v13  ;;  %v2224_v53 = vpop.f32.mrf.mxu0  ;;  %4555 = vmatprep.mubr.bf16.mxu1 %v14421_v7  ;;  %v1538_v12 = vadd.f32 %v14793_v23, %v14792_v55  ;;  %v14795_v49 = vld [vmem:[#allocation110_spill] sm:$0xff]  ;;  %v4280_v23 = vrot.slane %v4278_v4, 4  ;;  %v14802_v62 = vld [vmem:[#allocation112_spill] sm:$0xff] }
 0x21c   : > { %14789 = vst [vmem:[#allocation52_spill] sm:$0xff] %v11746_v17  ;;  %v2761_v39 = vpop.f32.mrf.mxu1  ;;  %v11758_v20 = vadd.f32 %v2224_v53, %v1536_v22  ;;  %v14797_v17 = vld [vmem:[#allocation164_spill] sm:$0xff]  ;;  %v14799_v22 = vld [vmem:[#allocation97_spill] sm:$0xff] }
 0x21d   : > { %14791 = vst [vmem:[#allocation115_spill] sm:$0xff] %v11749_v2  ;;  %v11763_v13 = vadd.f32 %v2761_v39, %v14795_v49  ;;  %v2226_v2 = vpop.f32.mrf.mxu0  ;;  %v5094_v35 = vsel %vm829_vm0, %v14797_v17, 0  ;;  %v8407_v39 = vrot.slane %v8373_v6, 9  ;;  %v4281_v49 = vrot.slane %v8375_v30, 5  ;;  %v14801_v17 = vld [vmem:[#allocation24_spill] sm:$0xff]  ;;  %v14806_v30 = vld [vmem:[#allocation114_spill] sm:$0xff] }
 0x21e   : > { %14794 = vst [vmem:[#allocation43_spill] sm:$0xff] %v11758_v20  ;;  %v2763_v31 = vpop.f32.mrf.mxu1  ;;  %v11770_v26 = vadd.f32 %v2226_v2, %v1538_v12  ;;  %v8377_v12 = vld [vmem:[%s9614_s21 + $0x70] sm:$0xf] }
 0x21f   : > { %14796 = vst [vmem:[#allocation141_spill] sm:$0xff] %v11763_v13  ;;  %v11775_v53 = vadd.f32 %v2763_v31, %v14799_v22  ;;  %v9080_v55 = vpop.f32.mrf.mxu0  ;;  %9147 = vmatmul.mubr.msk.bf16.vlgmr.msra.gmra.mxu0 %vm780_vm3, %v11546_v0  ;;  %v4282_v31 = vsel %vm10104_vm7, %v4280_v23, %v4281_v49  ;;  %v4285_v22 = vrot.slane %v8377_v12, 5 }
 0x220   : > { %v2765_v13 = vpop.f32.mrf.mxu1  ;;  %v11780_v20 = vadd.f32 %v9080_v55, %v14801_v17  ;;  %5117 = vmatpush1.bf16.msra.mxu0 %v5094_v35  ;;  %9150 = vmatprep.mubr.msk.bf16.mxu0 %vm780_vm3, %v11589_v32  ;;  %v14808_v17 = vld [vmem:[#allocation26_spill] sm:$0xff] }
 0x221   : > { %14800 = vst [vmem:[#allocation45_spill] sm:$0xff] %v11775_v53  ;;  %v11786_v2 = vadd.f32 %v2765_v13, %v14802_v62  ;;  %v2902_v37 = vpop.f32.mrf.mxu0  ;;  %9335 = vmatprep.subr.msk.bf16.mxu0 %vm829_vm0, %v11768_v61  ;;  %v4279_v13 = vsel %vm10104_vm7, %v8407_v39, %v4278_v4  ;;  %v14811_v53 = vld [vmem:[#allocation89_spill] sm:$0xff]  ;;  %v4287_v12 = vrot.slane %v4285_v22, 4 }
 0x222   : > { %v2769_v0 = vpop.f32.mrf.mxu1  ;;  %8440 = vmatmul.mubr.msk.bf16.gmra.mxu1 %vm780_vm3, %v11772_v33  ;;  %v11793_v6 = vadd.f32 %v2902_v37, %v14804_v14  ;;  %v8378_v37 = vld [vmem:[%s9614_s21 + $0x74] sm:$0x1]  ;;  %v14809_v14 = vld [vmem:[#allocation116_spill] sm:$0xff]  ;;  %v11814_v4 = vcombine.low %v4279_v13, %v4282_v31  ;;  %v11837_v31 = vrot.slane %v11735_v10, %v14798_v36 }
 0x223   : > { %14803 = vst [vmem:[#allocation143_spill] sm:$0xff] %v11786_v2  ;;  %v11796_v35 = vadd.f32 %v2769_v0, %v14806_v30  ;;  %v9081_v32 = vpop.f32.mrf.mxu0  ;;  %4565 = vmatprep.mubr.bf16.mxu1 %v14421_v7  ;;  %v8376_v2 = vld [vmem:[%s9614_s21 + $0x6c] sm:$0xe]  ;;  %v8381_v10 = vld [vmem:[%s9614_s21 + $0x80] sm:$0x1] }
 0x224   : > { %14805 = vst [vmem:[#allocation54_spill] sm:$0xff] %v11793_v6  ;;  %v2771_v55 = vpop.f32.mrf.mxu1  ;;  %v11804_v62 = vadd.f32 %v9081_v32, %v14808_v17  ;;  %v8408_v49 = vrot.slane %v8376_v2, 9  ;;  %v4288_v32 = vrot.slane %v8378_v37, 5 }
 0x225   : > { %14807 = vst [vmem:[#allocation117_spill] sm:$0xff] %v11796_v35  ;;  %v11809_v0 = vadd.f32 %v2771_v55, %v14809_v14  ;;  %v2905_v30 = vpop.f32.mrf.mxu0  ;;  %v14813_v55 = vld [vmem:[#allocation28_spill] sm:$0xff] }
 0x226   : > { %v2773_v35 = vpop.f32.mrf.mxu1  ;;  %v11812_v6 = vadd.f32 %v2905_v30, %v14811_v53  ;;  %v8380_v53 = vld [vmem:[%s9614_s21 + $0x7c] sm:$0xf]  ;;  %v4289_v30 = vsel %vm10104_vm7, %v4287_v12, %v4288_v32 }
 0x227   : > { %14810 = vst [vmem:[#allocation56_spill] sm:$0xff] %v11809_v0  ;;  %v11817_v39 = vadd.f32 %v2773_v35, %v11340_v29  ;;  %v9084_v23 = vpop.f32.mrf.mxu0  ;;  %9151 = vmatmul.mubr.msk.bf16.gmra.mxu0 %vm780_vm3, %v11632_v38  ;;  %v14815_v38 = vld [vmem:[#allocation124_spill] sm:$0xff]  ;;  %v8390_v0 = vld [vmem:[%s9614_s21 + $0xa4] sm:$0x1] }
 0x228   : > { %v2775_v17 = vpop.f32.mrf.mxu1  ;;  %v11822_v14 = vadd.f32 %v9084_v23, %v14813_v55  ;;  %9154 = vmatprep.mubr.msk.bf16.mxu0 %vm780_vm3, %v11675_v57  ;;  %v4292_v23 = vrot.slane %v8380_v53, 5  ;;  %v14817_v55 = vld [vmem:[#allocation30_spill] sm:$0xff] }
 0x229   : > { %14812 = vst [vmem:[#allocation119_spill] sm:$0xff] %v11817_v39  ;;  %v11828_v29 = vadd.f32 %v2775_v17, %v11346_v44  ;;  %v2918_v35 = vpop.f32.mrf.mxu0  ;;  %v4286_v44 = vsel %vm10104_vm7, %v8408_v49, %v4285_v22  ;;  %v14819_v22 = vld [vmem:[#allocation13_spill] sm:$0xff]  ;;  %v4295_v39 = vrot.slane %v8381_v10, 5 }
 0x22a   : > { %v2779_v13 = vpop.f32.mrf.mxu1  ;;  %8441 = vmatmul.mubr.msk.bf16.gmra.mxu1 %vm780_vm3, %v11814_v4  ;;  %v11833_v2 = vadd.f32 %v2918_v35, %v14815_v38  ;;  %v8379_v38 = vld [vmem:[%s9614_s21 + $0x78] sm:$0xe]  ;;  %v8425_v12 = vcombine.low %v4286_v44, %v4289_v30 }
 0x22b   : > { %14814 = vst [vmem:[#allocation47_spill] sm:$0xff] %v11828_v29  ;;  %v11840_v57 = vadd.f32 %v2779_v13, %v11359_v3  ;;  %v9085_v37 = vpop.f32.mrf.mxu0  ;;  %4575 = vmatprep.mubr.bf16.mxu1 %v14421_v7  ;;  %v6050_v3 = vcombine.high %v11837_v31, %v11837_v31 }
 0x22c   : > { %v2781_v17 = vpop.f32.mrf.mxu1  ;;  %v11848_v35 = vadd.f32 %v9085_v37, %v14817_v55  ;;  %v8409_v37 = vrot.slane %v8379_v38, 9  ;;  %v4294_v55 = vrot.slane %v4292_v23, 4 }
 0x22d   : > { %14816 = vst [vmem:[#allocation145_spill] sm:$0xff] %v11840_v57  ;;  %v11855_v13 = vadd.f32 %v2781_v17, %v11377_v59  ;;  %v2921_v57 = vpop.f32.mrf.mxu0  ;;  %8613 = vmatprep.subr.msk.bf16.mxu1 %vm829_vm0, %v6050_v3  ;;  %v14821_v17 = vld [vmem:[#allocation14_spill] sm:$0xff] }
 0x22e   : > { %v2783_v29 = vpop.f32.mrf.mxu1  ;;  %v11858_v49 = vadd.f32 %v2921_v57, %v14819_v22  ;;  %v8383_v57 = vld [vmem:[%s9614_s21 + $0x88] sm:$0xf] }
 0x22f   : > { %14818 = vst [vmem:[#allocation49_spill] sm:$0xff] %v11855_v13  ;;  %v11862_v32 = vadd.f32 %v2783_v29, %v11393_v48  ;;  %v9088_v53 = vpop.f32.mrf.mxu0  ;;  %9155 = vmatmul.mubr.msk.bf16.gmra.mxu0 %vm780_vm3, %v11718_v51  ;;  %v14823_v51 = vld [vmem:[#allocation32_spill] sm:$0xff]  ;;  %v4299_v3 = vrot.slane %v8383_v57, 5 }
 0x230   : > { %v2785_v59 = vpop.f32.mrf.mxu1  ;;  %v11867_v13 = vadd.f32 %v9088_v53, %v14821_v17  ;;  %9158 = vmatprep.mubr.msk.bf16.mxu0 %vm780_vm3, %v11772_v33  ;;  %v4293_v33 = vsel %vm10104_vm7, %v8409_v37, %v4292_v23  ;;  %v14825_v53 = vld [vmem:[#allocation15_spill] sm:$0xff]  ;;  %v8382_v17 = vld [vmem:[%s9614_s21 + $0x84] sm:$0xe] }
 0x231   : > { %14820 = vst [vmem:[#allocation147_spill] sm:$0xff] %v11862_v32  ;;  %v11873_v48 = vadd.f32 %v2785_v59, %v11403_v47  ;;  %v2934_v29 = vpop.f32.mrf.mxu0  ;;  %v4296_v47 = vsel %vm10104_vm7, %v4294_v55, %v4295_v39  ;;  %v8389_v39 = vld [vmem:[%s9614_s21 + $0xa0] sm:$0xf]  ;;  %v4301_v57 = vrot.slane %v4299_v3, 4 }
 0x232   : > { %v2789_v44 = vpop.f32.mrf.mxu1  ;;  %8442 = vmatmul.mubr.msk.bf16.gmra.mxu1 %vm780_vm3, %v8425_v12  ;;  %v11877_v30 = vadd.f32 %v2934_v29, %v14823_v51  ;;  %v8384_v29 = vld [vmem:[%s9614_s21 + $0x8c] sm:$0x1]  ;;  %v8386_v51 = vld [vmem:[%s9614_s21 + $0x94] sm:$0xf]  ;;  %v8426_v23 = vcombine.low %v4293_v33, %v4296_v47  ;;  %v8387_v47 = vld [vmem:[%s9614_s21 + $0x98] sm:$0x1] }
 0x233   : > { %14822 = vst [vmem:[#allocation58_spill] sm:$0xff] %v11873_v48  ;;  %v11880_v38 = vadd.f32 %v2789_v44, %v11416_v52  ;;  %v9089_v10 = vpop.f32.mrf.mxu0  ;;  %4585 = vmatprep.mubr.bf16.mxu1 %v14421_v7  ;;  %v14828_v48 = vld [vmem:[#allocation16_spill] sm:$0xff] }
 0x234   : > { %v2791_v22 = vpop.f32.mrf.mxu1  ;;  %v11888_v59 = vadd.f32 %v9089_v10, %v14825_v53  ;;  %v4302_v10 = vrot.slane %v8384_v29, 5  ;;  %v14831_v53 = vld [vmem:[#allocation34_spill] sm:$0xff]  ;;  %v8388_v29 = vld [vmem:[%s9614_s21 + $0x9c] sm:$0xe] }
 0x235   : > { %14824 = vst [vmem:[#allocation121_spill] sm:$0xff] %v11880_v38  ;;  %v11893_v52 = vadd.f32 %v2791_v22, %v11427_v56  ;;  %v2937_v44 = vpop.f32.mrf.mxu0  ;;  %v8410_v56 = vrot.slane %v8382_v17, 9  ;;  %v14834_v17 = vld [vmem:[#allocation17_spill] sm:$0xff] }
 0x236   : > { %14826 = vst [vmem:[#allocation51_spill] sm:$0xff] %v11888_v59  ;;  %v2793_v38 = vpop.f32.mrf.mxu1  ;;  %v11897_v32 = vadd.f32 %v2937_v44, %v14828_v48  ;;  %v4306_v48 = vrot.slane %v8386_v51, 5  ;;  %v4313_v44 = vrot.slane %v8389_v39, 5  ;;  %v4303_v51 = vsel %vm10104_vm7, %v4301_v57, %v4302_v10  ;;  %v8395_v10 = vld [vmem:[%s9614_s21 + $0xb8] sm:$0xf] }
 0x237   : > { %14827 = vst [vmem:[#allocation149_spill] sm:$0xff] %v11893_v52  ;;  %v11901_v37 = vadd.f32 %v2793_v38, %v11443_v41  ;;  %v9092_v55 = vpop.f32.mrf.mxu0  ;;  %9159 = vmatmul.mubr.msk.bf16.gmra.mxu0 %vm780_vm3, %v11814_v4  ;;  %v8385_v38 = vld [vmem:[%s9614_s21 + $0x90] sm:$0xe] }
 0x238   : > { %14829 = vst [vmem:[#allocation60_spill] sm:$0xff] %v11897_v32  ;;  %v2795_v22 = vpop.f32.mrf.mxu1  ;;  %v11906_v52 = vadd.f32 %v9092_v55, %v14831_v53  ;;  %9162 = vmatprep.mubr.msk.bf16.mxu0 %vm780_vm3, %v8425_v12  ;;  %v14838_v32 = vld [vmem:[#allocation19_spill] sm:$0xff] }
 0x239   : > { %14830 = vst [vmem:[#allocation123_spill] sm:$0xff] %v11901_v37  ;;  %v11910_v33 = vadd.f32 %v2795_v22, %v11452_v1  ;;  %v2950_v41 = vpop.f32.mrf.mxu0  ;;  %v4300_v1 = vsel %vm10104_vm7, %v8410_v56, %v4299_v3  ;;  %v14837_v22 = vld [vmem:[#allocation18_spill] sm:$0xff] }
 0x23a   : > { %14832 = vst [vmem:[#allocation53_spill] sm:$0xff] %v11906_v52  ;;  %v2799_v4 = vpop.f32.mrf.mxu1  ;;  %8443 = vmatmul.mubr.msk.bf16.gmra.mxu1 %vm780_vm3, %v8426_v23  ;;  %v11916_v37 = vadd.f32 %v2950_v41, %v14834_v17  ;;  %v8411_v41 = vrot.slane %v8385_v38, 9  ;;  %v4308_v17 = vrot.slane %v4306_v48, 4  ;;  %v4316_v52 = vrot.slane %v8390_v0, 5  ;;  %v8392_v3 = vld [vmem:[%s9614_s21 + $0xac] sm:$0xf] }
 0x23b   : > { %14833 = vst [vmem:[#allocation62_spill] sm:$0xff] %v11910_v33  ;;  %v11921_v55 = vadd.f32 %v2799_v4, %v11464_v60  ;;  %v9093_v12 = vpop.f32.mrf.mxu0  ;;  %4595 = vmatprep.mubr.bf16.mxu1 %v14421_v7  ;;  %v4309_v33 = vrot.slane %v8387_v47, 5  ;;  %v8427_v57 = vcombine.low %v4300_v1, %v4303_v51  ;;  %v8391_v1 = vld [vmem:[%s9614_s21 + $0xa8] sm:$0xe] }
 0x23c   : > { %14835 = vst [vmem:[#allocation126_spill] sm:$0xff] %v11916_v37  ;;  %v2801_v39 = vpop.f32.mrf.mxu1  ;;  %v11929_v53 = vadd.f32 %v9093_v12, %v14837_v22  ;;  %v4315_v37 = vrot.slane %v4313_v44, 4  ;;  %v14839_v12 = vld [vmem:[#allocation36_spill] sm:$0xff]  ;;  %v4307_v0 = vsel %vm10104_vm7, %v8411_v41, %v4306_v48 }
 0x23d   : > { %14836 = vst [vmem:[#allocation55_spill] sm:$0xff] %v11921_v55  ;;  %v11932_v60 = vadd.f32 %v2801_v39, %v11476_v43  ;;  %v2953_v4 = vpop.f32.mrf.mxu0  ;;  %v8412_v55 = vrot.slane %v8388_v29, 9  ;;  %v8396_v41 = vld [vmem:[%s9614_s21 + $0xbc] sm:$0x1] }
 0x23e   : > { %v2803_v56 = vpop.f32.mrf.mxu1  ;;  %v11936_v59 = vadd.f32 %v2953_v4, %v14838_v32  ;;  %v4310_v32 = vsel %vm10104_vm7, %v4308_v17, %v4309_v33  ;;  %v4317_v22 = vsel %vm10104_vm7, %v4315_v37, %v4316_v52  ;;  %v8393_v4 = vld [vmem:[%s9614_s21 + $0xb0] sm:$0x1]  ;;  %v8394_v33 = vld [vmem:[%s9614_s21 + $0xb4] sm:$0xe] }
 0x23f   : > { %v11940_v38 = vadd.f32 %v2803_v56, %v11490_v11  ;;  %v9096_v47 = vpop.f32.mrf.mxu0  ;;  %9163 = vmatmul.mubr.msk.bf16.gmra.mxu0 %vm780_vm3, %v8426_v23  ;;  %v4320_v11 = vrot.slane %v8392_v3, 5  ;;  %v4314_v39 = vsel %vm10104_vm7, %v8412_v55, %v4313_v44  ;;  %v4327_v56 = vrot.slane %v8395_v10, 5 }
 0x240   : > { %v2805_v43 = vpop.f32.mrf.mxu1  ;;  %v11944_v29 = vadd.f32 %v9096_v47, %v14839_v12  ;;  %9166 = vmatprep.mubr.msk.bf16.mxu0 %vm780_vm3, %v8427_v57  ;;  %v8428_v44 = vcombine.low %v4307_v0, %v4310_v32  ;;  %v8413_v55 = vrot.slane %v8391_v1, 9  ;;  %v8429_v3 = vcombine.low %v4314_v39, %v4317_v22 }
 0x241   : > { %v11953_v51 = vadd.f32 %v2805_v43, %v11499_v45  ;;  %v2966_v23 = vpop.f32.mrf.mxu0  ;;  %v4323_v10 = vrot.slane %v8393_v4, 5  ;;  %v8414_v12 = vrot.slane %v8394_v33, 9 }
 0x242   : > { %v2809_v47 = vpop.f32.mrf.mxu1  ;;  %8444 = vmatmul.mubr.msk.bf16.gmra.mxu1 %vm780_vm3, %v8427_v57  ;;  %v11962_v48 = vadd.f32 %v2966_v23, %v11344_v5  ;;  %v4322_v57 = vrot.slane %v4320_v11, 4  ;;  %v4330_v23 = vrot.slane %v8396_v41, 5  ;;  %v4321_v22 = vsel %vm10104_vm7, %v8413_v55, %v4320_v11  ;;  %v14842_v11 = vld [vmem:[#allocation21_spill] sm:$0xff] }
 0x243   : > { %v11967_v45 = vadd.f32 %v2809_v47, %v11511_v46  ;;  %v9097_v17 = vpop.f32.mrf.mxu0  ;;  %4605 = vmatprep.mubr.bf16.mxu1 %v14421_v7  ;;  %v4329_v46 = vrot.slane %v4327_v56, 4  ;;  %v8398_v47 = vld [vmem:[%s9614_s21 + $0xc4] sm:$0xf] }
 0x244   : > { %v2811_v52 = vpop.f32.mrf.mxu1  ;;  %v11971_v37 = vadd.f32 %v9097_v17, %v11350_v15  ;;  %v4324_v4 = vsel %vm10104_vm7, %v4322_v57, %v4323_v10  ;;  %v4334_v33 = vrot.slane %v8398_v47, 5 }
 0x245   : > { %14840 = vst [vmem:[#allocation64_spill] sm:$0xff] %v11967_v45  ;;  %v11974_v5 = vadd.f32 %v2811_v52, %v11523_v18  ;;  %v2969_v43 = vpop.f32.mrf.mxu0  ;;  %v14841_v18 = vld [vmem:[#allocation99_spill] sm:$0xff]  ;;  %v4331_v17 = vsel %vm10104_vm7, %v4329_v46, %v4330_v23  ;;  %v8399_v52 = vld [vmem:[%s9614_s21 + $0xc8] sm:$0x1] }
 0x246   : > { %v2813_v45 = vpop.f32.mrf.mxu1  ;;  %v11978_v0 = vadd.f32 %v2969_v43, %v11370_v24  ;;  %v8397_v24 = vld [vmem:[%s9614_s21 + $0xc0] sm:$0xe]  ;;  %v4336_v23 = vrot.slane %v4334_v33, 4 }
 0x247   : > { %v11981_v15 = vadd.f32 %v2813_v45, %v11535_v58  ;;  %v9100_v32 = vpop.f32.mrf.mxu0  ;;  %9167 = vmatmul.mubr.msk.bf16.gmra.mxu0 %vm780_vm3, %v8428_v44  ;;  %v4328_v45 = vsel %vm10104_vm7, %v8414_v12, %v4327_v56  ;;  %v8415_v47 = vrot.slane %v8397_v24, 9  ;;  %v14843_v56 = vld [vmem:[#allocation118_spill] sm:$0xff]  ;;  %v14846_v24 = vld [vmem:[#allocation101_spill] sm:$0xff] }
 0x248   : > { %v2815_v1 = vpop.f32.mrf.mxu1  ;;  %v11985_v39 = vadd.f32 %v9100_v32, %v14841_v18  ;;  %9170 = vmatprep.mubr.msk.bf16.mxu0 %vm780_vm3, %v8429_v3  ;;  %v12012_v46 = vcombine.low %v4328_v45, %v4331_v17 }
 0x249   : > { %v11994_v58 = vadd.f32 %v2815_v1, %v11544_v21  ;;  %v2982_v41 = vpop.f32.mrf.mxu0  ;;  %v8430_v21 = vcombine.low %v4321_v22, %v4324_v4  ;;  %v4337_v1 = vrot.slane %v8399_v52, 5 }
 0x24a   : > { %v2819_v43 = vpop.f32.mrf.mxu1  ;;  %8445 = vmatmul.mubr.msk.bf16.gmra.mxu1 %vm780_vm3, %v8428_v44  ;;  %v12003_v55 = vadd.f32 %v2982_v41, %v14842_v11 }
 0x24b   : > { %v12006_v57 = vadd.f32 %v2819_v43, %v11555_v25  ;;  %v9101_v10 = vpop.f32.mrf.mxu0  ;;  %4615 = vmatprep.mubr.bf16.mxu1 %v14421_v7  ;;  %v14844_v25 = vld [vmem:[#allocation38_spill] sm:$0xff]  ;;  %v4338_v17 = vsel %vm10104_vm7, %v4336_v23, %v4337_v1  ;;  %v14850_v23 = vld [vmem:[#allocation120_spill] sm:$0xff] }
 0x24c   : > { %v2821_v32 = vpop.f32.mrf.mxu1  ;;  %v12010_v12 = vadd.f32 %v9101_v10, %v14843_v56 }
 0x24d   : > { %v12015_v44 = vadd.f32 %v2821_v32, %v11566_v50  ;;  %v2985_v18 = vpop.f32.mrf.mxu0  ;;  %v4335_v50 = vsel %vm10104_vm7, %v8415_v47, %v4334_v33  ;;  %v14848_v32 = vld [vmem:[#allocation23_spill] sm:$0xff] }
 0x24e   : > { %v2823_v41 = vpop.f32.mrf.mxu1  ;;  %v12018_v43 = vadd.f32 %v2985_v18, %v14844_v25  ;;  %v12044_v33 = vcombine.low %v4335_v50, %v4338_v17  ;;  %v14854_v17 = vld [vmem:[#allocation122_spill] sm:$0xff] }
 0x24f   : > { %v12021_v11 = vadd.f32 %v2823_v41, %v11578_v19  ;;  %v9104_v22 = vpop.f32.mrf.mxu0  ;;  %9171 = vmatmul.mubr.msk.bf16.gmra.mxu0 %vm780_vm3, %v8430_v21 }
 0x250   : > { %v2825_v4 = vpop.f32.mrf.mxu1  ;;  %v12025_v45 = vadd.f32 %v9104_v22, %v14846_v24  ;;  %9174 = vmatprep.mubr.msk.bf16.mxu0 %vm780_vm3, %v12012_v46  ;;  %v14852_v22 = vld [vmem:[#allocation25_spill] sm:$0xff] }
 0x251   : > { %14845 = vst [vmem:[#allocation128_spill] sm:$0xff] %v12021_v11  ;;  %v12034_v52 = vadd.f32 %v2825_v4, %v11587_v8  ;;  %v2998_v19 = vpop.f32.mrf.mxu0 }
 0x252   : > { %v2829_v10 = vpop.f32.mrf.mxu1  ;;  %8446 = vmatmul.mubr.msk.bf16.gmra.mxu1 %vm780_vm3, %v8429_v3  ;;  %v12038_v56 = vadd.f32 %v2998_v19, %v14848_v32 }
 0x253   : > { %14847 = vst [vmem:[#allocation57_spill] sm:$0xff] %v12034_v52  ;;  %v12041_v18 = vadd.f32 %v2829_v10, %v11598_v63  ;;  %v9105_v41 = vpop.f32.mrf.mxu0  ;;  %4625 = vmatprep.mubr.bf16.mxu1 %v14421_v7 }
 0x254   : > { %v2831_v47 = vpop.f32.mrf.mxu1  ;;  %v12047_v1 = vadd.f32 %v9105_v41, %v14850_v23  ;;  %v9421_v23 = vld [vmem:[%s9614_s21 + $0x18] sm:$0xff]  }
 0x255   : > { %14849 = vst [vmem:[#allocation66_spill] sm:$0xff] %v12041_v18  ;;  %v12050_v8 = vadd.f32 %v2831_v47, %v11609_v54  ;;  %v3001_v25 = vpop.f32.mrf.mxu0 }
 0x256   : > { %v2833_v3 = vpop.f32.mrf.mxu1  ;;  %v12053_v4 = vadd.f32 %v3001_v25, %v14852_v22 }
 0x257   : > { %14851 = vst [vmem:[#allocation130_spill] sm:$0xff] %v12050_v8  ;;  %v12056_v63 = vadd.f32 %v2833_v3, %v11621_v28  ;;  %v9108_v24 = vpop.f32.mrf.mxu0  ;;  %9175 = vmatmul.mubr.msk.bf16.gmra.mxu0 %vm780_vm3, %v12044_v33  ;;  %v14857_v3 = vld [vmem:[#allocation40_spill] sm:$0xff]  ;;  %v14880_v8 = vld [vmem:[#allocation29_spill] sm:$0xff] }
 0x258   : > { %v2835_v50 = vpop.f32.mrf.mxu1  ;;  %v12061_v19 = vadd.f32 %v9108_v24, %v14854_v17  ;;  %5134 = vmatprep.mubr.bf16.mxu0 %v14421_v7 }
 0x259   : > { %14853 = vst [vmem:[#allocation59_spill] sm:$0xff] %v12056_v63  ;;  %v12065_v54 = vadd.f32 %v2835_v50, %v11630_v40  ;;  %v3014_v10 = vpop.f32.mrf.mxu0  ;;  %v14859_v50 = vld [vmem:[#allocation103_spill] sm:$0xff] }
 0x25a   : > { %v2839_v32 = vpop.f32.mrf.mxu1  ;;  %8447 = vmatmul.mubr.msk.bf16.gmra.mxu1 %vm780_vm3, %v8430_v21  ;;  %v12069_v28 = vadd.f32 %v3014_v10, %v11495_v16  ;;  %v6106_v21 = vsel %vm829_vm0, %v11768_v61, 0 }
 0x25b   : > { %14855 = vst [vmem:[#allocation68_spill] sm:$0xff] %v12065_v54  ;;  %v12072_v41 = vadd.f32 %v2839_v32, %v11641_v34  ;;  %v9109_v47 = vpop.f32.mrf.mxu0  ;;  %4635 = vmatprep.mubr.bf16.mxu1 %v14421_v7  ;;  %v14860_v34 = vld [vmem:[#allocation131_spill] sm:$0xff]  ;;  %v14871_v54 = vld [vmem:[#allocation125_spill] sm:$0xff] }
 0x25c   : > { %v2841_v25 = vpop.f32.mrf.mxu1  ;;  %v12077_v22 = vadd.f32 %v9109_v47, %v14857_v3  ;;  %v14862_v3 = vld [vmem:[#allocation42_spill] sm:$0xff] }
 0x25d   : > { %14856 = vst [vmem:[#allocation132_spill] sm:$0xff] %v12072_v41  ;;  %v12080_v40 = vadd.f32 %v2841_v25, %v11652_v9  ;;  %v3017_v24 = vpop.f32.mrf.mxu0  ;;  %v12101_v25 = vld [vmem:[%s14361_s1 + $0x30] sm:$0x3f] }
 0x25e   : > { %v2843_v16 = vpop.f32.mrf.mxu1  ;;  %v12085_v17 = vadd.f32 %v3017_v24, %v14859_v50 }
 0x25f   : > { %14858 = vst [vmem:[#allocation61_spill] sm:$0xff] %v12080_v40  ;;  %v12088_v10 = vadd.f32 %v2843_v16, %v14860_v34  ;;  %v3715_v32 = vpop.f32.mrf.mxu0  ;;  %8516 = vmatmul.mubr.msk.bf16.vlgmr.msra.gmra.mxu0 %vm780_vm3, %v9421_v23  ;;  %v14864_v16 = vld [vmem:[#allocation105_spill] sm:$0xff]  ;;  %v14866_v34 = vld [vmem:[#allocation48_spill] sm:$0xff] }
 0x260   : > { %v2845_v47 = vpop.f32.mrf.mxu1  ;;  %v12092_v27 = vadd.f32 %v3715_v32, %v14862_v3  ;;  %9213 = vmatpush3.bf16.msra.mxu0 %v6106_v21  ;;  %5144 = vmatprep.mubr.bf16.mxu0 %v14421_v7  ;;  %v12110_v21 = vrot.slane %v12101_v25, %v14798_v36 }
 0x261   : > { %14861 = vst [vmem:[#allocation70_spill] sm:$0xff] %v12088_v10  ;;  %v12096_v9 = vadd.f32 %v2845_v47, %v11673_v42  ;;  %v3717_v61 = vpop.f32.mrf.mxu0  ;;  %v9422_v47 = vld [vmem:[%s9614_s21 + $0x24] sm:$0xff]  }
 0x262   : > { %v2849_v24 = vpop.f32.mrf.mxu1  ;;  %8448 = vmatmul.mubr.msk.bf16.gmra.mxu1 %vm780_vm3, %v12012_v46  ;;  %v12106_v50 = vadd.f32 %v3717_v61, %v14864_v16  ;;  %14865 = vst [vmem:[#allocation63_spill] sm:$0xff] %v12110_v21  ;;  %v6832_v46 = vcombine.high %v12110_v21, %v12110_v21  ;;  %v14869_v61 = vld [vmem:[#allocation37_spill] sm:$0xff] }
 0x263   : > { %14863 = vst [vmem:[#allocation134_spill] sm:$0xff] %v12096_v9  ;;  %v12113_v42 = vadd.f32 %v2849_v24, %v14866_v34  ;;  %v3719_v32 = vpop.f32.mrf.mxu0  ;;  %4645 = vmatprep.mubr.bf16.mxu1 %v14421_v7  ;;  %v14868_v9 = vld [vmem:[#allocation27_spill] sm:$0xff] }
 0x264   : > { %v2851_v3 = vpop.f32.mrf.mxu1  ;;  %v12118_v10 = vadd.f32 %v3719_v32, %v14868_v9  ;;  %8727 = vmatprep.subr.msk.bf16.mxu0 %vm829_vm0, %v6832_v46  ;;  %v14872_v24 = vld [vmem:[#allocation39_spill] sm:$0xff]  ;;  %v14874_v32 = vld [vmem:[#allocation44_spill] sm:$0xff] }
 0x265   : > { %14867 = vst [vmem:[#allocation71_spill] sm:$0xff] %v12113_v42  ;;  %v12123_v16 = vadd.f32 %v2851_v3, %v14869_v61  ;;  %v3721_v40 = vpop.f32.mrf.mxu0  ;;  %v14875_v3 = vld [vmem:[#allocation41_spill] sm:$0xff]  ;;  %v14877_v46 = vld [vmem:[#allocation107_spill] sm:$0xff] }
 0x266   : > { %v2853_v41 = vpop.f32.mrf.mxu1  ;;  %v12126_v63 = vadd.f32 %v3721_v40, %v14871_v54 }
 0x267   : > { %14870 = vst [vmem:[#allocation136_spill] sm:$0xff] %v12123_v16  ;;  %v12130_v34 = vadd.f32 %v2853_v41, %v14872_v24  ;;  %v3725_v42 = vpop.f32.mrf.mxu0  ;;  %8517 = vmatmul.mubr.msk.bf16.gmra.mxu0 %vm780_vm3, %v9422_v47  ;;  %v14878_v24 = vld [vmem:[#allocation50_spill] sm:$0xff] }
 0x268   : > { %v2855_v9 = vpop.f32.mrf.mxu1  ;;  %v12134_v21 = vadd.f32 %v3725_v42, %v14874_v32  ;;  %5154 = vmatprep.mubr.bf16.mxu0 %v14421_v7  ;;  %v9423_v42 = vld [vmem:[%s9614_s21 + $0x30] sm:$0xff]  }
 0x269   : > { %14873 = vst [vmem:[#allocation65_spill] sm:$0xff] %v12130_v34  ;;  %v12138_v61 = vadd.f32 %v2855_v9, %v14875_v3  ;;  %v3727_v54 = vpop.f32.mrf.mxu0  ;;  %v14881_v9 = vld [vmem:[#allocation52_spill] sm:$0xff] }
 0x26a   : > { %v2859_v40 = vpop.f32.mrf.mxu1  ;;  %8449 = vmatmul.mubr.msk.bf16.gmra.mxu1 %vm780_vm3, %v12044_v33  ;;  %v12143_v41 = vadd.f32 %v3727_v54, %v14877_v46  ;;  %v14883_v33 = vld [vmem:[#allocation127_spill] sm:$0xff] }
 0x26b   : > { %14876 = vst [vmem:[#allocation157_spill] sm:$0xff] %v12138_v61  ;;  %v12146_v34 = vadd.f32 %v2859_v40, %v14878_v24  ;;  %v3729_v16 = vpop.f32.mrf.mxu0  ;;  %9180 = vmatprep.mubr.msk.bf16.mxu1 %vm780_vm3, %v9421_v23  ;;  %v14884_v54 = vld [vmem:[#allocation43_spill] sm:$0xff] }
 0x26c   : > { %v2861_v32 = vpop.f32.mrf.mxu1  ;;  %v12151_v18 = vadd.f32 %v3729_v16, %v14880_v8  ;;  %v14886_v24 = vld [vmem:[#allocation31_spill] sm:$0xff]  ;;  %v6100_v8 = vsel %vm829_vm0, %v11837_v31, 0 }
 0x26d   : > { %14879 = vst [vmem:[#allocation72_spill] sm:$0xff] %v12146_v34  ;;  %v12154_v3 = vadd.f32 %v2861_v32, %v14881_v9  ;;  %v3731_v61 = vpop.f32.mrf.mxu0 }
 0x26e   : > { %v2863_v52 = vpop.f32.mrf.mxu1  ;;  %v12157_v11 = vadd.f32 %v3731_v61, %v14883_v33 }
 0x26f   : > { %14882 = vst [vmem:[#allocation138_spill] sm:$0xff] %v12154_v3  ;;  %v12160_v40 = vadd.f32 %v2863_v52, %v14884_v54  ;;  %v3735_v46 = vpop.f32.mrf.mxu0  ;;  %8518 = vmatmul.mubr.msk.bf16.gmra.mxu0 %vm780_vm3, %v9423_v42  ;;  %v14888_v52 = vld [vmem:[#allocation129_spill] sm:$0xff] }
 0x270   : > { %v2865_v23 = vpop.f32.mrf.mxu1  ;;  %v12164_v34 = vadd.f32 %v3735_v46, %v14886_v24  ;;  %5164 = vmatprep.mubr.bf16.mxu0 %v14421_v7  ;;  %v9424_v46 = vld [vmem:[%s9614_s21 + $0x3c] sm:$0xff]   ;;  %v14890_v24 = vld [vmem:[#allocation46_spill] sm:$0xff] }
 0x271   : > { %14885 = vst [vmem:[#allocation67_spill] sm:$0xff] %v12160_v40  ;;  %v12170_v16 = vadd.f32 %v2865_v23, %v11770_v26  ;;  %v3737_v61 = vpop.f32.mrf.mxu0  ;;  %v14891_v23 = vld [vmem:[#allocation54_spill] sm:$0xff]  ;;  %v14893_v3 = vld [vmem:[#allocation109_spill] sm:$0xff] }
 0x272   : > { %v9114_v32 = vpop.f32.mrf.mxu1  ;;  %9181 = vmatmul.mubr.msk.bf16.vlgmr.msra.gmra.mxu1 %vm780_vm3, %v9422_v47  ;;  %v12174_v9 = vadd.f32 %v3737_v61, %v14888_v52  ;;  %v14895_v52 = vld [vmem:[#allocation33_spill] sm:$0xff] }
 0x273   : > { %14887 = vst [vmem:[#allocation159_spill] sm:$0xff] %v12170_v16  ;;  %v12177_v33 = vadd.f32 %v9114_v32, %v11780_v20  ;;  %v3739_v54 = vpop.f32.mrf.mxu0  ;;  %9184 = vmatprep.mubr.msk.bf16.mxu1 %vm780_vm3, %v9423_v42  ;;  %6123 = vmatpush1.bf16.msra.mxu1 %v6100_v8  ;;  %v9425_v42 = vld [vmem:[%s9614_s21 + $0x48] sm:$0xff]  }
 0x274   : > { %v3908_v31 = vpop.f32.mrf.mxu1  ;;  %v12182_v26 = vadd.f32 %v3739_v54, %v14890_v24 }
 0x275   : > { %14889 = vst [vmem:[#allocation73_spill] sm:$0xff] %v12177_v33  ;;  %v12185_v16 = vadd.f32 %v3908_v31, %v14891_v23  ;;  %v3741_v47 = vpop.f32.mrf.mxu0 }
 0x276   : > { %v9115_v40 = vpop.f32.mrf.mxu1  ;;  %v12188_v61 = vadd.f32 %v3741_v47, %v14893_v3 }
 0x277   : > { %14892 = vst [vmem:[#allocation140_spill] sm:$0xff] %v12185_v16  ;;  %v12191_v20 = vadd.f32 %v9115_v40, %v11804_v62  ;;  %v3745_v32 = vpop.f32.mrf.mxu0  ;;  %8519 = vmatmul.mubr.msk.bf16.gmra.mxu0 %vm780_vm3, %v9424_v46  ;;  %v14897_v62 = vld [vmem:[#allocation35_spill] sm:$0xff] }
 0x278   : > { %v3911_v8 = vpop.f32.mrf.mxu1  ;;  %v12196_v33 = vadd.f32 %v3745_v32, %v14895_v52  ;;  %5174 = vmatprep.mubr.bf16.mxu0 %v14421_v7  ;;  %v14899_v32 = vld [vmem:[#allocation133_spill] sm:$0xff] }
 0x279   : > { %14894 = vst [vmem:[#allocation69_spill] sm:$0xff] %v12191_v20  ;;  %v12200_v54 = vadd.f32 %v3911_v8, %v11812_v6  ;;  %v3747_v31 = vpop.f32.mrf.mxu0 }
 0x27a   : > { %v9118_v3 = vpop.f32.mrf.mxu1  ;;  %9185 = vmatmul.mubr.msk.bf16.gmra.mxu1 %vm780_vm3, %v9424_v46  ;;  %v12204_v40 = vadd.f32 %v3747_v31, %v14897_v62  ;;  %v6817_v46 = vcombine.high %v12101_v25, %v12101_v25  ;;  %v14901_v31 = vld [vmem:[#allocation111_spill] sm:$0xff] }
 0x27b   : > { %14896 = vst [vmem:[#allocation74_spill] sm:$0xff] %v12200_v54  ;;  %v12207_v24 = vadd.f32 %v9118_v3, %v11822_v14  ;;  %v3749_v23 = vpop.f32.mrf.mxu0  ;;  %9188 = vmatprep.mubr.msk.bf16.mxu1 %vm780_vm3, %v9425_v42  ;;  %v9426_v14 = vld [vmem:[%s9614_s21 + $0x54] sm:$0xff]  }
 0x27c   : > { %v3924_v47 = vpop.f32.mrf.mxu1  ;;  %v12211_v52 = vadd.f32 %v3749_v23, %v14899_v32  ;;  %v9427_v23 = vld [vmem:[%s9614_s21 + $0x60] sm:$0xff]   ;;  %v12228_v32 = vrot.slane %v6817_v46, %v14798_v36 }
 0x27d   : > { %14898 = vst [vmem:[#allocation142_spill] sm:$0xff] %v12207_v24  ;;  %v12214_v6 = vadd.f32 %v3924_v47, %v11833_v2  ;;  %v3751_v8 = vpop.f32.mrf.mxu0  ;;  %v14904_v47 = vld [vmem:[#allocation135_spill] sm:$0xff]  ;;  %v14907_v36 = vld [vmem:[#allocation137_spill] sm:$0xff] }
 0x27e   : > { %v9119_v54 = vpop.f32.mrf.mxu1  ;;  %v12219_v62 = vadd.f32 %v3751_v8, %v14901_v31  ;;  %9336 = vmatprep.subr.msk.bf16.mxu1 %vm829_vm0, %v12228_v32 }
 0x27f   : > { %14900 = vst [vmem:[#allocation75_spill] sm:$0xff] %v12214_v6  ;;  %v12223_v3 = vadd.f32 %v9119_v54, %v11848_v35  ;;  %v3755_v24 = vpop.f32.mrf.mxu0  ;;  %8520 = vmatmul.mubr.msk.bf16.gmra.mxu0 %vm780_vm3, %v9425_v42 }
 0x280   : > { %14902 = vst [vmem:[#allocation144_spill] sm:$0xff] %v12219_v62  ;;  %v3927_v2 = vpop.f32.mrf.mxu1  ;;  %v12231_v6 = vadd.f32 %v3755_v24, %v14904_v47  ;;  %5184 = vmatprep.mubr.bf16.mxu0 %v14421_v7 }
 0x281   : > { %14903 = vst [vmem:[#allocation76_spill] sm:$0xff] %v12223_v3  ;;  %v12235_v25 = vadd.f32 %v3927_v2, %v11858_v49  ;;  %v3757_v8 = vpop.f32.mrf.mxu0  ;;  %v14910_v49 = vld [vmem:[#allocation139_spill] sm:$0xff]  ;;  %v14913_v3 = vld [vmem:[#allocation113_spill] sm:$0xff] }
 0x282   : > { %14905 = vst [vmem:[#allocation146_spill] sm:$0xff] %v12231_v6  ;;  %v9122_v35 = vpop.f32.mrf.mxu1  ;;  %9189 = vmatmul.mubr.msk.bf16.gmra.mxu1 %vm780_vm3, %v9426_v14  ;;  %v12241_v42 = vadd.f32 %v3757_v8, %v14907_v36  ;;  %v9428_v8 = vld [vmem:[%s9614_s21 + $0x6c] sm:$0xff]  }
 0x283   : > { %14906 = vst [vmem:[#allocation77_spill] sm:$0xff] %v12235_v25  ;;  %v12244_v54 = vadd.f32 %v9122_v35, %v11867_v13  ;;  %v3759_v24 = vpop.f32.mrf.mxu0  ;;  %9192 = vmatprep.mubr.msk.bf16.mxu1 %vm780_vm3, %v9427_v23  ;;  %v14915_v36 = vld [vmem:[#allocation51_spill] sm:$0xff] }
 0x284   : > { %14908 = vst [vmem:[#allocation148_spill] sm:$0xff] %v12241_v42  ;;  %v3940_v46 = vpop.f32.mrf.mxu1  ;;  %v12248_v31 = vadd.f32 %v3759_v24, %v14910_v49  ;;  %v12262_v35 = vld [vmem:[%s9614_s21 + $0x78] sm:$0xff]   ;;  %v12412_v6 = vld [vmem:[%s9614_s21 + $0xcc] sm:$0xff]  }
 0x285   : > { %14909 = vst [vmem:[#allocation78_spill] sm:$0xff] %v12244_v54  ;;  %v12251_v2 = vadd.f32 %v3940_v46, %v11877_v30  ;;  %v3761_v47 = vpop.f32.mrf.mxu0  ;;  %v14917_v24 = vld [vmem:[#allocation115_spill] sm:$0xff]  ;;  %v14919_v30 = vld [vmem:[#allocation60_spill] sm:$0xff] }
 0x286   : > { %14911 = vst [vmem:[#allocation150_spill] sm:$0xff] %v12248_v31  ;;  %v9123_v25 = vpop.f32.mrf.mxu1  ;;  %v12254_v20 = vadd.f32 %v3761_v47, %v14913_v3  ;;  %v14929_v31 = vld [vmem:[#allocation143_spill] sm:$0xff] }
 0x287   : > { %14912 = vst [vmem:[#allocation79_spill] sm:$0xff] %v12251_v2  ;;  %v12258_v16 = vadd.f32 %v9123_v25, %v14915_v36  ;;  %v3765_v13 = vpop.f32.mrf.mxu0  ;;  %8521 = vmatmul.mubr.msk.bf16.gmra.mxu0 %vm780_vm3, %v9426_v14  ;;  %v14921_v25 = vld [vmem:[#allocation141_spill] sm:$0xff] }
 0x288   : > { %14914 = vst [vmem:[#allocation151_spill] sm:$0xff] %v12254_v20  ;;  %v3943_v54 = vpop.f32.mrf.mxu1  ;;  %v12265_v49 = vadd.f32 %v3765_v13, %v14917_v24  ;;  %5194 = vmatprep.mubr.bf16.mxu0 %v14421_v7  ;;  %v14923_v14 = vld [vmem:[#allocation53_spill] sm:$0xff] }
 0x289   : > { %14916 = vst [vmem:[#allocation80_spill] sm:$0xff] %v12258_v16  ;;  %v12269_v46 = vadd.f32 %v3943_v54, %v14919_v30  ;;  %v3767_v3 = vpop.f32.mrf.mxu0  ;;  %v14925_v24 = vld [vmem:[#allocation45_spill] sm:$0xff]  ;;  %v14927_v54 = vld [vmem:[#allocation126_spill] sm:$0xff] }
 0x28a   : > { %14918 = vst [vmem:[#allocation152_spill] sm:$0xff] %v12265_v49  ;;  %v9126_v47 = vpop.f32.mrf.mxu1  ;;  %9193 = vmatmul.mubr.msk.bf16.gmra.mxu1 %vm780_vm3, %v9428_v8  ;;  %v12273_v36 = vadd.f32 %v3767_v3, %v14921_v25  ;;  %v12290_v3 = vld [vmem:[%s9614_s21 + $0x84] sm:$0xff]  }
 0x28b   : > { %14920 = vst [vmem:[#allocation81_spill] sm:$0xff] %v12269_v46  ;;  %v12276_v16 = vadd.f32 %v9126_v47, %v14923_v14  ;;  %v3769_v2 = vpop.f32.mrf.mxu0  ;;  %9196 = vmatprep.mubr.msk.bf16.mxu1 %vm780_vm3, %v12262_v35  ;;  %v12297_v14 = vld [vmem:[%s9614_s21 + $0x90] sm:$0xff]  }
 0x28c   : > { %14922 = vst [vmem:[#allocation153_spill] sm:$0xff] %v12273_v36  ;;  %v3956_v13 = vpop.f32.mrf.mxu1  ;;  %v12281_v49 = vadd.f32 %v3769_v2, %v14925_v24  ;;  %v14932_v24 = vld [vmem:[#allocation117_spill] sm:$0xff] }
 0x28d   : > { %14924 = vst [vmem:[#allocation82_spill] sm:$0xff] %v12276_v16  ;;  %v12284_v30 = vadd.f32 %v3956_v13, %v14927_v54  ;;  %v3771_v46 = vpop.f32.mrf.mxu0 }
 0x28e   : > { %14926 = vst [vmem:[#allocation154_spill] sm:$0xff] %v12281_v49  ;;  %v9127_v20 = vpop.f32.mrf.mxu1  ;;  %v12287_v42 = vadd.f32 %v3771_v46, %v14929_v31  ;;  %v8550_v49 = vld [vmem:[%s9614_s21 + $0x20] sm:$0x1] }
 0x28f   : > { %14928 = vst [vmem:[#allocation84_spill] sm:$0xff] %v12284_v30  ;;  %v12293_v47 = vadd.f32 %v9127_v20, %v11929_v53  ;;  %v3775_v25 = vpop.f32.mrf.mxu0  ;;  %8522 = vmatmul.mubr.msk.bf16.gmra.mxu0 %vm780_vm3, %v9427_v23  ;;  %v14935_v20 = vld [vmem:[#allocation56_spill] sm:$0xff]  ;;  %v14941_v30 = vld [vmem:[#allocation47_spill] sm:$0xff] }
 0x290   : > { %14930 = vst [vmem:[#allocation155_spill] sm:$0xff] %v12287_v42  ;;  %v3959_v2 = vpop.f32.mrf.mxu1  ;;  %v12300_v16 = vadd.f32 %v3775_v25, %v14932_v24  ;;  %5204 = vmatprep.mubr.bf16.mxu0 %v14421_v7  ;;  %v12368_v42 = vld [vmem:[%s9614_s21 + $0xb4] sm:$0xff]  }
 0x291   : > { %14931 = vst [vmem:[#allocation85_spill] sm:$0xff] %v12293_v47  ;;  %v12304_v31 = vadd.f32 %v3959_v2, %v11936_v59  ;;  %v3777_v46 = vpop.f32.mrf.mxu0  ;;  %v14938_v59 = vld [vmem:[#allocation119_spill] sm:$0xff] }
 0x292   : > { %14933 = vst [vmem:[#allocation86_spill] sm:$0xff] %v12300_v16  ;;  %v9130_v53 = vpop.f32.mrf.mxu1  ;;  %9197 = vmatmul.mubr.msk.bf16.gmra.mxu1 %vm780_vm3, %v12290_v3  ;;  %v12309_v23 = vadd.f32 %v3777_v46, %v14935_v20  ;;  %v12326_v20 = vld [vmem:[%s9614_s21 + $0x9c] sm:$0xff]  }
 0x293   : > { %14934 = vst [vmem:[#allocation156_spill] sm:$0xff] %v12304_v31  ;;  %v12312_v13 = vadd.f32 %v9130_v53, %v11944_v29  ;;  %v3779_v54 = vpop.f32.mrf.mxu0  ;;  %9200 = vmatprep.mubr.msk.bf16.mxu1 %vm780_vm3, %v12297_v14  ;;  %v8548_v29 = vld [vmem:[%s9614_s21 + $0x18] sm:$0xf]  ;;  %v8549_v53 = vld [vmem:[%s9614_s21 + $0x1c] sm:$0xf] }
 0x294   : > { %14936 = vst [vmem:[#allocation88_spill] sm:$0xff] %v12309_v23  ;;  %v3972_v25 = vpop.f32.mrf.mxu1  ;;  %v12317_v2 = vadd.f32 %v3779_v54, %v14938_v59  ;;  %v12335_v54 = vld [vmem:[%s9614_s21 + $0xa8] sm:$0xff]  }
 0x295   : > { %14937 = vst [vmem:[#allocation158_spill] sm:$0xff] %v12312_v13  ;;  %v12320_v24 = vadd.f32 %v3972_v25, %v11962_v48  ;;  %v3781_v31 = vpop.f32.mrf.mxu0  ;;  %v14944_v25 = vld [vmem:[#allocation145_spill] sm:$0xff] }
 0x296   : > { %14939 = vst [vmem:[#allocation90_spill] sm:$0xff] %v12317_v2  ;;  %v9131_v47 = vpop.f32.mrf.mxu1  ;;  %v12323_v46 = vadd.f32 %v3781_v31, %v14941_v30  ;;  %v8552_v2 = vld [vmem:[%s9614_s21 + $0x28] sm:$0xf] }
 0x297   : > { %14940 = vst [vmem:[#allocation160_spill] sm:$0xff] %v12320_v24  ;;  %v12331_v13 = vadd.f32 %v9131_v47, %v11971_v37  ;;  %v3785_v23 = vpop.f32.mrf.mxu0  ;;  %8523 = vmatmul.mubr.msk.bf16.gmra.mxu0 %vm780_vm3, %v9428_v8  ;;  %v5601_v24 = vshrl.u32 %v8548_v29, 16  ;;  %v5604_v37 = vshll.u32 %v8548_v29, 16  ;;  %v5610_v47 = vshll.u32 %v8549_v53, 16  ;;  %v14947_v8 = vld [vmem:[#allocation49_spill] sm:$0xff] }
 0x298   : > { %14942 = vst [vmem:[#allocation92_spill] sm:$0xff] %v12323_v46  ;;  %v3975_v48 = vpop.f32.mrf.mxu1  ;;  %v12338_v59 = vadd.f32 %v3785_v23, %v14944_v25  ;;  %5214 = vmatprep.mubr.bf16.mxu0 %v14421_v7  ;;  %v5614_v23 = vshrl.u32 %v8549_v53, 16 }
 0x299   : > { %14943 = vst [vmem:[#allocation161_spill] sm:$0xff] %v12331_v13  ;;  %v12342_v30 = vadd.f32 %v3975_v48, %v11978_v0  ;;  %v3787_v31 = vpop.f32.mrf.mxu0  ;;  %v8551_v0 = vld [vmem:[%s9614_s21 + $0x24] sm:$0xf]  ;;  %v14950_v48 = vld [vmem:[#allocation147_spill] sm:$0xff]  ;;  %v5603_v53 = vrot.slane %v5601_v24, 4  ;;  %v12362_v16 = vrot.slane %v5610_v47, 5 }
 0x29a   : > { %14945 = vst [vmem:[#allocation94_spill] sm:$0xff] %v12338_v59  ;;  %v9134_v13 = vpop.f32.mrf.mxu1  ;;  %9201 = vmatmul.mubr.msk.bf16.gmra.mxu1 %vm780_vm3, %v12326_v20  ;;  %v12347_v46 = vadd.f32 %v3787_v31, %v14947_v8  ;;  %v5616_v36 = vrot.slane %v5614_v23, 4  ;;  %v12377_v24 = vld [vmem:[%s9614_s21 + $0xc0] sm:$0xff]   ;;  %v5638_v47 = vshrl.u32 %v8552_v2, 16 }
 0x29b   : > { %14946 = vst [vmem:[#allocation162_spill] sm:$0xff] %v12342_v30  ;;  %v12350_v25 = vadd.f32 %v9134_v13, %v11985_v39  ;;  %v3789_v59 = vpop.f32.mrf.mxu0  ;;  %9204 = vmatprep.mubr.msk.bf16.mxu1 %vm780_vm3, %v12335_v54  ;;  %v14953_v13 = vld [vmem:[#allocation58_spill] sm:$0xff] }
 0x29c   : > { %14948 = vst [vmem:[#allocation96_spill] sm:$0xff] %v12347_v46  ;;  %v3988_v29 = vpop.f32.mrf.mxu1  ;;  %v12356_v30 = vadd.f32 %v3789_v59, %v14950_v48  ;;  %v5606_v46 = vrot.slane %v5604_v37, 5  ;;  %v5625_v59 = vshrl.u32 %v8551_v0, 16  ;;  %v5628_v48 = vshll.u32 %v8551_v0, 16 }
 0x29d   : > { %14949 = vst [vmem:[#allocation163_spill] sm:$0xff] %v12350_v25  ;;  %v12360_v31 = vadd.f32 %v3988_v29, %v12003_v55  ;;  %v3791_v8 = vpop.f32.mrf.mxu0  ;;  %v5634_v37 = vshll.u32 %v8552_v2, 16 }
 0x29e   : > { %14951 = vst [vmem:[#allocation91_spill] sm:$0xff] %v12356_v30  ;;  %v9135_v39 = vpop.f32.mrf.mxu1  ;;  %v12365_v25 = vadd.f32 %v3791_v8, %v14953_v13  ;;  %v14956_v8 = vld [vmem:[#allocation121_spill] sm:$0xff]  ;;  %v5607_v0 = vor.u32 %v5606_v46, %v5603_v53  ;;  %v5640_v53 = vrot.slane %v5638_v47, 4 }
 0x29f   : > { %14952 = vst [vmem:[#allocation98_spill] sm:$0xff] %v12360_v31  ;;  %v12372_v30 = vadd.f32 %v9135_v39, %v12010_v12  ;;  %v3795_v55 = vpop.f32.mrf.mxu0  ;;  %8524 = vmatmul.mubr.msk.bf16.gmra.mxu0 %vm780_vm3, %v12262_v35  ;;  %v5620_v39 = vshll.u32 %v8550_v49, 16  ;;  %v14959_v35 = vld [vmem:[#allocation149_spill] sm:$0xff]  ;;  %v5617_v31 = vor.u32 %v5616_v36, %v12362_v16  ;;  %v8553_v49 = vld [vmem:[%s9614_s21 + $0x2c] sm:$0x1]  ;;  %v12398_v46 = vrot.slane %v5634_v37, 5 }
 0x2a0   : > { %14954 = vst [vmem:[#allocation165_spill] sm:$0xff] %v12365_v25  ;;  %v3991_v29 = vpop.f32.mrf.mxu1  ;;  %v12380_v13 = vadd.f32 %v3795_v55, %v14956_v8  ;;  %5224 = vmatprep.mubr.bf16.mxu0 %v14421_v7  ;;  %v5627_v55 = vrot.slane %v5625_v59, 4  ;;  %v5630_v8 = vrot.slane %v5628_v48, 5  ;;  %v8554_v36 = vld [vmem:[%s9614_s21 + $0x30] sm:$0xf]  ;;  %v5644_v62 = vshll.u32 %v8553_v49, 16 }
 0x2a1   : > { %14955 = vst [vmem:[#allocation100_spill] sm:$0xff] %v12372_v30  ;;  %v12384_v23 = vadd.f32 %v3991_v29, %v12018_v43  ;;  %v3797_v12 = vpop.f32.mrf.mxu0  ;;  %v5618_v37 = vrot.slane %v5617_v31, 4 }
 0x2a2   : > { %14957 = vst [vmem:[#allocation166_spill] sm:$0xff] %v12380_v13  ;;  %v9138_v30 = vpop.f32.mrf.mxu1  ;;  %9205 = vmatmul.mubr.msk.bf16.gmra.mxu1 %vm780_vm3, %v12368_v42  ;;  %v12389_v2 = vadd.f32 %v3797_v12, %v14959_v35  ;;  %v14962_v12 = vld [vmem:[#allocation123_spill] sm:$0xff]  ;;  %v5631_v47 = vor.u32 %v5630_v8, %v5627_v55 }
 0x2a3   : > { %14958 = vst [vmem:[#allocation93_spill] sm:$0xff] %v12384_v23  ;;  %v12393_v13 = vadd.f32 %v9138_v30, %v12025_v45  ;;  %v3799_v43 = vpop.f32.mrf.mxu0  ;;  %9208 = vmatprep.mubr.msk.bf16.mxu1 %vm780_vm3, %v12377_v24  ;;  %v5608_v45 = vrot.slane %v5607_v0, 4  ;;  %v5622_v30 = vrot.slane %v5620_v39, 5  ;;  %v5649_v0 = vshrl.u32 %v8554_v36, 16 }
 0x2a4   : > { %14960 = vst [vmem:[#allocation102_spill] sm:$0xff] %v12389_v2  ;;  %v4004_v29 = vpop.f32.mrf.mxu1  ;;  %v12401_v35 = vadd.f32 %v3799_v43, %v14962_v12  ;;  %v14964_v2 = vld [vmem:[#allocation62_spill] sm:$0xff]  ;;  %v5652_v39 = vshll.u32 %v8554_v36, 16 }
 0x2a5   : > { %14961 = vst [vmem:[#allocation167_spill] sm:$0xff] %v12393_v13  ;;  %v12405_v59 = vadd.f32 %v4004_v29, %v12038_v56  ;;  %v3801_v48 = vpop.f32.mrf.mxu0  ;;  %v8555_v13 = vld [vmem:[%s9614_s21 + $0x34] sm:$0xf]  ;;  %v5641_v56 = vor.u32 %v5640_v53, %v12398_v46  ;;  %v5623_v36 = vsel %vm9648_vm4, %v5618_v37, %v5622_v30  ;;  %v8556_v37 = vld [vmem:[%s9614_s21 + $0x38] sm:$0x1] }
 0x2a6   : > { %v9139_v23 = vpop.f32.mrf.mxu1  ;;  %v12409_v25 = vadd.f32 %v3801_v48, %v14964_v2  ;;  %v5658_v31 = vshll.u32 %v8555_v13, 16  ;;  %v5662_v55 = vshrl.u32 %v8555_v13, 16  ;;  %v5632_v13 = vrot.slane %v5631_v47, 4 }
 0x2a7   : > { %14963 = vst [vmem:[#allocation104_spill] sm:$0xff] %v12405_v59  ;;  %v12415_v43 = vadd.f32 %v9139_v23, %v12047_v1  ;;  %v3805_v12 = vpop.f32.mrf.mxu0  ;;  %8525 = vmatmul.mubr.msk.bf16.gmra.mxu0 %vm780_vm3, %v12290_v3  ;;  %v14965_v59 = vld [vmem:[#allocation55_spill] sm:$0xff]  ;;  %v5613_v3 = vsel %vm9648_vm4, %v5608_v45, %v12362_v16  ;;  %v5642_v16 = vrot.slane %v5641_v56, 4  ;;  %v5651_v45 = vrot.slane %v5649_v0, 4  ;;  %v8557_v56 = vld [vmem:[%s9614_s21 + $0x3c] sm:$0xf] }
 0x2a8   : > { %v4007_v29 = vpop.f32.mrf.mxu1  ;;  %v12421_v2 = vadd.f32 %v3805_v12, %v14965_v59  ;;  %5234 = vmatprep.mubr.bf16.mxu0 %v14421_v7  ;;  %v5646_v59 = vrot.slane %v5644_v62, 5  ;;  %v5654_v12 = vrot.slane %v5652_v39, 5  ;;  %v5664_v30 = vrot.slane %v5662_v55, 4  ;;  %v8558_v0 = vld [vmem:[%s9614_s21 + $0x40] sm:$0xf] }
 0x2a9   : > { %v12425_v8 = vadd.f32 %v4007_v29, %v12053_v4  ;;  %v3807_v1 = vpop.f32.mrf.mxu0 }
 0x2aa   : > { %v9142_v49 = vpop.f32.mrf.mxu1  ;;  %9209 = vmatmul.mubr.msk.bf16.gmra.mxu1 %vm780_vm3, %v12412_v6  ;;  %v12433_v53 = vadd.f32 %v3807_v1, %v11932_v60  ;;  %v12444_v1 = vrot.slane %v5658_v31, 5  ;;  %v5647_v31 = vsel %vm9648_vm4, %v5642_v16, %v5646_v59  ;;  %v5676_v59 = vshll.u32 %v8557_v56, 16 }
 0x2ab   : > { %v12438_v4 = vadd.f32 %v9142_v49, %v12061_v19  ;;  %v3809_v48 = vpop.f32.mrf.mxu0  ;;  %6140 = vmatprep.mubr.bf16.mxu1 %v14421_v7  ;;  %v5682_v16 = vshll.u32 %v8558_v0, 16 }
 0x2ac   : > { %v4020_v29 = vpop.f32.mrf.mxu1  ;;  %v12442_v60 = vadd.f32 %v3809_v48, %v11940_v38  ;;  %v5668_v48 = vshll.u32 %v8556_v37, 16  ;;  %v8560_v37 = vld [vmem:[%s9614_s21 + $0x48] sm:$0xf] }
 0x2ad   : > { %14967 = vst [vmem:[#allocation9_spill] sm:$0xff] %v12438_v4  ;;  %v12447_v62 = vadd.f32 %v4020_v29, %v12069_v28  ;;  %v3811_v19 = vpop.f32.mrf.mxu0  ;;  %v12453_v4 = vcombine.low %v5613_v3, %v5623_v36  ;;  %v5637_v28 = vsel %vm9648_vm4, %v5632_v13, %v12398_v46  ;;  %v14968_v3 = vld [vmem:[#allocation64_spill] sm:$0xff]  ;;  %v5673_v13 = vshrl.u32 %v8557_v56, 16 }
 0x2ae   : > { %v9143_v47 = vpop.f32.mrf.mxu1  ;;  %v12451_v49 = vadd.f32 %v3811_v19, %v11953_v51  ;;  %v5655_v51 = vor.u32 %v5654_v12, %v5651_v45 }
 0x2af   : > { %v12458_v39 = vadd.f32 %v9143_v47, %v12077_v22  ;;  %v3815_v38 = vpop.f32.mrf.mxu0  ;;  %8526 = vmatmul.mubr.msk.bf16.gmra.mxu0 %vm780_vm3, %v12297_v14  ;;  %v5665_v22 = vor.u32 %v5664_v30, %v12444_v1  ;;  %v6888_v14 = vsel %vm829_vm0, %v12228_v32, 0  ;;  %v5686_v30 = vshrl.u32 %v8558_v0, 16 }
 0x2b0   : > { %v4023_v55 = vpop.f32.mrf.mxu1  ;;  %v12468_v36 = vadd.f32 %v3815_v38, %v14968_v3  ;;  %5244 = vmatprep.mubr.bf16.mxu0 %v14421_v7  ;;  %v5656_v38 = vrot.slane %v5655_v51, 4  ;;  %v8561_v3 = vld [vmem:[%s9614_s21 + $0x4c] sm:$0xf] }
 0x2b1   : > { %v12475_v29 = vadd.f32 %v4023_v55, %v12085_v17  ;;  %v3817_v46 = vpop.f32.mrf.mxu0  ;;  %v12486_v17 = vcombine.low %v5637_v28, %v5647_v31  ;;  %v5666_v55 = vrot.slane %v5665_v22, 4 }
 0x2b2   : > { %v4497_v45 = vpop.f32.mrf.mxu1  ;;  %8614 = vmatmul.mubr.msk.bf16.vlgmr.msra.gmra.mxu1 %vm780_vm3, %v12453_v4  ;;  %v12480_v12 = vadd.f32 %v3817_v46, %v11974_v5  ;;  %v5670_v5 = vrot.slane %v5668_v48, 5  ;;  %v5675_v46 = vrot.slane %v5673_v13, 4  ;;  %v5710_v48 = vshrl.u32 %v8561_v3, 16 }
 0x2b3   : > { %14969 = vst [vmem:[#allocation168_spill] sm:$0xff] %v12475_v29  ;;  %v12483_v19 = vadd.f32 %v4497_v45, %v12092_v27  ;;  %v3819_v32 = vpop.f32.mrf.mxu0  ;;  %6150 = vmatprep.mubr.bf16.mxu1 %v14421_v7  ;;  %9247 = vmatpush3.bf16.msra.mxu1 %v6888_v14  ;;  %v5678_v45 = vrot.slane %v5676_v59, 5  ;;  %v8559_v14 = vld [vmem:[%s9614_s21 + $0x44] sm:$0x1]  ;;  %v5688_v29 = vrot.slane %v5686_v30, 4 }
 0x2b4   : > { %v4499_v47 = vpop.f32.mrf.mxu1  ;;  %v12490_v56 = vadd.f32 %v3819_v32, %v11981_v15  ;;  %v5697_v15 = vshrl.u32 %v8560_v37, 16  ;;  %v5700_v32 = vshll.u32 %v8560_v37, 16  ;;  %v5692_v37 = vshll.u32 %v8559_v14, 16 }
 0x2b5   : > { %14970 = vst [vmem:[#allocation106_spill] sm:$0xff] %v12483_v19  ;;  %v12494_v0 = vadd.f32 %v4499_v47, %v12106_v50  ;;  %v3821_v27 = vpop.f32.mrf.mxu0  ;;  %v12496_v19 = vrot.slane %v5682_v16, 5  ;;  %v5706_v50 = vshll.u32 %v8561_v3, 16  ;;  %v5679_v30 = vor.u32 %v5678_v45, %v5675_v46 }
 0x2b6   : > { %v4501_v28 = vpop.f32.mrf.mxu1  ;;  %v12499_v31 = vadd.f32 %v3821_v27, %v11994_v58  ;;  %v5661_v58 = vsel %vm9648_vm4, %v5656_v38, %v12444_v1  ;;  %v5699_v1 = vrot.slane %v5697_v15, 4  ;;  %v5712_v46 = vrot.slane %v5710_v48, 4 }
 0x2b7   : > { %14971 = vst [vmem:[#allocation10_spill] sm:$0xff] %v12494_v0  ;;  %v12503_v51 = vadd.f32 %v4501_v28, %v12118_v10  ;;  %v3825_v22 = vpop.f32.mrf.mxu0  ;;  %8527 = vmatmul.mubr.msk.bf16.gmra.mxu0 %vm780_vm3, %v12326_v20  ;;  %v5671_v20 = vsel %vm9648_vm4, %v5666_v55, %v5670_v5  ;;  %v5689_v3 = vor.u32 %v5688_v29, %v12496_v19  ;;  %v8562_v55 = vld [vmem:[%s9614_s21 + $0x50] sm:$0x1]  ;;  %v12530_v5 = vrot.slane %v5706_v50, 5  ;;  %v14975_v28 = vld [vmem:[#allocation128_spill] sm:$0xff]  ;;  %v15008_v0 = vld [vmem:[#allocation157_spill] sm:$0xff] }
 0x2b8   : > { %v4503_v13 = vpop.f32.mrf.mxu1  ;;  %v12508_v59 = vadd.f32 %v3825_v22, %v12006_v57  ;;  %5254 = vmatprep.mubr.bf16.mxu0 %v14421_v7  ;;  %v5694_v22 = vrot.slane %v5692_v37, 5  ;;  %v14979_v37 = vld [vmem:[#allocation66_spill] sm:$0xff] }
 0x2b9   : > { %14972 = vst [vmem:[#allocation20_spill] sm:$0xff] %v12503_v51  ;;  %v12515_v10 = vadd.f32 %v4503_v13, %v12126_v63  ;;  %v3827_v16 = vpop.f32.mrf.mxu0  ;;  %v5702_v63 = vrot.slane %v5700_v32, 5  ;;  %v12539_v32 = vcombine.low %v5661_v58, %v5671_v20  ;;  %v8564_v13 = vld [vmem:[%s9614_s21 + $0x58] sm:$0xf]  ;;  %v5690_v50 = vrot.slane %v5689_v3, 4  ;;  %v15005_v51 = vld [vmem:[#allocation65_spill] sm:$0xff] }
 0x2ba   : > { %v4507_v47 = vpop.f32.mrf.mxu1  ;;  %8615 = vmatmul.mubr.msk.bf16.gmra.mxu1 %vm780_vm3, %v12486_v17  ;;  %v12522_v57 = vadd.f32 %v3827_v16, %v12015_v44  ;;  %v8563_v44 = vld [vmem:[%s9614_s21 + $0x54] sm:$0xf]  ;;  %v5730_v3 = vshll.u32 %v8564_v13, 16 }
 0x2bb   : > { %14973 = vst [vmem:[#allocation95_spill] sm:$0xff] %v12515_v10  ;;  %v12526_v38 = vadd.f32 %v4507_v47, %v12134_v21  ;;  %v3829_v27 = vpop.f32.mrf.mxu0  ;;  %6160 = vmatprep.mubr.bf16.mxu1 %v14421_v7  ;;  %v5680_v21 = vrot.slane %v5679_v30, 4  ;;  %v14977_v47 = vld [vmem:[#allocation57_spill] sm:$0xff]  ;;  %v5703_v48 = vor.u32 %v5702_v63, %v5699_v1  ;;  %v5716_v10 = vshll.u32 %v8562_v55, 16 }
 0x2bc   : > { %v4509_v45 = vpop.f32.mrf.mxu1  ;;  %v12533_v14 = vadd.f32 %v3829_v27, %v14975_v28  ;;  %v5721_v58 = vshrl.u32 %v8563_v44, 16  ;;  %v5724_v20 = vshll.u32 %v8563_v44, 16  ;;  %v5734_v1 = vshrl.u32 %v8564_v13, 16 }
 0x2bd   : > { %14974 = vst [vmem:[#allocation11_spill] sm:$0xff] %v12526_v38  ;;  %v12537_v29 = vadd.f32 %v4509_v45, %v12143_v41  ;;  %v3831_v15 = vpop.f32.mrf.mxu0  ;;  %v5713_v41 = vor.u32 %v5712_v46, %v12530_v5  ;;  %v14981_v46 = vld [vmem:[#allocation130_spill] sm:$0xff]  ;;  %v5704_v13 = vrot.slane %v5703_v48, 4  ;;  %v8566_v48 = vld [vmem:[%s9614_s21 + $0x60] sm:$0xf] }
 0x2be   : > { %v4511_v16 = vpop.f32.mrf.mxu1  ;;  %v12543_v38 = vadd.f32 %v3831_v15, %v14977_v47  ;;  %v5695_v15 = vsel %vm9648_vm4, %v5690_v50, %v5694_v22  ;;  %v5736_v22 = vrot.slane %v5734_v1, 4 }
 0x2bf   : > { %14976 = vst [vmem:[#allocation83_spill] sm:$0xff] %v12537_v29  ;;  %v12546_v27 = vadd.f32 %v4511_v16, %v12151_v18  ;;  %v3835_v28 = vpop.f32.mrf.mxu0  ;;  %8528 = vmatmul.mubr.msk.bf16.gmra.mxu0 %vm780_vm3, %v12335_v54  ;;  %v5685_v54 = vsel %vm9648_vm4, %v5680_v21, %v12496_v19  ;;  %v5714_v19 = vrot.slane %v5713_v41, 4  ;;  %v5723_v21 = vrot.slane %v5721_v58, 4  ;;  %v8567_v58 = vld [vmem:[%s9614_s21 + $0x64] sm:$0xf] }
 0x2c0   : > { %v4513_v30 = vpop.f32.mrf.mxu1  ;;  %v12552_v45 = vadd.f32 %v3835_v28, %v14979_v37  ;;  %5264 = vmatprep.mubr.bf16.mxu0 %v14421_v7  ;;  %v5726_v28 = vrot.slane %v5724_v20, 5  ;;  %v14983_v37 = vld [vmem:[#allocation59_spill] sm:$0xff]  ;;  %v12585_v41 = vcombine.low %v5685_v54, %v5695_v15 }
 0x2c1   : > { %14978 = vst [vmem:[#allocation108_spill] sm:$0xff] %v12546_v27  ;;  %v12556_v63 = vadd.f32 %v4513_v30, %v12157_v11  ;;  %v3837_v18 = vpop.f32.mrf.mxu0  ;;  %v5718_v11 = vrot.slane %v5716_v10, 5  ;;  %v8568_v27 = vld [vmem:[%s9614_s21 + $0x68] sm:$0x1] }
 0x2c2   : > { %v4517_v55 = vpop.f32.mrf.mxu1  ;;  %8616 = vmatmul.mubr.msk.bf16.gmra.mxu1 %vm780_vm3, %v12539_v32  ;;  %v12564_v44 = vadd.f32 %v3837_v18, %v14981_v46  ;;  %v12575_v46 = vrot.slane %v5730_v3, 5  ;;  %v5727_v1 = vor.u32 %v5726_v28, %v5723_v21  ;;  %v14989_v21 = vld [vmem:[#allocation61_spill] sm:$0xff] }
 0x2c3   : > { %14980 = vst [vmem:[#allocation12_spill] sm:$0xff] %v12556_v63  ;;  %v12569_v16 = vadd.f32 %v4517_v55, %v12164_v34  ;;  %v3839_v47 = vpop.f32.mrf.mxu0  ;;  %6170 = vmatprep.mubr.bf16.mxu1 %v14421_v7  ;;  %v8565_v34 = vld [vmem:[%s9614_s21 + $0x5c] sm:$0x1]  ;;  %v5719_v3 = vsel %vm9648_vm4, %v5714_v19, %v5718_v11  ;;  %v5758_v11 = vshrl.u32 %v8567_v58, 16 }
 0x2c4   : > { %v4519_v30 = vpop.f32.mrf.mxu1  ;;  %v12573_v18 = vadd.f32 %v3839_v47, %v14983_v37  ;;  %v5740_v15 = vshll.u32 %v8565_v34, 16 }
 0x2c5   : > { %14982 = vst [vmem:[#allocation22_spill] sm:$0xff] %v12569_v16  ;;  %v12578_v50 = vadd.f32 %v4519_v30, %v12174_v9  ;;  %v3841_v10 = vpop.f32.mrf.mxu0  ;;  %v14985_v16 = vld [vmem:[#allocation68_spill] sm:$0xff]  ;;  %v5709_v9 = vsel %vm9648_vm4, %v5704_v13, %v12530_v5  ;;  %v5748_v13 = vshll.u32 %v8566_v48, 16 }
 0x2c6   : > { %v4521_v55 = vpop.f32.mrf.mxu1  ;;  %v12583_v63 = vadd.f32 %v3841_v10, %v14985_v16  ;;  %v14987_v30 = vld [vmem:[#allocation132_spill] sm:$0xff]  ;;  %v5754_v10 = vshll.u32 %v8567_v58, 16 }
 0x2c7   : > { %14984 = vst [vmem:[#allocation110_spill] sm:$0xff] %v12578_v50  ;;  %v12589_v20 = vadd.f32 %v4521_v55, %v12182_v26  ;;  %v3845_v47 = vpop.f32.mrf.mxu0  ;;  %8529 = vmatmul.mubr.msk.bf16.gmra.mxu0 %vm780_vm3, %v12368_v42  ;;  %v5737_v26 = vor.u32 %v5736_v22, %v12575_v46  ;;  %v5745_v42 = vshrl.u32 %v8566_v48, 16  ;;  %v12615_v55 = vcombine.low %v5709_v9, %v5719_v3  ;;  %v8569_v48 = vld [vmem:[%s9614_s21 + $0x6c] sm:$0xf] }
 0x2c8   : > { %v4523_v16 = vpop.f32.mrf.mxu1  ;;  %v12599_v54 = vadd.f32 %v3845_v47, %v14987_v30  ;;  %5274 = vmatprep.mubr.bf16.mxu0 %v14421_v7  ;;  %v8570_v47 = vld [vmem:[%s9614_s21 + $0x70] sm:$0xf]  ;;  %v5760_v9 = vrot.slane %v5758_v11, 4  ;;  %v5769_v29 = vshrl.u32 %v8569_v48, 16 }
 0x2c9   : > { %14986 = vst [vmem:[#allocation164_spill] sm:$0xff] %v12589_v20  ;;  %v12604_v37 = vadd.f32 %v4523_v16, %v12188_v61  ;;  %v3847_v5 = vpop.f32.mrf.mxu0  ;;  %v5728_v61 = vrot.slane %v5727_v1, 4  ;;  %v14991_v16 = vld [vmem:[#allocation70_spill] sm:$0xff]  ;;  %v5742_v20 = vrot.slane %v5740_v15, 5  ;;  %v5782_v15 = vshrl.u32 %v8570_v47, 16 }
 0x2ca   : > { %v4527_v19 = vpop.f32.mrf.mxu1  ;;  %8617 = vmatmul.mubr.msk.bf16.gmra.mxu1 %vm780_vm3, %v12585_v41  ;;  %v12609_v28 = vadd.f32 %v3847_v5, %v14989_v21  ;;  %v5747_v5 = vrot.slane %v5745_v42, 4  ;;  %v14994_v1 = vld [vmem:[#allocation134_spill] sm:$0xff] }
 0x2cb   : > { %14988 = vst [vmem:[#allocation6_spill] sm:$0xff] %v12604_v37  ;;  %v12612_v22 = vadd.f32 %v4527_v19, %v12196_v33  ;;  %v3849_v34 = vpop.f32.mrf.mxu0  ;;  %6180 = vmatprep.mubr.bf16.mxu1 %v14421_v7  ;;  %v5738_v37 = vrot.slane %v5737_v26, 4  ;;  %v5750_v19 = vrot.slane %v5748_v13, 5  ;;  %v14997_v13 = vld [vmem:[#allocation71_spill] sm:$0xff]  ;;  %v5733_v11 = vsel %vm9648_vm4, %v5728_v61, %v12575_v46 }
 0x2cc   : > { %v4529_v58 = vpop.f32.mrf.mxu1  ;;  %v12620_v30 = vadd.f32 %v3849_v34, %v14991_v16  ;;  %v5772_v34 = vshll.u32 %v8569_v48, 16  ;;  %v5778_v16 = vshll.u32 %v8570_v47, 16  ;;  %v5771_v61 = vrot.slane %v5769_v29, 4 }
 0x2cd   : > { %14990 = vst [vmem:[#allocation97_spill] sm:$0xff] %v12612_v22  ;;  %v12623_v21 = vadd.f32 %v4529_v58, %v12204_v40  ;;  %v3851_v33 = vpop.f32.mrf.mxu0  ;;  %v12625_v22 = vrot.slane %v5754_v10, 5  ;;  %v5743_v48 = vsel %vm9648_vm4, %v5738_v37, %v5742_v20  ;;  %v14999_v58 = vld [vmem:[#allocation144_spill] sm:$0xff]  ;;  %v5751_v47 = vor.u32 %v5750_v19, %v5747_v5  ;;  %v8571_v5 = vld [vmem:[%s9614_s21 + $0x74] sm:$0x1] }
 0x2ce   : > { %14992 = vst [vmem:[#allocation24_spill] sm:$0xff] %v12620_v30  ;;  %v4531_v3 = vpop.f32.mrf.mxu1  ;;  %v12628_v50 = vadd.f32 %v3851_v33, %v14994_v1  ;;  %v5764_v1 = vshll.u32 %v8568_v27, 16  ;;  %v5774_v20 = vrot.slane %v5772_v34, 5  ;;  %v12656_v37 = vrot.slane %v5778_v16, 5  ;;  %v15006_v34 = vld [vmem:[#allocation148_spill] sm:$0xff] }
 0x2cf   : > { %14993 = vst [vmem:[#allocation112_spill] sm:$0xff] %v12623_v21  ;;  %v12632_v26 = vadd.f32 %v4531_v3, %v12211_v52  ;;  %v3855_v40 = vpop.f32.mrf.mxu0  ;;  %8530 = vmatmul.mubr.msk.bf16.gmra.mxu0 %vm780_vm3, %v12377_v24  ;;  %v8572_v52 = vld [vmem:[%s9614_s21 + $0x78] sm:$0xf]  ;;  %v5761_v3 = vor.u32 %v5760_v9, %v12625_v22  ;;  %v15003_v21 = vld [vmem:[#allocation146_spill] sm:$0xff]  ;;  %v5784_v27 = vrot.slane %v5782_v15, 4  ;;  %v5788_v30 = vshll.u32 %v8571_v5, 16 }
 0x2d0   : > { %14995 = vst [vmem:[#allocation87_spill] sm:$0xff] %v12628_v50  ;;  %v4533_v42 = vpop.f32.mrf.mxu1  ;;  %v12637_v10 = vadd.f32 %v3855_v40, %v14997_v13  ;;  %5284 = vmatprep.mubr.bf16.mxu0 %v14421_v7  ;;  %v8573_v40 = vld [vmem:[%s9614_s21 + $0x7c] sm:$0xf]  ;;  %v5793_v19 = vshrl.u32 %v8572_v52, 16  ;;  %v5796_v9 = vshll.u32 %v8572_v52, 16  ;;  %v5775_v52 = vor.u32 %v5774_v20, %v5771_v61 }
 0x2d1   : > { %14996 = vst [vmem:[#allocation114_spill] sm:$0xff] %v12632_v26  ;;  %v12647_v33 = vadd.f32 %v4533_v42, %v14999_v58  ;;  %v3857_v24 = vpop.f32.mrf.mxu0  ;;  %v15001_v26 = vld [vmem:[#allocation136_spill] sm:$0xff]  ;;  %v5806_v29 = vshrl.u32 %v8573_v40, 16  ;;  %v5762_v50 = vrot.slane %v5761_v3, 4 }
 0x2d2   : > { %14998 = vst [vmem:[#allocation26_spill] sm:$0xff] %v12637_v10  ;;  %v4537_v13 = vpop.f32.mrf.mxu1  ;;  %8618 = vmatmul.mubr.msk.bf16.gmra.mxu1 %vm780_vm3, %v12615_v55  ;;  %v12654_v46 = vadd.f32 %v3857_v24, %v15001_v26  ;;  %v5802_v26 = vshll.u32 %v8573_v40, 16 }
 0x2d3   : > { %15000 = vst [vmem:[#allocation116_spill] sm:$0xff] %v12647_v33  ;;  %v12659_v42 = vadd.f32 %v4537_v13, %v15003_v21  ;;  %v3859_v58 = vpop.f32.mrf.mxu0  ;;  %6190 = vmatprep.mubr.bf16.mxu1 %v14421_v7  ;;  %v12669_v21 = vcombine.low %v5733_v11, %v5743_v48  ;;  %v5752_v13 = vrot.slane %v5751_v47, 4  ;;  %v5785_v11 = vor.u32 %v5784_v27, %v12656_v37  ;;  %v8574_v27 = vld [vmem:[%s9614_s21 + $0x80] sm:$0x1] }
 0x2d4   : > { %15002 = vst [vmem:[#allocation89_spill] sm:$0xff] %v12654_v46  ;;  %v4539_v33 = vpop.f32.mrf.mxu1  ;;  %v12664_v10 = vadd.f32 %v3859_v58, %v15005_v51  ;;  %v8575_v51 = vld [vmem:[%s9614_s21 + $0x84] sm:$0xf]  ;;  %v15010_v58 = vld [vmem:[#allocation150_spill] sm:$0xff]  ;;  %v5795_v48 = vrot.slane %v5793_v19, 4  ;;  %v5798_v47 = vrot.slane %v5796_v9, 5 }
 0x2d5   : > { %15004 = vst [vmem:[#allocation28_spill] sm:$0xff] %v12659_v42  ;;  %v12667_v16 = vadd.f32 %v4539_v33, %v15006_v34  ;;  %v3861_v24 = vpop.f32.mrf.mxu0  ;;  %v5766_v42 = vrot.slane %v5764_v1, 5  ;;  %v12686_v3 = vrot.slane %v5802_v26, 5  ;;  %v5808_v61 = vrot.slane %v5806_v29, 4  ;;  %v8576_v19 = vld [vmem:[%s9614_s21 + $0x88] sm:$0xf] }
 0x2d6   : > { %v4541_v46 = vpop.f32.mrf.mxu1  ;;  %v12672_v15 = vadd.f32 %v3861_v24, %v15008_v0  ;;  %v15012_v0 = vld [vmem:[#allocation72_spill] sm:$0xff]  ;;  %v5817_v9 = vshrl.u32 %v8575_v51, 16  ;;  %v5820_v24 = vshll.u32 %v8575_v51, 16  ;;  %v5786_v51 = vrot.slane %v5785_v11, 4 }
 0x2d7   : > { %15007 = vst [vmem:[#allocation124_spill] sm:$0xff] %v12667_v16  ;;  %v12676_v40 = vadd.f32 %v4541_v46, %v15010_v58  ;;  %v3865_v33 = vpop.f32.mrf.mxu0  ;;  %8531 = vmatmul.mubr.msk.bf16.gmra.mxu0 %vm780_vm3, %v12412_v6  ;;  %v15014_v46 = vld [vmem:[#allocation151_spill] sm:$0xff]  ;;  %v5757_v6 = vsel %vm9648_vm4, %v5752_v13, %v12625_v22  ;;  %v5767_v29 = vsel %vm9648_vm4, %v5762_v50, %v5766_v42  ;;  %v5812_v42 = vshll.u32 %v8574_v27, 16 }
 0x2d8   : > { %15009 = vst [vmem:[#allocation30_spill] sm:$0xff] %v12672_v15  ;;  %v4543_v1 = vpop.f32.mrf.mxu1  ;;  %v12682_v34 = vadd.f32 %v3865_v33, %v15012_v0  ;;  %9214 = vmatprep.mubr.msk.bf16.mxu0 %vm780_vm3, %v12453_v4  ;;  %v15016_v4 = vld [vmem:[#allocation138_spill] sm:$0xff]  ;;  %v15018_v33 = vld [vmem:[#allocation63_spill] sm:$0xff]  ;;  %v5776_v0 = vrot.slane %v5775_v52, 4  ;;  %v5809_v50 = vor.u32 %v5808_v61, %v12686_v3 }
 0x2d9   : > { %15011 = vst [vmem:[#allocation13_spill] sm:$0xff] %v12676_v40  ;;  %v12689_v20 = vadd.f32 %v4543_v1, %v15014_v46  ;;  %v3867_v5 = vpop.f32.mrf.mxu0  ;;  %v6882_v1 = vsel %vm829_vm0, %v15018_v33, 0  ;;  %v15019_v46 = vld [vmem:[#allocation152_spill] sm:$0xff]  ;;  %v5799_v40 = vor.u32 %v5798_v47, %v5795_v48  ;;  %v15022_v33 = vld [vmem:[#allocation153_spill] sm:$0xff]  ;;  %v15024_v15 = vld [vmem:[#allocation159_spill] sm:$0xff]  ;;  %v12719_v48 = vcombine.low %v5757_v6, %v5767_v29 }
 0x2da   : > { %15013 = vst [vmem:[#allocation14_spill] sm:$0xff] %v12682_v34  ;;  %v4547_v58 = vpop.f32.mrf.mxu1  ;;  %8619 = vmatmul.mubr.msk.bf16.gmra.mxu1 %vm780_vm3, %v12669_v21  ;;  %v12699_v26 = vadd.f32 %v3867_v5, %v15016_v4  ;;  %v15021_v5 = vld [vmem:[#allocation67_spill] sm:$0xff]  ;;  %v5830_v34 = vshrl.u32 %v8576_v19, 16  ;;  %v5810_v29 = vrot.slane %v5809_v50, 4 }
 0x2db   : > { %15015 = vst [vmem:[#allocation32_spill] sm:$0xff] %v12689_v20  ;;  %v12706_v22 = vadd.f32 %v4547_v58, %v15019_v46  ;;  %v3869_v13 = vpop.f32.mrf.mxu0  ;;  %6200 = vmatprep.mubr.bf16.mxu1 %v14421_v7  ;;  %v5790_v20 = vrot.slane %v5788_v30, 5  ;;  %v5819_v46 = vrot.slane %v5817_v9, 4  ;;  %v8578_v47 = vld [vmem:[%s9614_s21 + $0x90] sm:$0xf]  ;;  %v15027_v9 = vld [vmem:[#allocation73_spill] sm:$0xff] }
 0x2dc   : > { %15017 = vst [vmem:[#allocation15_spill] sm:$0xff] %v12699_v26  ;;  %v4549_v16 = vpop.f32.mrf.mxu1  ;;  %v12710_v4 = vadd.f32 %v3869_v13, %v15021_v5  ;;  %v5826_v26 = vshll.u32 %v8576_v19, 16  ;;  %v15025_v13 = vld [vmem:[#allocation154_spill] sm:$0xff]  ;;  %v8579_v19 = vld [vmem:[%s9614_s21 + $0x94] sm:$0xf] }
 0x2dd   : > { %15020 = vst [vmem:[#allocation16_spill] sm:$0xff] %v12706_v22  ;;  %v12714_v52 = vadd.f32 %v4549_v16, %v15022_v33  ;;  %v3871_v58 = vpop.f32.mrf.mxu0  ;;  %v5822_v22 = vrot.slane %v5820_v24, 5  ;;  %v5781_v16 = vsel %vm9648_vm4, %v5776_v0, %v12656_v37  ;;  %v5791_v27 = vsel %vm9648_vm4, %v5786_v51, %v5790_v20  ;;  %v8577_v0 = vld [vmem:[%s9614_s21 + $0x8c] sm:$0x1] }
 0x2de   : > { %v4551_v11 = vpop.f32.mrf.mxu1  ;;  %v12717_v30 = vadd.f32 %v3871_v58, %v15024_v15  ;;  %v5800_v15 = vrot.slane %v5799_v40, 4  ;;  %v5814_v33 = vrot.slane %v5812_v42, 5  ;;  %v15029_v58 = vld [vmem:[#allocation155_spill] sm:$0xff]  ;;  %v5832_v40 = vrot.slane %v5830_v34, 4  ;;  %v15033_v42 = vld [vmem:[#allocation86_spill] sm:$0xff] }
 0x2df   : > { %15023 = vst [vmem:[#allocation34_spill] sm:$0xff] %v12714_v52  ;;  %v12723_v5 = vadd.f32 %v4551_v11, %v15025_v13  ;;  %v9148_v61 = vpop.f32.mrf.mxu0  ;;  %9215 = vmatmul.mubr.msk.bf16.vlgmr.msra.gmra.mxu0 %vm780_vm3, %v12486_v17  ;;  %v12738_v17 = vrot.slane %v5826_v26, 5  ;;  %v5823_v20 = vor.u32 %v5822_v22, %v5819_v46  ;;  %v5841_v51 = vshrl.u32 %v8578_v47, 16  ;;  %v15035_v46 = vld [vmem:[#allocation69_spill] sm:$0xff] }
 0x2e0   : > { %v4553_v6 = vpop.f32.mrf.mxu1  ;;  %v12734_v24 = vadd.f32 %v9148_v61, %v15027_v9  ;;  %6905 = vmatpush1.bf16.msra.mxu0 %v6882_v1  ;;  %9218 = vmatprep.mubr.msk.bf16.mxu0 %vm780_vm3, %v12539_v32  ;;  %v15031_v1 = vld [vmem:[#allocation140_spill] sm:$0xff]  ;;  %v5844_v32 = vshll.u32 %v8578_v47, 16  ;;  %v5850_v50 = vshll.u32 %v8579_v19, 16  ;;  %v5854_v26 = vshrl.u32 %v8579_v19, 16 }
 0x2e1   : > { %15026 = vst [vmem:[#allocation17_spill] sm:$0xff] %v12723_v5  ;;  %v12741_v11 = vadd.f32 %v4553_v6, %v15029_v58  ;;  %v4690_v37 = vpop.f32.mrf.mxu0  ;;  %v12753_v22 = vcombine.low %v5781_v16, %v5791_v27  ;;  %v5815_v47 = vsel %vm9648_vm4, %v5810_v29, %v5814_v33  ;;  %v5836_v19 = vshll.u32 %v8577_v0, 16  ;;  %v15041_v33 = vld [vmem:[#allocation90_spill] sm:$0xff] }
 0x2e2   : > { %15028 = vst [vmem:[#allocation18_spill] sm:$0xff] %v12734_v24  ;;  %v4557_v13 = vpop.f32.mrf.mxu1  ;;  %8620 = vmatmul.mubr.msk.bf16.gmra.mxu1 %vm780_vm3, %v12719_v48  ;;  %v12747_v61 = vadd.f32 %v4690_v37, %v15031_v1  ;;  %v5805_v37 = vsel %vm9648_vm4, %v5800_v15, %v12686_v3  ;;  %v15037_v1 = vld [vmem:[#allocation88_spill] sm:$0xff]  ;;  %v12767_v16 = vrot.slane %v5823_v20, 4  ;;  %v5833_v27 = vor.u32 %v5832_v40, %v12738_v17  ;;  %v8580_v20 = vld [vmem:[%s9614_s21 + $0x98] sm:$0x1] }
 0x2e3   : > { %15030 = vst [vmem:[#allocation19_spill] sm:$0xff] %v12741_v11  ;;  %v12750_v9 = vadd.f32 %v4557_v13, %v15033_v42  ;;  %v9149_v6 = vpop.f32.mrf.mxu0  ;;  %6210 = vmatprep.mubr.bf16.mxu1 %v14421_v7  ;;  %v8581_v13 = vld [vmem:[%s9614_s21 + $0x9c] sm:$0xf]  ;;  %v15039_v11 = vld [vmem:[#allocation74_spill] sm:$0xff]  ;;  %v5846_v3 = vrot.slane %v5844_v32, 5  ;;  %v12773_v15 = vrot.slane %v5850_v50, 5 }
 0x2e4   : > { %15032 = vst [vmem:[#allocation36_spill] sm:$0xff] %v12747_v61  ;;  %v4559_v34 = vpop.f32.mrf.mxu1  ;;  %v12756_v58 = vadd.f32 %v9149_v6, %v15035_v46  ;;  %v5843_v6 = vrot.slane %v5841_v51, 4  ;;  %v5856_v29 = vrot.slane %v5854_v26, 4  ;;  %v5865_v40 = vshrl.u32 %v8581_v13, 16  ;;  %v15043_v51 = vld [vmem:[#allocation142_spill] sm:$0xff]  ;;  %v15045_v26 = vld [vmem:[#allocation92_spill] sm:$0xff] }
 0x2e5   : > { %15034 = vst [vmem:[#allocation99_spill] sm:$0xff] %v12750_v9  ;;  %v12765_v42 = vadd.f32 %v4559_v34, %v15037_v1  ;;  %v4693_v9 = vpop.f32.mrf.mxu0  ;;  %v8582_v32 = vld [vmem:[%s9614_s21 + $0xa0] sm:$0xf]  ;;  %v5868_v50 = vshll.u32 %v8581_v13, 16 }
 0x2e6   : > { %15036 = vst [vmem:[#allocation21_spill] sm:$0xff] %v12756_v58  ;;  %v4561_v46 = vpop.f32.mrf.mxu1  ;;  %v12771_v5 = vadd.f32 %v4693_v9, %v15039_v11  ;;  %v12786_v11 = vcombine.low %v5805_v37, %v5815_v47  ;;  %v5847_v47 = vor.u32 %v5846_v3, %v5843_v6  ;;  %v5857_v13 = vor.u32 %v5856_v29, %v12773_v15  ;;  %v15053_v29 = vld [vmem:[#allocation96_spill] sm:$0xff] }
 0x2e7   : > { %15038 = vst [vmem:[#allocation118_spill] sm:$0xff] %v12765_v42  ;;  %v12776_v0 = vadd.f32 %v4561_v46, %v15041_v33  ;;  %v9152_v34 = vpop.f32.mrf.mxu0  ;;  %9219 = vmatmul.mubr.msk.bf16.gmra.mxu0 %vm780_vm3, %v12585_v41  ;;  %v5829_v41 = vsel %vm9648_vm4, %v12767_v16, %v12738_v17  ;;  %v5834_v33 = vrot.slane %v5833_v27, 4  ;;  %v5874_v16 = vshll.u32 %v8582_v32, 16 }
 0x2e8   : > { %15040 = vst [vmem:[#allocation38_spill] sm:$0xff] %v12771_v5  ;;  %v4563_v1 = vpop.f32.mrf.mxu1  ;;  %v12782_v42 = vadd.f32 %v9152_v34, %v15043_v51  ;;  %9222 = vmatprep.mubr.msk.bf16.mxu0 %vm780_vm3, %v12615_v55  ;;  %v5838_v34 = vrot.slane %v5836_v19, 5  ;;  %v8584_v51 = vld [vmem:[%s9614_s21 + $0xa8] sm:$0xf]  ;;  %v15047_v55 = vld [vmem:[#allocation75_spill] sm:$0xff]  ;;  %v5867_v19 = vrot.slane %v5865_v40, 4 }
 0x2e9   : > { %15042 = vst [vmem:[#allocation101_spill] sm:$0xff] %v12776_v0  ;;  %v12790_v9 = vadd.f32 %v4563_v1, %v15045_v26  ;;  %v4706_v46 = vpop.f32.mrf.mxu0  ;;  %v5860_v1 = vshll.u32 %v8580_v20, 16  ;;  %v8585_v26 = vld [vmem:[%s9614_s21 + $0xac] sm:$0xf]  ;;  %v5878_v27 = vshrl.u32 %v8582_v32, 16  ;;  %v15051_v5 = vld [vmem:[#allocation76_spill] sm:$0xff] }
 0x2ea   : > { %15044 = vst [vmem:[#allocation23_spill] sm:$0xff] %v12782_v42  ;;  %v4567_v0 = vpop.f32.mrf.mxu1  ;;  %8621 = vmatmul.mubr.msk.bf16.gmra.mxu1 %vm780_vm3, %v12753_v22  ;;  %v12800_v37 = vadd.f32 %v4706_v46, %v15047_v55  ;;  %v8583_v46 = vld [vmem:[%s9614_s21 + $0xa4] sm:$0x1]  ;;  %v5870_v55 = vrot.slane %v5868_v50, 5  ;;  %v5889_v6 = vshrl.u32 %v8584_v51, 16  ;;  %v5892_v3 = vshll.u32 %v8584_v51, 16 }
 0x2eb   : > { %15046 = vst [vmem:[#allocation120_spill] sm:$0xff] %v12790_v9  ;;  %v15049_v9 = vld [vmem:[#allocation94_spill] sm:$0xff]  ;;  %v9153_v17 = vpop.f32.mrf.mxu0  ;;  %6220 = vmatprep.mubr.bf16.mxu1 %v14421_v7  ;;  %v15055_v32 = vld [vmem:[#allocation77_spill] sm:$0xff]  ;;  %v12822_v50 = vrot.slane %v5857_v13, 4  ;;  %v12824_v51 = vrot.slane %v5860_v1, 5 }
 0x2ec   : > { %15048 = vst [vmem:[#allocation25_spill] sm:$0xff] %v12800_v37  ;;  %v12805_v52 = vadd.f32 %v4567_v0, %v15049_v9  ;;  %v4569_v42 = vpop.f32.mrf.mxu1  ;;  %v12809_v58 = vadd.f32 %v9153_v17, %v15051_v5  ;;  %v5839_v0 = vsel %vm9648_vm4, %v5834_v33, %v5838_v34  ;;  %v5898_v9 = vshll.u32 %v8585_v26, 16  ;;  %v8586_v1 = vld [vmem:[%s9614_s21 + $0xb0] sm:$0x1] }
 0x2ed   : > { %v12813_v20 = vadd.f32 %v4569_v42, %v15053_v29  ;;  %v4709_v37 = vpop.f32.mrf.mxu0  ;;  %v12820_v5 = vrot.slane %v5847_v47, 4  ;;  %v15057_v42 = vld [vmem:[#allocation91_spill] sm:$0xff]  ;;  %v12831_v33 = vrot.slane %v5874_v16, 5  ;;  %v5880_v34 = vrot.slane %v5878_v27, 4 }
 0x2ee   : > { %15050 = vst [vmem:[#allocation122_spill] sm:$0xff] %v12805_v52  ;;  %15052 = vst [vmem:[#allocation40_spill] sm:$0xff] %v12809_v58  ;;  %v5902_v52 = vshrl.u32 %v8585_v26, 16  ;;  %v4571_v40 = vpop.f32.mrf.mxu1  ;;  %v12818_v61 = vadd.f32 %v4709_v37, %v15055_v32  ;;  %v5884_v26 = vshll.u32 %v8583_v46, 16  ;;  %v15059_v32 = vld [vmem:[#allocation78_spill] sm:$0xff]  ;;  %v5871_v13 = vor.u32 %v5870_v55, %v5867_v19  ;;  %v15070_v58 = vld [vmem:[#allocation81_spill] sm:$0xff] }
 0x2ef   : > { %15054 = vst [vmem:[#allocation103_spill] sm:$0xff] %v12813_v20  ;;  %v12827_v17 = vadd.f32 %v4571_v40, %v15057_v42  ;;  %v9156_v29 = vpop.f32.mrf.mxu0  ;;  %9223 = vmatmul.mubr.msk.bf16.gmra.mxu0 %vm780_vm3, %v12669_v21  ;;  %v5891_v40 = vrot.slane %v5889_v6, 4  ;;  %v5894_v42 = vrot.slane %v5892_v3, 5  ;;  %v15061_v20 = vld [vmem:[#allocation165_spill] sm:$0xff]  ;;  %v12843_v16 = vrot.slane %v5898_v9, 5  ;;  %v15065_v3 = vld [vmem:[#allocation166_spill] sm:$0xff] }
 0x2f0   : > { %15056 = vst [vmem:[#allocation131_spill] sm:$0xff] %v12818_v61  ;;  %v4573_v37 = vpop.f32.mrf.mxu1  ;;  %v12834_v47 = vadd.f32 %v9156_v29, %v15059_v32  ;;  %9226 = vmatprep.mubr.msk.bf16.mxu0 %vm780_vm3, %v12719_v48  ;;  %v5904_v27 = vrot.slane %v5902_v52, 4  ;;  %v15063_v29 = vld [vmem:[#allocation79_spill] sm:$0xff]  ;;  %v12850_v19 = vcombine.low %v5829_v41, %v5839_v0  ;;  %v5853_v55 = vsel %vm9648_vm4, %v12820_v5, %v12773_v15  ;;  %v8590_v32 = vld [vmem:[%s9614_s21 + $0xc0] sm:$0xf] }
 0x2f1   : > { %15058 = vst [vmem:[#allocation42_spill] sm:$0xff] %v12827_v17  ;;  %v8587_v17 = vld [vmem:[%s9614_s21 + $0xb4] sm:$0xf]  ;;  %v12841_v61 = vadd.f32 %v4573_v37, %v15061_v20  ;;  %v4722_v21 = vpop.f32.mrf.mxu0  ;;  %v5863_v6 = vsel %vm9648_vm4, %v12822_v50, %v12824_v51  ;;  %v8588_v52 = vld [vmem:[%s9614_s21 + $0xb8] sm:$0xf]  ;;  %v5881_v41 = vor.u32 %v5880_v34, %v12831_v33  ;;  %v5908_v0 = vshll.u32 %v8586_v1, 16 }
 0x2f2   : > { %15060 = vst [vmem:[#allocation105_spill] sm:$0xff] %v12834_v47  ;;  %v4577_v46 = vpop.f32.mrf.mxu1  ;;  %8622 = vmatmul.mubr.msk.bf16.gmra.mxu1 %vm780_vm3, %v12786_v11  ;;  %v12848_v48 = vadd.f32 %v4722_v21, %v15063_v29  ;;  %v5913_v37 = vshrl.u32 %v8587_v17, 16  ;;  %v15067_v15 = vld [vmem:[#allocation80_spill] sm:$0xff]  ;;  %v12870_v29 = vrot.slane %v5871_v13, 4  ;;  %v12872_v50 = vrot.slane %v5884_v26, 5 }
 0x2f3   : > { %15062 = vst [vmem:[#allocation48_spill] sm:$0xff] %v12841_v61  ;;  %v12862_v20 = vadd.f32 %v4577_v46, %v15065_v3  ;;  %v9157_v9 = vpop.f32.mrf.mxu0  ;;  %6230 = vmatprep.mubr.bf16.mxu1 %v14421_v7  ;;  %v5895_v51 = vor.u32 %v5894_v42, %v5891_v40  ;;  %v15068_v46 = vld [vmem:[#allocation102_spill] sm:$0xff]  ;;  %v5905_v61 = vor.u32 %v5904_v27, %v12843_v16  ;;  %v5922_v34 = vshll.u32 %v8588_v52, 16  ;;  %v8591_v1 = vld [vmem:[%s9614_s21 + $0xc4] sm:$0xf] }
 0x2f4   : > { %15064 = vst [vmem:[#allocation27_spill] sm:$0xff] %v12848_v48  ;;  %v4579_v21 = vpop.f32.mrf.mxu1  ;;  %v12868_v5 = vadd.f32 %v9157_v9, %v15067_v15  ;;  %v5916_v48 = vshll.u32 %v8587_v17, 16  ;;  %v5926_v9 = vshrl.u32 %v8588_v52, 16  ;;  %v5937_v15 = vshrl.u32 %v8590_v32, 16 }
 0x2f5   : > { %15066 = vst [vmem:[#allocation37_spill] sm:$0xff] %v12862_v20  ;;  %v12875_v3 = vadd.f32 %v4579_v21, %v15068_v46  ;;  %v4725_v20 = vpop.f32.mrf.mxu0  ;;  %v5940_v13 = vshll.u32 %v8590_v32, 16  ;;  %v5882_v42 = vrot.slane %v5881_v41, 4  ;;  %v5910_v21 = vrot.slane %v5908_v0, 5  ;;  %v15071_v46 = vld [vmem:[#allocation82_spill] sm:$0xff] }
 0x2f6   : > { %v4581_v47 = vpop.f32.mrf.mxu1  ;;  %v12880_v24 = vadd.f32 %v4725_v20, %v15070_v58  ;;  %v5915_v17 = vrot.slane %v5913_v37, 4  ;;  %v5896_v58 = vrot.slane %v5895_v51, 4  ;;  %v5946_v52 = vshll.u32 %v8591_v1, 16  ;;  %v15073_v37 = vld [vmem:[#allocation84_spill] sm:$0xff] }
 0x2f7   : > { %15069 = vst [vmem:[#allocation125_spill] sm:$0xff] %v12875_v3  ;;  %v12883_v26 = vadd.f32 %v4581_v47, %v12401_v35  ;;  %v9160_v40 = vpop.f32.mrf.mxu0  ;;  %9227 = vmatmul.mubr.msk.bf16.gmra.mxu0 %vm780_vm3, %v12753_v22  ;;  %v5950_v20 = vshrl.u32 %v8591_v1, 16  ;;  %v5906_v32 = vrot.slane %v5905_v61, 4  ;;  %v5918_v22 = vrot.slane %v5916_v48, 5 }
 0x2f8   : > { %v4583_v27 = vpop.f32.mrf.mxu1  ;;  %v12888_v3 = vadd.f32 %v9160_v40, %v15071_v46  ;;  %9230 = vmatprep.mubr.msk.bf16.mxu0 %vm780_vm3, %v12786_v11  ;;  %v12895_v41 = vrot.slane %v5922_v34, 5  ;;  %v8589_v11 = vld [vmem:[%s9614_s21 + $0xbc] sm:$0x1]  ;;  %v5928_v51 = vrot.slane %v5926_v9, 4  ;;  %v5939_v1 = vrot.slane %v5937_v15, 4 }
 0x2f9   : > { %v12893_v35 = vadd.f32 %v4583_v27, %v12409_v25  ;;  %v4738_v47 = vpop.f32.mrf.mxu0  ;;  %v5942_v46 = vrot.slane %v5940_v13, 5  ;;  %v8607_v48 = vcombine.low %v5853_v55, %v5863_v6  ;;  %v5877_v34 = vsel %vm9648_vm4, %v12870_v29, %v12831_v33 }
 0x2fa   : > { %v4587_v0 = vpop.f32.mrf.mxu1  ;;  %8623 = vmatmul.mubr.msk.bf16.gmra.mxu1 %vm780_vm3, %v12850_v19  ;;  %v12900_v40 = vadd.f32 %v4738_v47, %v15073_v37  ;;  %v15075_v47 = vld [vmem:[#allocation85_spill] sm:$0xff]  ;;  %v5887_v9 = vsel %vm9648_vm4, %v5882_v42, %v12872_v50  ;;  %v12918_v15 = vrot.slane %v5946_v52, 5  ;;  %v5952_v13 = vrot.slane %v5950_v20, 4  ;;  %v15077_v50 = vld [vmem:[#allocation156_spill] sm:$0xff] }
 0x2fb   : > { %15072 = vst [vmem:[#allocation39_spill] sm:$0xff] %v12893_v35  ;;  %v12904_v25 = vadd.f32 %v4587_v0, %v12421_v2  ;;  %v9161_v61 = vpop.f32.mrf.mxu0  ;;  %6240 = vmatprep.mubr.bf16.mxu1 %v14421_v7  ;;  %v8592_v2 = vld [vmem:[%s9614_s21 + $0xc8] sm:$0x1]  ;;  %v8593_v0 = vld [vmem:[%s9614_s21 + $0xcc] sm:$0xf]  ;;  %v5901_v33 = vsel %vm9648_vm4, %v5896_v58, %v12843_v16  ;;  %v5911_v29 = vsel %vm9648_vm4, %v5906_v32, %v5910_v21 }
 0x2fc   : > { %v4589_v27 = vpop.f32.mrf.mxu1  ;;  %v12912_v37 = vadd.f32 %v9161_v61, %v15075_v47  ;;  %v5932_v61 = vshll.u32 %v8589_v11, 16  ;;  %v8594_v47 = vld [vmem:[%s9614_s21 + $0xd0] sm:$0xf]  ;;  %v5919_v52 = vor.u32 %v5918_v22, %v5915_v17  ;;  %v5929_v20 = vor.u32 %v5928_v51, %v12895_v41 }
 0x2fd   : > { %15074 = vst [vmem:[#allocation44_spill] sm:$0xff] %v12904_v25  ;;  %v12922_v55 = vadd.f32 %v4589_v27, %v12433_v53  ;;  %v4741_v6 = vpop.f32.mrf.mxu0  ;;  %v5943_v35 = vor.u32 %v5942_v46, %v5939_v1  ;;  %v5956_v16 = vshll.u32 %v8592_v2, 16  ;;  %v5961_v58 = vshrl.u32 %v8593_v0, 16  ;;  %v15078_v11 = vld [vmem:[#allocation158_spill] sm:$0xff] }
 0x2fe   : > { %v4591_v25 = vpop.f32.mrf.mxu1  ;;  %v12931_v42 = vadd.f32 %v4741_v6, %v15077_v50  ;;  %v5964_v21 = vshll.u32 %v8593_v0, 16  ;;  %v5953_v17 = vor.u32 %v5952_v13, %v12918_v15  ;;  %v5970_v22 = vshll.u32 %v8594_v47, 16  ;;  %v15079_v0 = vld [vmem:[#allocation160_spill] sm:$0xff] }
 0x2ff   : > { %15076 = vst [vmem:[#allocation41_spill] sm:$0xff] %v12922_v55  ;;  %v12935_v53 = vadd.f32 %v4591_v25, %v12442_v60  ;;  %v9164_v27 = vpop.f32.mrf.mxu0  ;;  %9231 = vmatmul.mubr.msk.bf16.gmra.mxu0 %vm780_vm3, %v12850_v19  ;;  %v5974_v51 = vshrl.u32 %v8594_v47, 16  ;;  %v8608_v46 = vcombine.low %v5877_v34, %v5887_v9  ;;  %v12947_v25 = vcombine.low %v5901_v33, %v5911_v29 }
 0x300   : > { %v4593_v32 = vpop.f32.mrf.mxu1  ;;  %v12940_v55 = vadd.f32 %v9164_v27, %v15078_v11  ;;  %9234 = vmatprep.mubr.msk.bf16.mxu0 %vm780_vm3, %v8607_v48  ;;  %v5934_v19 = vrot.slane %v5932_v61, 5  ;;  %v5920_v50 = vrot.slane %v5919_v52, 4  ;;  %v5930_v27 = vrot.slane %v5929_v20, 4  ;;  %v15081_v61 = vld [vmem:[#allocation161_spill] sm:$0xff]  ;;  %v8595_v20 = vld [vmem:[%s9614_s21 + $0xd4] sm:$0x1] }
 0x301   : > { %v12945_v60 = vadd.f32 %v4593_v32, %v12451_v49  ;;  %v4754_v1 = vpop.f32.mrf.mxu0  ;;  %v5944_v13 = vrot.slane %v5943_v35, 4  ;;  %v5958_v34 = vrot.slane %v5956_v16, 5  ;;  %v5963_v9 = vrot.slane %v5961_v58, 4 }
 0x302   : > { %v4597_v2 = vpop.f32.mrf.mxu1  ;;  %8624 = vmatmul.mubr.msk.bf16.gmra.mxu1 %vm780_vm3, %v8607_v48  ;;  %v12951_v6 = vadd.f32 %v4754_v1, %v15079_v0  ;;  %v5966_v33 = vrot.slane %v5964_v21, 5  ;;  %v5954_v48 = vrot.slane %v5953_v17, 4  ;;  %v5972_v11 = vrot.slane %v5970_v22, 5 }
 0x303   : > { %v12954_v47 = vadd.f32 %v4597_v2, %v12468_v36  ;;  %v9165_v49 = vpop.f32.mrf.mxu0  ;;  %6250 = vmatprep.mubr.bf16.mxu1 %v14421_v7  ;;  %v5976_v1 = vrot.slane %v5974_v51, 4  ;;  %v15082_v2 = vld [vmem:[#allocation162_spill] sm:$0xff]  ;;  %v5925_v16 = vsel %vm9648_vm4, %v5920_v50, %v12895_v41  ;;  %v5949_v17 = vsel %vm9648_vm4, %v5944_v13, %v12918_v15 }
 0x304   : > { %15080 = vst [vmem:[#allocation107_spill] sm:$0xff] %v12951_v6  ;;  %v4599_v29 = vpop.f32.mrf.mxu1  ;;  %v12958_v32 = vadd.f32 %v9165_v49, %v15081_v61  ;;  %v5967_v22 = vor.u32 %v5966_v33, %v5963_v9  ;;  %v15084_v49 = vld [vmem:[#allocation163_spill] sm:$0xff]  ;;  %v5980_v50 = vshll.u32 %v8595_v20, 16  ;;  %v15085_v15 = vld [vmem:[#allocation98_spill] sm:$0xff] }
 0x305   : > { %v12961_v52 = vadd.f32 %v4599_v29, %v12480_v12  ;;  %v4757_v35 = vpop.f32.mrf.mxu0  ;;  %v5935_v12 = vsel %vm9648_vm4, %v5930_v27, %v5934_v19  ;;  %v5977_v41 = vor.u32 %v5976_v1, %v5972_v11 }
 0x306   : > { %v4601_v36 = vpop.f32.mrf.mxu1  ;;  %v12965_v0 = vadd.f32 %v4757_v35, %v15082_v2  ;;  %v5968_v20 = vrot.slane %v5967_v22, 4  ;;  %v8647_v2 = vld [vmem:[%s9614_s21 + $0x1c] sm:$0xf] }
 0x307   : > { %v12971_v58 = vadd.f32 %v4601_v36, %v12490_v56  ;;  %v9168_v21 = vpop.f32.mrf.mxu0  ;;  %9235 = vmatmul.mubr.msk.bf16.gmra.mxu0 %vm780_vm3, %v8608_v46  ;;  %v5959_v56 = vsel %vm9648_vm4, %v5954_v48, %v5958_v34  ;;  %v8610_v34 = vcombine.low %v5925_v16, %v5935_v12  ;;  %v5978_v36 = vrot.slane %v5977_v41, 4  ;;  %v15089_v41 = vld [vmem:[#allocation167_spill] sm:$0xff] }
 0x308   : > { %15083 = vst [vmem:[#allocation50_spill] sm:$0xff] %v12965_v0  ;;  %v4603_v51 = vpop.f32.mrf.mxu1  ;;  %v12980_v29 = vadd.f32 %v9168_v21, %v15084_v49  ;;  %9238 = vmatprep.mubr.msk.bf16.mxu0 %vm780_vm3, %v12947_v25  ;;  %v12997_v48 = vcombine.low %v5949_v17, %v5959_v56  ;;  %v15088_v49 = vld [vmem:[#allocation93_spill] sm:$0xff]  ;;  %v8646_v17 = vld [vmem:[%s9614_s21 + $0x18] sm:$0xe]  ;;  %v6656_v22 = vrot.slane %v8647_v2, 5 }
 0x309   : > { %v12987_v19 = vadd.f32 %v4603_v51, %v12499_v31  ;;  %v4770_v27 = vpop.f32.mrf.mxu0  ;;  %v15087_v31 = vld [vmem:[#allocation100_spill] sm:$0xff] }
 0x30a   : > { %v4607_v61 = vpop.f32.mrf.mxu1  ;;  %8625 = vmatmul.mubr.msk.bf16.gmra.mxu1 %vm780_vm3, %v8608_v46  ;;  %v12991_v13 = vadd.f32 %v4770_v27, %v15085_v15  ;;  %v5982_v46 = vrot.slane %v5980_v50, 5 }
 0x30b   : > { %v12994_v9 = vadd.f32 %v4607_v61, %v12508_v59  ;;  %v9169_v33 = vpop.f32.mrf.mxu0  ;;  %6260 = vmatprep.mubr.bf16.mxu1 %v14421_v7 }
 0x30c   : > { %15086 = vst [vmem:[#allocation29_spill] sm:$0xff] %v12991_v13  ;;  %v4609_v1 = vpop.f32.mrf.mxu1  ;;  %v13000_v35 = vadd.f32 %v9169_v33, %v15087_v31  ;;  %v5983_v61 = vsel %vm9648_vm4, %v5978_v36, %v5982_v46  ;;  %v15091_v31 = vld [vmem:[#allocation104_spill] sm:$0xff] }
 0x30d   : > { %v13004_v21 = vadd.f32 %v4609_v1, %v12522_v57  ;;  %v4773_v59 = vpop.f32.mrf.mxu0  ;;  %v5973_v57 = vsel %vm9648_vm4, %v5968_v20, %v5972_v11  ;;  %v6658_v20 = vrot.slane %v6656_v22, 4 }
 0x30e   : > { %v4611_v51 = vpop.f32.mrf.mxu1  ;;  %v13007_v27 = vadd.f32 %v4773_v59, %v15088_v49  ;;  %v8694_v59 = vrot.slane %v8646_v17, 9  ;;  %v13036_v23 = vcombine.low %v5973_v57, %v5983_v61 }
 0x30f   : > { %v13010_v16 = vadd.f32 %v4611_v51, %v12533_v14  ;;  %v9172_v12 = vpop.f32.mrf.mxu0  ;;  %9239 = vmatmul.mubr.msk.bf16.gmra.mxu0 %vm780_vm3, %v8610_v34  ;;  %v8648_v14 = vld [vmem:[%s9614_s21 + $0x20] sm:$0x1] }
 0x310   : > { %v4613_v56 = vpop.f32.mrf.mxu1  ;;  %v13015_v50 = vadd.f32 %v9172_v12, %v15089_v41  ;;  %9242 = vmatprep.mubr.msk.bf16.mxu0 %vm780_vm3, %v12997_v48 }
 0x311   : > { %v13025_v15 = vadd.f32 %v4613_v56, %v12543_v38  ;;  %v4786_v33 = vpop.f32.mrf.mxu0  ;;  %v6659_v38 = vrot.slane %v8648_v14, 5 }
 0x312   : > { %v4617_v1 = vpop.f32.mrf.mxu1  ;;  %8626 = vmatmul.mubr.msk.bf16.gmra.mxu1 %vm780_vm3, %v12947_v25  ;;  %v13030_v2 = vadd.f32 %v4786_v33, %v15091_v31  ;;  %v8650_v25 = vld [vmem:[%s9614_s21 + $0x28] sm:$0xf] }
 0x313   : > { %15090 = vst [vmem:[#allocation52_spill] sm:$0xff] %v13025_v15  ;;  %v13033_v51 = vadd.f32 %v4617_v1, %v12552_v45  ;;  %v9173_v11 = vpop.f32.mrf.mxu0  ;;  %6270 = vmatprep.mubr.bf16.mxu1 %v14421_v7  ;;  %v6660_v61 = vsel %vm10104_vm7, %v6658_v20, %v6659_v38  ;;  %v15096_v33 = vld [vmem:[#allocation9_spill] sm:$0xff] }
 0x314   : > { %v4619_v36 = vpop.f32.mrf.mxu1  ;;  %v13039_v46 = vadd.f32 %v9173_v11, %v12415_v43  ;;  %v6657_v43 = vsel %vm10104_vm7, %v8694_v59, %v6656_v22 }
 0x315   : > { %15092 = vst [vmem:[#allocation127_spill] sm:$0xff] %v13033_v51  ;;  %v13043_v49 = vadd.f32 %v4619_v36, %v12564_v44  ;;  %v4789_v12 = vpop.f32.mrf.mxu0  ;;  %v6663_v44 = vrot.slane %v8650_v25, 5  ;;  %v13070_v59 = vcombine.low %v6657_v43, %v6660_v61 }
 0x316   : > { %v4621_v45 = vpop.f32.mrf.mxu1  ;;  %v13046_v17 = vadd.f32 %v4789_v12, %v12425_v8  ;;  %v8649_v8 = vld [vmem:[%s9614_s21 + $0x24] sm:$0xe] }
 0x317   : > { %15093 = vst [vmem:[#allocation43_spill] sm:$0xff] %v13043_v49  ;;  %v13049_v56 = vadd.f32 %v4621_v45, %v12573_v18  ;;  %v9176_v41 = vpop.f32.mrf.mxu0  ;;  %9243 = vmatmul.mubr.msk.bf16.gmra.mxu0 %vm780_vm3, %v13036_v23  ;;  %v8651_v18 = vld [vmem:[%s9614_s21 + $0x2c] sm:$0x1]  ;;  %v8695_v25 = vrot.slane %v8649_v8, 9  ;;  %v6665_v12 = vrot.slane %v6663_v44, 4 }
 0x318   : > { %v4623_v14 = vpop.f32.mrf.mxu1  ;;  %v13058_v1 = vadd.f32 %v9176_v41, %v15096_v33  ;;  %6922 = vmatprep.mubr.bf16.mxu0 %v14421_v7  ;;  %v6666_v45 = vrot.slane %v8651_v18, 5  ;;  %v15101_v33 = vld [vmem:[#allocation24_spill] sm:$0xff] }
 0x319   : > { %15094 = vst [vmem:[#allocation31_spill] sm:$0xff] %v13049_v56  ;;  %v13064_v31 = vadd.f32 %v4623_v14, %v12583_v63  ;;  %v4802_v11 = vpop.f32.mrf.mxu0 }
 0x31a   : > { %v4627_v36 = vpop.f32.mrf.mxu1  ;;  %8627 = vmatmul.mubr.msk.bf16.gmra.mxu1 %vm780_vm3, %v8610_v34  ;;  %v13068_v22 = vadd.f32 %v4802_v11, %v12447_v62  ;;  %v8653_v34 = vld [vmem:[%s9614_s21 + $0x34] sm:$0xf]  ;;  %v6667_v18 = vsel %vm10104_vm7, %v6665_v12, %v6666_v45  ;;  %v15107_v45 = vld [vmem:[#allocation26_spill] sm:$0xff] }
 0x31b   : > { %15097 = vst [vmem:[#allocation129_spill] sm:$0xff] %v13064_v31  ;;  %v13073_v20 = vadd.f32 %v4627_v36, %v12599_v54  ;;  %v9177_v38 = vpop.f32.mrf.mxu0  ;;  %6280 = vmatprep.mubr.bf16.mxu1 %v14421_v7  ;;  %v15100_v54 = vld [vmem:[#allocation168_spill] sm:$0xff] }
 0x31c   : > { %v4629_v63 = vpop.f32.mrf.mxu1  ;;  %v13077_v41 = vadd.f32 %v9177_v38, %v12458_v39  ;;  %v6664_v39 = vsel %vm10104_vm7, %v8695_v25, %v6663_v44  ;;  %v15103_v38 = vld [vmem:[#allocation106_spill] sm:$0xff]  ;;  %v15120_v31 = vld [vmem:[#allocation108_spill] sm:$0xff] }
 0x31d   : > { %15098 = vst [vmem:[#allocation46_spill] sm:$0xff] %v13073_v20  ;;  %v13081_v62 = vadd.f32 %v4629_v63, %v12609_v28  ;;  %v4805_v43 = vpop.f32.mrf.mxu0  ;;  %v6670_v28 = vrot.slane %v8653_v34, 5  ;;  %v15106_v44 = vld [vmem:[#allocation10_spill] sm:$0xff]  ;;  %v13109_v12 = vcombine.low %v6664_v39, %v6667_v18  ;;  %v15112_v18 = vld [vmem:[#allocation95_spill] sm:$0xff] }
 0x31e   : > { %v4631_v61 = vpop.f32.mrf.mxu1  ;;  %v13084_v14 = vadd.f32 %v4805_v43, %v15100_v54  ;;  %v8652_v43 = vld [vmem:[%s9614_s21 + $0x30] sm:$0xe] }
 0x31f   : > { %15099 = vst [vmem:[#allocation54_spill] sm:$0xff] %v13081_v62  ;;  %v13087_v11 = vadd.f32 %v4631_v61, %v15101_v33  ;;  %v5136_v8 = vpop.f32.mrf.mxu0  ;;  %8728 = vmatmul.mubr.msk.bf16.vlgmr.msra.gmra.mxu0 %vm780_vm3, %v13070_v59  ;;  %v8654_v61 = vld [vmem:[%s9614_s21 + $0x38] sm:$0x1]  ;;  %v6672_v6 = vrot.slane %v6670_v28, 4  ;;  %v8659_v62 = vld [vmem:[%s9614_s21 + $0x4c] sm:$0xf] }
 0x320   : > { %v4633_v36 = vpop.f32.mrf.mxu1  ;;  %v13096_v63 = vadd.f32 %v5136_v8, %v15103_v38  ;;  %6932 = vmatprep.mubr.bf16.mxu0 %v14421_v7  ;;  %v15104_v54 = vld [vmem:[#allocation87_spill] sm:$0xff]  ;;  %v8696_v38 = vrot.slane %v8652_v43, 9  ;;  %v6684_v49 = vrot.slane %v8659_v62, 5 }
 0x321   : > { %15102 = vst [vmem:[#allocation109_spill] sm:$0xff] %v13087_v11  ;;  %v13102_v33 = vadd.f32 %v4633_v36, %v15104_v54  ;;  %v5138_v13 = vpop.f32.mrf.mxu0  ;;  %v6673_v36 = vrot.slane %v8654_v61, 5 }
 0x322   : > { %v4637_v0 = vpop.f32.mrf.mxu1  ;;  %8628 = vmatmul.mubr.msk.bf16.gmra.mxu1 %vm780_vm3, %v12997_v48  ;;  %v13107_v25 = vadd.f32 %v5138_v13, %v15106_v44  ;;  %v8656_v48 = vld [vmem:[%s9614_s21 + $0x40] sm:$0xf] }
 0x323   : > { %15105 = vst [vmem:[#allocation33_spill] sm:$0xff] %v13102_v33  ;;  %v13112_v34 = vadd.f32 %v4637_v0, %v15107_v45  ;;  %v5140_v8 = vpop.f32.mrf.mxu0  ;;  %6290 = vmatprep.mubr.bf16.mxu1 %v14421_v7  ;;  %v15109_v33 = vld [vmem:[#allocation20_spill] sm:$0xff]  ;;  %v15110_v13 = vld [vmem:[#allocation89_spill] sm:$0xff] }
 0x324   : > { %v4639_v54 = vpop.f32.mrf.mxu1  ;;  %v13116_v11 = vadd.f32 %v5140_v8, %v15109_v33  ;;  %v6671_v33 = vsel %vm10104_vm7, %v8696_v38, %v6670_v28  ;;  %v6674_v8 = vsel %vm10104_vm7, %v6672_v6, %v6673_v36  ;;  %v15117_v6 = vld [vmem:[#allocation83_spill] sm:$0xff]  ;;  %v15118_v36 = vld [vmem:[#allocation14_spill] sm:$0xff] }
 0x325   : > { %15108 = vst [vmem:[#allocation35_spill] sm:$0xff] %v13112_v34  ;;  %v13120_v44 = vadd.f32 %v4639_v54, %v15110_v13  ;;  %v5142_v39 = vpop.f32.mrf.mxu0  ;;  %v6677_v54 = vrot.slane %v8656_v48, 5  ;;  %v8713_v38 = vcombine.low %v6671_v33, %v6674_v8  ;;  %v8658_v33 = vld [vmem:[%s9614_s21 + $0x48] sm:$0xe] }
 0x326   : > { %v4641_v0 = vpop.f32.mrf.mxu1  ;;  %v13123_v45 = vadd.f32 %v5142_v39, %v15112_v18  ;;  %v8655_v39 = vld [vmem:[%s9614_s21 + $0x3c] sm:$0xe] }
 0x327   : > { %15111 = vst [vmem:[#allocation133_spill] sm:$0xff] %v13120_v44  ;;  %v13126_v43 = vadd.f32 %v4641_v0, %v12664_v10  ;;  %v5146_v61 = vpop.f32.mrf.mxu0  ;;  %8729 = vmatmul.mubr.msk.bf16.gmra.mxu0 %vm780_vm3, %v13109_v12  ;;  %v15114_v44 = vld [vmem:[#allocation11_spill] sm:$0xff]  ;;  %v8657_v10 = vld [vmem:[%s9614_s21 + $0x44] sm:$0x1]  ;;  %v15115_v0 = vld [vmem:[#allocation30_spill] sm:$0xff] }
 0x328   : > { %v4643_v13 = vpop.f32.mrf.mxu1  ;;  %v13135_v34 = vadd.f32 %v5146_v61, %v15114_v44  ;;  %6942 = vmatprep.mubr.bf16.mxu0 %v14421_v7  ;;  %v8697_v61 = vrot.slane %v8655_v39, 9 }
 0x329   : > { %15113 = vst [vmem:[#allocation111_spill] sm:$0xff] %v13126_v43  ;;  %v13141_v18 = vadd.f32 %v4643_v13, %v15115_v0  ;;  %v5148_v43 = vpop.f32.mrf.mxu0  ;;  %v6679_v13 = vrot.slane %v6677_v54, 4  ;;  %v6680_v0 = vrot.slane %v8657_v10, 5 }
 0x32a   : > { %v4647_v20 = vpop.f32.mrf.mxu1  ;;  %8629 = vmatmul.mubr.msk.bf16.gmra.mxu1 %vm780_vm3, %v13036_v23  ;;  %v13147_v28 = vadd.f32 %v5148_v43, %v15117_v6  ;;  %v15122_v23 = vld [vmem:[#allocation15_spill] sm:$0xff]  ;;  %v15124_v6 = vld [vmem:[#allocation12_spill] sm:$0xff] }
 0x32b   : > { %15116 = vst [vmem:[#allocation135_spill] sm:$0xff] %v13141_v18  ;;  %v13150_v48 = vadd.f32 %v4647_v20, %v15118_v36  ;;  %v5150_v44 = vpop.f32.mrf.mxu0  ;;  %9248 = vmatprep.mubr.msk.bf16.mxu1 %vm780_vm3, %v13070_v59  ;;  %v8660_v20 = vld [vmem:[%s9614_s21 + $0x50] sm:$0x1]  ;;  %v6681_v62 = vsel %vm10104_vm7, %v6679_v13, %v6680_v0 }
 0x32c   : > { %v4649_v18 = vpop.f32.mrf.mxu1  ;;  %v13155_v56 = vadd.f32 %v5150_v44, %v15120_v31  ;;  %v6678_v31 = vsel %vm10104_vm7, %v8697_v61, %v6677_v54  ;;  %v8665_v54 = vld [vmem:[%s9614_s21 + $0x64] sm:$0xf]  ;;  %v15130_v13 = vld [vmem:[#allocation110_spill] sm:$0xff] }
 0x32d   : > { %15119 = vst [vmem:[#allocation137_spill] sm:$0xff] %v13150_v48  ;;  %v13158_v51 = vadd.f32 %v4649_v18, %v15122_v23  ;;  %v5152_v43 = vpop.f32.mrf.mxu0  ;;  %v15127_v18 = vld [vmem:[#allocation22_spill] sm:$0xff]  ;;  %v8698_v23 = vrot.slane %v8658_v33, 9 }
 0x32e   : > { %15121 = vst [vmem:[#allocation139_spill] sm:$0xff] %v13155_v56  ;;  %v4651_v8 = vpop.f32.mrf.mxu1  ;;  %v13163_v36 = vadd.f32 %v5152_v43, %v15124_v6  ;;  %v6686_v43 = vrot.slane %v6684_v49, 4 }
 0x32f   : > { %15123 = vst [vmem:[#allocation113_spill] sm:$0xff] %v13158_v51  ;;  %v13166_v59 = vadd.f32 %v4651_v8, %v12710_v4  ;;  %v5156_v39 = vpop.f32.mrf.mxu0  ;;  %8730 = vmatmul.mubr.msk.bf16.gmra.mxu0 %vm780_vm3, %v8713_v38  ;;  %v6687_v4 = vrot.slane %v8660_v20, 5  ;;  %v8662_v8 = vld [vmem:[%s9614_s21 + $0x58] sm:$0xf] }
 0x330   : > { %15125 = vst [vmem:[#allocation51_spill] sm:$0xff] %v13163_v36  ;;  %v4653_v10 = vpop.f32.mrf.mxu1  ;;  %v13174_v44 = vadd.f32 %v5156_v39, %v15127_v18  ;;  %6952 = vmatprep.mubr.bf16.mxu0 %v14421_v7  ;;  %v15132_v39 = vld [vmem:[#allocation18_spill] sm:$0xff]  ;;  %v6691_v18 = vrot.slane %v8662_v8, 5  ;;  %v15134_v51 = vld [vmem:[#allocation164_spill] sm:$0xff] }
 0x331   : > { %15126 = vst [vmem:[#allocation115_spill] sm:$0xff] %v13166_v59  ;;  %v13179_v6 = vadd.f32 %v4653_v10, %v12717_v30  ;;  %v5158_v59 = vpop.f32.mrf.mxu0  ;;  %v8714_v30 = vcombine.low %v6678_v31, %v6681_v62  ;;  %v8661_v10 = vld [vmem:[%s9614_s21 + $0x54] sm:$0xe]  ;;  %v8666_v31 = vld [vmem:[%s9614_s21 + $0x68] sm:$0x1]  ;;  %v15138_v8 = vld [vmem:[#allocation6_spill] sm:$0xff] }
 0x332   : > { %15128 = vst [vmem:[#allocation60_spill] sm:$0xff] %v13174_v44  ;;  %v9182_v61 = vpop.f32.mrf.mxu1  ;;  %9249 = vmatmul.mubr.msk.bf16.vlgmr.msra.gmra.mxu1 %vm780_vm3, %v13109_v12  ;;  %v13185_v0 = vadd.f32 %v5158_v59, %v15130_v13  ;;  %v6685_v12 = vsel %vm10104_vm7, %v8698_v23, %v6684_v49  ;;  %v6688_v59 = vsel %vm10104_vm7, %v6686_v43, %v6687_v4  ;;  %v8663_v13 = vld [vmem:[%s9614_s21 + $0x5c] sm:$0x1]  ;;  %v6693_v4 = vrot.slane %v6691_v18, 4 }
 0x333   : > { %15129 = vst [vmem:[#allocation141_spill] sm:$0xff] %v13179_v6  ;;  %v13188_v33 = vadd.f32 %v9182_v61, %v15132_v39  ;;  %v5160_v20 = vpop.f32.mrf.mxu0  ;;  %9252 = vmatprep.mubr.msk.bf16.mxu1 %vm780_vm3, %v8713_v38  ;;  %v15136_v61 = vld [vmem:[#allocation36_spill] sm:$0xff]  ;;  %v8715_v43 = vcombine.low %v6685_v12, %v6688_v59 }
 0x334   : > { %15131 = vst [vmem:[#allocation53_spill] sm:$0xff] %v13185_v0  ;;  %v5329_v6 = vpop.f32.mrf.mxu1  ;;  %v13193_v48 = vadd.f32 %v5160_v20, %v15134_v51  ;;  %v6698_v0 = vrot.slane %v8665_v54, 5  ;;  %v8664_v38 = vld [vmem:[%s9614_s21 + $0x60] sm:$0xe]  ;;  %v8699_v51 = vrot.slane %v8661_v10, 9  ;;  %v6701_v10 = vrot.slane %v8666_v31, 5 }
 0x335   : > { %15133 = vst [vmem:[#allocation45_spill] sm:$0xff] %v13188_v33  ;;  %v13201_v39 = vadd.f32 %v5329_v6, %v15136_v61  ;;  %v5162_v33 = vpop.f32.mrf.mxu0  ;;  %v15140_v20 = vld [vmem:[#allocation21_spill] sm:$0xff]  ;;  %v6694_v6 = vrot.slane %v8663_v13, 5  ;;  %v15146_v59 = vld [vmem:[#allocation112_spill] sm:$0xff] }
 0x336   : > { %15135 = vst [vmem:[#allocation126_spill] sm:$0xff] %v13193_v48  ;;  %v9183_v62 = vpop.f32.mrf.mxu1  ;;  %v13206_v44 = vadd.f32 %v5162_v33, %v15138_v8  ;;  %v15142_v61 = vld [vmem:[#allocation97_spill] sm:$0xff]  ;;  %v8700_v33 = vrot.slane %v8664_v38, 9  ;;  %v6700_v8 = vrot.slane %v6698_v0, 4  ;;  %v15144_v48 = vld [vmem:[#allocation38_spill] sm:$0xff] }
 0x337   : > { %15137 = vst [vmem:[#allocation143_spill] sm:$0xff] %v13201_v39  ;;  %v13209_v49 = vadd.f32 %v9183_v62, %v15140_v20  ;;  %v5166_v23 = vpop.f32.mrf.mxu0  ;;  %8731 = vmatmul.mubr.msk.bf16.gmra.mxu0 %vm780_vm3, %v8714_v30  ;;  %v6695_v31 = vsel %vm10104_vm7, %v6693_v4, %v6694_v6  ;;  %v8672_v4 = vld [vmem:[%s9614_s21 + $0x80] sm:$0x1] }
 0x338   : > { %15139 = vst [vmem:[#allocation117_spill] sm:$0xff] %v13206_v44  ;;  %v5332_v54 = vpop.f32.mrf.mxu1  ;;  %v13213_v39 = vadd.f32 %v5166_v23, %v15142_v61  ;;  %6962 = vmatprep.mubr.bf16.mxu0 %v14421_v7  ;;  %v8668_v44 = vld [vmem:[%s9614_s21 + $0x70] sm:$0xf] }
 0x339   : > { %15141 = vst [vmem:[#allocation56_spill] sm:$0xff] %v13209_v49  ;;  %v13218_v62 = vadd.f32 %v5332_v54, %v15144_v48  ;;  %v5168_v20 = vpop.f32.mrf.mxu0  ;;  %v8671_v49 = vld [vmem:[%s9614_s21 + $0x7c] sm:$0xf]  ;;  %v15148_v23 = vld [vmem:[#allocation23_spill] sm:$0xff]  ;;  %v6692_v48 = vsel %vm10104_vm7, %v8699_v51, %v6691_v18  ;;  %v8667_v54 = vld [vmem:[%s9614_s21 + $0x6c] sm:$0xe] }
 0x33a   : > { %15143 = vst [vmem:[#allocation119_spill] sm:$0xff] %v13213_v39  ;;  %v9186_v12 = vpop.f32.mrf.mxu1  ;;  %9253 = vmatmul.mubr.msk.bf16.gmra.mxu1 %vm780_vm3, %v8714_v30  ;;  %v13223_v13 = vadd.f32 %v5168_v20, %v15146_v59  ;;  %v15150_v39 = vld [vmem:[#allocation114_spill] sm:$0xff]  ;;  %v6702_v59 = vsel %vm10104_vm7, %v6700_v8, %v6701_v10  ;;  %v8670_v51 = vld [vmem:[%s9614_s21 + $0x78] sm:$0xe] }
 0x33b   : > { %15145 = vst [vmem:[#allocation47_spill] sm:$0xff] %v13218_v62  ;;  %v13226_v61 = vadd.f32 %v9186_v12, %v15148_v23  ;;  %v5170_v38 = vpop.f32.mrf.mxu0  ;;  %9256 = vmatprep.mubr.msk.bf16.mxu1 %vm780_vm3, %v8715_v43  ;;  %v6705_v62 = vrot.slane %v8668_v44, 5  ;;  %v6699_v12 = vsel %vm10104_vm7, %v8700_v33, %v6698_v0  ;;  %v8669_v23 = vld [vmem:[%s9614_s21 + $0x74] sm:$0x1]  ;;  %v15154_v44 = vld [vmem:[#allocation116_spill] sm:$0xff] }
 0x33c   : > { %15147 = vst [vmem:[#allocation145_spill] sm:$0xff] %v13223_v13  ;;  %v5345_v30 = vpop.f32.mrf.mxu1  ;;  %v13235_v20 = vadd.f32 %v5170_v38, %v15150_v39  ;;  %v15152_v13 = vld [vmem:[#allocation25_spill] sm:$0xff]  ;;  %v8716_v39 = vcombine.low %v6692_v48, %v6695_v31  ;;  %v8701_v38 = vrot.slane %v8667_v54, 9  ;;  %v6708_v10 = vrot.slane %v8669_v23, 5 }
 0x33d   : > { %15149 = vst [vmem:[#allocation49_spill] sm:$0xff] %v13226_v61  ;;  %v6712_v61 = vrot.slane %v8671_v49, 5  ;;  %v13243_v36 = vadd.f32 %v5345_v30, %v15152_v13  ;;  %v5172_v18 = vpop.f32.mrf.mxu0  ;;  %v13254_v49 = vcombine.low %v6699_v12, %v6702_v59  ;;  %v6707_v8 = vrot.slane %v6705_v62, 4  ;;  %v15158_v30 = vld [vmem:[#allocation28_spill] sm:$0xff] }
 0x33e   : > { %15151 = vst [vmem:[#allocation147_spill] sm:$0xff] %v13235_v20  ;;  %v9187_v6 = vpop.f32.mrf.mxu1  ;;  %v13248_v56 = vadd.f32 %v5172_v18, %v15154_v44  ;;  %v15156_v20 = vld [vmem:[#allocation40_spill] sm:$0xff]  ;;  %v8702_v48 = vrot.slane %v8670_v51, 9  ;;  %v6715_v54 = vrot.slane %v8672_v4, 5  ;;  %v8674_v18 = vld [vmem:[%s9614_s21 + $0x88] sm:$0xf]  ;;  %v6706_v4 = vsel %vm10104_vm7, %v8701_v38, %v6705_v62 }
 0x33f   : > { %15153 = vst [vmem:[#allocation58_spill] sm:$0xff] %v13243_v36  ;;  %v13251_v0 = vadd.f32 %v9187_v6, %v15156_v20  ;;  %v5176_v33 = vpop.f32.mrf.mxu0  ;;  %8732 = vmatmul.mubr.msk.bf16.gmra.mxu0 %vm780_vm3, %v8715_v43  ;;  %v6714_v31 = vrot.slane %v6712_v61, 4  ;;  %v15160_v20 = vld [vmem:[#allocation131_spill] sm:$0xff]  ;;  %v15162_v59 = vld [vmem:[#allocation124_spill] sm:$0xff] }
 0x340   : > { %15155 = vst [vmem:[#allocation121_spill] sm:$0xff] %v13248_v56  ;;  %v5348_v13 = vpop.f32.mrf.mxu1  ;;  %v13257_v36 = vadd.f32 %v5176_v33, %v15158_v30  ;;  %6972 = vmatprep.mubr.bf16.mxu0 %v14421_v7  ;;  %v8677_v43 = vld [vmem:[%s9614_s21 + $0x94] sm:$0xf]  ;;  %v15164_v33 = vld [vmem:[#allocation105_spill] sm:$0xff]  ;;  %v8676_v38 = vld [vmem:[%s9614_s21 + $0x90] sm:$0xe] }
 0x341   : > { %15157 = vst [vmem:[#allocation149_spill] sm:$0xff] %v13251_v0  ;;  %v13262_v6 = vadd.f32 %v5348_v13, %v15160_v20  ;;  %v5178_v44 = vpop.f32.mrf.mxu0  ;;  %v6709_v13 = vsel %vm10104_vm7, %v6707_v8, %v6708_v10  ;;  %v8673_v20 = vld [vmem:[%s9614_s21 + $0x84] sm:$0xe]  ;;  %v8678_v8 = vld [vmem:[%s9614_s21 + $0x98] sm:$0x1] }
 0x342   : > { %15159 = vst [vmem:[#allocation123_spill] sm:$0xff] %v13257_v36  ;;  %v9190_v12 = vpop.f32.mrf.mxu1  ;;  %9257 = vmatmul.mubr.msk.bf16.gmra.mxu1 %vm780_vm3, %v8716_v39  ;;  %v13267_v23 = vadd.f32 %v5178_v44, %v15162_v59  ;;  %v15166_v44 = vld [vmem:[#allocation13_spill] sm:$0xff]  ;;  %v15167_v36 = vld [vmem:[#allocation27_spill] sm:$0xff] }
 0x343   : > { %15161 = vst [vmem:[#allocation62_spill] sm:$0xff] %v13262_v6  ;;  %v13270_v30 = vadd.f32 %v9190_v12, %v15164_v33  ;;  %v5180_v51 = vpop.f32.mrf.mxu0  ;;  %9260 = vmatprep.mubr.msk.bf16.mxu1 %vm780_vm3, %v13254_v49  ;;  %v6719_v6 = vrot.slane %v8674_v18, 5  ;;  %v6713_v12 = vsel %vm10104_vm7, %v8702_v48, %v6712_v61  ;;  %v6716_v33 = vsel %vm10104_vm7, %v6714_v31, %v6715_v54  ;;  %v15169_v18 = vld [vmem:[#allocation32_spill] sm:$0xff] }
 0x344   : > { %15163 = vst [vmem:[#allocation55_spill] sm:$0xff] %v13267_v23  ;;  %v5361_v0 = vpop.f32.mrf.mxu1  ;;  %v13280_v59 = vadd.f32 %v5180_v51, %v15166_v44  ;;  %v6726_v23 = vrot.slane %v8677_v43, 5  ;;  %v13295_v51 = vcombine.low %v6706_v4, %v6709_v13  ;;  %v8703_v44 = vrot.slane %v8673_v20, 9  ;;  %v15171_v43 = vld [vmem:[#allocation16_spill] sm:$0xff] }
 0x345   : > { %15165 = vst [vmem:[#allocation7_spill] sm:$0xff] %v13270_v30  ;;  %v8675_v30 = vld [vmem:[%s9614_s21 + $0x8c] sm:$0x1]  ;;  %v13288_v56 = vadd.f32 %v5361_v0, %v15167_v36  ;;  %v5182_v62 = vpop.f32.mrf.mxu0  ;;  %v13301_v36 = vcombine.low %v6713_v12, %v6716_v33  ;;  %v6721_v0 = vrot.slane %v6719_v6, 4  ;;  %v8704_v4 = vrot.slane %v8676_v38, 9 }
 0x346   : > { %v9191_v10 = vpop.f32.mrf.mxu1  ;;  %v13293_v15 = vadd.f32 %v5182_v62, %v15169_v18  ;;  %v6722_v31 = vrot.slane %v8675_v30, 5  ;;  %v6728_v13 = vrot.slane %v6726_v23, 4  ;;  %v6729_v20 = vrot.slane %v8678_v8, 5  ;;  %v8680_v62 = vld [vmem:[%s9614_s21 + $0xa0] sm:$0xf]  ;;  %v15173_v30 = vld [vmem:[#allocation34_spill] sm:$0xff] }
 0x347   : > { %15168 = vst [vmem:[#allocation64_spill] sm:$0xff] %v13288_v56  ;;  %v13298_v61 = vadd.f32 %v9191_v10, %v12868_v5  ;;  %v5186_v48 = vpop.f32.mrf.mxu0  ;;  %8733 = vmatmul.mubr.msk.bf16.gmra.mxu0 %vm780_vm3, %v8716_v39  ;;  %v8683_v39 = vld [vmem:[%s9614_s21 + $0xac] sm:$0xf] }
 0x348   : > { %v5364_v54 = vpop.f32.mrf.mxu1  ;;  %v13304_v56 = vadd.f32 %v5186_v48, %v15171_v43  ;;  %6982 = vmatprep.mubr.bf16.mxu0 %v14421_v7  ;;  %v6723_v8 = vsel %vm10104_vm7, %v6721_v0, %v6722_v31  ;;  %v8679_v48 = vld [vmem:[%s9614_s21 + $0x9c] sm:$0xe]  ;;  %v8684_v0 = vld [vmem:[%s9614_s21 + $0xb0] sm:$0x1] }
 0x349   : > { %15170 = vst [vmem:[#allocation128_spill] sm:$0xff] %v13298_v61  ;;  %v13309_v5 = vadd.f32 %v5364_v54, %v12880_v24  ;;  %v5188_v10 = vpop.f32.mrf.mxu0  ;;  %v6720_v24 = vsel %vm10104_vm7, %v8703_v44, %v6719_v6  ;;  %v6733_v54 = vrot.slane %v8680_v62, 5  ;;  %v8682_v44 = vld [vmem:[%s9614_s21 + $0xa8] sm:$0xe]  ;;  %v15178_v62 = vld [vmem:[#allocation19_spill] sm:$0xff] }
 0x34a   : > { %v9194_v12 = vpop.f32.mrf.mxu1  ;;  %9261 = vmatmul.mubr.msk.bf16.gmra.mxu1 %vm780_vm3, %v13295_v51  ;;  %v13315_v33 = vadd.f32 %v5188_v10, %v15173_v30  ;;  %v15176_v10 = vld [vmem:[#allocation17_spill] sm:$0xff] }
 0x34b   : > { %15172 = vst [vmem:[#allocation57_spill] sm:$0xff] %v13309_v5  ;;  %v13318_v18 = vadd.f32 %v9194_v12, %v12888_v3  ;;  %v5190_v38 = vpop.f32.mrf.mxu0  ;;  %9264 = vmatprep.mubr.msk.bf16.mxu1 %vm780_vm3, %v13301_v36  ;;  %v6727_v3 = vsel %vm10104_vm7, %v8704_v4, %v6726_v23  ;;  %v6730_v12 = vsel %vm10104_vm7, %v6728_v13, %v6729_v20  ;;  %v6740_v5 = vrot.slane %v8683_v39, 5 }
 0x34c   : > { %15174 = vst [vmem:[#allocation66_spill] sm:$0xff] %v13315_v33  ;;  %v5377_v43 = vpop.f32.mrf.mxu1  ;;  %v13328_v30 = vadd.f32 %v5190_v38, %v15176_v10  ;;  %v13343_v38 = vcombine.low %v6720_v24, %v6723_v8  ;;  %v8705_v10 = vrot.slane %v8679_v48, 9  ;;  %v6735_v13 = vrot.slane %v6733_v54, 4 }
 0x34d   : > { %15175 = vst [vmem:[#allocation130_spill] sm:$0xff] %v13318_v18  ;;  %v8681_v18 = vld [vmem:[%s9614_s21 + $0xa4] sm:$0x1]  ;;  %v13336_v61 = vadd.f32 %v5377_v43, %v12900_v40  ;;  %v5192_v6 = vpop.f32.mrf.mxu0  ;;  %v13350_v40 = vcombine.low %v6727_v3, %v6730_v12  ;;  %v15180_v43 = vld [vmem:[#allocation99_spill] sm:$0xff]  ;;  %v8706_v24 = vrot.slane %v8682_v44, 9  ;;  %v6742_v8 = vrot.slane %v6740_v5, 4 }
 0x34e   : > { %v9195_v31 = vpop.f32.mrf.mxu1  ;;  %v13341_v33 = vadd.f32 %v5192_v6, %v15178_v62  ;;  %v6736_v20 = vrot.slane %v8681_v18, 5  ;;  %v6743_v48 = vrot.slane %v8684_v0, 5  ;;  %v15182_v18 = vld [vmem:[#allocation118_spill] sm:$0xff] }
 0x34f   : > { %15177 = vst [vmem:[#allocation59_spill] sm:$0xff] %v13336_v61  ;;  %v13346_v23 = vadd.f32 %v9195_v31, %v12912_v37  ;;  %v5196_v4 = vpop.f32.mrf.mxu0  ;;  %8734 = vmatmul.mubr.msk.bf16.gmra.mxu0 %vm780_vm3, %v13254_v49  ;;  %v8686_v37 = vld [vmem:[%s9614_s21 + $0xb8] sm:$0xf]  ;;  %v8689_v49 = vld [vmem:[%s9614_s21 + $0xc4] sm:$0xf] }
 0x350   : > { %v5380_v39 = vpop.f32.mrf.mxu1  ;;  %v13353_v61 = vadd.f32 %v5196_v4, %v15180_v43  ;;  %6992 = vmatprep.mubr.bf16.mxu0 %v14421_v7  ;;  %v6737_v62 = vsel %vm10104_vm7, %v6735_v13, %v6736_v20  ;;  %v8685_v4 = vld [vmem:[%s9614_s21 + $0xb4] sm:$0xe]  ;;  %v15187_v13 = vld [vmem:[#allocation120_spill] sm:$0xff] }
 0x351   : > { %15179 = vst [vmem:[#allocation68_spill] sm:$0xff] %v13346_v23  ;;  %v13358_v6 = vadd.f32 %v5380_v39, %v12931_v42  ;;  %v5198_v31 = vpop.f32.mrf.mxu0  ;;  %v6734_v42 = vsel %vm10104_vm7, %v8705_v10, %v6733_v54  ;;  %v6747_v39 = vrot.slane %v8686_v37, 5  ;;  %v8688_v54 = vld [vmem:[%s9614_s21 + $0xc0] sm:$0xe]  ;;  %v8690_v10 = vld [vmem:[%s9614_s21 + $0xc8] sm:$0x1] }
 0x352   : > { %v9198_v3 = vpop.f32.mrf.mxu1  ;;  %9265 = vmatmul.mubr.msk.bf16.gmra.mxu1 %vm780_vm3, %v13343_v38  ;;  %v13364_v12 = vadd.f32 %v5198_v31, %v15182_v18  ;;  %v15186_v31 = vld [vmem:[#allocation101_spill] sm:$0xff]  ;;  %v13391_v37 = vcombine.low %v6734_v42, %v6737_v62  ;;  %v8708_v42 = vrot.slane %v8688_v54, 9 }
 0x353   : > { %15181 = vst [vmem:[#allocation132_spill] sm:$0xff] %v13358_v6  ;;  %v13367_v44 = vadd.f32 %v9198_v3, %v12940_v55  ;;  %v5200_v0 = vpop.f32.mrf.mxu0  ;;  %9268 = vmatprep.mubr.msk.bf16.mxu1 %vm780_vm3, %v13350_v40  ;;  %v6741_v55 = vsel %vm10104_vm7, %v8706_v24, %v6740_v5  ;;  %v6744_v3 = vsel %vm10104_vm7, %v6742_v8, %v6743_v48  ;;  %v6754_v6 = vrot.slane %v8689_v49, 5 }
 0x354   : > { %15183 = vst [vmem:[#allocation61_spill] sm:$0xff] %v13364_v12  ;;  %v13376_v43 = vpop.f32.mrf.mxu1  ;;  %v13379_v18 = vadd.f32 %v5200_v0, %v15186_v31  ;;  %v8707_v0 = vrot.slane %v8685_v4, 9  ;;  %v13398_v24 = vcombine.low %v6741_v55, %v6744_v3  ;;  %v6749_v8 = vrot.slane %v6747_v39, 4 }
 0x355   : > { %15184 = vst [vmem:[#allocation70_spill] sm:$0xff] %v13367_v44  ;;  %15185 = vst [vmem:[#allocation134_spill] sm:$0xff] %v13376_v43  ;;  %v8687_v44 = vld [vmem:[%s9614_s21 + $0xbc] sm:$0x1]  ;;  %v5202_v23 = vpop.f32.mrf.mxu0  ;;  %v15190_v43 = vld [vmem:[#allocation122_spill] sm:$0xff]  ;;  %v6756_v62 = vrot.slane %v6754_v6, 4 }
 0x356   : > { %v9199_v12 = vpop.f32.mrf.mxu1  ;;  %v13389_v20 = vadd.f32 %v5202_v23, %v15187_v13  ;;  %v6750_v48 = vrot.slane %v8687_v44, 5  ;;  %v6748_v3 = vsel %vm10104_vm7, %v8707_v0, %v6747_v39  ;;  %v15196_v39 = vld [vmem:[#allocation48_spill] sm:$0xff] }
 0x357   : > { %v13394_v31 = vadd.f32 %v9199_v12, %v12958_v32  ;;  %v5206_v5 = vpop.f32.mrf.mxu0  ;;  %8735 = vmatmul.mubr.msk.bf16.gmra.mxu0 %vm780_vm3, %v13295_v51  ;;  %v6757_v32 = vrot.slane %v8690_v10, 5  ;;  %v8692_v12 = vld [vmem:[%s9614_s21 + $0xd0] sm:$0xf]  ;;  %v8691_v10 = vld [vmem:[%s9614_s21 + $0xcc] sm:$0xe] }
 0x358   : > { %v13400_v49 = vpop.f32.mrf.mxu1  ;;  %v13403_v23 = vadd.f32 %v5206_v5, %v15190_v43  ;;  %7002 = vmatprep.mubr.bf16.mxu0 %v14421_v7  ;;  %v15191_v51 = vld [vmem:[#allocation103_spill] sm:$0xff]  ;;  %v6751_v54 = vsel %vm10104_vm7, %v6749_v8, %v6750_v48  ;;  %v6761_v5 = vrot.slane %v8692_v12, 5  ;;  %v8709_v48 = vrot.slane %v8691_v10, 9 }
 0x359   : > { %15188 = vst [vmem:[#allocation71_spill] sm:$0xff] %v13394_v31  ;;  %15189 = vst [vmem:[#allocation144_spill] sm:$0xff] %v13400_v49  ;;  %v5208_v4 = vpop.f32.mrf.mxu0  ;;  %v15195_v49 = vld [vmem:[#allocation42_spill] sm:$0xff]  ;;  %v13435_v8 = vcombine.low %v6748_v3, %v6751_v54 }
 0x35a   : > { %v9202_v13 = vpop.f32.mrf.mxu1  ;;  %9269 = vmatmul.mubr.msk.bf16.gmra.mxu1 %vm780_vm3, %v13391_v37  ;;  %v13410_v44 = vadd.f32 %v5208_v4, %v15191_v51  ;;  %v8693_v51 = vld [vmem:[%s9614_s21 + $0xd4] sm:$0x1]  ;;  %s270_s21 = scalar_lea.vmem [#allocation2], %s269_s18 }
 0x35b   : > { %v13413_v55 = vadd.f32 %v9202_v13, %v12980_v29  ;;  %v5210_v43 = vpop.f32.mrf.mxu0  ;;  %9272 = vmatprep.mubr.msk.bf16.mxu1 %vm780_vm3, %v13398_v24  ;;  %v6755_v29 = vsel %vm10104_vm7, %v8708_v42, %v6754_v6  ;;  %v6758_v13 = vsel %vm10104_vm7, %v6756_v62, %v6757_v32  ;;  %v6763_v42 = vrot.slane %v6761_v5, 4  ;;  %s7947_s23 = sshll.u32 %s270_s21, 4  ;;  %s7948_s23 = int_to_ptr.vmem [resolvable:$true] %s7947_s23 }
 0x35c   : > { %15192 = vst [vmem:[#allocation136_spill] sm:$0xff] %v13410_v44  ;;  %v13422_v31 = vpop.f32.mrf.mxu1  ;;  %v13425_v4 = vadd.f32 %v5210_v43, %v15195_v49  ;;  %v13442_v6 = vcombine.low %v6755_v29, %v6758_v13  ;;  %v6764_v62 = vrot.slane %v8693_v51, 5  ;;  %v15197_v43 = vld [vmem:[#allocation37_spill] sm:$0xff]  ;;  %v6762_v29 = vsel %vm10104_vm7, %v8709_v48, %v6761_v5  ;;  %s9440_s14 = scalar_lea.vmem %s7948_s23, 16  ;;  %p9447_p0 = scmp.lt.s32.totalorder %s7948_s23, %s9445_s15 }
 0x35d   : > { %15193 = vst [vmem:[#allocation146_spill] sm:$0xff] %v13413_v55  ;;  %15194 = vst [vmem:[#allocation65_spill] sm:$0xff] %v13422_v31  ;;  %v5212_v55 = vpop.f32.mrf.mxu0  ;;  %p9441_p11 = scmp.ne.s32.totalorder %s7948_s23, %s9440_s14  ;;  %p9448_p1 = scmp.lt.s32.totalorder %s9446_s16, %s9440_s14 }
 0x35e   : > { %v9203_v44 = vpop.f32.mrf.mxu1  ;;  %v13433_v0 = vadd.f32 %v5212_v55, %v15196_v39 }
 0x35f   : > { %v13438_v12 = vadd.f32 %v9203_v44, %v13000_v35  ;;  %v5216_v49 = vpop.f32.mrf.mxu0  ;;  %8736 = vmatmul.mubr.msk.bf16.gmra.mxu0 %vm780_vm3, %v13301_v36  ;;  %v15198_v44 = vld [vmem:[#allocation125_spill] sm:$0xff]  ;;  %p9442_p12 = pnand %p9441_p11, %p9585_p5  ;;  %p9449_p2 = por %p9448_p1, %p9447_p0 }
 0x360   : > { %v5412_v32 = vpop.f32.mrf.mxu1  ;;  %v13445_v31 = vadd.f32 %v5216_v49, %v15197_v43  ;;  %7012 = vmatprep.mubr.bf16.mxu0 %v14421_v7 }
 0x361   : > { %v13449_v55 = vadd.f32 %v5412_v32, %v13007_v27  ;;  %v5218_v3 = vpop.f32.mrf.mxu0  ;;  %v6765_v27 = vsel %vm10104_vm7, %v6763_v42, %v6764_v62  ;;  %v15199_v32 = vld [vmem:[#allocation39_spill] sm:$0xff]  ;;  %p9443_p13 = pneg %p9442_p12 }
 0x362   : > { %v9206_v35 = vpop.f32.mrf.mxu1  ;;  %9273 = vmatmul.mubr.msk.bf16.gmra.mxu1 %vm780_vm3, %v13435_v8  ;;  %v13454_v36 = vadd.f32 %v5218_v3, %v15198_v44  ;;  %v13474_v3 = vcombine.low %v6762_v29, %v6765_v27 }
 0x363   : > { %v13457_v54 = vadd.f32 %v9206_v35, %v13015_v50  ;;  %v5220_v10 = vpop.f32.mrf.mxu0  ;;  %9276 = vmatprep.mubr.msk.bf16.mxu1 %vm780_vm3, %v13442_v6  ;;  %p9450_p3 = pnand %p9449_p2, %p9443_p13 }
 0x364   : > { %v5425_v13 = vpop.f32.mrf.mxu1  ;;  %v13466_v51 = vadd.f32 %v5220_v10, %v12883_v26  ;;  %v15200_v26 = vld [vmem:[#allocation44_spill] sm:$0xff] }
 0x365   : > { %v13469_v39 = vadd.f32 %v5425_v13, %v13030_v2  ;;  %v5222_v49 = vpop.f32.mrf.mxu0 }
 0x366   : > { %v9207_v50 = vpop.f32.mrf.mxu1  ;;  %v13472_v43 = vadd.f32 %v5222_v49, %v15199_v32 }
 0x367   : > { %v13477_v35 = vadd.f32 %v9207_v50, %v13039_v46  ;;  %v5226_v5 = vpop.f32.mrf.mxu0  ;;  %8737 = vmatmul.mubr.msk.bf16.gmra.mxu0 %vm780_vm3, %v13343_v38  ;;  %v15201_v46 = vld [vmem:[#allocation41_spill] sm:$0xff] }
 0x368   : > { %v5428_v57 = vpop.f32.mrf.mxu1  ;;  %v13482_v48 = vadd.f32 %v5226_v5, %v15200_v26  ;;  %7022 = vmatprep.mubr.bf16.mxu0 %v14421_v7 }
 0x369   : > { %v13486_v2 = vadd.f32 %v5428_v57, %v13046_v17  ;;  %v5228_v42 = vpop.f32.mrf.mxu0 }
 0x36a   : > { %v9210_v62 = vpop.f32.mrf.mxu1  ;;  %9277 = vmatmul.mubr.msk.bf16.gmra.mxu1 %vm780_vm3, %v13474_v3  ;;  %v13491_v44 = vadd.f32 %v5228_v42, %v15201_v46 }
 0x36b   : > { %v13494_v10 = vadd.f32 %v9210_v62, %v13058_v1  ;;  %v5230_v38 = vpop.f32.mrf.mxu0 }
 0x36c   : > { %v5441_v29 = vpop.f32.mrf.mxu1  ;;  %v13497_v27 = vadd.f32 %v5230_v38, %v12935_v53 }
 0x36d   : > { %v13500_v13 = vadd.f32 %v5441_v29, %v13068_v22  ;;  %v5232_v17 = vpop.f32.mrf.mxu0 }
 0x36e   : > { %v9211_v49 = vpop.f32.mrf.mxu1  ;;  %v13503_v50 = vadd.f32 %v5232_v17, %v12945_v60 }
 0x36f   : > { %v13506_v32 = vadd.f32 %v9211_v49, %v13077_v41  ;;  %v5236_v5 = vpop.f32.mrf.mxu0  ;;  %8738 = vmatmul.mubr.msk.bf16.gmra.mxu0 %vm780_vm3, %v13350_v40 }
 0x370   : > { %v5444_v1 = vpop.f32.mrf.mxu1  ;;  %v13511_v57 = vadd.f32 %v5236_v5, %v12954_v47  ;;  %7032 = vmatprep.mubr.bf16.mxu0 %v14421_v7 }
 0x371   : > { %v13515_v53 = vadd.f32 %v5444_v1, %v13084_v14  ;;  %v5238_v22 = vpop.f32.mrf.mxu0 }
 0x372   : > { %v6142_v26 = vpop.f32.mrf.mxu1  ;;  %v13518_v60 = vadd.f32 %v5238_v22, %v12961_v52 }
 0x373   : > { %v13521_v41 = vadd.f32 %v6142_v26, %v13096_v63  ;;  %v5240_v42 = vpop.f32.mrf.mxu0 }
 0x374   : > { %v6144_v62 = vpop.f32.mrf.mxu1  ;;  %v13524_v40 = vadd.f32 %v5240_v42, %v12971_v58 }
 0x375   : > { %v13527_v47 = vadd.f32 %v6144_v62, %v13107_v25  ;;  %v5242_v46 = vpop.f32.mrf.mxu0  ;;  %v15209_v62 = vld [vmem:[#allocation139_spill] sm:$0xff] }
 0x376   : > { %15202 = vst [vmem:[#allocation148_spill] sm:$0xff] %v13524_v40  ;;  %v6146_v38 = vpop.f32.mrf.mxu1  ;;  %v13530_v14 = vadd.f32 %v5242_v46, %v12987_v19 }
 0x377   : > { %v13533_v29 = vadd.f32 %v6146_v38, %v13116_v11  ;;  %v5246_v52 = vpop.f32.mrf.mxu0  ;;  %8739 = vmatmul.mubr.msk.bf16.gmra.mxu0 %vm780_vm3, %v13391_v37  ;;  %v15210_v38 = vld [vmem:[#allocation127_spill] sm:$0xff] }
 0x378   : > { %15203 = vst [vmem:[#allocation157_spill] sm:$0xff] %v13530_v14  ;;  %v6148_v63 = vpop.f32.mrf.mxu1  ;;  %v13538_v17 = vadd.f32 %v5246_v52, %v12994_v9  ;;  %7042 = vmatprep.mubr.bf16.mxu0 %v14421_v7  ;;  %v15233_v14 = vld [vmem:[#allocation147_spill] sm:$0xff] }
 0x379   : > { %v13542_v58 = vadd.f32 %v6148_v63, %v13123_v45  ;;  %v5248_v25 = vpop.f32.mrf.mxu0  ;;  %v15207_v45 = vld [vmem:[#allocation52_spill] sm:$0xff] }
 0x37a   : > { %15204 = vst [vmem:[#allocation150_spill] sm:$0xff] %v13538_v17  ;;  %v6152_v49 = vpop.f32.mrf.mxu1  ;;  %v13545_v19 = vadd.f32 %v5248_v25, %v13004_v21 }
 0x37b   : > { %v13548_v11 = vadd.f32 %v6152_v49, %v13135_v34  ;;  %v5250_v5 = vpop.f32.mrf.mxu0  ;;  %v15213_v49 = vld [vmem:[#allocation43_spill] sm:$0xff] }
 0x37c   : > { %15205 = vst [vmem:[#allocation72_spill] sm:$0xff] %v13545_v19  ;;  %v6154_v1 = vpop.f32.mrf.mxu1  ;;  %v13551_v37 = vadd.f32 %v5250_v5, %v13010_v16  ;;  %v15212_v16 = vld [vmem:[#allocation51_spill] sm:$0xff] }
 0x37d   : > { %v13554_v9 = vadd.f32 %v6154_v1, %v13147_v28  ;;  %v5252_v22 = vpop.f32.mrf.mxu0  ;;  %v15215_v1 = vld [vmem:[#allocation60_spill] sm:$0xff] }
 0x37e   : > { %15206 = vst [vmem:[#allocation151_spill] sm:$0xff] %v13551_v37  ;;  %v6156_v26 = vpop.f32.mrf.mxu1  ;;  %v13557_v42 = vadd.f32 %v5252_v22, %v15207_v45  ;;  %v15221_v37 = vld [vmem:[#allocation126_spill] sm:$0xff] }
 0x37f   : > { %v13560_v46 = vadd.f32 %v6156_v26, %v15209_v62  ;;  %v5256_v21 = vpop.f32.mrf.mxu0  ;;  %8740 = vmatmul.mubr.msk.bf16.gmra.mxu0 %vm780_vm3, %v13398_v24  ;;  %v15216_v24 = vld [vmem:[#allocation31_spill] sm:$0xff] }
 0x380   : > { %15208 = vst [vmem:[#allocation138_spill] sm:$0xff] %v13557_v42  ;;  %v6158_v34 = vpop.f32.mrf.mxu1  ;;  %v13565_v52 = vadd.f32 %v5256_v21, %v15210_v38  ;;  %7052 = vmatprep.mubr.bf16.mxu0 %v14421_v7  ;;  %v15218_v21 = vld [vmem:[#allocation53_spill] sm:$0xff] }
 0x381   : > { %v13569_v28 = vadd.f32 %v6158_v34, %v15212_v16  ;;  %v5258_v63 = vpop.f32.mrf.mxu0  ;;  %v15219_v34 = vld [vmem:[#allocation129_spill] sm:$0xff] }
 0x382   : > { %15211 = vst [vmem:[#allocation63_spill] sm:$0xff] %v13565_v52  ;;  %v6162_v25 = vpop.f32.mrf.mxu1  ;;  %v13572_v5 = vadd.f32 %v5258_v63, %v15213_v49  ;;  %v15222_v49 = vld [vmem:[#allocation46_spill] sm:$0xff] }
 0x383   : > { %v13575_v22 = vadd.f32 %v6162_v25, %v15215_v1  ;;  %v5260_v26 = vpop.f32.mrf.mxu0 }
 0x384   : > { %15214 = vst [vmem:[#allocation152_spill] sm:$0xff] %v13572_v5  ;;  %v6164_v45 = vpop.f32.mrf.mxu1  ;;  %v13578_v62 = vadd.f32 %v5260_v26, %v15216_v24  ;;  %v15224_v26 = vld [vmem:[#allocation117_spill] sm:$0xff] }
 0x385   : > { %v13581_v38 = vadd.f32 %v6164_v45, %v15218_v21  ;;  %v5262_v52 = vpop.f32.mrf.mxu0 }
 0x386   : > { %15217 = vst [vmem:[#allocation67_spill] sm:$0xff] %v13578_v62  ;;  %v6166_v42 = vpop.f32.mrf.mxu1  ;;  %v13584_v16 = vadd.f32 %v5262_v52, %v15219_v34  ;;  %v15225_v52 = vld [vmem:[#allocation54_spill] sm:$0xff] }
 0x387   : > { %v13587_v19 = vadd.f32 %v6166_v42, %v15221_v37  ;;  %v5266_v63 = vpop.f32.mrf.mxu0  ;;  %8741 = vmatmul.mubr.msk.bf16.gmra.mxu0 %vm780_vm3, %v13435_v8  ;;  %v15227_v37 = vld [vmem:[#allocation119_spill] sm:$0xff]  ;;  %v15228_v8 = vld [vmem:[#allocation109_spill] sm:$0xff] }
 0x388   : > { %15220 = vst [vmem:[#allocation153_spill] sm:$0xff] %v13584_v16  ;;  %v6168_v25 = vpop.f32.mrf.mxu1  ;;  %v13592_v1 = vadd.f32 %v5266_v63, %v15222_v49  ;;  %7062 = vmatprep.mubr.bf16.mxu0 %v14421_v7  ;;  %v15230_v63 = vld [vmem:[#allocation145_spill] sm:$0xff] }
 0x389   : > { %v13596_v45 = vadd.f32 %v6168_v25, %v15224_v26  ;;  %v5268_v24 = vpop.f32.mrf.mxu0  ;;  %v15231_v25 = vld [vmem:[#allocation33_spill] sm:$0xff] }
 0x38a   : > { %15223 = vst [vmem:[#allocation159_spill] sm:$0xff] %v13592_v1  ;;  %v6172_v21 = vpop.f32.mrf.mxu1  ;;  %v13599_v34 = vadd.f32 %v5268_v24, %v15225_v52  ;;  %v15234_v52 = vld [vmem:[#allocation35_spill] sm:$0xff] }
 0x38b   : > { %v13602_v42 = vadd.f32 %v6172_v21, %v15227_v37  ;;  %v5270_v16 = vpop.f32.mrf.mxu0 }
 0x38c   : > { %15226 = vst [vmem:[#allocation154_spill] sm:$0xff] %v13599_v34  ;;  %v6174_v62 = vpop.f32.mrf.mxu1  ;;  %v13605_v5 = vadd.f32 %v5270_v16, %v15228_v8 }
 0x38d   : > { %v13608_v49 = vadd.f32 %v6174_v62, %v15230_v63  ;;  %v5272_v1 = vpop.f32.mrf.mxu0  ;;  %v15236_v62 = vld [vmem:[#allocation121_spill] sm:$0xff] }
 0x38e   : > { %15229 = vst [vmem:[#allocation73_spill] sm:$0xff] %v13605_v5  ;;  %v6176_v17 = vpop.f32.mrf.mxu1  ;;  %v13611_v26 = vadd.f32 %v5272_v1, %v15231_v25  ;;  %v15238_v1 = vld [vmem:[#allocation133_spill] sm:$0xff] }
 0x38f   : > { %v13614_v40 = vadd.f32 %v6176_v17, %v15233_v14  ;;  %v5276_v24 = vpop.f32.mrf.mxu0  ;;  %8742 = vmatmul.mubr.msk.bf16.gmra.mxu0 %vm780_vm3, %v13442_v6  ;;  %v15240_v14 = vld [vmem:[#allocation123_spill] sm:$0xff] }
 0x390   : > { %15232 = vst [vmem:[#allocation155_spill] sm:$0xff] %v13611_v26  ;;  %v6178_v21 = vpop.f32.mrf.mxu1  ;;  %v13619_v37 = vadd.f32 %v5276_v24, %v15234_v52  ;;  %7072 = vmatprep.mubr.bf16.mxu0 %v14421_v7  ;;  %v15242_v6 = vld [vmem:[#allocation111_spill] sm:$0xff] }
 0x391   : > { %v13623_v16 = vadd.f32 %v6178_v21, %v15236_v62  ;;  %v5278_v8 = vpop.f32.mrf.mxu0  ;;  %v15244_v24 = vld [vmem:[#allocation55_spill] sm:$0xff] }
 0x392   : > { %15235 = vst [vmem:[#allocation140_spill] sm:$0xff] %v13619_v37  ;;  %v6182_v63 = vpop.f32.mrf.mxu1  ;;  %v13626_v25 = vadd.f32 %v5278_v8, %v15238_v1  ;;  %v15246_v21 = vld [vmem:[#allocation135_spill] sm:$0xff]  ;;  %v15249_v1 = vld [vmem:[#allocation137_spill] sm:$0xff] }
 0x393   : > { %15237 = vst [vmem:[#allocation86_spill] sm:$0xff] %v13623_v16  ;;  %v13629_v17 = vadd.f32 %v6182_v63, %v15240_v14  ;;  %v5280_v26 = vpop.f32.mrf.mxu0 }
 0x394   : > { %15239 = vst [vmem:[#allocation69_spill] sm:$0xff] %v13626_v25  ;;  %v6184_v5 = vpop.f32.mrf.mxu1  ;;  %v13632_v34 = vadd.f32 %v5280_v26, %v15242_v6 }
 0x395   : > { %15241 = vst [vmem:[#allocation88_spill] sm:$0xff] %v13629_v17  ;;  %v13635_v52 = vadd.f32 %v6184_v5, %v15244_v24  ;;  %v5282_v7 = vpop.f32.mrf.mxu0  ;;  %v15252_v24 = vld [vmem:[#allocation113_spill] sm:$0xff] }
 0x396   : > { %15243 = vst [vmem:[#allocation74_spill] sm:$0xff] %v13632_v34  ;;  %v6186_v37 = vpop.f32.mrf.mxu1  ;;  %v13638_v62 = vadd.f32 %v5282_v7, %v15246_v21  ;;  %v15255_v21 = vld [vmem:[#allocation115_spill] sm:$0xff] }
 0x397   : > { %15245 = vst [vmem:[#allocation90_spill] sm:$0xff] %v13635_v52  ;;  %v13641_v16 = vadd.f32 %v6186_v37, %v13280_v59  ;;  %v5286_v8 = vpop.f32.mrf.mxu0  ;;  %8743 = vmatmul.mubr.msk.bf16.gmra.mxu0 %vm780_vm3, %v13474_v3  ;;  %v15257_v3 = vld [vmem:[#allocation66_spill] sm:$0xff] }
 0x398   : > { %15247 = vst [vmem:[#allocation142_spill] sm:$0xff] %v13638_v62  ;;  %v6188_v63 = vpop.f32.mrf.mxu1  ;;  %v13646_v14 = vadd.f32 %v5286_v8, %v15249_v1 }
 0x399   : > { %15248 = vst [vmem:[#allocation92_spill] sm:$0xff] %v13641_v16  ;;  %v13649_v26 = vadd.f32 %v6188_v63, %v13293_v15  ;;  %v5288_v5 = vpop.f32.mrf.mxu0  ;;  %v15259_v15 = vld [vmem:[#allocation141_spill] sm:$0xff] }
 0x39a   : > { %15250 = vst [vmem:[#allocation75_spill] sm:$0xff] %v13646_v14  ;;  %v6192_v6 = vpop.f32.mrf.mxu1  ;;  %v13652_v34 = vadd.f32 %v5288_v5, %v15252_v24 }
 0x39b   : > { %15251 = vst [vmem:[#allocation94_spill] sm:$0xff] %v13649_v26  ;;  %v13655_v7 = vadd.f32 %v6192_v6, %v13304_v56  ;;  %v5290_v59 = vpop.f32.mrf.mxu0  ;;  %v15262_v56 = vld [vmem:[#allocation45_spill] sm:$0xff] }
 0x39c   : > { %15253 = vst [vmem:[#allocation76_spill] sm:$0xff] %v13652_v34  ;;  %v6194_v37 = vpop.f32.mrf.mxu1  ;;  %v13658_v62 = vadd.f32 %v5290_v59, %v15255_v21 }
 0x39d   : > { %15254 = vst [vmem:[#allocation96_spill] sm:$0xff] %v13655_v7  ;;  %v13661_v25 = vadd.f32 %v6194_v37, %v15257_v3  ;;  %v5292_v8 = vpop.f32.mrf.mxu0  ;;  %v15264_v37 = vld [vmem:[#allocation143_spill] sm:$0xff] }
 0x39e   : > { %15256 = vst [vmem:[#allocation77_spill] sm:$0xff] %v13658_v62  ;;  %v6196_v1 = vpop.f32.mrf.mxu1  ;;  %v13664_v63 = vadd.f32 %v5292_v8, %v15259_v15 }
 0x39f   : > { %15258 = vst [vmem:[#allocation91_spill] sm:$0xff] %v13661_v25  ;;  %v13667_v14 = vadd.f32 %v6196_v1, %v13328_v30  ;;  %v9216_v5 = vpop.f32.mrf.mxu0  ;;  %v15266_v30 = vld [vmem:[#allocation56_spill] sm:$0xff] }
 0x3a0   : > { %15260 = vst [vmem:[#allocation78_spill] sm:$0xff] %v13664_v63  ;;  %v6198_v24 = vpop.f32.mrf.mxu1  ;;  %v13670_v6 = vadd.f32 %v9216_v5, %v15262_v56  ;;  %v15267_v63 = vld [vmem:[#allocation61_spill] sm:$0xff] }
 0x3a1   : > { %15261 = vst [vmem:[#allocation165_spill] sm:$0xff] %v13667_v14  ;;  %v13673_v34 = vadd.f32 %v6198_v24, %v13341_v33  ;;  %v6335_v59 = vpop.f32.mrf.mxu0  ;;  %v15269_v33 = vld [vmem:[#allocation47_spill] sm:$0xff] }
 0x3a2   : > { %v6202_v21 = vpop.f32.mrf.mxu1  ;;  %v13676_v3 = vadd.f32 %v6335_v59, %v15264_v37 }
 0x3a3   : > { %15263 = vst [vmem:[#allocation79_spill] sm:$0xff] %v13673_v34  ;;  %v13679_v62 = vadd.f32 %v6202_v21, %v13353_v61  ;;  %v9217_v8 = vpop.f32.mrf.mxu0  ;;  %v15271_v61 = vld [vmem:[#allocation49_spill] sm:$0xff] }
 0x3a4   : > { %v6204_v15 = vpop.f32.mrf.mxu1  ;;  %v13682_v1 = vadd.f32 %v9217_v8, %v15266_v30 }
 0x3a5   : > { %15265 = vst [vmem:[#allocation166_spill] sm:$0xff] %v13679_v62  ;;  %v13685_v14 = vadd.f32 %v6204_v15, %v15267_v63  ;;  %v6338_v5 = vpop.f32.mrf.mxu0  ;;  %v15273_v63 = vld [vmem:[#allocation58_spill] sm:$0xff] }
 0x3a6   : > { %v6206_v56 = vpop.f32.mrf.mxu1  ;;  %v13688_v24 = vadd.f32 %v6338_v5, %v15269_v33 }
 0x3a7   : > { %15268 = vst [vmem:[#allocation80_spill] sm:$0xff] %v13685_v14  ;;  %v13691_v34 = vadd.f32 %v6206_v56, %v13379_v18  ;;  %v9220_v59 = vpop.f32.mrf.mxu0  ;;  %v15275_v18 = vld [vmem:[#allocation149_spill] sm:$0xff] }
 0x3a8   : > { %v6208_v37 = vpop.f32.mrf.mxu1  ;;  %v13694_v21 = vadd.f32 %v9220_v59, %v15271_v61 }
 0x3a9   : > { %15270 = vst [vmem:[#allocation102_spill] sm:$0xff] %v13691_v34  ;;  %v13697_v62 = vadd.f32 %v6208_v37, %v13389_v20  ;;  %v6351_v8 = vpop.f32.mrf.mxu0  ;;  %v15276_v34 = vld [vmem:[#allocation136_spill] sm:$0xff]  ;;  %v15278_v20 = vld [vmem:[#allocation62_spill] sm:$0xff] }
 0x3aa   : > { %v6212_v30 = vpop.f32.mrf.mxu1  ;;  %v13700_v15 = vadd.f32 %v6351_v8, %v15273_v63 }
 0x3ab   : > { %15272 = vst [vmem:[#allocation81_spill] sm:$0xff] %v13697_v62  ;;  %v13703_v14 = vadd.f32 %v6212_v30, %v13403_v23  ;;  %v9221_v5 = vpop.f32.mrf.mxu0  ;;  %v15281_v23 = vld [vmem:[#allocation7_spill] sm:$0xff] }
 0x3ac   : > { %v6214_v33 = vpop.f32.mrf.mxu1  ;;  %v13706_v56 = vadd.f32 %v9221_v5, %v15275_v18 }
 0x3ad   : > { %15274 = vst [vmem:[#allocation82_spill] sm:$0xff] %v13703_v14  ;;  %v13709_v25 = vadd.f32 %v6214_v33, %v15276_v34  ;;  %v6354_v59 = vpop.f32.mrf.mxu0  ;;  %v15284_v34 = vld [vmem:[#allocation64_spill] sm:$0xff] }
 0x3ae   : > { %v6216_v61 = vpop.f32.mrf.mxu1  ;;  %v13712_v37 = vadd.f32 %v6354_v59, %v15278_v20 }
 0x3af   : > { %15277 = vst [vmem:[#allocation84_spill] sm:$0xff] %v13709_v25  ;;  %v13715_v62 = vadd.f32 %v6216_v61, %v13425_v4  ;;  %v9224_v8 = vpop.f32.mrf.mxu0  ;;  %v15287_v4 = vld [vmem:[#allocation128_spill] sm:$0xff] }
 0x3b0   : > { %15279 = vst [vmem:[#allocation85_spill] sm:$0xff] %v13712_v37  ;;  %v6218_v63 = vpop.f32.mrf.mxu1  ;;  %v13718_v30 = vadd.f32 %v9224_v8, %v15281_v23  ;;  %v15289_v23 = vld [vmem:[#allocation57_spill] sm:$0xff]  ;;  %v15312_v37 = vld [vmem:[#allocation146_spill] sm:$0xff] }
 0x3b1   : > { %15280 = vst [vmem:[#allocation156_spill] sm:$0xff] %v13715_v62  ;;  %v13721_v14 = vadd.f32 %v6218_v63, %v13433_v0  ;;  %v6367_v5 = vpop.f32.mrf.mxu0 }
 0x3b2   : > { %15282 = vst [vmem:[#allocation158_spill] sm:$0xff] %v13718_v30  ;;  %v6222_v18 = vpop.f32.mrf.mxu1  ;;  %v13724_v33 = vadd.f32 %v6367_v5, %v15284_v34  ;;  %v15292_v34 = vld [vmem:[#allocation130_spill] sm:$0xff] }
 0x3b3   : > { %15283 = vst [vmem:[#allocation160_spill] sm:$0xff] %v13721_v14  ;;  %v13727_v25 = vadd.f32 %v6222_v18, %v13445_v31  ;;  %v9225_v59 = vpop.f32.mrf.mxu0  ;;  %v15294_v14 = vld [vmem:[#allocation59_spill] sm:$0xff] }
 0x3b4   : > { %15285 = vst [vmem:[#allocation161_spill] sm:$0xff] %v13724_v33  ;;  %v13729_v20 = vpop.f32.mrf.mxu1  ;;  %v13732_v61 = vadd.f32 %v9225_v59, %v15287_v4 }
 0x3b5   : > { %15286 = vst [vmem:[#allocation162_spill] sm:$0xff] %v13727_v25  ;;  %v6370_v62 = vpop.f32.mrf.mxu0 }
 0x3b6   : > { %15288 = vst [vmem:[#allocation163_spill] sm:$0xff] %v13732_v61  ;;  %v6226_v8 = vpop.f32.mrf.mxu1  ;;  %v13735_v7 = vadd.f32 %v6370_v62, %v15289_v23  ;;  %v15296_v62 = vld [vmem:[#allocation68_spill] sm:$0xff] }
 0x3b7   : > { %v13738_v0 = vadd.f32 %v6226_v8, %v13466_v51  ;;  %v9228_v63 = vpop.f32.mrf.mxu0 }
 0x3b8   : > { %15290 = vst [vmem:[#allocation98_spill] sm:$0xff] %v13735_v7  ;;  %v13740_v5 = vpop.f32.mrf.mxu1  ;;  %v13743_v31 = vadd.f32 %v9228_v63, %v15292_v34  ;;  %v15300_v34 = vld [vmem:[#allocation107_spill] sm:$0xff] }
 0x3b9   : > { %15291 = vst [vmem:[#allocation100_spill] sm:$0xff] %v13738_v0  ;;  %v6383_v18 = vpop.f32.mrf.mxu0  ;;  %v15298_v0 = vld [vmem:[#allocation132_spill] sm:$0xff] }
 0x3ba   : > { %15293 = vst [vmem:[#allocation93_spill] sm:$0xff] %v13743_v31  ;;  %v13745_v25 = vpop.f32.mrf.mxu1  ;;  %v13748_v59 = vadd.f32 %v6383_v18, %v15294_v14  ;;  %v15301_v31 = vld [vmem:[#allocation134_spill] sm:$0xff] }
 0x3bb   : > { %v9229_v4 = vpop.f32.mrf.mxu0  ;;  %v5506_v26 = vadd.f32 %v15301_v31, %v15300_v34  ;;  %v15302_v14 = vld [vmem:[#allocation70_spill] sm:$0xff]  ;;  %v15306_v34 = vld [vmem:[#allocation144_spill] sm:$0xff] }
 0x3bc   : > { %15295 = vst [vmem:[#allocation167_spill] sm:$0xff] %v13748_v59  ;;  %v13750_v61 = vpop.f32.mrf.mxu1  ;;  %v13753_v23 = vadd.f32 %v9229_v4, %v15296_v62  ;;  %v7693_v31 = vld [vmem:[%s14363_s3 + $0xf0] sm:$0xff] }
 0x3bd   : > { %v6386_v51 = vpop.f32.mrf.mxu0 }
 0x3be   : > { %15297 = vst [vmem:[#allocation104_spill] sm:$0xff] %v13753_v23  ;;  %v13755_v8 = vpop.f32.mrf.mxu1  ;;  %v13758_v7 = vadd.f32 %v6386_v51, %v15298_v0  ;;  %v7694_v0 = vld [vmem:[%s14363_s3 + $0xf8] sm:$0xff]  ;;  %v7692_v23 = vld [vmem:[%s14363_s3 + $0xe8] sm:$0xff] }
 0x3bf   : > { %v9232_v63 = vpop.f32.mrf.mxu0  ;;  %v7678_v51 = vld [vmem:[%s14363_s3 + $0x78] sm:$0xff]  ;;  %8917 = vmatprep.subr.mxu1 %v7694_v0 }
 0x3c0   : > { %15299 = vst [vmem:[#allocation8_spill] sm:$0xff] %v13758_v7  ;;  %v13762_v33 = vpop.f32.mrf.mxu1  ;;  %v13765_v18 = vadd.f32 %v9232_v63, %v15302_v14  ;;  %v15305_v63 = vld [vmem:[#allocation50_spill] sm:$0xff]  ;;  %8918 = vmatpush3.msra.mxu1 %v7678_v51  ;;  %v15309_v51 = vld [vmem:[#allocation29_spill] sm:$0xff] }
 0x3c1   : > { %v6399_v59 = vpop.f32.mrf.mxu0  ;;  %v5509_v14 = vadd.f32 %v15306_v34, %v15305_v63  ;;  %8919 = vmatprep.subr.mxu1 %v7693_v31  ;;  %v7691_v63 = vld [vmem:[%s14363_s3 + $0xe0] sm:$0xff] }
 0x3c2   : > { %15303 = vst [vmem:[#allocation9_spill] sm:$0xff] %v13765_v18  ;;  %v13767_v16 = vpop.f32.mrf.mxu1  ;;  %v13769_v4 = vadd.f32 %v6399_v59, %v5506_v26  ;;  %v15307_v26 = vld [vmem:[#allocation71_spill] sm:$0xff]  ;;  %v15310_v34 = vld [vmem:[#allocation65_spill] sm:$0xff] }
 0x3c3   : > { %v9233_v62 = vpop.f32.mrf.mxu0 }
 0x3c4   : > { %15304 = vst [vmem:[#allocation168_spill] sm:$0xff] %v13769_v4  ;;  %v13782_v18 = vpop.f32.mrf.mxu1  ;;  %v13785_v59 = vadd.f32 %v9233_v62, %v15307_v26  ;;  %v7677_v4 = vld [vmem:[%s14363_s3 + $0x70] sm:$0xff]  ;;  %v7676_v62 = vld [vmem:[%s14363_s3 + $0x68] sm:$0xff]  ;;  %v5518_v26 = vadd.f32 %v15310_v34, %v15309_v51  ;;  %v7690_v51 = vld [vmem:[%s14363_s3 + $0xd8] sm:$0xff] }
 0x3c5   : > { %v6402_v7 = vpop.f32.mrf.mxu0  ;;  %8920 = vmatpush3.msra.mxu1 %v7677_v4 }
 0x3c6   : > { %15308 = vst [vmem:[#allocation24_spill] sm:$0xff] %v13785_v59  ;;  %v13793_v30 = vpop.f32.mrf.mxu1  ;;  %v13795_v52 = vadd.f32 %v6402_v7, %v5509_v14  ;;  %8921 = vmatprep.subr.mxu1 %v7692_v23  ;;  %v7675_v7 = vld [vmem:[%s14363_s3 + $0x60] sm:$0xff] }
 0x3c7   : > { %v9236_v0 = vpop.f32.mrf.mxu0  ;;  %8922 = vmatpush3.msra.mxu1 %v7676_v62  ;;  %v7674_v62 = vld [vmem:[%s14363_s3 + $0x58] sm:$0xff] }
 0x3c8   : > { %v13805_v59 = vpop.f32.mrf.mxu1  ;;  %v13808_v17 = vadd.f32 %v9236_v0, %v15312_v37  ;;  %8923 = vmatprep.subr.mxu1 %v7691_v63 }
 0x3c9   : > { %15311 = vst [vmem:[#allocation106_spill] sm:$0xff] %v13805_v59  ;;  %v6415_v31 = vpop.f32.mrf.mxu0  ;;  %8924 = vmatpush3.msra.mxu1 %v7675_v7  ;;  %v7689_v7 = vld [vmem:[%s14363_s3 + $0xd0] sm:$0xff] }
 0x3ca   : > { %v13813_v4 = vpop.f32.mrf.mxu1  ;;  %v13815_v14 = vadd.f32 %v6415_v31, %v5518_v26  ;;  %8925 = vmatprep.subr.mxu1 %v7690_v51 }
 0x3cb   : > { %15313 = vst [vmem:[#allocation87_spill] sm:$0xff] %v13813_v4  ;;  %v9237_v34 = vpop.f32.mrf.mxu0  ;;  %8926 = vmatpush3.msra.mxu1 %v7674_v62 }
 0x3cc   : > { %v13820_v37 = vpop.f32.mrf.mxu1  ;;  %v13823_v23 = vadd.f32 %v9237_v34, %v13438_v12  ;;  %8927 = vmatprep.subr.mxu1 %v7689_v7  ;;  %v7673_v34 = vld [vmem:[%s14363_s3 + $0x50] sm:$0xff] }
 0x3cd   : > { %15314 = vst [vmem:[#allocation10_spill] sm:$0xff] %v13820_v37  ;;  %v6418_v0 = vpop.f32.mrf.mxu0  ;;  %8928 = vmatpush3.msra.mxu1 %v7673_v34 }
 0x3ce   : > { %v13828_v26 = vpop.f32.mrf.mxu1  ;;  %v13831_v63 = vadd.f32 %v6418_v0, %v13449_v55  ;;  %v7688_v0 = vld [vmem:[%s14363_s3 + $0xc8] sm:$0xff] }
 0x3cf   : > { %15315 = vst [vmem:[#allocation26_spill] sm:$0xff] %v13828_v26  ;;  %v9240_v31 = vpop.f32.mrf.mxu0  ;;  %8929 = vmatprep.subr.mxu1 %v7688_v0 }
 0x3d0   : > { %v13836_v12 = vpop.f32.mrf.mxu1  ;;  %v13839_v51 = vadd.f32 %v9240_v31, %v13457_v54  ;;  %v7672_v31 = vld [vmem:[%s14363_s3 + $0x48] sm:$0xff] }
 0x3d1   : > { %15316 = vst [vmem:[#allocation20_spill] sm:$0xff] %v13836_v12  ;;  %v6431_v62 = vpop.f32.mrf.mxu0  ;;  %8930 = vmatpush3.msra.mxu1 %v7672_v31 }
 0x3d2   : > { %v13844_v26 = vpop.f32.mrf.mxu1  ;;  %v13847_v55 = vadd.f32 %v6431_v62, %v13469_v39  ;;  %v7687_v62 = vld [vmem:[%s14363_s3 + $0xc0] sm:$0xff] }
 0x3d3   : > { %15317 = vst [vmem:[#allocation89_spill] sm:$0xff] %v13844_v26  ;;  %v9241_v7 = vpop.f32.mrf.mxu0  ;;  %8931 = vmatprep.subr.mxu1 %v7687_v62  ;;  %v7686_v62 = vld [vmem:[%s14363_s3 + $0xb8] sm:$0xff] }
 0x3d4   : > { %15318 = vst [vmem:[#allocation95_spill] sm:$0xff] %v13847_v55  ;;  %v13852_v12 = vpop.f32.mrf.mxu1  ;;  %v13855_v54 = vadd.f32 %v9241_v7, %v13477_v35  ;;  %v7671_v7 = vld [vmem:[%s14363_s3 + $0x40] sm:$0xff] }
 0x3d5   : > { %15319 = vst [vmem:[#allocation11_spill] sm:$0xff] %v13852_v12  ;;  %v6434_v34 = vpop.f32.mrf.mxu0  ;;  %8932 = vmatpush3.msra.mxu1 %v7671_v7 }
 0x3d6   : > { %15320 = vst [vmem:[#allocation30_spill] sm:$0xff] %v13855_v54  ;;  %v13860_v26 = vpop.f32.mrf.mxu1  ;;  %v13863_v39 = vadd.f32 %v6434_v34, %v13486_v2  ;;  %8933 = vmatprep.subr.mxu1 %v7686_v62 }
 0x3d7   : > { %15321 = vst [vmem:[#allocation83_spill] sm:$0xff] %v13860_v26  ;;  %v9244_v0 = vpop.f32.mrf.mxu0  ;;  %v15325_v26 = vld [vmem:[#allocation5_spill] sm:$0xff] }
 0x3d8   : > { %15322 = vst [vmem:[#allocation14_spill] sm:$0xff] %v13863_v39  ;;  %v13868_v12 = vpop.f32.mrf.mxu1  ;;  %v13871_v35 = vadd.f32 %v9244_v0, %v13494_v10  ;;  %v7344_v2 = vsub.s32 0, %v15325_v26  ;;  %v13888_v10 = vld [vmem:[%s14362_s2] sm:$0x7]  ;;  %v7348_v7 = vsub.s32 1, %v15325_v26 }
 0x3d9   : > { %15323 = vst [vmem:[#allocation108_spill] sm:$0xff] %v13868_v12  ;;  %v6447_v31 = vpop.f32.mrf.mxu0 }
 0x3da   : > { %15324 = vst [vmem:[#allocation15_spill] sm:$0xff] %v13871_v35  ;;  %v13877_v34 = vpop.f32.mrf.mxu1  ;;  %v13880_v37 = vadd.f32 %v6447_v31, %v13500_v13  ;;  %v7670_v13 = vld [vmem:[%s14363_s3 + $0x38] sm:$0xff]  ;;  %v13900_v4 = vrot.slane %v13888_v10, %v7344_v2  ;;  %v7669_v2 = vld [vmem:[%s14363_s3 + $0x30] sm:$0xff] }
 0x3db   : > { %15326 = vst [vmem:[#allocation12_spill] sm:$0xff] %v13877_v34  ;;  %v9245_v0 = vpop.f32.mrf.mxu0  ;;  %8934 = vmatpush3.msra.mxu1 %v7670_v13 }
 0x3dc   : > { %15327 = vst [vmem:[#allocation22_spill] sm:$0xff] %v13880_v37  ;;  %v13891_v12 = vpop.f32.mrf.mxu1  ;;  %v13894_v34 = vadd.f32 %v9245_v0, %v13506_v32  ;;  %v13911_v0 = vrot.slane %v13888_v10, %v7348_v7 }
 0x3dd   : > { %15328 = vst [vmem:[#allocation110_spill] sm:$0xff] %v13891_v12  ;;  %v6450_v31 = vpop.f32.mrf.mxu0  ;;  %v7685_v12 = vld [vmem:[%s14363_s3 + $0xb0] sm:$0xff] }
 0x3de   : > { %15329 = vst [vmem:[#allocation18_spill] sm:$0xff] %v13894_v34  ;;  %v13902_v59 = vpop.f32.mrf.mxu1  ;;  %v13905_v62 = vadd.f32 %v6450_v31, %v13515_v53  ;;  %8935 = vmatprep.subr.mxu1 %v7685_v12 }
 0x3df   : > { %15330 = vst [vmem:[#allocation164_spill] sm:$0xff] %v13902_v59  ;;  %v6924_v32 = vpop.f32.mrf.mxu0  ;;  %8936 = vmatpush3.msra.mxu1 %v7669_v2 }
 0x3e0   : > { %15331 = vst [vmem:[#allocation36_spill] sm:$0xff] %v13905_v62  ;;  %v13913_v34 = vpop.f32.mrf.mxu1  ;;  %v7244_v13 = vadd.f32 %v6924_v32, %v13521_v41 }
 0x3e1   : > { %15332 = vst [vmem:[#allocation6_spill] sm:$0xff] %v13913_v34  ;;  %v6926_v59 = vpop.f32.mrf.mxu0 }
 0x3e2   : > { %v13919_v53 = vpop.f32.mrf.mxu1  ;;  %v7357_v31 = vadd.f32 %v13900_v4, %v7244_v13  ;;  %v7245_v62 = vadd.f32 %v6926_v59, %v13527_v47 }
 0x3e3   : > { %15333 = vst [vmem:[#allocation21_spill] sm:$0xff] %v13919_v53  ;;  %v6928_v12 = vpop.f32.mrf.mxu0 }
 0x3e4   : > { %v13923_v37 = vpop.f32.mrf.mxu1  ;;  %v7358_v7 = vadd.f32 %v13911_v0, %v7245_v62  ;;  %v7247_v34 = vadd.f32 %v6928_v12, %v13533_v29  ;;  %v7453_v53 = vmax.f32 %v7357_v31, 0.0 }
 0x3e5   : > { %15334 = vst [vmem:[#allocation97_spill] sm:$0xff] %v13923_v37  ;;  %v6930_v41 = vpop.f32.mrf.mxu0 }
 0x3e6   : > { %v13927_v32 = vpop.f32.mrf.mxu1  ;;  %v7360_v35 = vadd.f32 %v13900_v4, %v7247_v34  ;;  %v7248_v2 = vadd.f32 %v6930_v41, %v13542_v58  ;;  %v7454_v37 = vmax.f32 %v7358_v7, 0.0  ;;  %v7684_v58 = vld [vmem:[%s14363_s3 + $0xa8] sm:$0xff]  ;;  %v7352_v41 = vsub.s32 2, %v15325_v26 }
 0x3e7   : > { %15335 = vst [vmem:[#allocation38_spill] sm:$0xff] %v13927_v32  ;;  %v6934_v39 = vpop.f32.mrf.mxu0  ;;  %8937 = vmatprep.subr.mxu1 %v7684_v58 }
 0x3e8   : > { %v7456_v54 = vmax.f32 %v7360_v35, 0.0  ;;  %v13931_v13 = vpop.f32.mrf.mxu1  ;;  %v7361_v47 = vadd.f32 %v13911_v0, %v7248_v2  ;;  %v7250_v59 = vadd.f32 %v6934_v39, %v13548_v11  ;;  %v7668_v11 = vld [vmem:[%s14363_s3 + $0x28] sm:$0xff] }
 0x3e9   : > { %v6936_v62 = vpop.f32.mrf.mxu0  ;;  %8938 = vmatpush3.msra.mxu1 %v7668_v11 }
 0x3ea   : > { %v7549_v55 = vadd.f32 %v7456_v54, %v7453_v53  ;;  %v7457_v29 = vmax.f32 %v7361_v47, 0.0  ;;  %v13935_v12 = vpop.f32.mrf.mxu1  ;;  %v7363_v32 = vadd.f32 %v13900_v4, %v7250_v59  ;;  %v7251_v34 = vadd.f32 %v6936_v62, %v13554_v9  ;;  %v7683_v9 = vld [vmem:[%s14363_s3 + $0xa0] sm:$0xff] }
 0x3eb   : > { %v6938_v35 = vpop.f32.mrf.mxu0  ;;  %8939 = vmatprep.subr.mxu1 %v7683_v9 }
 0x3ec   : > { %v7586_v39 = vadd.f32 %v7457_v29, %v7454_v37  ;;  %v7459_v31 = vmax.f32 %v7363_v32, 0.0  ;;  %v13945_v54 = vpop.f32.mrf.mxu1  ;;  %v7364_v53 = vadd.f32 %v13911_v0, %v7251_v34  ;;  %v7253_v7 = vadd.f32 %v6938_v35, %v13560_v46  ;;  %v7667_v37 = vld [vmem:[%s14363_s3 + $0x20] sm:$0xff]  ;;  %v7682_v29 = vld [vmem:[%s14363_s3 + $0x98] sm:$0xff] }
 0x3ed   : > { %v6940_v2 = vpop.f32.mrf.mxu0  ;;  %8940 = vmatpush3.msra.mxu1 %v7667_v37  ;;  %v7666_v34 = vld [vmem:[%s14363_s3 + $0x18] sm:$0xff] }
 0x3ee   : > { %v7550_v32 = vadd.f32 %v7549_v55, %v7459_v31  ;;  %v7460_v47 = vmax.f32 %v7364_v53, 0.0  ;;  %v13956_v59 = vpop.f32.mrf.mxu1  ;;  %v7366_v62 = vadd.f32 %v13900_v4, %v7253_v7  ;;  %v7254_v46 = vadd.f32 %v6940_v2, %v13569_v28  ;;  %8941 = vmatprep.subr.mxu1 %v7682_v29  ;;  %v7681_v28 = vld [vmem:[%s14363_s3 + $0x90] sm:$0xff]  ;;  %v7679_v29 = vld [vmem:[%s14363_s3 + $0x80] sm:$0xff] }
 0x3ef   : > { %v6944_v26 = vpop.f32.mrf.mxu0  ;;  %8942 = vmatpush3.msra.mxu1 %v7666_v34  ;;  %v7665_v53 = vld [vmem:[%s14363_s3 + $0x10] sm:$0xff]  ;;  %v13980_v7 = vrot.slane %v13888_v10, %v7352_v41  ;;  %v13992_v10 = vadd.f32 %v13729_v20, %v13454_v36  ;;  %v13996_v41 = vadd.f32 %v13740_v5, %v13472_v43  ;;  %v14006_v43 = vadd.f32 %v13745_v25, %v13482_v48 }
 0x3f0   : > { %v7587_v58 = vadd.f32 %v7586_v39, %v7460_v47  ;;  %v7462_v55 = vmax.f32 %v7366_v62, 0.0  ;;  %v13966_v35 = vpop.f32.mrf.mxu1  ;;  %v7367_v11 = vadd.f32 %v13911_v0, %v7254_v46  ;;  %v7256_v31 = vadd.f32 %v6944_v26, %v13575_v22  ;;  %v7680_v39 = vld [vmem:[%s14363_s3 + $0x88] sm:$0xff]  ;;  %8943 = vmatprep.subr.mxu1 %v7681_v28 }
 0x3f1   : > { %v6946_v9 = vpop.f32.mrf.mxu0  ;;  %v7664_v22 = vld [vmem:[%s14363_s3 + $0x8] sm:$0xff]  ;;  %8944 = vmatpush3.msra.mxu1 %v7665_v53  ;;  %v14020_v48 = vadd.f32 %v13755_v8, %v13497_v27  ;;  %v14033_v27 = vadd.f32 %v13767_v16, %v13511_v57 }
 0x3f2   : > { %v7551_v2 = vadd.f32 %v7550_v32, %v7462_v55  ;;  %v7463_v37 = vmax.f32 %v7367_v11, 0.0  ;;  %v7369_v47 = vadd.f32 %v13900_v4, %v7256_v31  ;;  %v9250_v62 = vpop.f32.mrf.mxu1  ;;  %v7257_v46 = vadd.f32 %v6946_v9, %v13581_v38  ;;  %8945 = vmatprep.subr.mxu1 %v7680_v39  ;;  %v7663_v38 = vld [vmem:[%s14363_s3] sm:$0xff] }
 0x3f3   : > { %v7252_v32 = vadd.f32 %v9250_v62, %v13670_v6  ;;  %v6948_v26 = vpop.f32.mrf.mxu0  ;;  %8946 = vmatpush3.msra.mxu1 %v7664_v22 }
 0x3f4   : > { %v7588_v34 = vadd.f32 %v7587_v58, %v7463_v37  ;;  %v7465_v55 = vmax.f32 %v7369_v47, 0.0  ;;  %v7370_v11 = vadd.f32 %v13911_v0, %v7257_v46  ;;  %v7117_v31 = vpop.f32.mrf.mxu1  ;;  %v7259_v36 = vadd.f32 %v6948_v26, %v13587_v19  ;;  %8947 = vmatprep.subr.mxu1 %v7679_v29 }
 0x3f5   : > { %v14009_v6 = vadd.f32 %v13980_v7, %v7252_v32  ;;  %v7246_v20 = vadd.f32 %v7117_v31, %v13676_v3  ;;  %v6950_v5 = vpop.f32.mrf.mxu0  ;;  %8948 = vmatpush3.msra.mxu1 %v7663_v38  ;;  %v14016_v19 = vadd.f32 %v13750_v61, %v13491_v44  ;;  %v14029_v61 = vadd.f32 %v13762_v33, %v13503_v50  ;;  %v15336_v33 = vld [vmem:[#allocation148_spill] sm:$0xff] }
 0x3f6   : > { %v7552_v28 = vadd.f32 %v7551_v2, %v7465_v55  ;;  %v7466_v58 = vmax.f32 %v7370_v11, 0.0  ;;  %v7372_v53 = vadd.f32 %v13900_v4, %v7259_v36  ;;  %v9251_v39 = vpop.f32.mrf.mxu1  ;;  %v7260_v9 = vadd.f32 %v6950_v5, %v13596_v45 }
 0x3f7   : > { %v7359_v25 = vadd.f32 %v13980_v7, %v7246_v20  ;;  %v7255_v3 = vadd.f32 %v9251_v39, %v13682_v1  ;;  %v6954_v22 = vpop.f32.mrf.mxu0  ;;  %v9504_v2 = vmov 0.0   ;;  %v14041_v50 = vadd.f32 %v13782_v18, %v13518_v60  ;;  %v15337_v39 = vld [vmem:[#allocation86_spill] sm:$0xff] }
 0x3f8   : > { %9280 = vmatprep.subr.mxu1 %v9504_v2  ;;  %v7589_v37 = vadd.f32 %v7588_v34, %v7466_v58  ;;  %v7468_v47 = vmax.f32 %v7372_v53, 0.0  ;;  %v7373_v45 = vadd.f32 %v13911_v0, %v7260_v9  ;;  %v7120_v62 = vpop.f32.mrf.mxu1  ;;  %v7262_v44 = vadd.f32 %v6954_v22, %v13602_v42 }
 0x3f9   : > { %v7368_v1 = vadd.f32 %v13980_v7, %v7255_v3  ;;  %v7249_v8 = vadd.f32 %v7120_v62, %v13688_v24  ;;  %v6956_v46 = vpop.f32.mrf.mxu0  ;;  %v14045_v57 = vadd.f32 %v13793_v30, %v15336_v33  ;;  %v7455_v20 = vmax.f32 %v7359_v25, 0.0 }
 0x3fa   : > { %v7553_v29 = vadd.f32 %v7552_v28, %v7468_v47  ;;  %v7469_v32 = vmax.f32 %v7373_v45, 0.0  ;;  %v7375_v26 = vadd.f32 %v13900_v4, %v7262_v44  ;;  %v9254_v38 = vpop.f32.mrf.mxu1  ;;  %v7263_v42 = vadd.f32 %v6956_v46, %v13608_v49  ;;  %v15338_v44 = vld [vmem:[#allocation88_spill] sm:$0xff] }
 0x3fb   : > { %v7362_v16 = vadd.f32 %v13980_v7, %v7249_v8  ;;  %v7264_v24 = vadd.f32 %v9254_v38, %v13694_v21  ;;  %v6958_v34 = vpop.f32.mrf.mxu0  ;;  %v7461_v3 = vmax.f32 %v14009_v6, 0.0  ;;  %v7464_v46 = vmax.f32 %v7368_v1, 0.0 }
 0x3fc   : > { %v7590_v55 = vadd.f32 %v7589_v37, %v7469_v32  ;;  %v7471_v11 = vmax.f32 %v7375_v26, 0.0  ;;  %v7376_v31 = vadd.f32 %v13911_v0, %v7263_v42  ;;  %v7133_v36 = vpop.f32.mrf.mxu1  ;;  %v7265_v49 = vadd.f32 %v6958_v34, %v13614_v40  ;;  %v15339_v26 = vld [vmem:[#allocation85_spill] sm:$0xff] }
 0x3fd   : > { %v7458_v5 = vmax.f32 %v7362_v16, 0.0  ;;  %v7377_v60 = vadd.f32 %v13980_v7, %v7264_v24  ;;  %v7258_v18 = vadd.f32 %v7133_v36, %v13700_v15  ;;  %v6960_v30 = vpop.f32.mrf.mxu0  ;;  %v15340_v24 = vld [vmem:[#allocation90_spill] sm:$0xff] }
 0x3fe   : > { %v7554_v28 = vadd.f32 %v7553_v29, %v7471_v11  ;;  %v7472_v58 = vmax.f32 %v7376_v31, 0.0  ;;  %v7378_v53 = vadd.f32 %v13900_v4, %v7265_v49  ;;  %v9255_v21 = vpop.f32.mrf.mxu1  ;;  %v7266_v9 = vadd.f32 %v6960_v30, %v15337_v39  ;;  %v15341_v36 = vld [vmem:[#allocation158_spill] sm:$0xff] }
 0x3ff   : > { %v7623_v22 = vadd.f32 %v7458_v5, %v7455_v20  ;;  %v7371_v37 = vadd.f32 %v13980_v7, %v7258_v18  ;;  %v7267_v40 = vadd.f32 %v9255_v21, %v13706_v56  ;;  %v6964_v25 = vpop.f32.mrf.mxu0 }
 0x400   : > { %v7591_v47 = vadd.f32 %v7590_v55, %v7472_v58  ;;  %v7474_v45 = vmax.f32 %v7378_v53, 0.0  ;;  %v7379_v15 = vadd.f32 %v13911_v0, %v7266_v9  ;;  %v7136_v62 = vpop.f32.mrf.mxu1  ;;  %v7268_v8 = vadd.f32 %v6964_v25, %v15338_v44  ;;  %v15342_v58 = vld [vmem:[#allocation92_spill] sm:$0xff]  ;;  %v15343_v9 = vld [vmem:[#allocation161_spill] sm:$0xff] }
 0x401   : > { %v7624_v29 = vadd.f32 %v7623_v22, %v7461_v3  ;;  %v7380_v32 = vadd.f32 %v13980_v7, %v7267_v40  ;;  %v7261_v38 = vadd.f32 %v7136_v62, %v15339_v26  ;;  %v6966_v6 = vpop.f32.mrf.mxu0  ;;  %v7467_v55 = vmax.f32 %v7371_v37, 0.0 }
 0x402   : > { %v7555_v42 = vadd.f32 %v7554_v28, %v7474_v45  ;;  %v7475_v33 = vmax.f32 %v7379_v15, 0.0  ;;  %v7381_v16 = vadd.f32 %v13900_v4, %v7268_v8  ;;  %v9258_v56 = vpop.f32.mrf.mxu1  ;;  %v7269_v34 = vadd.f32 %v6966_v6, %v15340_v24  ;;  %v15344_v15 = vld [vmem:[#allocation94_spill] sm:$0xff] }
 0x403   : > { %v7625_v11 = vadd.f32 %v7624_v29, %v7464_v46  ;;  %v7374_v31 = vadd.f32 %v13980_v7, %v7261_v38  ;;  %v7276_v49 = vadd.f32 %v9258_v56, %v15341_v36  ;;  %v6968_v1 = vpop.f32.mrf.mxu0  ;;  %v7473_v62 = vmax.f32 %v7377_v60, 0.0  ;;  %v15345_v46 = vld [vmem:[#allocation163_spill] sm:$0xff]  ;;  %v15346_v56 = vld [vmem:[#allocation96_spill] sm:$0xff] }
 0x404   : > { %v7592_v20 = vadd.f32 %v7591_v47, %v7475_v33  ;;  %v7477_v5 = vmax.f32 %v7381_v16, 0.0  ;;  %v7382_v18 = vadd.f32 %v13911_v0, %v7269_v34  ;;  %v7149_v30 = vpop.f32.mrf.mxu1  ;;  %v7271_v28 = vadd.f32 %v6968_v1, %v15342_v58 }
 0x405   : > { %v7626_v53 = vadd.f32 %v7625_v11, %v7467_v55  ;;  %v7470_v21 = vmax.f32 %v7374_v31, 0.0  ;;  %v7389_v39 = vadd.f32 %v13980_v7, %v7276_v49  ;;  %v7270_v3 = vadd.f32 %v7149_v30, %v15343_v9  ;;  %v6970_v22 = vpop.f32.mrf.mxu0  ;;  %v15347_v11 = vld [vmem:[#allocation98_spill] sm:$0xff] }
 0x406   : > { %v7556_v37 = vadd.f32 %v7555_v42, %v7477_v5  ;;  %v7478_v40 = vmax.f32 %v7382_v18, 0.0  ;;  %v7384_v25 = vadd.f32 %v13900_v4, %v7271_v28  ;;  %v9259_v45 = vpop.f32.mrf.mxu1  ;;  %v7272_v47 = vadd.f32 %v6970_v22, %v15344_v15  ;;  %v15348_v18 = vld [vmem:[#allocation91_spill] sm:$0xff] }
 0x407   : > { %v7627_v44 = vadd.f32 %v7626_v53, %v7470_v21  ;;  %v7383_v8 = vadd.f32 %v13980_v7, %v7270_v3  ;;  %v7279_v29 = vadd.f32 %v9259_v45, %v15345_v46  ;;  %v6974_v26 = vpop.f32.mrf.mxu0  ;;  %v7476_v24 = vmax.f32 %v7380_v32, 0.0  ;;  %v15349_v53 = vld [vmem:[#allocation93_spill] sm:$0xff] }
 0x408   : > { %v7593_v38 = vadd.f32 %v7592_v20, %v7478_v40  ;;  %v7480_v6 = vmax.f32 %v7384_v25, 0.0  ;;  %v7385_v33 = vadd.f32 %v13911_v0, %v7272_v47  ;;  %v7152_v16 = vpop.f32.mrf.mxu1  ;;  %v7274_v42 = vadd.f32 %v6974_v26, %v15346_v56  ;;  %v15350_v25 = vld [vmem:[#allocation165_spill] sm:$0xff] }
 0x409   : > { %v7628_v34 = vadd.f32 %v7627_v44, %v7473_v62  ;;  %v7392_v55 = vadd.f32 %v13980_v7, %v7279_v29  ;;  %v7273_v31 = vadd.f32 %v7152_v16, %v15347_v11  ;;  %v6976_v60 = vpop.f32.mrf.mxu0  ;;  %v7479_v30 = vmax.f32 %v7383_v8, 0.0  ;;  %v15351_v62 = vld [vmem:[#allocation167_spill] sm:$0xff] }
 0x40a   : > { %v7557_v36 = vadd.f32 %v7556_v37, %v7480_v6  ;;  %v7481_v49 = vmax.f32 %v7385_v33, 0.0  ;;  %v7387_v1 = vadd.f32 %v13900_v4, %v7274_v42  ;;  %v9262_v5 = vpop.f32.mrf.mxu1  ;;  %v7275_v20 = vadd.f32 %v6976_v60, %v15348_v18  ;;  %v15352_v33 = vld [vmem:[#allocation79_spill] sm:$0xff] }
 0x40b   : > { %v7629_v58 = vadd.f32 %v7628_v34, %v7476_v24  ;;  %v7386_v28 = vadd.f32 %v13980_v7, %v7273_v31  ;;  %v7288_v21 = vadd.f32 %v9262_v5, %v15349_v53  ;;  %v6978_v32 = vpop.f32.mrf.mxu0  ;;  %v7485_v16 = vmax.f32 %v7389_v39, 0.0  ;;  %v15353_v24 = vld [vmem:[#allocation104_spill] sm:$0xff]  ;;  %v15354_v5 = vld [vmem:[#allocation166_spill] sm:$0xff] }
 0x40c   : > { %v7594_v9 = vadd.f32 %v7593_v38, %v7481_v49  ;;  %v7483_v3 = vmax.f32 %v7387_v1, 0.0  ;;  %v7388_v22 = vadd.f32 %v13911_v0, %v7275_v20  ;;  %v7165_v40 = vpop.f32.mrf.mxu1  ;;  %v7277_v37 = vadd.f32 %v6978_v32, %v15350_v25 }
 0x40d   : > { %v7630_v45 = vadd.f32 %v7629_v58, %v7479_v30  ;;  %v7482_v15 = vmax.f32 %v7386_v28, 0.0  ;;  %v7401_v47 = vadd.f32 %v13980_v7, %v7288_v21  ;;  %v7282_v44 = vadd.f32 %v7165_v40, %v15351_v62  ;;  %v6980_v8 = vpop.f32.mrf.mxu0  ;;  %v15355_v58 = vld [vmem:[#allocation8_spill] sm:$0xff] }
 0x40e   : > { %v7558_v46 = vadd.f32 %v7557_v36, %v7483_v3  ;;  %v7484_v29 = vmax.f32 %v7388_v22, 0.0  ;;  %v7390_v26 = vadd.f32 %v13900_v4, %v7277_v37  ;;  %v9263_v6 = vpop.f32.mrf.mxu1  ;;  %v7278_v38 = vadd.f32 %v6980_v8, %v15352_v33  ;;  %v15356_v22 = vld [vmem:[#allocation80_spill] sm:$0xff] }
 0x40f   : > { %v7631_v56 = vadd.f32 %v7630_v45, %v7482_v15  ;;  %v7395_v42 = vadd.f32 %v13980_v7, %v7282_v44  ;;  %v7291_v34 = vadd.f32 %v9263_v6, %v15353_v24  ;;  %v6984_v11 = vpop.f32.mrf.mxu0  ;;  %v7488_v18 = vmax.f32 %v7392_v55, 0.0  ;;  %v15357_v45 = vld [vmem:[#allocation9_spill] sm:$0xff] }
 0x410   : > { %v7595_v31 = vadd.f32 %v7594_v9, %v7484_v29  ;;  %v7486_v60 = vmax.f32 %v7390_v26, 0.0  ;;  %v7391_v49 = vadd.f32 %v13911_v0, %v7278_v38  ;;  %v7168_v1 = vpop.f32.mrf.mxu1  ;;  %v7280_v36 = vadd.f32 %v6984_v11, %v15354_v5  ;;  %v15358_v26 = vld [vmem:[#allocation102_spill] sm:$0xff] }
 0x411   : > { %v7632_v20 = vadd.f32 %v7631_v56, %v7485_v16  ;;  %v7404_v30 = vadd.f32 %v13980_v7, %v7291_v34  ;;  %v7285_v28 = vadd.f32 %v7168_v1, %v15355_v58  ;;  %v6986_v39 = vpop.f32.mrf.mxu0  ;;  %v7491_v40 = vmax.f32 %v7395_v42, 0.0  ;;  %v15359_v16 = vld [vmem:[#allocation168_spill] sm:$0xff] }
 0x412   : > { %v7559_v53 = vadd.f32 %v7558_v46, %v7486_v60  ;;  %v7487_v21 = vmax.f32 %v7391_v49, 0.0  ;;  %v7393_v32 = vadd.f32 %v13900_v4, %v7280_v36  ;;  %v9266_v3 = vpop.f32.mrf.mxu1  ;;  %v7281_v9 = vadd.f32 %v6986_v39, %v15356_v22  ;;  %v15360_v49 = vld [vmem:[#allocation81_spill] sm:$0xff] }
 0x413   : > { %v7633_v25 = vadd.f32 %v7632_v20, %v7488_v18  ;;  %v7398_v37 = vadd.f32 %v13980_v7, %v7285_v28  ;;  %v7300_v15 = vadd.f32 %v9266_v3, %v15357_v45  ;;  %v6988_v55 = vpop.f32.mrf.mxu0  ;;  %v7497_v1 = vmax.f32 %v7401_v47, 0.0  ;;  %v15361_v18 = vld [vmem:[#allocation24_spill] sm:$0xff]  ;;  %v15362_v3 = vld [vmem:[#allocation82_spill] sm:$0xff] }
 0x414   : > { %v7596_v62 = vadd.f32 %v7595_v31, %v7487_v21  ;;  %v7489_v44 = vmax.f32 %v7393_v32, 0.0  ;;  %v7394_v8 = vadd.f32 %v13911_v0, %v7281_v9  ;;  %v7181_v29 = vpop.f32.mrf.mxu1  ;;  %v7283_v46 = vadd.f32 %v6988_v55, %v15358_v26 }
 0x415   : > { %v7634_v6 = vadd.f32 %v7633_v25, %v7491_v40  ;;  %v7494_v33 = vmax.f32 %v7398_v37, 0.0  ;;  %v7413_v38 = vadd.f32 %v13980_v7, %v7300_v15  ;;  %v7294_v56 = vadd.f32 %v7181_v29, %v15359_v16  ;;  %v6990_v42 = vpop.f32.mrf.mxu0 }
 0x416   : > { %v7560_v24 = vadd.f32 %v7559_v53, %v7489_v44  ;;  %v7490_v34 = vmax.f32 %v7394_v8, 0.0  ;;  %v7396_v11 = vadd.f32 %v13900_v4, %v7283_v46  ;;  %v9267_v60 = vpop.f32.mrf.mxu1  ;;  %v7284_v31 = vadd.f32 %v6990_v42, %v15360_v49  ;;  %v15363_v44 = vld [vmem:[#allocation84_spill] sm:$0xff] }
 0x417   : > { %v7635_v5 = vadd.f32 %v7634_v6, %v7494_v33  ;;  %v7407_v36 = vadd.f32 %v13980_v7, %v7294_v56  ;;  %v7303_v20 = vadd.f32 %v9267_v60, %v15361_v18  ;;  %v6994_v58 = vpop.f32.mrf.mxu0  ;;  %v7500_v22 = vmax.f32 %v7404_v30, 0.0  ;;  %v15364_v56 = vld [vmem:[#allocation156_spill] sm:$0xff] }
 0x418   : > { %v7597_v28 = vadd.f32 %v7596_v62, %v7490_v34  ;;  %v7492_v39 = vmax.f32 %v7396_v11, 0.0  ;;  %v7397_v21 = vadd.f32 %v13911_v0, %v7284_v31  ;;  %v7184_v32 = vpop.f32.mrf.mxu1  ;;  %v7286_v53 = vadd.f32 %v6994_v58, %v15362_v3 }
 0x419   : > { %v7636_v9 = vadd.f32 %v7635_v5, %v7497_v1  ;;  %v7416_v40 = vadd.f32 %v13980_v7, %v7303_v20  ;;  %v7297_v25 = vadd.f32 %v7184_v32, %v13795_v52  ;;  %v6996_v47 = vpop.f32.mrf.mxu0  ;;  %v7503_v8 = vmax.f32 %v7407_v36, 0.0  ;;  %v15365_v36 = vld [vmem:[#allocation160_spill] sm:$0xff] }
 0x41a   : > { %v7561_v37 = vadd.f32 %v7560_v24, %v7492_v39  ;;  %v7493_v45 = vmax.f32 %v7397_v21, 0.0  ;;  %v7399_v15 = vadd.f32 %v13900_v4, %v7286_v53  ;;  %v9270_v55 = vpop.f32.mrf.mxu1  ;;  %v7287_v62 = vadd.f32 %v6996_v47, %v15363_v44 }
 0x41b   : > { %v7637_v29 = vadd.f32 %v7636_v9, %v7500_v22  ;;  %v7410_v26 = vadd.f32 %v13980_v7, %v7297_v25  ;;  %v7312_v46 = vadd.f32 %v9270_v55, %v13808_v17  ;;  %v6998_v30 = vpop.f32.mrf.mxu0  ;;  %v7509_v20 = vmax.f32 %v7413_v38, 0.0  ;;  %v15366_v22 = vld [vmem:[#allocation162_spill] sm:$0xff] }
 0x41c   : > { %v7598_v6 = vadd.f32 %v7597_v28, %v7493_v45  ;;  %v7495_v33 = vmax.f32 %v7399_v15, 0.0  ;;  %v7400_v16 = vadd.f32 %v13911_v0, %v7287_v62  ;;  %v7197_v52 = vpop.f32.mrf.mxu1  ;;  %v7289_v42 = vadd.f32 %v6998_v30, %v15364_v56 }
 0x41d   : > { %v7638_v24 = vadd.f32 %v7637_v29, %v7503_v8  ;;  %v7506_v34 = vmax.f32 %v7410_v26, 0.0  ;;  %v7425_v11 = vadd.f32 %v13980_v7, %v7312_v46  ;;  %v7306_v60 = vadd.f32 %v7197_v52, %v13815_v14  ;;  %v7000_v49 = vpop.f32.mrf.mxu0 }
 0x41e   : > { %v7562_v31 = vadd.f32 %v7561_v37, %v7495_v33  ;;  %v7496_v1 = vmax.f32 %v7400_v16, 0.0  ;;  %v7402_v5 = vadd.f32 %v13900_v4, %v7289_v42  ;;  %v9271_v17 = vpop.f32.mrf.mxu1  ;;  %v7290_v18 = vadd.f32 %v7000_v49, %v15365_v36  ;;  %v15367_v16 = vld [vmem:[#allocation100_spill] sm:$0xff] }
 0x41f   : > { %v7639_v58 = vadd.f32 %v7638_v24, %v7506_v34  ;;  %v7419_v28 = vadd.f32 %v13980_v7, %v7306_v60  ;;  %v7315_v39 = vadd.f32 %v9271_v17, %v13823_v23  ;;  %v7004_v21 = vpop.f32.mrf.mxu0  ;;  %v7512_v25 = vmax.f32 %v7416_v40, 0.0  ;;  %v15368_v34 = vld [vmem:[#allocation95_spill] sm:$0xff] }
 0x420   : > { %v7599_v32 = vadd.f32 %v7598_v6, %v7496_v1  ;;  %v7498_v3 = vmax.f32 %v7402_v5, 0.0  ;;  %v7403_v53 = vadd.f32 %v13911_v0, %v7290_v18  ;;  %v7200_v14 = vpop.f32.mrf.mxu1  ;;  %v7292_v9 = vadd.f32 %v7004_v21, %v15366_v22 }
 0x421   : > { %v7640_v47 = vadd.f32 %v7639_v58, %v7509_v20  ;;  %v7428_v37 = vadd.f32 %v13980_v7, %v7315_v39  ;;  %v7309_v45 = vadd.f32 %v7200_v14, %v13831_v63  ;;  %v7006_v38 = vpop.f32.mrf.mxu0  ;;  %v7515_v8 = vmax.f32 %v7419_v28, 0.0  ;;  %v15369_v20 = vld [vmem:[#allocation30_spill] sm:$0xff] }
 0x422   : > { %v7563_v15 = vadd.f32 %v7562_v31, %v7498_v3  ;;  %v7499_v55 = vmax.f32 %v7403_v53, 0.0  ;;  %v7405_v44 = vadd.f32 %v13900_v4, %v7292_v9  ;;  %v9274_v23 = vpop.f32.mrf.mxu1  ;;  %v7293_v62 = vadd.f32 %v7006_v38, %v13992_v10 }
 0x423   : > { %v7641_v29 = vadd.f32 %v7640_v47, %v7512_v25  ;;  %v7422_v26 = vadd.f32 %v13980_v7, %v7309_v45  ;;  %v7324_v46 = vadd.f32 %v9274_v23, %v13839_v51  ;;  %v7008_v40 = vpop.f32.mrf.mxu0  ;;  %v7521_v17 = vmax.f32 %v7425_v11, 0.0  ;;  %v15370_v25 = vld [vmem:[#allocation14_spill] sm:$0xff] }
 0x424   : > { %v7600_v30 = vadd.f32 %v7599_v32, %v7499_v55  ;;  %v7501_v6 = vmax.f32 %v7405_v44, 0.0  ;;  %v7406_v33 = vadd.f32 %v13911_v0, %v7293_v62  ;;  %v7213_v63 = vpop.f32.mrf.mxu1  ;;  %v7295_v52 = vadd.f32 %v7008_v40, %v15367_v16  ;;  %v15372_v16 = vld [vmem:[#allocation22_spill] sm:$0xff] }
 0x425   : > { %v7642_v56 = vadd.f32 %v7641_v29, %v7515_v8  ;;  %v7518_v42 = vmax.f32 %v7422_v26, 0.0  ;;  %v7437_v24 = vadd.f32 %v13980_v7, %v7324_v46  ;;  %v7318_v10 = vadd.f32 %v7213_v63, %v15368_v34  ;;  %v7010_v60 = vpop.f32.mrf.mxu0  ;;  %v15371_v8 = vld [vmem:[#allocation15_spill] sm:$0xff] }
 0x426   : > { %v7564_v49 = vadd.f32 %v7563_v15, %v7501_v6  ;;  %v7502_v31 = vmax.f32 %v7406_v33, 0.0  ;;  %v7408_v1 = vadd.f32 %v13900_v4, %v7295_v52  ;;  %v9275_v51 = vpop.f32.mrf.mxu1  ;;  %v7296_v5 = vadd.f32 %v7010_v60, %v13996_v41 }
 0x427   : > { %v7643_v36 = vadd.f32 %v7642_v56, %v7518_v42  ;;  %v7431_v18 = vadd.f32 %v13980_v7, %v7318_v10  ;;  %v7327_v58 = vadd.f32 %v9275_v51, %v15369_v20  ;;  %v7014_v28 = vpop.f32.mrf.mxu0  ;;  %v7524_v14 = vmax.f32 %v7428_v37, 0.0  ;;  %v15373_v51 = vld [vmem:[#allocation18_spill] sm:$0xff] }
 0x428   : > { %v7601_v39 = vadd.f32 %v7600_v30, %v7502_v31  ;;  %v7504_v21 = vmax.f32 %v7408_v1, 0.0  ;;  %v7409_v32 = vadd.f32 %v13911_v0, %v7296_v5  ;;  %v7216_v3 = vpop.f32.mrf.mxu1  ;;  %v7298_v53 = vadd.f32 %v7014_v28, %v14006_v43 }
 0x429   : > { %v7644_v22 = vadd.f32 %v7643_v36, %v7521_v17  ;;  %v7440_v9 = vadd.f32 %v13980_v7, %v7327_v58  ;;  %v7321_v41 = vadd.f32 %v7216_v3, %v15370_v25  ;;  %v7016_v11 = vpop.f32.mrf.mxu0  ;;  %v7527_v44 = vmax.f32 %v7431_v18, 0.0  ;;  %v15375_v25 = vld [vmem:[#allocation157_spill] sm:$0xff] }
 0x42a   : > { %v7565_v47 = vadd.f32 %v7564_v49, %v7504_v21  ;;  %v7505_v45 = vmax.f32 %v7409_v32, 0.0  ;;  %v7411_v38 = vadd.f32 %v13900_v4, %v7298_v53  ;;  %v9278_v15 = vpop.f32.mrf.mxu1  ;;  %v7299_v55 = vadd.f32 %v7016_v11, %v14016_v19  ;;  %v15374_v32 = vld [vmem:[#allocation36_spill] sm:$0xff] }
 0x42b   : > { %v7645_v23 = vadd.f32 %v7644_v22, %v7524_v14  ;;  %v7434_v62 = vadd.f32 %v13980_v7, %v7321_v41  ;;  %v7336_v43 = vadd.f32 %v9278_v15, %v15371_v8  ;;  %v7018_v37 = vpop.f32.mrf.mxu0  ;;  %v7533_v49 = vmax.f32 %v7437_v24, 0.0  ;;  %v15376_v41 = vld [vmem:[#allocation106_spill] sm:$0xff] }
 0x42c   : > { %v7602_v29 = vadd.f32 %v7601_v39, %v7505_v45  ;;  %v7507_v26 = vmax.f32 %v7411_v38, 0.0  ;;  %v7412_v46 = vadd.f32 %v13911_v0, %v7299_v55  ;;  %v7229_v40 = vpop.f32.mrf.mxu1  ;;  %v7301_v30 = vadd.f32 %v7018_v37, %v14020_v48 }
 0x42d   : > { %v7646_v6 = vadd.f32 %v7645_v23, %v7527_v44  ;;  %v7530_v33 = vmax.f32 %v7434_v62, 0.0  ;;  %v7449_v63 = vadd.f32 %v13980_v7, %v7336_v43  ;;  %v7330_v19 = vadd.f32 %v7229_v40, %v15372_v16  ;;  %v7020_v52 = vpop.f32.mrf.mxu0  ;;  %v15377_v23 = vld [vmem:[#allocation150_spill] sm:$0xff]  ;;  %v15378_v62 = vld [vmem:[#allocation87_spill] sm:$0xff] }
 0x42e   : > { %v7566_v56 = vadd.f32 %v7565_v47, %v7507_v26  ;;  %v7508_v42 = vmax.f32 %v7412_v46, 0.0  ;;  %v7414_v34 = vadd.f32 %v13900_v4, %v7301_v30  ;;  %v9279_v10 = vpop.f32.mrf.mxu1  ;;  %v7302_v60 = vadd.f32 %v7020_v52, %v14029_v61  ;;  %v15379_v30 = vld [vmem:[#allocation72_spill] sm:$0xff] }
 0x42f   : > { %v7647_v31 = vadd.f32 %v7646_v6, %v7530_v33  ;;  %v7443_v1 = vadd.f32 %v13980_v7, %v7330_v19  ;;  %v7339_v48 = vadd.f32 %v9279_v10, %v15373_v51  ;;  %v7024_v5 = vpop.f32.mrf.mxu0  ;;  %v7536_v28 = vmax.f32 %v7440_v9, 0.0  ;;  %v15382_v10 = vld [vmem:[#allocation26_spill] sm:$0xff] }
 0x430   : > { %v7603_v17 = vadd.f32 %v7602_v29, %v7508_v42  ;;  %v7510_v36 = vmax.f32 %v7414_v34, 0.0  ;;  %v7415_v18 = vadd.f32 %v13911_v0, %v7302_v60  ;;  %v7232_v20 = vpop.f32.mrf.mxu1  ;;  %v7304_v58 = vadd.f32 %v7024_v5, %v14033_v27  ;;  %v15381_v34 = vld [vmem:[#allocation151_spill] sm:$0xff] }
 0x431   : > { %v7648_v39 = vadd.f32 %v7647_v31, %v7533_v49  ;;  %v7452_v21 = vadd.f32 %v13980_v7, %v7339_v48  ;;  %v7333_v61 = vadd.f32 %v7232_v20, %v15374_v32  ;;  %v7026_v24 = vpop.f32.mrf.mxu0  ;;  %v6526_v11 = vadd.f32 %v15376_v41, %v15375_v25 }
 0x432   : > { %v7567_v3 = vadd.f32 %v7566_v56, %v7510_v36  ;;  %v7511_v53 = vmax.f32 %v7415_v18, 0.0  ;;  %v7417_v14 = vadd.f32 %v13900_v4, %v7304_v58  ;;  %v7305_v22 = vadd.f32 %v7026_v24, %v14041_v50  ;;  %v15383_v36 = vld [vmem:[#allocation138_spill] sm:$0xff]  ;;  %v15385_v24 = vld [vmem:[#allocation63_spill] sm:$0xff] }
 0x433   : > { %v7539_v47 = vmax.f32 %v7443_v1, 0.0  ;;  %v7649_v45 = vadd.f32 %v7648_v39, %v7536_v28  ;;  %v7446_v27 = vadd.f32 %v13980_v7, %v7333_v61  ;;  %v7028_v9 = vpop.f32.mrf.mxu0  ;;  %v6528_v8 = vadd.f32 %v15378_v62, %v15377_v23  ;;  %v15380_v7 = vld [vmem:[#allocation10_spill] sm:$0xff]  ;;  %v15390_v23 = vld [vmem:[#allocation83_spill] sm:$0xff] }
 0x434   : > { %v7604_v38 = vadd.f32 %v7603_v17, %v7511_v53  ;;  %v7513_v15 = vmax.f32 %v7417_v14, 0.0  ;;  %v7418_v55 = vadd.f32 %v13911_v0, %v7305_v22  ;;  %v7307_v44 = vadd.f32 %v7028_v9, %v14045_v57 }
 0x435   : > { %v7650_v43 = vadd.f32 %v7649_v45, %v7539_v47  ;;  %v7542_v37 = vmax.f32 %v7446_v27, 0.0  ;;  %v7030_v50 = vpop.f32.mrf.mxu0  ;;  %v6529_v6 = vadd.f32 %v15380_v7, %v15379_v30  ;;  %v7545_v33 = vmax.f32 %v7449_v63, 0.0  ;;  %v15384_v63 = vld [vmem:[#allocation20_spill] sm:$0xff]  ;;  %v15388_v47 = vld [vmem:[#allocation11_spill] sm:$0xff] }
 0x436   : > { %v7568_v29 = vadd.f32 %v7567_v3, %v7513_v15  ;;  %v7514_v26 = vmax.f32 %v7418_v55, 0.0  ;;  %v7420_v46 = vadd.f32 %v13900_v4, %v7307_v44  ;;  %v7308_v40 = vadd.f32 %v7030_v50, %v6526_v11  ;;  %v15387_v11 = vld [vmem:[#allocation152_spill] sm:$0xff]  ;;  %v15389_v44 = vld [vmem:[#allocation67_spill] sm:$0xff] }
 0x437   : > { %v7651_v16 = vadd.f32 %v7650_v43, %v7542_v37  ;;  %v7034_v19 = vpop.f32.mrf.mxu0  ;;  %v6531_v60 = vadd.f32 %v15382_v10, %v15381_v34  ;;  %v7548_v49 = vmax.f32 %v7452_v21, 0.0  ;;  %v6532_v18 = vadd.f32 %v15384_v63, %v15383_v36  ;;  %v15386_v21 = vld [vmem:[#allocation89_spill] sm:$0xff] }
 0x438   : > { %v7605_v52 = vadd.f32 %v7604_v38, %v7514_v26  ;;  %v7516_v56 = vmax.f32 %v7420_v46, 0.0  ;;  %v7421_v57 = vadd.f32 %v13911_v0, %v7308_v40  ;;  %v7310_v42 = vadd.f32 %v7034_v19, %v6528_v8  ;;  %v15391_v26 = vld [vmem:[#allocation153_spill] sm:$0xff]  ;;  %v15392_v46 = vld [vmem:[#allocation108_spill] sm:$0xff]  ;;  %v15393_v19 = vld [vmem:[#allocation159_spill] sm:$0xff] }
 0x439   : > { %v7652_v31 = vadd.f32 %v7651_v16, %v7545_v33  ;;  %v7036_v1 = vpop.f32.mrf.mxu0  ;;  %v6534_v3 = vadd.f32 %v15386_v21, %v15385_v24  ;;  %v6535_v45 = vadd.f32 %v15388_v47, %v15387_v11  ;;  %v6537_v62 = vadd.f32 %v15390_v23, %v15389_v44  ;;  %v15397_v63 = vld [vmem:[#allocation73_spill] sm:$0xff]  ;;  %v15399_v21 = vld [vmem:[#allocation155_spill] sm:$0xff]  ;;  %v15401_v47 = vld [vmem:[#allocation140_spill] sm:$0xff] }
 0x43a   : > { %v7569_v51 = vadd.f32 %v7568_v29, %v7516_v56  ;;  %v7517_v48 = vmax.f32 %v7421_v57, 0.0  ;;  %v7423_v5 = vadd.f32 %v13900_v4, %v7310_v42  ;;  %v7311_v17 = vadd.f32 %v7036_v1, %v6529_v6  ;;  %v15403_v23 = vld [vmem:[#allocation69_spill] sm:$0xff] }
 0x43b   : > { %v14176_v20 = vadd.f32 %v7652_v31, %v7548_v49  ;;  %v7038_v58 = vpop.f32.mrf.mxu0  ;;  %v6538_v40 = vadd.f32 %v15392_v46, %v15391_v26  ;;  %v15395_v49 = vld [vmem:[#allocation154_spill] sm:$0xff] }
 0x43c   : > { %v7606_v28 = vadd.f32 %v7605_v52, %v7517_v48  ;;  %v7519_v39 = vmax.f32 %v7423_v5, 0.0  ;;  %v7424_v32 = vadd.f32 %v13911_v0, %v7311_v17  ;;  %v7313_v61 = vadd.f32 %v7038_v58, %v6531_v60  ;;  %v15394_v52 = vld [vmem:[#allocation12_spill] sm:$0xff]  ;;  %v15396_v31 = vld [vmem:[#allocation110_spill] sm:$0xff] }
 0x43d   : > { %v7040_v53 = vpop.f32.mrf.mxu0  ;;  %v6540_v56 = vadd.f32 %v15394_v52, %v15393_v19  ;;  %v6541_v1 = vadd.f32 %v15396_v31, %v15395_v49  ;;  %v15405_v46 = vld [vmem:[#allocation74_spill] sm:$0xff]  ;;  %v15408_v49 = vld [vmem:[#allocation75_spill] sm:$0xff] }
 0x43e   : > { %v7570_v14 = vadd.f32 %v7569_v51, %v7519_v39  ;;  %v7520_v22 = vmax.f32 %v7424_v32, 0.0  ;;  %v7426_v25 = vadd.f32 %v13900_v4, %v7313_v61  ;;  %v7314_v41 = vadd.f32 %v7040_v53, %v6532_v18  ;;  %v15398_v18 = vld [vmem:[#allocation164_spill] sm:$0xff]  ;;  %v15407_v52 = vld [vmem:[#allocation142_spill] sm:$0xff] }
 0x43f   : > { %v7044_v27 = vpop.f32.mrf.mxu0  ;;  %v6543_v58 = vadd.f32 %v15398_v18, %v15397_v63  ;;  %v6552_v31 = vadd.f32 %v13935_v12, %v15408_v49  ;;  %v7703_v49 = vld [vmem:[%s14363_s3 + $0x140] sm:$0xff] }
 0x440   : > { %v7607_v9 = vadd.f32 %v7606_v28, %v7520_v22  ;;  %v7522_v38 = vmax.f32 %v7426_v25, 0.0  ;;  %v7427_v15 = vadd.f32 %v13911_v0, %v7314_v41  ;;  %v7316_v55 = vadd.f32 %v7044_v27, %v6534_v3  ;;  %v15400_v3 = vld [vmem:[#allocation6_spill] sm:$0xff] }
 0x441   : > { %v7046_v8 = vpop.f32.mrf.mxu0  ;;  %v6544_v53 = vadd.f32 %v15400_v3, %v15399_v21 }
 0x442   : > { %v7571_v43 = vadd.f32 %v7570_v14, %v7522_v38  ;;  %v7523_v37 = vmax.f32 %v7427_v15, 0.0  ;;  %v7429_v50 = vadd.f32 %v13900_v4, %v7316_v55  ;;  %v7317_v29 = vadd.f32 %v7046_v8, %v6535_v45  ;;  %v15402_v45 = vld [vmem:[#allocation21_spill] sm:$0xff] }
 0x443   : > { %v7048_v30 = vpop.f32.mrf.mxu0  ;;  %v6546_v27 = vadd.f32 %v15402_v45, %v15401_v47 }
 0x444   : > { %v7608_v7 = vadd.f32 %v7607_v9, %v7523_v37  ;;  %v7525_v6 = vmax.f32 %v7429_v50, 0.0  ;;  %v7430_v33 = vadd.f32 %v13911_v0, %v7317_v29  ;;  %v7319_v16 = vadd.f32 %v7048_v30, %v6537_v62  ;;  %v15404_v62 = vld [vmem:[#allocation97_spill] sm:$0xff] }
 0x445   : > { %v7050_v57 = vpop.f32.mrf.mxu0  ;;  %v6547_v8 = vadd.f32 %v15404_v62, %v15403_v23 }
 0x446   : > { %v7572_v42 = vadd.f32 %v7571_v43, %v7525_v6  ;;  %v7526_v34 = vmax.f32 %v7430_v33, 0.0  ;;  %v7432_v10 = vadd.f32 %v13900_v4, %v7319_v16  ;;  %v7320_v60 = vadd.f32 %v7050_v57, %v6538_v40  ;;  %v15406_v40 = vld [vmem:[#allocation38_spill] sm:$0xff] }
 0x447   : > { %v7054_v51 = vpop.f32.mrf.mxu0  ;;  %v6549_v30 = vadd.f32 %v15406_v40, %v15405_v46 }
 0x448   : > { %v7609_v48 = vadd.f32 %v7608_v7, %v7526_v34  ;;  %v7528_v5 = vmax.f32 %v7432_v10, 0.0  ;;  %v7433_v17 = vadd.f32 %v13911_v0, %v7320_v60  ;;  %v7322_v36 = vadd.f32 %v7054_v51, %v6540_v56 }
 0x449   : > { %v7056_v28 = vpop.f32.mrf.mxu0  ;;  %v6550_v56 = vadd.f32 %v13931_v13, %v15407_v52  ;;  %v7708_v52 = vld [vmem:[%s14363_s3 + $0x168] sm:$0xff] }
 0x44a   : > { %v7573_v39 = vadd.f32 %v7572_v42, %v7528_v5  ;;  %v7529_v32 = vmax.f32 %v7433_v17, 0.0  ;;  %v7435_v61 = vadd.f32 %v13900_v4, %v7322_v36  ;;  %v7323_v24 = vadd.f32 %v7056_v28, %v6541_v1  ;;  %v15409_v36 = vld [vmem:[#allocation76_spill] sm:$0xff] }
 0x44b   : > { %v7058_v14 = vpop.f32.mrf.mxu0  ;;  %v6553_v63 = vadd.f32 %v13945_v54, %v15409_v36 }
 0x44c   : > { %v7610_v22 = vadd.f32 %v7609_v48, %v7529_v32  ;;  %v7531_v25 = vmax.f32 %v7435_v61, 0.0  ;;  %v7436_v41 = vadd.f32 %v13911_v0, %v7323_v24  ;;  %v7325_v11 = vadd.f32 %v7058_v14, %v6543_v58  ;;  %v15410_v32 = vld [vmem:[#allocation77_spill] sm:$0xff]  ;;  %v15411_v14 = vld [vmem:[#allocation78_spill] sm:$0xff] }
 0x44d   : > { %v7060_v9 = vpop.f32.mrf.mxu0  ;;  %v6555_v61 = vadd.f32 %v13956_v59, %v15410_v32  ;;  %v7855_v32 = vld [vmem:[%s14365_s5 + $0x10] sm:$0xff] }
 0x44e   : > { %v7574_v38 = vadd.f32 %v7573_v39, %v7531_v25  ;;  %v7532_v15 = vmax.f32 %v7436_v41, 0.0  ;;  %v7438_v55 = vadd.f32 %v13900_v4, %v7325_v11  ;;  %v7326_v44 = vadd.f32 %v7060_v9, %v6544_v53 }
 0x44f   : > { %v7064_v43 = vpop.f32.mrf.mxu0 }
 0x450   : > { %v7611_v37 = vadd.f32 %v7610_v22, %v7532_v15  ;;  %v7534_v50 = vmax.f32 %v7438_v55, 0.0  ;;  %v7439_v29 = vadd.f32 %v13911_v0, %v7326_v44  ;;  %v7328_v26 = vadd.f32 %v7064_v43, %v6546_v27 }
 0x451   : > { %v7066_v7 = vpop.f32.mrf.mxu0  ;;  %v6556_v22 = vadd.f32 %v13966_v35, %v15411_v14 }
 0x452   : > { %v7575_v6 = vadd.f32 %v7574_v38, %v7534_v50  ;;  %v7535_v33 = vmax.f32 %v7439_v29, 0.0  ;;  %v7441_v16 = vadd.f32 %v13900_v4, %v7328_v26  ;;  %v7329_v19 = vadd.f32 %v7066_v7, %v6547_v8 }
 0x453   : > { %v7068_v57 = vpop.f32.mrf.mxu0 }
 0x454   : > { %v7612_v42 = vadd.f32 %v7611_v37, %v7535_v33  ;;  %v7537_v34 = vmax.f32 %v7441_v16, 0.0  ;;  %v7442_v10 = vadd.f32 %v13911_v0, %v7329_v19  ;;  %v7331_v60 = vadd.f32 %v7068_v57, %v6549_v30  ;;  %v7709_v19 = vld [vmem:[%s14363_s3 + $0x170] sm:$0xff] }
 0x455   : > { %v7070_v1 = vpop.f32.mrf.mxu0  ;;  %v7654_v57 = vrot.slane %v14176_v20, 4 }
 0x456   : > { %v7576_v51 = vadd.f32 %v7575_v6, %v7537_v34  ;;  %v7538_v48 = vmax.f32 %v7442_v10, 0.0  ;;  %v7444_v5 = vadd.f32 %v13900_v4, %v7331_v60  ;;  %v7332_v17 = vadd.f32 %v7070_v1, %v6550_v56  ;;  %v7707_v56 = vld [vmem:[%s14363_s3 + $0x160] sm:$0xff]  ;;  %v7705_v34 = vld [vmem:[%s14363_s3 + $0x150] sm:$0xff]  ;;  %v7704_v60 = vld [vmem:[%s14363_s3 + $0x148] sm:$0xff] }
 0x457   : > { %v7074_v18 = vpop.f32.mrf.mxu0  ;;  %v7655_v10 = vadd.f32 %v7654_v57, %v14176_v20  ;;  %v7702_v20 = vld [vmem:[%s14363_s3 + $0x138] sm:$0xff]  ;;  %v7701_v1 = vld [vmem:[%s14363_s3 + $0x130] sm:$0xff] }
 0x458   : > { %v7613_v13 = vadd.f32 %v7612_v42, %v7538_v48  ;;  %v7540_v58 = vmax.f32 %v7444_v5, 0.0  ;;  %v7445_v28 = vadd.f32 %v13911_v0, %v7332_v17  ;;  %v7334_v39 = vadd.f32 %v7074_v18, %v6552_v31  ;;  %v7706_v42 = vld [vmem:[%s14363_s3 + $0x158] sm:$0xff]  ;;  %v7700_v48 = vld [vmem:[%s14363_s3 + $0x128] sm:$0xff]  ;;  %v7699_v5 = vld [vmem:[%s14363_s3 + $0x120] sm:$0xff] }
 0x459   : > { %v7076_v24 = vpop.f32.mrf.mxu0  ;;  %v7656_v31 = vrot.slane %v7655_v10, 2  ;;  %v7698_v17 = vld [vmem:[%s14363_s3 + $0x118] sm:$0xff]  ;;  %v7696_v18 = vld [vmem:[%s14363_s3 + $0x108] sm:$0xff] }
 0x45a   : > { %v7577_v12 = vadd.f32 %v7576_v51, %v7540_v58  ;;  %v7541_v21 = vmax.f32 %v7445_v28, 0.0  ;;  %v7447_v3 = vadd.f32 %v13900_v4, %v7334_v39  ;;  %v7335_v53 = vadd.f32 %v7076_v24, %v6553_v63  ;;  %v7697_v63 = vld [vmem:[%s14363_s3 + $0x110] sm:$0xff]  ;;  %v7695_v58 = vld [vmem:[%s14363_s3 + $0x100] sm:$0xff]  ;;  %v7856_v39 = vld [vmem:[%s14365_s5 + $0x18] sm:$0xff] }
 0x45b   : > { %v7078_v25 = vpop.f32.mrf.mxu0  ;;  %v7657_v51 = vadd.f32 %v7656_v31, %v7655_v10  ;;  %v7853_v24 = vld [vmem:[%s14365_s5] sm:$0xff] }
 0x45c   : > { %v7614_v54 = vadd.f32 %v7613_v13, %v7541_v21  ;;  %v7543_v41 = vmax.f32 %v7447_v3, 0.0  ;;  %v7448_v11 = vadd.f32 %v13911_v0, %v7335_v53  ;;  %v7337_v47 = vadd.f32 %v7078_v25, %v6555_v61  ;;  %v7854_v61 = vld [vmem:[%s14365_s5 + $0x8] sm:$0xff]  ;;  %v7711_v53 = vld [vmem:[%s14364_s4] sm:$0x1] }
 0x45d   : > { %v7080_v45 = vpop.f32.mrf.mxu0  ;;  %v7658_v36 = vrot.slane %v7657_v51, 1 }
 0x45e   : > { %v7578_v27 = vadd.f32 %v7577_v12, %v7543_v41  ;;  %v7544_v9 = vmax.f32 %v7448_v11, 0.0  ;;  %v7450_v59 = vadd.f32 %v13900_v4, %v7337_v47  ;;  %v7338_v38 = vadd.f32 %v7080_v45, %v6556_v22 }
 0x45f   : > { %v7659_v13 = vadd.f32 %v7658_v36, %v7657_v51 }
 0x460   : > { %v7615_v15 = vadd.f32 %v7614_v54, %v7544_v9  ;;  %v7546_v55 = vmax.f32 %v7450_v59, 0.0  ;;  %v7451_v44 = vadd.f32 %v13911_v0, %v7338_v38  ;;  %v7710_v0 = vld [vmem:[%s14363_s3 + $0x178] sm:$0xff] }
 0x461   : > { %v7662_v28 = vmul.f32 0.00390625, %v7659_v13 }
 0x462   : > { %v7579_v23 = vadd.f32 %v7578_v27, %v7546_v55  ;;  %v7547_v62 = vmax.f32 %v7451_v44, 0.0 }
 0x464   : > { %v7580_v8 = vrot.slane %v7579_v23, 4  ;;  %v7616_v35 = vadd.f32 %v7615_v15, %v7547_v62 }
 0x466   : > { %v7581_v43 = vadd.f32 %v7580_v8, %v7579_v23  ;;  %v7617_v37 = vrot.slane %v7616_v35, 4 }
 0x468   : > { %v7582_v50 = vrot.slane %v7581_v43, 2  ;;  %v7618_v29 = vadd.f32 %v7617_v37, %v7616_v35 }
 0x46a   : > { %v7583_v26 = vadd.f32 %v7582_v50, %v7581_v43  ;;  %v7619_v46 = vrot.slane %v7618_v29, 2 }
 0x46c   : > { %v7584_v40 = vrot.slane %v7583_v26, 1  ;;  %v7620_v30 = vadd.f32 %v7619_v46, %v7618_v29 }
 0x46e   : > { %v7621_v7 = vrot.slane %v7620_v30, 1  ;;  %v7585_v6 = vadd.f32 %v7584_v40, %v7583_v26 }
 0x470   : > { %v7622_v4 = vadd.f32 %v7621_v7, %v7620_v30  ;;  %v7660_v16 = vmul.f32 0.00390625, %v7585_v6 }
 0x472   : > { %v7661_v33 = vmul.f32 0.00390625, %v7622_v4 }
 0x474   : > { %7776 = vmatprep.mubr.f32.mxu1 %v7661_v33 }
 0x475   : > { %7777 = vmatmul.mubr.f32.vlgmr.msra.gmra.mxu1 %v7660_v16 }
 0x476   : > { %9281 = vmatpush3.msra.mxu1 %v7710_v0  ;;  %9312 = vmatprep.mubr.msk.f32.mxu1 %vm9505_vm8, %v9504_v2 }
 0x477   : > { %9282 = vmatprep.subr.mxu1 %v9504_v2 }
 0x478   : > { %9283 = vmatpush3.msra.mxu1 %v7709_v19 }
 0x479   : > { %9284 = vmatprep.subr.mxu1 %v9504_v2 }
 0x47a   : > { %9285 = vmatpush3.msra.mxu1 %v7708_v52 }
 0x47b   : > { %9286 = vmatprep.subr.mxu1 %v9504_v2 }
 0x47c   : > { %9287 = vmatpush3.msra.mxu1 %v7707_v56 }
 0x47d   : > { %9288 = vmatprep.subr.mxu1 %v9504_v2 }
 0x47e   : > { %9289 = vmatpush3.msra.mxu1 %v7706_v42 }
 0x47f   : > { %9290 = vmatprep.subr.mxu1 %v9504_v2 }
 0x480   : > { %9291 = vmatpush3.msra.mxu1 %v7705_v34 }
 0x481   : > { %9292 = vmatprep.subr.mxu1 %v9504_v2 }
 0x482   : > { %9293 = vmatpush3.msra.mxu1 %v7704_v60 }
 0x483   : > { %9294 = vmatprep.subr.mxu1 %v9504_v2 }
 0x484   : > { %9295 = vmatpush3.msra.mxu1 %v7703_v49 }
 0x485   : > { %9296 = vmatprep.subr.mxu1 %v9504_v2 }
 0x486   : > { %9297 = vmatpush3.msra.mxu1 %v7702_v20 }
 0x487   : > { %9298 = vmatprep.subr.mxu1 %v9504_v2 }
 0x488   : > { %9299 = vmatpush3.msra.mxu1 %v7701_v1 }
 0x489   : > { %9300 = vmatprep.subr.mxu1 %v9504_v2 }
 0x48a   : > { %9301 = vmatpush3.msra.mxu1 %v7700_v48 }
 0x48b   : > { %9302 = vmatprep.subr.mxu1 %v9504_v2 }
 0x48c   : > { %9303 = vmatpush3.msra.mxu1 %v7699_v5 }
 0x48d   : > { %9304 = vmatprep.subr.mxu1 %v9504_v2 }
 0x48e   : > { %9305 = vmatpush3.msra.mxu1 %v7698_v17 }
 0x48f   : > { %9306 = vmatprep.subr.mxu1 %v9504_v2 }
 0x490   : > { %9307 = vmatpush3.msra.mxu1 %v7697_v63 }
 0x491   : > { %9308 = vmatprep.subr.mxu1 %v9504_v2 }
 0x492   : > { %9309 = vmatpush3.msra.mxu1 %v7696_v18 }
 0x493   : > { %9310 = vmatprep.subr.mxu1 %v9504_v2 }
 0x494   : > { %9311 = vmatpush3.msra.mxu1 %v7695_v58 }
 0x495   : > { %9313 = vmatmul.mubr.f32.vlgmr.msra.gmra.mxu1 %v7662_v28  ;;  %9315 = vmatprep.subr.mxu1 %v9504_v2 }
 0x496   : > { %9323 = vmatprep.mubr.msk.f32.mxu1 %vm9505_vm8, %v9504_v2  ;;  %9316 = vmatpush3.msra.mxu1 %v7856_v39 }
 0x497   : > { %9317 = vmatprep.subr.mxu1 %v9504_v2 }
 0x498   : > { %9318 = vmatpush3.msra.mxu1 %v7855_v32 }
 0x499   : > { %9319 = vmatprep.subr.mxu1 %v9504_v2 }
 0x49a   : > { %9320 = vmatpush3.msra.mxu1 %v7854_v61 }
 0x49b   : > { %9321 = vmatprep.subr.mxu1 %v9504_v2  ;;  %v7857_v2 = vld [vmem:[%s14366_s6] sm:$0x1] }
 0x49c   : > { %9322 = vmatpush3.msra.mxu1 %v7853_v24 }
 0x535   : > { %v8949_v12 = vpop.f32.mrf.mxu1 }
 0x537   : > { %v8950_v21 = vpop.f32.mrf.mxu1 }
 0x538   : > { %v8951_v3 = vadd.f32 %v8950_v21, %v8949_v12 }
 0x53a   : > { %v7779_v14 = vadd.f32 %v8951_v3, %v7711_v53 }
 0x555   : > { %v7848_v22 = vpop.f32.mrf.mxu1 }
 0x556   : > { %v7849_v25 = vadd.f32 %v7848_v22, %v7779_v14 }
 0x557   : > { %v9314_v54 = vpop.f32.mrf.mxu1 }
 0x558   : > { %v7852_v41 = vmax.f32 %v7849_v25, 0.0 }
 0x55a   : > { %9324 = vmatmul.mubr.msk.f32.vlgmr.msra.gmra.mxu1 %vm7858_vm9, %v7852_v41 }
 0x61a   : > { %v7928_v11 = vpop.f32.mrf.mxu1 }
 0x61b   : > { %v7929_v47 = vadd.f32 %v7928_v11, %v7857_v2 }
 0x61c   : > { %v9325_v45 = vpop.f32.mrf.mxu1 }
 0x61d   : > { %7933 = vst.msk [vmem:[%s270_s21] sm:$0x1] %vm7932_vm10, %v7929_v47 }
 0x61e   : > { %9453 = shalt.err (!%p9450_p3)
}
 0x61f   : > { %s9454_s17 = scalar_lea.hbm %s14325_s9, 16  ;;  %s9458_s20 = scalar_lea.hbm %s14367_s7, 32 }
 0x620   : > { %p9455_p4 = scmp.ne.s32.totalorder %s14325_s9, %s9454_s17  ;;  %p9459_p9 = scmp.lt.s32.totalorder %s14325_s9, %s14367_s7 }
 0x621   : > { %p9460_p10 = scmp.lt.s32.totalorder %s9458_s20, %s9454_s17 }
 0x622   : > { %p9456_p7 = pnand %p9455_p4, %p9585_p5 }
 0x623   : > { %p9461_p11 = por %p9460_p10, %p9459_p9 }
 0x624   : > { %p9457_p8 = pneg %p9456_p7 }
 0x626   : > { %p9462_p12 = pnand %p9461_p11, %p9457_p8 }
 0x628   : > { %9465 = shalt.err (!%p9462_p12)
}
 0x629   : > { %9338 = dma.vmem_to_hbm [thread:$0]  (%p9585_p5), %s7948_s23, 16, %s14325_s9, %s7935_s13  }
 0x62a PF: > { %p9344_p13 = scmp.ge.s32.totalorder %s9500_s27, 2  ;;  %s7959_s29 = sand.u32 1, %s9488_s24  }
 0x62b   : > { %s7960_s8 = scalar_lea.sflag [#allocation3], %s7959_s29 }
 0x62c   : > { %p9341_p0 = pnand %p9344_p13, %p9589_p6 }
 0x62e   : > { %p9342_p1 = pneg %p9341_p0 }
 0x630   : > { %9483 = dma.done.wait (%p9342_p1), %s7960_s8, 16  }
 0x631   : > { %9485 = vsyncadd (%p9342_p1), %s7960_s8, 4294967280  ;;  %p17_p2 = scmp.ge.s32.totalorder %s9572_s30, 4   ;;  %s15412_s24 = smov %s9492_s25 }
 0x632   : > { %s15413_s25 = smov %s9496_s26  ;;  %s15414_s26 = smov %s9583_s10 }
 0x633   : > { %s15415_s27 = smov %s9572_s30  ;;  %19 = sbr.rel (!%p17_p2) target bundleno = 3 (0x3), region = 93 }
 0x638   :  { %7964 = vsyncpa [#allocation3], 1 }
 0x639   :  { %7966 = vsyncpa [#allocation3 + $0x1], 1 }

</bundles_post_ra>
